<compile_context>
chip_gen: v6e
topology: v6e:2x2x1
jax: 0.10.0
libtpu: 0.0.40
codegen_flags: <defaults>
</compile_context>

<pallas_src>
import functools

import jax
import jax.numpy as jnp
import numpy as np
from jax import lax
from jax.experimental import pallas as pl
from jax.experimental.pallas import tpu as pltpu


# ----------------------------------------------------------------------------
# Fused dense-block kernel (one batch element per grid step).
# ----------------------------------------------------------------------------
def _dense_block_kernel(x_ref, scat_ref, *rest, num_layers, growth):
    """Fused _DenseBlock forward for one batch element.

    x_ref    : (1, C0, HW)     block input, channels-first, HW on the lane axis
    scat_ref : (9, HW, HW)     0/1 scatter matrices for the 3x3 conv taps
    rest     : per-layer params (s1, b1, w1s, b2, w2p) * num_layers,
               followed by the output ref (1, C_total, HW).
               w1s already carries the folded BN2 scale.

    The output block is used as the persistent VMEM feature buffer: rows
    [0, C0) hold the input features, layer i appends its `growth` new rows.
    """
    o_ref = rest[5 * num_layers]
    c0 = x_ref.shape[1]
    hw = x_ref.shape[2]

    # Seed the feature buffer with the block input (it is also part of the
    # final torch.cat output).  Aligned, lane-dense store.
    o_ref[0, 0:c0, :] = x_ref[0]

    cin = c0
    for i in range(num_layers):                      # statically unrolled
        s1, b1, w1s, b2, w2p = rest[5 * i:5 * i + 5]

        # ---- BN1 (folded scale/bias) + ReLU over the channel-concat --------
        feat = o_ref[0, 0:cin, :]                    # (cin, HW), aligned read
        h = jnp.maximum(feat * s1[...] + b1[...], 0.0)

        # ---- conv1 (1x1) + BN2 scale (pre-folded) + BN2 bias + ReLU --------
        y = jnp.dot(w1s[...], h,                     # (Cmid, cin) @ (cin, HW)
                    preferred_element_type=jnp.float32)
        y = jnp.maximum(y + b2[...], 0.0)

        # ---- conv2: 3x3 "same" conv as matmuls ------------------------------
        # z[t*Cg + g, :] = sum_c w2[g, c, tap=t] * y[c, :]   (one K=Cmid matmul)
        # out           = sum_t z_t @ S_t                    (lane-dense scatter)
        z = jnp.dot(w2p[...], y,                     # (9*Cg, Cmid) @ (Cmid, HW)
                    preferred_element_type=jnp.float32)
        acc = jnp.dot(z[0:growth, :], scat_ref[0],
                      preferred_element_type=jnp.float32)
        for t in range(1, 9):
            acc = acc + jnp.dot(z[t * growth:(t + 1) * growth, :],
                                scat_ref[t],
                                preferred_element_type=jnp.float32)

        # ---- append the new features (aligned, lane-dense store) -----------
        o_ref[0, cin:cin + growth, :] = acc
        cin = cin + growth


def _full_spec(shape):
    zeros = (0,) * len(shape)
    return pl.BlockSpec(shape, lambda b, _z=zeros: _z)


def _make_scatter_mats(H, W):
    """0/1 scatter matrices: S[t, src, dst] for tap t = ky*3 + kx."""
    HW = H * W
    scat = np.zeros((9, HW, HW), np.float32)
    for ky in range(3):
        for kx in range(3):
            t = ky * 3 + kx
            for h in range(H):
                sh = h + ky - 1
                if not (0 <= sh < H):
                    continue
                for w in range(W):
                    sw = w + kx - 1
                    if 0 <= sw < W:
                        scat[t, sh * W + sw, h * W + w] = 1.0
    return jnp.asarray(scat)


# ----------------------------------------------------------------------------
# _DenseBlock wrapper: ONE pallas_call for the whole block, NCHW in/out.
# ----------------------------------------------------------------------------
def dense_block_pallas(x_nchw, params):
    """x_nchw: (N, C0, H, W) f32 -> (N, C0 + num_layers*growth, H, W) f32."""
    N, C0, H, W = x_nchw.shape
    HW = H * W
    num_layers = len(params)
    growth = params[0][4].shape[0] // 9          # w2 packed as (9*growth, Cmid)
    C_total = C0 + num_layers * growth

    scat = _make_scatter_mats(H, W)
    flat = [p for layer in params for p in layer]

    in_specs = [pl.BlockSpec((1, C0, HW), lambda b: (b, 0, 0)),
                _full_spec(scat.shape)]
    in_specs += [_full_spec(p.shape) for p in flat]

    kernel = functools.partial(_dense_block_kernel,
                               num_layers=num_layers, growth=growth)

    out = pl.pallas_call(
        kernel,
        out_shape=jax.ShapeDtypeStruct((N, C_total, HW), jnp.float32),
        grid=(N,),
        in_specs=in_specs,
        out_specs=pl.BlockSpec((1, C_total, HW), lambda b: (b, 0, 0)),
        compiler_params=pltpu.CompilerParams(
            dimension_semantics=("parallel",)),      # batch across TCs on v7x
    )(x_nchw.reshape(N, C0, HW), scat, *flat)

    return out.reshape(N, C_total, H, W)


# ----------------------------------------------------------------------------
# Pure-JAX reference (correctness check only), uses torch-layout weights.
# ----------------------------------------------------------------------------
def dense_block_ref(x_nchw, raw_params):
    feats = [x_nchw]
    for (s1, b1, w1, s2, b2, w2) in raw_params:
        cat = jnp.concatenate(feats, axis=1)
        h = jnp.maximum(cat * s1[None, :, None, None] + b1[None, :, None, None], 0.0)
        h = lax.conv_general_dilated(h, w1, (1, 1), "VALID",
                                     dimension_numbers=("NCHW", "OIHW", "NCHW"))
        h = jnp.maximum(h * s2[None, :, None, None] + b2[None, :, None, None], 0.0)
        h = lax.conv_general_dilated(h, w2, (1, 1), "SAME",
                                     dimension_numbers=("NCHW", "OIHW", "NCHW"))
        feats.append(h)
    return jnp.concatenate(feats, axis=1)


# ----------------------------------------------------------------------------
# Deterministic parameter init (shapes follow _DenseLayer.__init__).
# Returns (raw torch-layout params for the reference, packed kernel params).
# ----------------------------------------------------------------------------
def init_params(key, num_layers, num_input_features, bn_size, growth_rate):
    eps = 1e-5
    cmid = bn_size * growth_rate
    raw, packed = [], []
    for i in range(num_layers):
        cin = num_input_features + i * growth_rate
        ks = jax.random.split(jax.random.fold_in(key, i), 10)

        g1 = 1.0 + 0.1 * jax.random.normal(ks[0], (cin,), jnp.float32)
        be1 = 0.1 * jax.random.normal(ks[1], (cin,), jnp.float32)
        m1 = 0.1 * jax.random.normal(ks[2], (cin,), jnp.float32)
        v1 = 0.5 + jax.random.uniform(ks[3], (cin,), jnp.float32)

        g2 = 1.0 + 0.1 * jax.random.normal(ks[5], (cmid,), jnp.float32)
        be2 = 0.1 * jax.random.normal(ks[6], (cmid,), jnp.float32)
        m2 = 0.1 * jax.random.normal(ks[7], (cmid,), jnp.float32)
        v2 = 0.5 + jax.random.uniform(ks[8], (cmid,), jnp.float32)

        # conv weights in PyTorch OIHW layout
        w1 = 0.1 * jax.random.normal(ks[4], (cmid, cin, 1, 1), jnp.float32)
        w2 = 0.05 * jax.random.normal(ks[9], (growth_rate, cmid, 3, 3), jnp.float32)

        # inference-mode BN folded into per-channel scale/bias
        s1 = g1 / jnp.sqrt(v1 + eps)
        b1 = be1 - m1 * s1
        s2 = g2 / jnp.sqrt(v2 + eps)
        b2 = be2 - m2 * s2

        raw.append((s1, b1, w1, s2, b2, w2))

        # kernel layouts:
        #   scale/bias as (C, 1) columns (lane-broadcast),
        #   conv1 as (Cmid, Cin) with BN2 scale folded in (conv1 has no bias),
        #   conv2 packed tap-major as (9*growth, Cmid), row = (ky*3+kx)*growth + g.
        w1_k = s2[:, None] * w1[:, :, 0, 0]
        w2_k = jnp.transpose(w2, (2, 3, 0, 1)).reshape(9 * growth_rate, cmid)
        packed.append((s1[:, None], b1[:, None], w1_k,
                       b2[:, None], w2_k))
    return raw, packed


if __name__ == "__main__":
    # _DenseBlock(num_layers=3, num_input_features=8, bn_size=4,
    #             growth_rate=8, drop_rate=0.0)
    num_layers = 3
    num_input_features = 8
    bn_size = 4
    growth_rate = 8

    N, H, W = 2, 16, 16
    key = jax.random.PRNGKey(0)
    kx, kp = jax.random.split(key)

    x = jax.random.normal(kx, (N, num_input_features, H, W), jnp.float32)
    raw_params, packed_params = init_params(kp, num_layers, num_input_features,
                                            bn_size, growth_rate)

    out = jax.block_until_ready(dense_block_pallas(x, packed_params))

    expected_channels = num_input_features + num_layers * growth_rate
    assert out.shape == (N, expected_channels, H, W), out.shape

    ref = jax.block_until_ready(dense_block_ref(x, raw_params))
    np.testing.assert_allclose(np.asarray(out), np.asarray(ref),
                               rtol=1e-3, atol=1e-3)

    print("KERNEL_OK")
</pallas_src>

<mosaic_0001>
module attributes {stable_mosaic.version = 11 : i64} {
  func.func @_dense_block_kernel(%arg0: i32, %arg1: memref<1x8x256xf32, #tpu.memory_space<vmem>>, %arg2: memref<9x256x256xf32, #tpu.memory_space<vmem>>, %arg3: memref<8x1xf32, #tpu.memory_space<vmem>>, %arg4: memref<8x1xf32, #tpu.memory_space<vmem>>, %arg5: memref<32x8xf32, #tpu.memory_space<vmem>>, %arg6: memref<32x1xf32, #tpu.memory_space<vmem>>, %arg7: memref<72x32xf32, #tpu.memory_space<vmem>>, %arg8: memref<16x1xf32, #tpu.memory_space<vmem>>, %arg9: memref<16x1xf32, #tpu.memory_space<vmem>>, %arg10: memref<32x16xf32, #tpu.memory_space<vmem>>, %arg11: memref<32x1xf32, #tpu.memory_space<vmem>>, %arg12: memref<72x32xf32, #tpu.memory_space<vmem>>, %arg13: memref<24x1xf32, #tpu.memory_space<vmem>>, %arg14: memref<24x1xf32, #tpu.memory_space<vmem>>, %arg15: memref<32x24xf32, #tpu.memory_space<vmem>>, %arg16: memref<32x1xf32, #tpu.memory_space<vmem>>, %arg17: memref<72x32xf32, #tpu.memory_space<vmem>>, %arg18: memref<1x32x256xf32, #tpu.memory_space<vmem>>) attributes {dimension_semantics = [#tpu.dimension_semantics<parallel>], iteration_bounds = array<i64: 2>, scalar_prefetch = 0 : i64, scratch_operands = 0 : i64, tpu.core_type = #tpu.core_type<tc>, window_params = [{transform_indices = @transform_0, window_bounds = array<i64: 1, 8, 256>}, {pipeline_mode = #tpu.pipeline_mode<synchronous>, transform_indices = @transform_1, window_bounds = array<i64: 9, 256, 256>}, {pipeline_mode = #tpu.pipeline_mode<synchronous>, transform_indices = @transform_2, window_bounds = array<i64: 8, 1>}, {pipeline_mode = #tpu.pipeline_mode<synchronous>, transform_indices = @transform_3, window_bounds = array<i64: 8, 1>}, {pipeline_mode = #tpu.pipeline_mode<synchronous>, transform_indices = @transform_4, window_bounds = array<i64: 32, 8>}, {pipeline_mode = #tpu.pipeline_mode<synchronous>, transform_indices = @transform_5, window_bounds = array<i64: 32, 1>}, {pipeline_mode = #tpu.pipeline_mode<synchronous>, transform_indices = @transform_6, window_bounds = array<i64: 72, 32>}, {pipeline_mode = #tpu.pipeline_mode<synchronous>, transform_indices = @transform_7, window_bounds = array<i64: 16, 1>}, {pipeline_mode = #tpu.pipeline_mode<synchronous>, transform_indices = @transform_8, window_bounds = array<i64: 16, 1>}, {pipeline_mode = #tpu.pipeline_mode<synchronous>, transform_indices = @transform_9, window_bounds = array<i64: 32, 16>}, {pipeline_mode = #tpu.pipeline_mode<synchronous>, transform_indices = @transform_10, window_bounds = array<i64: 32, 1>}, {pipeline_mode = #tpu.pipeline_mode<synchronous>, transform_indices = @transform_11, window_bounds = array<i64: 72, 32>}, {pipeline_mode = #tpu.pipeline_mode<synchronous>, transform_indices = @transform_12, window_bounds = array<i64: 24, 1>}, {pipeline_mode = #tpu.pipeline_mode<synchronous>, transform_indices = @transform_13, window_bounds = array<i64: 24, 1>}, {pipeline_mode = #tpu.pipeline_mode<synchronous>, transform_indices = @transform_14, window_bounds = array<i64: 32, 24>}, {pipeline_mode = #tpu.pipeline_mode<synchronous>, transform_indices = @transform_15, window_bounds = array<i64: 32, 1>}, {pipeline_mode = #tpu.pipeline_mode<synchronous>, transform_indices = @transform_16, window_bounds = array<i64: 72, 32>}, {transform_indices = @transform_17, window_bounds = array<i64: 1, 32, 256>}]} {
    %c0 = arith.constant 0 : index
    %c0_0 = arith.constant 0 : index
    %c0_1 = arith.constant 0 : index
    %0 = vector.load %arg1[%c0, %c0_0, %c0_1] : memref<1x8x256xf32, #tpu.memory_space<vmem>>, vector<1x8x256xf32>
    %1 = vector.shape_cast %0 : vector<1x8x256xf32> to vector<8x256xf32>
    %c0_2 = arith.constant 0 : index
    %c0_3 = arith.constant 0 : index
    %c0_4 = arith.constant 0 : index
    %2 = vector.load %arg18[%c0_2, %c0_3, %c0_4] : memref<1x32x256xf32, #tpu.memory_space<vmem>>, vector<1x8x256xf32>
    %3 = vector.shape_cast %2 : vector<1x8x256xf32> to vector<8x256xf32>
    %4 = vector.shape_cast %1 : vector<8x256xf32> to vector<1x8x256xf32>
    tpu.vector_store %arg18[%c0_2, %c0_3, %c0_4], %4 {strides = array<i32>} : memref<1x32x256xf32, #tpu.memory_space<vmem>>, vector<1x8x256xf32>,
    %c0_5 = arith.constant 0 : index
    %c0_6 = arith.constant 0 : index
    %c0_7 = arith.constant 0 : index
    %5 = vector.load %arg18[%c0_5, %c0_6, %c0_7] : memref<1x32x256xf32, #tpu.memory_space<vmem>>, vector<1x8x256xf32>
    %6 = vector.shape_cast %5 : vector<1x8x256xf32> to vector<8x256xf32>
    %c0_8 = arith.constant 0 : index
    %c0_9 = arith.constant 0 : index
    %7 = vector.load %arg3[%c0_8, %c0_9] : memref<8x1xf32, #tpu.memory_space<vmem>>, vector<8x1xf32>
    %8 = vector.broadcast %7 : vector<8x1xf32> to vector<8x256xf32>
    %9 = arith.mulf %6, %8 : vector<8x256xf32>
    %c0_10 = arith.constant 0 : index
    %c0_11 = arith.constant 0 : index
    %10 = vector.load %arg4[%c0_10, %c0_11] : memref<8x1xf32, #tpu.memory_space<vmem>>, vector<8x1xf32>
    %11 = vector.broadcast %10 : vector<8x1xf32> to vector<8x256xf32>
    %12 = arith.addf %9, %11 : vector<8x256xf32>
    %cst = arith.constant 0.000000e+00 : f32
    %13 = vector.broadcast %cst : f32 to vector<8x256xf32>
    %14 = arith.maximumf %12, %13 : vector<8x256xf32>
    %c0_12 = arith.constant 0 : index
    %c0_13 = arith.constant 0 : index
    %15 = vector.load %arg5[%c0_12, %c0_13] : memref<32x8xf32, #tpu.memory_space<vmem>>, vector<32x8xf32>
    %cst_14 = arith.constant dense<0.000000e+00> : vector<32x256xf32>
    %16 = tpu.matmul %15, %14, %cst_14 {dimension_numbers = #tpu.dot_dimension_numbers<[1], [0], [0], [1], [0, 0, 1, 1], [], []>} : vector<32x8xf32>, vector<8x256xf32>, vector<32x256xf32> -> vector<32x256xf32>
    %c0_15 = arith.constant 0 : index
    %c0_16 = arith.constant 0 : index
    %17 = vector.load %arg6[%c0_15, %c0_16] : memref<32x1xf32, #tpu.memory_space<vmem>>, vector<32x1xf32>
    %18 = vector.broadcast %17 : vector<32x1xf32> to vector<32x256xf32>
    %19 = arith.addf %16, %18 : vector<32x256xf32>
    %cst_17 = arith.constant 0.000000e+00 : f32
    %20 = vector.broadcast %cst_17 : f32 to vector<32x256xf32>
    %21 = arith.maximumf %19, %20 : vector<32x256xf32>
    %c0_18 = arith.constant 0 : index
    %c0_19 = arith.constant 0 : index
    %22 = vector.load %arg7[%c0_18, %c0_19] : memref<72x32xf32, #tpu.memory_space<vmem>>, vector<72x32xf32>
    %cst_20 = arith.constant dense<0.000000e+00> : vector<72x256xf32>
    %23 = tpu.matmul %22, %21, %cst_20 {dimension_numbers = #tpu.dot_dimension_numbers<[1], [0], [0], [1], [0, 0, 1, 1], [], []>} : vector<72x32xf32>, vector<32x256xf32>, vector<72x256xf32> -> vector<72x256xf32>
    %24 = vector.extract_strided_slice %23 {offsets = [0, 0], sizes = [8, 256], strides = [1, 1]} : vector<72x256xf32> to vector<8x256xf32>
    %c0_21 = arith.constant 0 : index
    %c0_22 = arith.constant 0 : index
    %c0_23 = arith.constant 0 : index
    %25 = vector.load %arg2[%c0_21, %c0_22, %c0_23] : memref<9x256x256xf32, #tpu.memory_space<vmem>>, vector<1x256x256xf32>
    %26 = vector.shape_cast %25 : vector<1x256x256xf32> to vector<256x256xf32>
    %cst_24 = arith.constant dense<0.000000e+00> : vector<8x256xf32>
    %27 = tpu.matmul %24, %26, %cst_24 {dimension_numbers = #tpu.dot_dimension_numbers<[1], [0], [0], [1], [0, 0, 1, 1], [], []>} : vector<8x256xf32>, vector<256x256xf32>, vector<8x256xf32> -> vector<8x256xf32>
    %28 = vector.extract_strided_slice %23 {offsets = [8, 0], sizes = [8, 256], strides = [1, 1]} : vector<72x256xf32> to vector<8x256xf32>
    %c1 = arith.constant 1 : index
    %c0_25 = arith.constant 0 : index
    %c0_26 = arith.constant 0 : index
    %29 = vector.load %arg2[%c1, %c0_25, %c0_26] : memref<9x256x256xf32, #tpu.memory_space<vmem>>, vector<1x256x256xf32>
    %30 = vector.shape_cast %29 : vector<1x256x256xf32> to vector<256x256xf32>
    %cst_27 = arith.constant dense<0.000000e+00> : vector<8x256xf32>
    %31 = tpu.matmul %28, %30, %cst_27 {dimension_numbers = #tpu.dot_dimension_numbers<[1], [0], [0], [1], [0, 0, 1, 1], [], []>} : vector<8x256xf32>, vector<256x256xf32>, vector<8x256xf32> -> vector<8x256xf32>
    %32 = arith.addf %27, %31 : vector<8x256xf32>
    %33 = vector.extract_strided_slice %23 {offsets = [16, 0], sizes = [8, 256], strides = [1, 1]} : vector<72x256xf32> to vector<8x256xf32>
    %c2 = arith.constant 2 : index
    %c0_28 = arith.constant 0 : index
    %c0_29 = arith.constant 0 : index
    %34 = vector.load %arg2[%c2, %c0_28, %c0_29] : memref<9x256x256xf32, #tpu.memory_space<vmem>>, vector<1x256x256xf32>
    %35 = vector.shape_cast %34 : vector<1x256x256xf32> to vector<256x256xf32>
    %cst_30 = arith.constant dense<0.000000e+00> : vector<8x256xf32>
    %36 = tpu.matmul %33, %35, %cst_30 {dimension_numbers = #tpu.dot_dimension_numbers<[1], [0], [0], [1], [0, 0, 1, 1], [], []>} : vector<8x256xf32>, vector<256x256xf32>, vector<8x256xf32> -> vector<8x256xf32>
    %37 = arith.addf %32, %36 : vector<8x256xf32>
    %38 = vector.extract_strided_slice %23 {offsets = [24, 0], sizes = [8, 256], strides = [1, 1]} : vector<72x256xf32> to vector<8x256xf32>
    %c3 = arith.constant 3 : index
    %c0_31 = arith.constant 0 : index
    %c0_32 = arith.constant 0 : index
    %39 = vector.load %arg2[%c3, %c0_31, %c0_32] : memref<9x256x256xf32, #tpu.memory_space<vmem>>, vector<1x256x256xf32>
    %40 = vector.shape_cast %39 : vector<1x256x256xf32> to vector<256x256xf32>
    %cst_33 = arith.constant dense<0.000000e+00> : vector<8x256xf32>
    %41 = tpu.matmul %38, %40, %cst_33 {dimension_numbers = #tpu.dot_dimension_numbers<[1], [0], [0], [1], [0, 0, 1, 1], [], []>} : vector<8x256xf32>, vector<256x256xf32>, vector<8x256xf32> -> vector<8x256xf32>
    %42 = arith.addf %37, %41 : vector<8x256xf32>
    %43 = vector.extract_strided_slice %23 {offsets = [32, 0], sizes = [8, 256], strides = [1, 1]} : vector<72x256xf32> to vector<8x256xf32>
    %c4 = arith.constant 4 : index
    %c0_34 = arith.constant 0 : index
    %c0_35 = arith.constant 0 : index
    %44 = vector.load %arg2[%c4, %c0_34, %c0_35] : memref<9x256x256xf32, #tpu.memory_space<vmem>>, vector<1x256x256xf32>
    %45 = vector.shape_cast %44 : vector<1x256x256xf32> to vector<256x256xf32>
    %cst_36 = arith.constant dense<0.000000e+00> : vector<8x256xf32>
    %46 = tpu.matmul %43, %45, %cst_36 {dimension_numbers = #tpu.dot_dimension_numbers<[1], [0], [0], [1], [0, 0, 1, 1], [], []>} : vector<8x256xf32>, vector<256x256xf32>, vector<8x256xf32> -> vector<8x256xf32>
    %47 = arith.addf %42, %46 : vector<8x256xf32>
    %48 = vector.extract_strided_slice %23 {offsets = [40, 0], sizes = [8, 256], strides = [1, 1]} : vector<72x256xf32> to vector<8x256xf32>
    %c5 = arith.constant 5 : index
    %c0_37 = arith.constant 0 : index
    %c0_38 = arith.constant 0 : index
    %49 = vector.load %arg2[%c5, %c0_37, %c0_38] : memref<9x256x256xf32, #tpu.memory_space<vmem>>, vector<1x256x256xf32>
    %50 = vector.shape_cast %49 : vector<1x256x256xf32> to vector<256x256xf32>
    %cst_39 = arith.constant dense<0.000000e+00> : vector<8x256xf32>
    %51 = tpu.matmul %48, %50, %cst_39 {dimension_numbers = #tpu.dot_dimension_numbers<[1], [0], [0], [1], [0, 0, 1, 1], [], []>} : vector<8x256xf32>, vector<256x256xf32>, vector<8x256xf32> -> vector<8x256xf32>
    %52 = arith.addf %47, %51 : vector<8x256xf32>
    %53 = vector.extract_strided_slice %23 {offsets = [48, 0], sizes = [8, 256], strides = [1, 1]} : vector<72x256xf32> to vector<8x256xf32>
    %c6 = arith.constant 6 : index
    %c0_40 = arith.constant 0 : index
    %c0_41 = arith.constant 0 : index
    %54 = vector.load %arg2[%c6, %c0_40, %c0_41] : memref<9x256x256xf32, #tpu.memory_space<vmem>>, vector<1x256x256xf32>
    %55 = vector.shape_cast %54 : vector<1x256x256xf32> to vector<256x256xf32>
    %cst_42 = arith.constant dense<0.000000e+00> : vector<8x256xf32>
    %56 = tpu.matmul %53, %55, %cst_42 {dimension_numbers = #tpu.dot_dimension_numbers<[1], [0], [0], [1], [0, 0, 1, 1], [], []>} : vector<8x256xf32>, vector<256x256xf32>, vector<8x256xf32> -> vector<8x256xf32>
    %57 = arith.addf %52, %56 : vector<8x256xf32>
    %58 = vector.extract_strided_slice %23 {offsets = [56, 0], sizes = [8, 256], strides = [1, 1]} : vector<72x256xf32> to vector<8x256xf32>
    %c7 = arith.constant 7 : index
    %c0_43 = arith.constant 0 : index
    %c0_44 = arith.constant 0 : index
    %59 = vector.load %arg2[%c7, %c0_43, %c0_44] : memref<9x256x256xf32, #tpu.memory_space<vmem>>, vector<1x256x256xf32>
    %60 = vector.shape_cast %59 : vector<1x256x256xf32> to vector<256x256xf32>
    %cst_45 = arith.constant dense<0.000000e+00> : vector<8x256xf32>
    %61 = tpu.matmul %58, %60, %cst_45 {dimension_numbers = #tpu.dot_dimension_numbers<[1], [0], [0], [1], [0, 0, 1, 1], [], []>} : vector<8x256xf32>, vector<256x256xf32>, vector<8x256xf32> -> vector<8x256xf32>
    %62 = arith.addf %57, %61 : vector<8x256xf32>
    %63 = vector.extract_strided_slice %23 {offsets = [64, 0], sizes = [8, 256], strides = [1, 1]} : vector<72x256xf32> to vector<8x256xf32>
    %c8 = arith.constant 8 : index
    %c0_46 = arith.constant 0 : index
    %c0_47 = arith.constant 0 : index
    %64 = vector.load %arg2[%c8, %c0_46, %c0_47] : memref<9x256x256xf32, #tpu.memory_space<vmem>>, vector<1x256x256xf32>
    %65 = vector.shape_cast %64 : vector<1x256x256xf32> to vector<256x256xf32>
    %cst_48 = arith.constant dense<0.000000e+00> : vector<8x256xf32>
    %66 = tpu.matmul %63, %65, %cst_48 {dimension_numbers = #tpu.dot_dimension_numbers<[1], [0], [0], [1], [0, 0, 1, 1], [], []>} : vector<8x256xf32>, vector<256x256xf32>, vector<8x256xf32> -> vector<8x256xf32>
    %67 = arith.addf %62, %66 : vector<8x256xf32>
    %c0_49 = arith.constant 0 : index
    %c8_50 = arith.constant 8 : index
    %c0_51 = arith.constant 0 : index
    %68 = vector.load %arg18[%c0_49, %c8_50, %c0_51] : memref<1x32x256xf32, #tpu.memory_space<vmem>>, vector<1x8x256xf32>
    %69 = vector.shape_cast %68 : vector<1x8x256xf32> to vector<8x256xf32>
    %70 = vector.shape_cast %67 : vector<8x256xf32> to vector<1x8x256xf32>
    tpu.vector_store %arg18[%c0_49, %c8_50, %c0_51], %70 {strides = array<i32>} : memref<1x32x256xf32, #tpu.memory_space<vmem>>, vector<1x8x256xf32>,
    %c0_52 = arith.constant 0 : index
    %c0_53 = arith.constant 0 : index
    %c0_54 = arith.constant 0 : index
    %71 = vector.load %arg18[%c0_52, %c0_53, %c0_54] : memref<1x32x256xf32, #tpu.memory_space<vmem>>, vector<1x16x256xf32>
    %72 = vector.shape_cast %71 : vector<1x16x256xf32> to vector<16x256xf32>
    %c0_55 = arith.constant 0 : index
    %c0_56 = arith.constant 0 : index
    %73 = vector.load %arg8[%c0_55, %c0_56] : memref<16x1xf32, #tpu.memory_space<vmem>>, vector<16x1xf32>
    %74 = vector.broadcast %73 : vector<16x1xf32> to vector<16x256xf32>
    %75 = arith.mulf %72, %74 : vector<16x256xf32>
    %c0_57 = arith.constant 0 : index
    %c0_58 = arith.constant 0 : index
    %76 = vector.load %arg9[%c0_57, %c0_58] : memref<16x1xf32, #tpu.memory_space<vmem>>, vector<16x1xf32>
    %77 = vector.broadcast %76 : vector<16x1xf32> to vector<16x256xf32>
    %78 = arith.addf %75, %77 : vector<16x256xf32>
    %cst_59 = arith.constant 0.000000e+00 : f32
    %79 = vector.broadcast %cst_59 : f32 to vector<16x256xf32>
    %80 = arith.maximumf %78, %79 : vector<16x256xf32>
    %c0_60 = arith.constant 0 : index
    %c0_61 = arith.constant 0 : index
    %81 = vector.load %arg10[%c0_60, %c0_61] : memref<32x16xf32, #tpu.memory_space<vmem>>, vector<32x16xf32>
    %cst_62 = arith.constant dense<0.000000e+00> : vector<32x256xf32>
    %82 = tpu.matmul %81, %80, %cst_62 {dimension_numbers = #tpu.dot_dimension_numbers<[1], [0], [0], [1], [0, 0, 1, 1], [], []>} : vector<32x16xf32>, vector<16x256xf32>, vector<32x256xf32> -> vector<32x256xf32>
    %c0_63 = arith.constant 0 : index
    %c0_64 = arith.constant 0 : index
    %83 = vector.load %arg11[%c0_63, %c0_64] : memref<32x1xf32, #tpu.memory_space<vmem>>, vector<32x1xf32>
    %84 = vector.broadcast %83 : vector<32x1xf32> to vector<32x256xf32>
    %85 = arith.addf %82, %84 : vector<32x256xf32>
    %cst_65 = arith.constant 0.000000e+00 : f32
    %86 = vector.broadcast %cst_65 : f32 to vector<32x256xf32>
    %87 = arith.maximumf %85, %86 : vector<32x256xf32>
    %c0_66 = arith.constant 0 : index
    %c0_67 = arith.constant 0 : index
    %88 = vector.load %arg12[%c0_66, %c0_67] : memref<72x32xf32, #tpu.memory_space<vmem>>, vector<72x32xf32>
    %cst_68 = arith.constant dense<0.000000e+00> : vector<72x256xf32>
    %89 = tpu.matmul %88, %87, %cst_68 {dimension_numbers = #tpu.dot_dimension_numbers<[1], [0], [0], [1], [0, 0, 1, 1], [], []>} : vector<72x32xf32>, vector<32x256xf32>, vector<72x256xf32> -> vector<72x256xf32>
    %90 = vector.extract_strided_slice %89 {offsets = [0, 0], sizes = [8, 256], strides = [1, 1]} : vector<72x256xf32> to vector<8x256xf32>
    %c0_69 = arith.constant 0 : index
    %c0_70 = arith.constant 0 : index
    %c0_71 = arith.constant 0 : index
    %91 = vector.load %arg2[%c0_69, %c0_70, %c0_71] : memref<9x256x256xf32, #tpu.memory_space<vmem>>, vector<1x256x256xf32>
    %92 = vector.shape_cast %91 : vector<1x256x256xf32> to vector<256x256xf32>
    %cst_72 = arith.constant dense<0.000000e+00> : vector<8x256xf32>
    %93 = tpu.matmul %90, %92, %cst_72 {dimension_numbers = #tpu.dot_dimension_numbers<[1], [0], [0], [1], [0, 0, 1, 1], [], []>} : vector<8x256xf32>, vector<256x256xf32>, vector<8x256xf32> -> vector<8x256xf32>
    %94 = vector.extract_strided_slice %89 {offsets = [8, 0], sizes = [8, 256], strides = [1, 1]} : vector<72x256xf32> to vector<8x256xf32>
    %c1_73 = arith.constant 1 : index
    %c0_74 = arith.constant 0 : index
    %c0_75 = arith.constant 0 : index
    %95 = vector.load %arg2[%c1_73, %c0_74, %c0_75] : memref<9x256x256xf32, #tpu.memory_space<vmem>>, vector<1x256x256xf32>
    %96 = vector.shape_cast %95 : vector<1x256x256xf32> to vector<256x256xf32>
    %cst_76 = arith.constant dense<0.000000e+00> : vector<8x256xf32>
    %97 = tpu.matmul %94, %96, %cst_76 {dimension_numbers = #tpu.dot_dimension_numbers<[1], [0], [0], [1], [0, 0, 1, 1], [], []>} : vector<8x256xf32>, vector<256x256xf32>, vector<8x256xf32> -> vector<8x256xf32>
    %98 = arith.addf %93, %97 : vector<8x256xf32>
    %99 = vector.extract_strided_slice %89 {offsets = [16, 0], sizes = [8, 256], strides = [1, 1]} : vector<72x256xf32> to vector<8x256xf32>
    %c2_77 = arith.constant 2 : index
    %c0_78 = arith.constant 0 : index
    %c0_79 = arith.constant 0 : index
    %100 = vector.load %arg2[%c2_77, %c0_78, %c0_79] : memref<9x256x256xf32, #tpu.memory_space<vmem>>, vector<1x256x256xf32>
    %101 = vector.shape_cast %100 : vector<1x256x256xf32> to vector<256x256xf32>
    %cst_80 = arith.constant dense<0.000000e+00> : vector<8x256xf32>
    %102 = tpu.matmul %99, %101, %cst_80 {dimension_numbers = #tpu.dot_dimension_numbers<[1], [0], [0], [1], [0, 0, 1, 1], [], []>} : vector<8x256xf32>, vector<256x256xf32>, vector<8x256xf32> -> vector<8x256xf32>
    %103 = arith.addf %98, %102 : vector<8x256xf32>
    %104 = vector.extract_strided_slice %89 {offsets = [24, 0], sizes = [8, 256], strides = [1, 1]} : vector<72x256xf32> to vector<8x256xf32>
    %c3_81 = arith.constant 3 : index
    %c0_82 = arith.constant 0 : index
    %c0_83 = arith.constant 0 : index
    %105 = vector.load %arg2[%c3_81, %c0_82, %c0_83] : memref<9x256x256xf32, #tpu.memory_space<vmem>>, vector<1x256x256xf32>
    %106 = vector.shape_cast %105 : vector<1x256x256xf32> to vector<256x256xf32>
    %cst_84 = arith.constant dense<0.000000e+00> : vector<8x256xf32>
    %107 = tpu.matmul %104, %106, %cst_84 {dimension_numbers = #tpu.dot_dimension_numbers<[1], [0], [0], [1], [0, 0, 1, 1], [], []>} : vector<8x256xf32>, vector<256x256xf32>, vector<8x256xf32> -> vector<8x256xf32>
    %108 = arith.addf %103, %107 : vector<8x256xf32>
    %109 = vector.extract_strided_slice %89 {offsets = [32, 0], sizes = [8, 256], strides = [1, 1]} : vector<72x256xf32> to vector<8x256xf32>
    %c4_85 = arith.constant 4 : index
    %c0_86 = arith.constant 0 : index
    %c0_87 = arith.constant 0 : index
    %110 = vector.load %arg2[%c4_85, %c0_86, %c0_87] : memref<9x256x256xf32, #tpu.memory_space<vmem>>, vector<1x256x256xf32>
    %111 = vector.shape_cast %110 : vector<1x256x256xf32> to vector<256x256xf32>
    %cst_88 = arith.constant dense<0.000000e+00> : vector<8x256xf32>
    %112 = tpu.matmul %109, %111, %cst_88 {dimension_numbers = #tpu.dot_dimension_numbers<[1], [0], [0], [1], [0, 0, 1, 1], [], []>} : vector<8x256xf32>, vector<256x256xf32>, vector<8x256xf32> -> vector<8x256xf32>
    %113 = arith.addf %108, %112 : vector<8x256xf32>
    %114 = vector.extract_strided_slice %89 {offsets = [40, 0], sizes = [8, 256], strides = [1, 1]} : vector<72x256xf32> to vector<8x256xf32>
    %c5_89 = arith.constant 5 : index
    %c0_90 = arith.constant 0 : index
    %c0_91 = arith.constant 0 : index
    %115 = vector.load %arg2[%c5_89, %c0_90, %c0_91] : memref<9x256x256xf32, #tpu.memory_space<vmem>>, vector<1x256x256xf32>
    %116 = vector.shape_cast %115 : vector<1x256x256xf32> to vector<256x256xf32>
    %cst_92 = arith.constant dense<0.000000e+00> : vector<8x256xf32>
    %117 = tpu.matmul %114, %116, %cst_92 {dimension_numbers = #tpu.dot_dimension_numbers<[1], [0], [0], [1], [0, 0, 1, 1], [], []>} : vector<8x256xf32>, vector<256x256xf32>, vector<8x256xf32> -> vector<8x256xf32>
    %118 = arith.addf %113, %117 : vector<8x256xf32>
    %119 = vector.extract_strided_slice %89 {offsets = [48, 0], sizes = [8, 256], strides = [1, 1]} : vector<72x256xf32> to vector<8x256xf32>
    %c6_93 = arith.constant 6 : index
    %c0_94 = arith.constant 0 : index
    %c0_95 = arith.constant 0 : index
    %120 = vector.load %arg2[%c6_93, %c0_94, %c0_95] : memref<9x256x256xf32, #tpu.memory_space<vmem>>, vector<1x256x256xf32>
    %121 = vector.shape_cast %120 : vector<1x256x256xf32> to vector<256x256xf32>
    %cst_96 = arith.constant dense<0.000000e+00> : vector<8x256xf32>
    %122 = tpu.matmul %119, %121, %cst_96 {dimension_numbers = #tpu.dot_dimension_numbers<[1], [0], [0], [1], [0, 0, 1, 1], [], []>} : vector<8x256xf32>, vector<256x256xf32>, vector<8x256xf32> -> vector<8x256xf32>
    %123 = arith.addf %118, %122 : vector<8x256xf32>
    %124 = vector.extract_strided_slice %89 {offsets = [56, 0], sizes = [8, 256], strides = [1, 1]} : vector<72x256xf32> to vector<8x256xf32>
    %c7_97 = arith.constant 7 : index
    %c0_98 = arith.constant 0 : index
    %c0_99 = arith.constant 0 : index
    %125 = vector.load %arg2[%c7_97, %c0_98, %c0_99] : memref<9x256x256xf32, #tpu.memory_space<vmem>>, vector<1x256x256xf32>
    %126 = vector.shape_cast %125 : vector<1x256x256xf32> to vector<256x256xf32>
    %cst_100 = arith.constant dense<0.000000e+00> : vector<8x256xf32>
    %127 = tpu.matmul %124, %126, %cst_100 {dimension_numbers = #tpu.dot_dimension_numbers<[1], [0], [0], [1], [0, 0, 1, 1], [], []>} : vector<8x256xf32>, vector<256x256xf32>, vector<8x256xf32> -> vector<8x256xf32>
    %128 = arith.addf %123, %127 : vector<8x256xf32>
    %129 = vector.extract_strided_slice %89 {offsets = [64, 0], sizes = [8, 256], strides = [1, 1]} : vector<72x256xf32> to vector<8x256xf32>
    %c8_101 = arith.constant 8 : index
    %c0_102 = arith.constant 0 : index
    %c0_103 = arith.constant 0 : index
    %130 = vector.load %arg2[%c8_101, %c0_102, %c0_103] : memref<9x256x256xf32, #tpu.memory_space<vmem>>, vector<1x256x256xf32>
    %131 = vector.shape_cast %130 : vector<1x256x256xf32> to vector<256x256xf32>
    %cst_104 = arith.constant dense<0.000000e+00> : vector<8x256xf32>
    %132 = tpu.matmul %129, %131, %cst_104 {dimension_numbers = #tpu.dot_dimension_numbers<[1], [0], [0], [1], [0, 0, 1, 1], [], []>} : vector<8x256xf32>, vector<256x256xf32>, vector<8x256xf32> -> vector<8x256xf32>
    %133 = arith.addf %128, %132 : vector<8x256xf32>
    %c0_105 = arith.constant 0 : index
    %c16 = arith.constant 16 : index
    %c0_106 = arith.constant 0 : index
    %134 = vector.load %arg18[%c0_105, %c16, %c0_106] : memref<1x32x256xf32, #tpu.memory_space<vmem>>, vector<1x8x256xf32>
    %135 = vector.shape_cast %134 : vector<1x8x256xf32> to vector<8x256xf32>
    %136 = vector.shape_cast %133 : vector<8x256xf32> to vector<1x8x256xf32>
    tpu.vector_store %arg18[%c0_105, %c16, %c0_106], %136 {strides = array<i32>} : memref<1x32x256xf32, #tpu.memory_space<vmem>>, vector<1x8x256xf32>,
    %c0_107 = arith.constant 0 : index
    %c0_108 = arith.constant 0 : index
    %c0_109 = arith.constant 0 : index
    %137 = vector.load %arg18[%c0_107, %c0_108, %c0_109] : memref<1x32x256xf32, #tpu.memory_space<vmem>>, vector<1x24x256xf32>
    %138 = vector.shape_cast %137 : vector<1x24x256xf32> to vector<24x256xf32>
    %c0_110 = arith.constant 0 : index
    %c0_111 = arith.constant 0 : index
    %139 = vector.load %arg13[%c0_110, %c0_111] : memref<24x1xf32, #tpu.memory_space<vmem>>, vector<24x1xf32>
    %140 = vector.broadcast %139 : vector<24x1xf32> to vector<24x256xf32>
    %141 = arith.mulf %138, %140 : vector<24x256xf32>
    %c0_112 = arith.constant 0 : index
    %c0_113 = arith.constant 0 : index
    %142 = vector.load %arg14[%c0_112, %c0_113] : memref<24x1xf32, #tpu.memory_space<vmem>>, vector<24x1xf32>
    %143 = vector.broadcast %142 : vector<24x1xf32> to vector<24x256xf32>
    %144 = arith.addf %141, %143 : vector<24x256xf32>
    %cst_114 = arith.constant 0.000000e+00 : f32
    %145 = vector.broadcast %cst_114 : f32 to vector<24x256xf32>
    %146 = arith.maximumf %144, %145 : vector<24x256xf32>
    %c0_115 = arith.constant 0 : index
    %c0_116 = arith.constant 0 : index
    %147 = vector.load %arg15[%c0_115, %c0_116] : memref<32x24xf32, #tpu.memory_space<vmem>>, vector<32x24xf32>
    %cst_117 = arith.constant dense<0.000000e+00> : vector<32x256xf32>
    %148 = tpu.matmul %147, %146, %cst_117 {dimension_numbers = #tpu.dot_dimension_numbers<[1], [0], [0], [1], [0, 0, 1, 1], [], []>} : vector<32x24xf32>, vector<24x256xf32>, vector<32x256xf32> -> vector<32x256xf32>
    %c0_118 = arith.constant 0 : index
    %c0_119 = arith.constant 0 : index
    %149 = vector.load %arg16[%c0_118, %c0_119] : memref<32x1xf32, #tpu.memory_space<vmem>>, vector<32x1xf32>
    %150 = vector.broadcast %149 : vector<32x1xf32> to vector<32x256xf32>
    %151 = arith.addf %148, %150 : vector<32x256xf32>
    %cst_120 = arith.constant 0.000000e+00 : f32
    %152 = vector.broadcast %cst_120 : f32 to vector<32x256xf32>
    %153 = arith.maximumf %151, %152 : vector<32x256xf32>
    %c0_121 = arith.constant 0 : index
    %c0_122 = arith.constant 0 : index
    %154 = vector.load %arg17[%c0_121, %c0_122] : memref<72x32xf32, #tpu.memory_space<vmem>>, vector<72x32xf32>
    %cst_123 = arith.constant dense<0.000000e+00> : vector<72x256xf32>
    %155 = tpu.matmul %154, %153, %cst_123 {dimension_numbers = #tpu.dot_dimension_numbers<[1], [0], [0], [1], [0, 0, 1, 1], [], []>} : vector<72x32xf32>, vector<32x256xf32>, vector<72x256xf32> -> vector<72x256xf32>
    %156 = vector.extract_strided_slice %155 {offsets = [0, 0], sizes = [8, 256], strides = [1, 1]} : vector<72x256xf32> to vector<8x256xf32>
    %c0_124 = arith.constant 0 : index
    %c0_125 = arith.constant 0 : index
    %c0_126 = arith.constant 0 : index
    %157 = vector.load %arg2[%c0_124, %c0_125, %c0_126] : memref<9x256x256xf32, #tpu.memory_space<vmem>>, vector<1x256x256xf32>
    %158 = vector.shape_cast %157 : vector<1x256x256xf32> to vector<256x256xf32>
    %cst_127 = arith.constant dense<0.000000e+00> : vector<8x256xf32>
    %159 = tpu.matmul %156, %158, %cst_127 {dimension_numbers = #tpu.dot_dimension_numbers<[1], [0], [0], [1], [0, 0, 1, 1], [], []>} : vector<8x256xf32>, vector<256x256xf32>, vector<8x256xf32> -> vector<8x256xf32>
    %160 = vector.extract_strided_slice %155 {offsets = [8, 0], sizes = [8, 256], strides = [1, 1]} : vector<72x256xf32> to vector<8x256xf32>
    %c1_128 = arith.constant 1 : index
    %c0_129 = arith.constant 0 : index
    %c0_130 = arith.constant 0 : index
    %161 = vector.load %arg2[%c1_128, %c0_129, %c0_130] : memref<9x256x256xf32, #tpu.memory_space<vmem>>, vector<1x256x256xf32>
    %162 = vector.shape_cast %161 : vector<1x256x256xf32> to vector<256x256xf32>
    %cst_131 = arith.constant dense<0.000000e+00> : vector<8x256xf32>
    %163 = tpu.matmul %160, %162, %cst_131 {dimension_numbers = #tpu.dot_dimension_numbers<[1], [0], [0], [1], [0, 0, 1, 1], [], []>} : vector<8x256xf32>, vector<256x256xf32>, vector<8x256xf32> -> vector<8x256xf32>
    %164 = arith.addf %159, %163 : vector<8x256xf32>
    %165 = vector.extract_strided_slice %155 {offsets = [16, 0], sizes = [8, 256], strides = [1, 1]} : vector<72x256xf32> to vector<8x256xf32>
    %c2_132 = arith.constant 2 : index
    %c0_133 = arith.constant 0 : index
    %c0_134 = arith.constant 0 : index
    %166 = vector.load %arg2[%c2_132, %c0_133, %c0_134] : memref<9x256x256xf32, #tpu.memory_space<vmem>>, vector<1x256x256xf32>
    %167 = vector.shape_cast %166 : vector<1x256x256xf32> to vector<256x256xf32>
    %cst_135 = arith.constant dense<0.000000e+00> : vector<8x256xf32>
    %168 = tpu.matmul %165, %167, %cst_135 {dimension_numbers = #tpu.dot_dimension_numbers<[1], [0], [0], [1], [0, 0, 1, 1], [], []>} : vector<8x256xf32>, vector<256x256xf32>, vector<8x256xf32> -> vector<8x256xf32>
    %169 = arith.addf %164, %168 : vector<8x256xf32>
    %170 = vector.extract_strided_slice %155 {offsets = [24, 0], sizes = [8, 256], strides = [1, 1]} : vector<72x256xf32> to vector<8x256xf32>
    %c3_136 = arith.constant 3 : index
    %c0_137 = arith.constant 0 : index
    %c0_138 = arith.constant 0 : index
    %171 = vector.load %arg2[%c3_136, %c0_137, %c0_138] : memref<9x256x256xf32, #tpu.memory_space<vmem>>, vector<1x256x256xf32>
    %172 = vector.shape_cast %171 : vector<1x256x256xf32> to vector<256x256xf32>
    %cst_139 = arith.constant dense<0.000000e+00> : vector<8x256xf32>
    %173 = tpu.matmul %170, %172, %cst_139 {dimension_numbers = #tpu.dot_dimension_numbers<[1], [0], [0], [1], [0, 0, 1, 1], [], []>} : vector<8x256xf32>, vector<256x256xf32>, vector<8x256xf32> -> vector<8x256xf32>
    %174 = arith.addf %169, %173 : vector<8x256xf32>
    %175 = vector.extract_strided_slice %155 {offsets = [32, 0], sizes = [8, 256], strides = [1, 1]} : vector<72x256xf32> to vector<8x256xf32>
    %c4_140 = arith.constant 4 : index
    %c0_141 = arith.constant 0 : index
    %c0_142 = arith.constant 0 : index
    %176 = vector.load %arg2[%c4_140, %c0_141, %c0_142] : memref<9x256x256xf32, #tpu.memory_space<vmem>>, vector<1x256x256xf32>
    %177 = vector.shape_cast %176 : vector<1x256x256xf32> to vector<256x256xf32>
    %cst_143 = arith.constant dense<0.000000e+00> : vector<8x256xf32>
    %178 = tpu.matmul %175, %177, %cst_143 {dimension_numbers = #tpu.dot_dimension_numbers<[1], [0], [0], [1], [0, 0, 1, 1], [], []>} : vector<8x256xf32>, vector<256x256xf32>, vector<8x256xf32> -> vector<8x256xf32>
    %179 = arith.addf %174, %178 : vector<8x256xf32>
    %180 = vector.extract_strided_slice %155 {offsets = [40, 0], sizes = [8, 256], strides = [1, 1]} : vector<72x256xf32> to vector<8x256xf32>
    %c5_144 = arith.constant 5 : index
    %c0_145 = arith.constant 0 : index
    %c0_146 = arith.constant 0 : index
    %181 = vector.load %arg2[%c5_144, %c0_145, %c0_146] : memref<9x256x256xf32, #tpu.memory_space<vmem>>, vector<1x256x256xf32>
    %182 = vector.shape_cast %181 : vector<1x256x256xf32> to vector<256x256xf32>
    %cst_147 = arith.constant dense<0.000000e+00> : vector<8x256xf32>
    %183 = tpu.matmul %180, %182, %cst_147 {dimension_numbers = #tpu.dot_dimension_numbers<[1], [0], [0], [1], [0, 0, 1, 1], [], []>} : vector<8x256xf32>, vector<256x256xf32>, vector<8x256xf32> -> vector<8x256xf32>
    %184 = arith.addf %179, %183 : vector<8x256xf32>
    %185 = vector.extract_strided_slice %155 {offsets = [48, 0], sizes = [8, 256], strides = [1, 1]} : vector<72x256xf32> to vector<8x256xf32>
    %c6_148 = arith.constant 6 : index
    %c0_149 = arith.constant 0 : index
    %c0_150 = arith.constant 0 : index
    %186 = vector.load %arg2[%c6_148, %c0_149, %c0_150] : memref<9x256x256xf32, #tpu.memory_space<vmem>>, vector<1x256x256xf32>
    %187 = vector.shape_cast %186 : vector<1x256x256xf32> to vector<256x256xf32>
    %cst_151 = arith.constant dense<0.000000e+00> : vector<8x256xf32>
    %188 = tpu.matmul %185, %187, %cst_151 {dimension_numbers = #tpu.dot_dimension_numbers<[1], [0], [0], [1], [0, 0, 1, 1], [], []>} : vector<8x256xf32>, vector<256x256xf32>, vector<8x256xf32> -> vector<8x256xf32>
    %189 = arith.addf %184, %188 : vector<8x256xf32>
    %190 = vector.extract_strided_slice %155 {offsets = [56, 0], sizes = [8, 256], strides = [1, 1]} : vector<72x256xf32> to vector<8x256xf32>
    %c7_152 = arith.constant 7 : index
    %c0_153 = arith.constant 0 : index
    %c0_154 = arith.constant 0 : index
    %191 = vector.load %arg2[%c7_152, %c0_153, %c0_154] : memref<9x256x256xf32, #tpu.memory_space<vmem>>, vector<1x256x256xf32>
    %192 = vector.shape_cast %191 : vector<1x256x256xf32> to vector<256x256xf32>
    %cst_155 = arith.constant dense<0.000000e+00> : vector<8x256xf32>
    %193 = tpu.matmul %190, %192, %cst_155 {dimension_numbers = #tpu.dot_dimension_numbers<[1], [0], [0], [1], [0, 0, 1, 1], [], []>} : vector<8x256xf32>, vector<256x256xf32>, vector<8x256xf32> -> vector<8x256xf32>
    %194 = arith.addf %189, %193 : vector<8x256xf32>
    %195 = vector.extract_strided_slice %155 {offsets = [64, 0], sizes = [8, 256], strides = [1, 1]} : vector<72x256xf32> to vector<8x256xf32>
    %c8_156 = arith.constant 8 : index
    %c0_157 = arith.constant 0 : index
    %c0_158 = arith.constant 0 : index
    %196 = vector.load %arg2[%c8_156, %c0_157, %c0_158] : memref<9x256x256xf32, #tpu.memory_space<vmem>>, vector<1x256x256xf32>
    %197 = vector.shape_cast %196 : vector<1x256x256xf32> to vector<256x256xf32>
    %cst_159 = arith.constant dense<0.000000e+00> : vector<8x256xf32>
    %198 = tpu.matmul %195, %197, %cst_159 {dimension_numbers = #tpu.dot_dimension_numbers<[1], [0], [0], [1], [0, 0, 1, 1], [], []>} : vector<8x256xf32>, vector<256x256xf32>, vector<8x256xf32> -> vector<8x256xf32>
    %199 = arith.addf %194, %198 : vector<8x256xf32>
    %c0_160 = arith.constant 0 : index
    %c24 = arith.constant 24 : index
    %c0_161 = arith.constant 0 : index
    %200 = vector.load %arg18[%c0_160, %c24, %c0_161] : memref<1x32x256xf32, #tpu.memory_space<vmem>>, vector<1x8x256xf32>
    %201 = vector.shape_cast %200 : vector<1x8x256xf32> to vector<8x256xf32>
    %202 = vector.shape_cast %199 : vector<8x256xf32> to vector<1x8x256xf32>
    tpu.vector_store %arg18[%c0_160, %c24, %c0_161], %202 {strides = array<i32>} : memref<1x32x256xf32, #tpu.memory_space<vmem>>, vector<1x8x256xf32>,
    return
  }
  func.func @transform_0(%arg0: i32) -> (i32, i32, i32) {
    %c0_i32 = arith.constant 0 : i32
    %c0_i32_0 = arith.constant 0 : i32
    %c0_i32_1 = arith.constant 0 : i32
    return %arg0, %c0_i32, %c0_i32_0 : i32, i32, i32
  }
  func.func @transform_1(%arg0: i32) -> (i32, i32, i32) {
    %c0_i32 = arith.constant 0 : i32
    %c0_i32_0 = arith.constant 0 : i32
    %c0_i32_1 = arith.constant 0 : i32
    %c0_i32_2 = arith.constant 0 : i32
    return %c0_i32, %c0_i32_0, %c0_i32_1 : i32, i32, i32
  }
  func.func @transform_2(%arg0: i32) -> (i32, i32) {
    %c0_i32 = arith.constant 0 : i32
    %c0_i32_0 = arith.constant 0 : i32
    %c0_i32_1 = arith.constant 0 : i32
    return %c0_i32, %c0_i32_0 : i32, i32
  }
  func.func @transform_3(%arg0: i32) -> (i32, i32) {
    %c0_i32 = arith.constant 0 : i32
    %c0_i32_0 = arith.constant 0 : i32
    %c0_i32_1 = arith.constant 0 : i32
    return %c0_i32, %c0_i32_0 : i32, i32
  }
  func.func @transform_4(%arg0: i32) -> (i32, i32) {
    %c0_i32 = arith.constant 0 : i32
    %c0_i32_0 = arith.constant 0 : i32
    %c0_i32_1 = arith.constant 0 : i32
    return %c0_i32, %c0_i32_0 : i32, i32
  }
  func.func @transform_5(%arg0: i32) -> (i32, i32) {
    %c0_i32 = arith.constant 0 : i32
    %c0_i32_0 = arith.constant 0 : i32
    %c0_i32_1 = arith.constant 0 : i32
    return %c0_i32, %c0_i32_0 : i32, i32
  }
  func.func @transform_6(%arg0: i32) -> (i32, i32) {
    %c0_i32 = arith.constant 0 : i32
    %c0_i32_0 = arith.constant 0 : i32
    %c0_i32_1 = arith.constant 0 : i32
    return %c0_i32, %c0_i32_0 : i32, i32
  }
  func.func @transform_7(%arg0: i32) -> (i32, i32) {
    %c0_i32 = arith.constant 0 : i32
    %c0_i32_0 = arith.constant 0 : i32
    %c0_i32_1 = arith.constant 0 : i32
    return %c0_i32, %c0_i32_0 : i32, i32
  }
  func.func @transform_8(%arg0: i32) -> (i32, i32) {
    %c0_i32 = arith.constant 0 : i32
    %c0_i32_0 = arith.constant 0 : i32
    %c0_i32_1 = arith.constant 0 : i32
    return %c0_i32, %c0_i32_0 : i32, i32
  }
  func.func @transform_9(%arg0: i32) -> (i32, i32) {
    %c0_i32 = arith.constant 0 : i32
    %c0_i32_0 = arith.constant 0 : i32
    %c0_i32_1 = arith.constant 0 : i32
    return %c0_i32, %c0_i32_0 : i32, i32
  }
  func.func @transform_10(%arg0: i32) -> (i32, i32) {
    %c0_i32 = arith.constant 0 : i32
    %c0_i32_0 = arith.constant 0 : i32
    %c0_i32_1 = arith.constant 0 : i32
    return %c0_i32, %c0_i32_0 : i32, i32
  }
  func.func @transform_11(%arg0: i32) -> (i32, i32) {
    %c0_i32 = arith.constant 0 : i32
    %c0_i32_0 = arith.constant 0 : i32
    %c0_i32_1 = arith.constant 0 : i32
    return %c0_i32, %c0_i32_0 : i32, i32
  }
  func.func @transform_12(%arg0: i32) -> (i32, i32) {
    %c0_i32 = arith.constant 0 : i32
    %c0_i32_0 = arith.constant 0 : i32
    %c0_i32_1 = arith.constant 0 : i32
    return %c0_i32, %c0_i32_0 : i32, i32
  }
  func.func @transform_13(%arg0: i32) -> (i32, i32) {
    %c0_i32 = arith.constant 0 : i32
    %c0_i32_0 = arith.constant 0 : i32
    %c0_i32_1 = arith.constant 0 : i32
    return %c0_i32, %c0_i32_0 : i32, i32
  }
  func.func @transform_14(%arg0: i32) -> (i32, i32) {
    %c0_i32 = arith.constant 0 : i32
    %c0_i32_0 = arith.constant 0 : i32
    %c0_i32_1 = arith.constant 0 : i32
    return %c0_i32, %c0_i32_0 : i32, i32
  }
  func.func @transform_15(%arg0: i32) -> (i32, i32) {
    %c0_i32 = arith.constant 0 : i32
    %c0_i32_0 = arith.constant 0 : i32
    %c0_i32_1 = arith.constant 0 : i32
    return %c0_i32, %c0_i32_0 : i32, i32
  }
  func.func @transform_16(%arg0: i32) -> (i32, i32) {
    %c0_i32 = arith.constant 0 : i32
    %c0_i32_0 = arith.constant 0 : i32
    %c0_i32_1 = arith.constant 0 : i32
    return %c0_i32, %c0_i32_0 : i32, i32
  }
  func.func @transform_17(%arg0: i32) -> (i32, i32, i32) {
    %c0_i32 = arith.constant 0 : i32
    %c0_i32_0 = arith.constant 0 : i32
    %c0_i32_1 = arith.constant 0 : i32
    return %arg0, %c0_i32, %c0_i32_0 : i32, i32, i32
  }
}

</mosaic_0001>

<bundles_post_ra>
// kernel: tpu_custom_call.1
= control target key start
LH: loop header
LB: loop body
LE: loop exit
PB: predicated region body
PF: predicated region fallthrough
CT: control target
= control target key end

     0   :  { %s6202_s0 = inlined_call_operand.hbm [shape: f32[2,8,256], index: 0, kind: input, shape index: {}]   ;;  %s6203_s1 = inlined_call_operand.hbm [shape: f32[9,256,256], index: 1, kind: input, shape index: {}]   ;;  %s6204_s2 = inlined_call_operand.vmem [shape: f32[8,1], index: 2, kind: input, shape index: {}]   ;;  %s6205_s3 = inlined_call_operand.vmem [shape: f32[8,1], index: 3, kind: input, shape index: {}]   ;;  %s6206_s4 = inlined_call_operand.vmem [shape: f32[32,8], index: 4, kind: input, shape index: {}]   ;;  %s6207_s5 = inlined_call_operand.vmem [shape: f32[32,1], index: 5, kind: input, shape index: {}]   ;;  %s6208_s6 = inlined_call_operand.vmem [shape: f32[72,32], index: 6, kind: input, shape index: {}]   ;;  %s6209_s7 = inlined_call_operand.vmem [shape: f32[16,1], index: 7, kind: input, shape index: {}]   ;;  %s6210_s8 = inlined_call_operand.vmem [shape: f32[16,1], index: 8, kind: input, shape index: {}]   ;;  %s6211_s9 = inlined_call_operand.vmem [shape: f32[32,16], index: 9, kind: input, shape index: {}]   ;;  %s6212_s10 = inlined_call_operand.vmem [shape: f32[32,1], index: 10, kind: input, shape index: {}]   ;;  %s6213_s11 = inlined_call_operand.vmem [shape: f32[72,32], index: 11, kind: input, shape index: {}]   ;;  %s6214_s12 = inlined_call_operand.vmem [shape: f32[24,1], index: 12, kind: input, shape index: {}]   ;;  %s6215_s13 = inlined_call_operand.vmem [shape: f32[24,1], index: 13, kind: input, shape index: {}]   ;;  %s6216_s14 = inlined_call_operand.vmem [shape: f32[32,24], index: 14, kind: input, shape index: {}]   ;;  %s6217_s15 = inlined_call_operand.vmem [shape: f32[32,1], index: 15, kind: input, shape index: {}]   ;;  %s6218_s16 = inlined_call_operand.vmem [shape: f32[72,32], index: 16, kind: input, shape index: {}]   ;;  %s6219_s17 = inlined_call_operand.hbm [shape: f32[2,32,256], index: 17, kind: output, shape index: {}]  }
   0x1   :  { %6237 = sst [smem:[#allocation15_spill]] %s6202_s0 }
   0x2   :  { %6238 = sst [smem:[#allocation16_spill]] %s6203_s1 }
   0x3   :  { %6239 = sst [smem:[#allocation17_spill]] %s6204_s2 }
   0x4   :  { %6240 = sst [smem:[#allocation18_spill]] %s6205_s3 }
   0x5   :  { %6241 = sst [smem:[#allocation19_spill]] %s6206_s4 }
   0x6   :  { %6242 = sst [smem:[#allocation20_spill]] %s6208_s6 }
   0x7   :  { %6243 = sst [smem:[#allocation21_spill]] %s6211_s9 }
   0x8   :  { %6244 = sst [smem:[#allocation22_spill]] %s6213_s11 }
   0x9   :  { %6245 = sst [smem:[#allocation23_spill]] %s6216_s14 }
   0xa   :  { %6246 = sst [smem:[#allocation24_spill]] %s6218_s16 }
   0xb   :  { %6247 = sst [smem:[#allocation25_spill]] %s6219_s17 }
   0xc   :  { %22 = vsyncpa [#allocation3], 0 }
   0xd   :  { %24 = vsyncpa [#allocation3 + $0x1], 0 }
   0xe   :  { %25 = vsyncpa [#allocation6], 0 }
   0xf   :  { %26 = vsyncpa [#allocation4], 0 }
  0x10   :  { %28 = vsyncpa [#allocation4 + $0x1], 0  ;;  %s5731_s24 = smov 0   ;;  %s5733_s25 = smov 0  }
  0x11   :  { %s5735_s26 = smov 0   ;;  %s5737_s27 = smov 0  }
  0x12 LB: > { %6248 = sst [smem:[#allocation11_spill]] %s5618_s24  ;;  %s5752_s28 = sadd.s32 4294967295, %s5630_s27   ;;  %s5630_s27 = sphi %s5737_s27, %s6280_s27   ;;  %s5626_s26 = sphi %s5735_s26, %s6284_s26   ;;  %s5622_s25 = sphi %s5733_s25, %s6283_s25   ;;  %s5618_s24 = sphi %s5731_s24, %s6282_s24  }
  0x13   : > { %s5382_s29 = sadd.s32 4294967294, %s5630_s27   ;;  %p54_p0 = scmp.ne.s32.totalorder %s5622_s25, %s5618_s24 }
  0x14   : > { %p6232_p1 = scmp.eq.s32.totalorder %s5752_s28, 0  ;;  %p420_p3 = scmp.eq.s32.totalorder %s5382_s29, 1 }
  0x15   : > { %p5383_p5 = scmp.ge.s32.totalorder %s5630_s27, 1  ;;  %p427_p7 = scmp.lt.s32.totalorder %s5630_s27, 3 }
  0x16   : > { %p5761_p4 = por %p6232_p1, %p54_p0  ;;  %p5766_p6 = por %p420_p3, %p54_p0 }
  0x17   : > { %p5771_p8 = pnand %p5383_p5, %p427_p7  ;;  %s5632_s19 = smov [#allocation5]  }
  0x18   : > { %s6249_s0 = scalar_select %p5761_p4, 1, 0 }
  0x19   : > { %s6250_s30 = scalar_select %p5766_p6, 1, 0 }
  0x1a   : > { %s6252_s18 = scalar_select %p5771_p8, 1, 0 }
  0x1b   : > { %6251 = sst [smem:[#allocation12_spill]] %s6250_s30  ;;  %s439_s1 = sshll.u32 %s5632_s19, 4  ;;  %s440_s1 = int_to_ptr.vmem [resolvable:$true] %s439_s1 }
  0x1c   : > { %p5447_p9 = pneg %p5771_p8  ;;  %s5785_s21 = sadd.s32 1, %s5630_s27  }
  0x1d   : > { %6254 = sst [smem:[#allocation13_spill]] %s5785_s21  ;;  %s41_s22 = sadd.s32 1, %s5626_s26 }
  0x1e   : > { %p5780_p11 = pnand %p5447_p9, %p6232_p1  ;;  %s38_s23 = ssub.s32 %s5630_s27, %s5785_s21 }
  0x1f   : > { %s5519_s29 = scalar_lea.vmem %s440_s1, 73728  ;;  %p5527_p5 = scmp.lt.s32.totalorder %s440_s1, %s440_s1 }
  0x20   : > { %p5510_p12 = pneg %p5780_p11  ;;  %p5520_p13 = scmp.ne.s32.totalorder %s440_s1, %s5519_s29 }
  0x21   : > { %p5528_p7 = scmp.lt.s32.totalorder %s5519_s29, %s5519_s29 }
  0x22   : > { %p5522_p0 = pnand %p5520_p13, %p5510_p12 }
  0x23   : > { %p5529_p10 = por %p5528_p7, %p5527_p5 }
  0x24   : > { %p5523_p3 = pneg %p5522_p0 }
  0x26   : > { %p5530_p2 = pnand %p5529_p10, %p5523_p3 }
  0x28   : > { %5533 = shalt.err (!%p5530_p2)
}
  0x29   : > { %s5633_s19 = smov 256   ;;  %s5634_s21 = smov 16  }
  0x2a   : > { %s6255_s17 = sld [smem:[#allocation16_spill]]  ;;  %p39_p9 = scmp.eq.s32.totalorder %s38_s23, 0 }
  0x2b   : > { %p48_p12 = scmp.ne.s32.totalorder %s5626_s26, %s5622_s25  ;;  %p49_p10 = scmp.eq.s32.totalorder %s5630_s27, 0 }
  0x2c   : > { %p5460_p2 = scmp.lt.s32.totalorder %s5630_s27, 2  ;;  %p6257_p0 = scmp.eq.s32.totalorder %s5752_s28, 1 }
  0x2d   : > { %s5802_s29 = scalar_select %p39_p9, %s5626_s26, %s41_s22  }
  0x2e   : > { %p50_p13 = por %p49_p10, %p48_p12  ;;  %p5806_p3 = por %p6257_p0, %p48_p12 }
  0x2f   : > { %6256 = sst [smem:[#allocation14_spill]] %s5802_s29  ;;  %s498_s14 = sand.u32 1, %s5626_s26  }
  0x30   : > { %5450 = dma.hbm_to_vmem [thread:$0]  (!%p5780_p11), %s6255_s17, 73728, %s440_s1, [#allocation6], %s5633_s19, %s5633_s19, %s5634_s21  }
  0x31   : > { %s6258_s16 = scalar_select %p5806_p3, 1, 0 }
  0x32   : > { %s5437_s11 = sshll.u32 %s5630_s27, 8  ;;  %s5386_s9 = sshll.u32 %s498_s14, 4 }
  0x33   : > { %s6259_s4 = sld [smem:[#allocation15_spill]]  ;;  %s502_s17 = scalar_lea.vmem [#allocation2], %s5386_s9 }
  0x34   : > { %s510_s30 = sshll.u32 %s502_s17, 4  ;;  %p5817_p11 = pnand %p5460_p2, %p50_p13  ;;  %s511_s30 = int_to_ptr.vmem [resolvable:$true] %s510_s30 }
  0x35   : > { %s499_s21 = scalar_lea.sflag [#allocation3], %s498_s14 }
  0x36   : > { %p5536_p7 = pneg %p5817_p11 }
  0x39   : > { %s5815_s24 = scalar_lea.hbm %s6259_s4, %s5437_s11  ;;  %s5539_s23 = scalar_lea.hbm %s6259_s4, 512 }
  0x3a   : > { %s5534_s22 = scalar_lea.hbm %s5815_s24, 256  ;;  %p5540_p10 = scmp.lt.s32.totalorder %s5815_s24, %s6259_s4 }
  0x3b   : > { %p5535_p5 = scmp.ne.s32.totalorder %s5815_s24, %s5534_s22  ;;  %p5541_p2 = scmp.lt.s32.totalorder %s5539_s23, %s5534_s22 }
  0x3d   : > { %p5537_p9 = pnand %p5536_p7, %p5535_p5  ;;  %p5542_p13 = por %p5541_p2, %p5540_p10 }
  0x3f   : > { %p5538_p12 = pneg %p5537_p9 }
  0x41   : > { %p5543_p0 = pnand %p5542_p13, %p5538_p12 }
  0x43   : > { %5546 = shalt.err (!%p5543_p0)
}
  0x44   : > { %s5547_s20 = scalar_lea.vmem %s511_s30, 256  ;;  %s5635_s14 = smov [#allocation2]  }
  0x45   : > { %p5548_p1 = scmp.ne.s32.totalorder %s511_s30, %s5547_s20  ;;  %s5552_s17 = sshll.u32 %s5635_s14, 4  ;;  %s5553_s17 = int_to_ptr.vmem [resolvable:$false] %s5552_s17 }
  0x46   : > { %s5554_s29 = scalar_lea.vmem %s5553_s17, 512  ;;  %p5555_p5 = scmp.lt.s32.totalorder %s511_s30, %s5553_s17 }
  0x47   : > { %p5550_p6 = pnand %p5548_p1, %p5536_p7  ;;  %p5556_p9 = scmp.lt.s32.totalorder %s5554_s29, %s5547_s20 }
  0x49   : > { %p5551_p3 = pneg %p5550_p6  ;;  %p5557_p4 = por %p5556_p9, %p5555_p5 }
  0x4b   : > { %p5558_p8 = pnand %p5557_p4, %p5551_p3 }
  0x4d   : > { %5561 = shalt.err (!%p5558_p8)
}
  0x4e   : > { %5454 = dma.hbm_to_vmem [thread:$0]  (!%p5817_p11), %s5815_s24, 256, %s511_s30, %s499_s21  }
  0x4f   : > { %p6261_p12 = scmp.ne.s32.totalorder %s6252_s18, 0 }
  0x50   : > { %s5838_s22 = sand.u32 (!%p6261_p12), 1, %s5622_s25   ;;  %p6262_p1 = scmp.ne.s32.totalorder (!%p6261_p12), %s6249_s0, 0 }
  0x51   : > { %519 = sbr.rel (%p6261_p12) target bundleno = 2895 (0xb4f), region = 88  ;;  %s5390_s6 = sshll.u32 (!%p6261_p12), %s5838_s22, 4 }
  0x52   : > { %s522_s11 = scalar_lea.sflag (!%p6261_p12), [#allocation3], %s5838_s22  ;;  %s525_s23 = scalar_lea.vmem (!%p6261_p12), [#allocation2], %s5390_s6 }
  0x56   : > { %5605 = dma.done.wait (%p6262_p1), %s522_s11, 256  }
  0x57   : > { %5607 = vsyncadd (%p6262_p1), %s522_s11, 4294967040  ;;  %p6263_p4 = scmp.eq.s32.totalorder %s5752_s28, 0 }
  0x59   : > { %5609 = dma.done.wait (%p6263_p4), [#allocation6], 73728   ;;  %p6264_p6 = pmov %p6263_p4 }
  0x5a   : > { %v5636_v0 = vmov 0   ;;  %s6265_s2 = sld [smem:[#allocation17_spill]]  ;;  %s5392_s24 = sshll.u32 %s5838_s22, 6  ;;  %v580_v3 = vld [vmem:[%s525_s23] sm:$0xff]  ;;  %v581_v4 = vld [vmem:[%s525_s23 + $0x8] sm:$0xff]  ;;  %v5637_v6 = vmov 0.0  }
  0x5b   : > { %5611 = vsyncadd (%p6264_p6), [#allocation6], 4294893568  ;;  %5502 = vset.pattern.permute.xlu0 %v5636_v0  ;;  %5503 = vset.pattern.permute.xlu1 %v5636_v0  ;;  %s6266_s3 = sld [smem:[#allocation18_spill]]  ;;  %s5857_s0 = scalar_lea.vmem [#allocation7], %s5392_s24  ;;  %v609_v5 = vld [vmem:[%s6207_s5 + $0x8] sm:$0xff]  ;;  %v2184_v9 = vld [vmem:[%s6212_s10 + $0x18] sm:$0xff] }
  0x5c   : > { %582 = vst [vmem:[%s5857_s0] sm:$0xff] %v580_v3  ;;  %583 = vst [vmem:[%s5857_s0 + $0x8] sm:$0xff] %v581_v4  ;;  %709 = vmatprep.mubr.f32.mxu1 %v5637_v6  ;;  %v2142_v7 = vld [vmem:[%s6209_s7 + $0x8] sm:$0xff]  ;;  %v3709_v11 = vld [vmem:[%s6214_s12 + $0x10] sm:$0xff]  ;;  %s6267_s14 = sld [smem:[#allocation19_spill]]  ;;  %vm632_vm0 = vcmask 64512   ;;  %vm751_vm1 = vcmask 261120  }
  0x5d   : > { %v2158_v8 = vld [vmem:[%s6210_s8 + $0x8] sm:$0xff]  ;;  %v3733_v12 = vld [vmem:[%s6215_s13 + $0x10] sm:$0xff]  ;;  %v3768_v14 = vld [vmem:[%s6217_s15 + $0x18] sm:$0xff]  ;;  %s6268_s1 = sld [smem:[#allocation20_spill]]  ;;  %vm2205_vm2 = vcmask 130048   ;;  %vm3789_vm3 = vcmask 195584  }
  0x5e   : > { %v2182_v10 = vld [vmem:[%s6212_s10 + $0x8] sm:$0xff]  ;;  %v611_v15 = vld [vmem:[%s6207_s5 + $0x18] sm:$0xff]  ;;  %v610_v17 = vld [vmem:[%s6207_s5 + $0x10] sm:$0xff]  ;;  %s6269_s11 = sld [smem:[#allocation21_spill]]  ;;  %s5438_s9 = sshll.u32 %s5752_s28, 10 }
  0x5f   : > { %v3732_v13 = vld [vmem:[%s6215_s13 + $0x8] sm:$0xff]  ;;  %629 = vperm.xlu1 %5503, %v611_v15   ;;  %v608_v18 = vld [vmem:[%s6207_s5] sm:$0xff]  ;;  %v2183_v21 = vld [vmem:[%s6212_s10 + $0x10] sm:$0xff]  ;;  %s6270_s20 = sld [smem:[#allocation22_spill]]  ;;  %s5299_s17 = sshll.u32 %s5857_s0, 4  ;;  %s6157_s17 = int_to_ptr.vmem [resolvable:$true] %s5299_s17 }
  0x60   : > { %v586_v1 = vld [vmem:[%s6265_s2] sm:$0xff]  ;;  %v3766_v16 = vld [vmem:[%s6217_s15 + $0x8] sm:$0xff]  ;;  %v3767_v26 = vld [vmem:[%s6217_s15 + $0x10] sm:$0xff]  ;;  %s6271_s19 = sld [smem:[#allocation23_spill]]  ;;  %s5562_s28 = scalar_lea.vmem %s6157_s17, 1024 }
  0x61   : > { %589 = vperm.xlu0 %5502, %v586_v1   ;;  %v594_v2 = vld [vmem:[%s6266_s3] sm:$0xff]  ;;  %v3708_v23 = vld [vmem:[%s6214_s12 + $0x8] sm:$0xff]  ;;  %v994_v40 = vld [vmem:[#allocation5 + $0x2f8] sm:$0xff]  ;;  %s6272_s21 = sld [smem:[#allocation24_spill]]  ;;  %p5563_p8 = scmp.ne.s32.totalorder %s6157_s17, %s5562_s28 }
  0x62   : > { %v2141_v19 = vld [vmem:[%s6209_s7] sm:$0xff]  ;;  %v605_v37 = vld [vmem:[%s6267_s14 + $0x8] sm:$0xff]  ;;  %v606_v38 = vld [vmem:[%s6267_s14 + $0x10] sm:$0xff]  ;;  %1027 = vmatprep.subr.mxu0 %v994_v40  ;;  %s6273_s18 = sld [smem:[#allocation25_spill]]  ;;  %p6274_p3 = scmp.ne.s32.totalorder %s6258_s16, 0 }
  0x63   : > { %624 = vperm.xlu1 %5503, %v610_v17   ;;  %v2157_v20 = vld [vmem:[%s6210_s8] sm:$0xff]  ;;  %v607_v39 = vld [vmem:[%s6267_s14 + $0x18] sm:$0xff]  ;;  %v993_v41 = vld [vmem:[#allocation5 + $0x2f0] sm:$0xff]  ;;  %s5638_s30 = smov [#allocation7]  }
  0x64   : > { %v2181_v22 = vld [vmem:[%s6212_s10] sm:$0xff]  ;;  %1028 = vmatpush1.msra.mxu0 %v993_v41  ;;  %v992_v42 = vld [vmem:[#allocation5 + $0x2e8] sm:$0xff]  ;;  %v990_v44 = vld [vmem:[#allocation5 + $0x2d8] sm:$0xff]  ;;  %p5564_p11 = pnand %p5563_p8, %p6274_p3 }
  0x65   : > { %597 = vperm.xlu0 %5502, %v594_v2   ;;  %v3707_v24 = vld [vmem:[%s6214_s12] sm:$0xff]  ;;  %1029 = vmatprep.subr.mxu0 %v992_v42  ;;  %v989_v45 = vld [vmem:[#allocation5 + $0x2d0] sm:$0xff]  ;;  %v988_v46 = vld [vmem:[#allocation5 + $0x2c8] sm:$0xff] }
  0x66   : > { %v3731_v25 = vld [vmem:[%s6215_s13] sm:$0xff]  ;;  %v986_v48 = vld [vmem:[#allocation5 + $0x2b8] sm:$0xff]  ;;  %v985_v49 = vld [vmem:[#allocation5 + $0x2b0] sm:$0xff]  ;;  %p5565_p7 = pneg %p5564_p11 }
  0x67   : > { %614 = vperm.xlu1 %5503, %v608_v18   ;;  %v3765_v27 = vld [vmem:[%s6217_s15] sm:$0xff]  ;;  %v984_v50 = vld [vmem:[#allocation5 + $0x2a8] sm:$0xff]  ;;  %v982_v52 = vld [vmem:[#allocation5 + $0x298] sm:$0xff] }
  0x68   : > { %v604_v36 = vld [vmem:[%s6267_s14] sm:$0xff]  ;;  %v981_v53 = vld [vmem:[#allocation5 + $0x290] sm:$0xff]  ;;  %v980_v54 = vld [vmem:[#allocation5 + $0x288] sm:$0xff]  ;;  %s6155_s29 = scalar_lea.hbm %s6273_s18, %s5438_s9 }
  0x69   : > { %619 = vperm.xlu0 %5502, %v609_v5   ;;  %v991_v43 = vld [vmem:[#allocation5 + $0x2e0] sm:$0xff]  ;;  %v978_v56 = vld [vmem:[#allocation5 + $0x278] sm:$0xff]  ;;  %v977_v57 = vld [vmem:[#allocation5 + $0x270] sm:$0xff] }
  0x6a   : > { %1030 = vmatpush1.msra.mxu0 %v991_v43  ;;  %v987_v47 = vld [vmem:[#allocation5 + $0x2c0] sm:$0xff]  ;;  %v976_v58 = vld [vmem:[#allocation5 + $0x268] sm:$0xff]  ;;  %v974_v60 = vld [vmem:[#allocation5 + $0x258] sm:$0xff] }
  0x6b   : > { %2145 = vperm.xlu1 %5503, %v2141_v19   ;;  %1031 = vmatprep.subr.mxu0 %v990_v44  ;;  %v983_v51 = vld [vmem:[#allocation5 + $0x2a0] sm:$0xff]  ;;  %v973_v61 = vld [vmem:[#allocation5 + $0x250] sm:$0xff]  ;;  %v972_v62 = vld [vmem:[#allocation5 + $0x248] sm:$0xff] }
  0x6c   : > { %1032 = vmatpush1.msra.mxu0 %v989_v45  ;;  %v979_v55 = vld [vmem:[#allocation5 + $0x280] sm:$0xff]  ;;  %v970_v0 = vld [vmem:[#allocation5 + $0x238] sm:$0xff]  ;;  %v969_v1 = vld [vmem:[#allocation5 + $0x230] sm:$0xff] }
  0x6d   : > { %2150 = vperm.xlu0 %5502, %v2142_v7   ;;  %1033 = vmatprep.subr.mxu0 %v988_v46  ;;  %v975_v59 = vld [vmem:[#allocation5 + $0x260] sm:$0xff]  ;;  %v968_v2 = vld [vmem:[#allocation5 + $0x228] sm:$0xff]  ;;  %v965_v5 = vld [vmem:[#allocation5 + $0x210] sm:$0xff] }
  0x6e   : > { %1034 = vmatpush1.msra.mxu0 %v987_v47  ;;  %v971_v63 = vld [vmem:[#allocation5 + $0x240] sm:$0xff]  ;;  %v964_v7 = vld [vmem:[#allocation5 + $0x208] sm:$0xff]  ;;  %v1018_v17 = vld [vmem:[#allocation5 + $0x3b8] sm:$0xff] }
  0x6f   : > { %2161 = vperm.xlu1 %5503, %v2157_v20   ;;  %1035 = vmatprep.subr.mxu0 %v986_v48  ;;  %v1020_v15 = vld [vmem:[#allocation5 + $0x3c8] sm:$0xff]  ;;  %v1017_v18 = vld [vmem:[#allocation5 + $0x3b0] sm:$0xff]  ;;  %v1015_v20 = vld [vmem:[#allocation5 + $0x3a0] sm:$0xff] }
  0x70   : > { %1036 = vmatpush1.msra.mxu0 %v985_v49  ;;  %v1016_v19 = vld [vmem:[#allocation5 + $0x3a8] sm:$0xff] }
  0x71   : > { %2166 = vperm.xlu0 %5502, %v2158_v8   ;;  %1037 = vmatprep.subr.mxu0 %v984_v50  ;;  %v963_v8 = vld [vmem:[#allocation5 + $0x200] sm:$0xff] }
  0x72   : > { %1038 = vmatpush1.msra.mxu0 %v983_v51 }
  0x73   : > { %2197 = vperm.xlu1 %5503, %v2183_v21   ;;  %1039 = vmatprep.subr.mxu0 %v982_v52  ;;  %v1014_v21 = vld [vmem:[#allocation5 + $0x398] sm:$0xff] }
  0x74   : > { %1040 = vmatpush1.msra.mxu0 %v981_v53 }
  0x75   : > { %2202 = vperm.xlu0 %5502, %v2184_v9   ;;  %1041 = vmatprep.subr.mxu0 %v980_v54  ;;  %v1026_v9 = vld [vmem:[#allocation5 + $0x3f8] sm:$0xff] }
  0x76   : > { %1042 = vmatpush1.msra.mxu0 %v979_v55 }
  0x77   : > { %2187 = vperm.xlu1 %5503, %v2181_v22   ;;  %1043 = vmatprep.subr.mxu0 %v978_v56  ;;  %v1013_v22 = vld [vmem:[#allocation5 + $0x390] sm:$0xff] }
  0x78   : > { %1044 = vmatpush1.msra.mxu0 %v977_v57 }
  0x79   : > { %2192 = vperm.xlu0 %5502, %v2182_v10   ;;  %1045 = vmatprep.subr.mxu0 %v976_v58  ;;  %v1025_v10 = vld [vmem:[#allocation5 + $0x3f0] sm:$0xff] }
  0x7a   : > { %1046 = vmatpush1.msra.mxu0 %v975_v59 }
  0x7b   : > { %3717 = vperm.xlu1 %5503, %v3708_v23   ;;  %1047 = vmatprep.subr.mxu0 %v974_v60  ;;  %v1012_v23 = vld [vmem:[#allocation5 + $0x388] sm:$0xff] }
  0x7c   : > { %1048 = vmatpush1.msra.mxu0 %v973_v61 }
  0x7d   : > { %3722 = vperm.xlu0 %5502, %v3709_v11   ;;  %1049 = vmatprep.subr.mxu0 %v972_v62  ;;  %v1024_v11 = vld [vmem:[#allocation5 + $0x3e8] sm:$0xff]  ;;  %v742_v62 = vld [vmem:[%s6268_s1] sm:$0xff] }
  0x7e   : > { %1050 = vmatpush1.msra.mxu0 %v971_v63  ;;  %v929_v63 = vld [vmem:[#allocation5 + $0xf8] sm:$0xff] }
  0x7f   : > { %3712 = vperm.xlu1 %5503, %v3707_v24   ;;  %1051 = vmatprep.subr.mxu0 %v970_v0  ;;  %v1011_v24 = vld [vmem:[#allocation5 + $0x380] sm:$0xff]  ;;  %v928_v0 = vld [vmem:[#allocation5 + $0xf0] sm:$0xff] }
  0x80   : > { %1052 = vmatpush1.msra.mxu0 %v969_v1  ;;  %v927_v1 = vld [vmem:[#allocation5 + $0xe8] sm:$0xff] }
  0x81   : > { %3746 = vperm.xlu0 %5502, %v3733_v12   ;;  %1053 = vmatprep.subr.mxu0 %v968_v2  ;;  %v1023_v12 = vld [vmem:[#allocation5 + $0x3e0] sm:$0xff] }
  0x82   : > { %v926_v2 = vld [vmem:[#allocation5 + $0xe0] sm:$0xff] }
  0x83   : > { %3736 = vperm.xlu1 %5503, %v3731_v25   ;;  %v1010_v25 = vld [vmem:[#allocation5 + $0x378] sm:$0xff] }
  0x85   : > { %3741 = vperm.xlu0 %5502, %v3732_v13   ;;  %v1022_v13 = vld [vmem:[#allocation5 + $0x3d8] sm:$0xff] }
  0x87   : > { %3781 = vperm.xlu1 %5503, %v3767_v26   ;;  %v1009_v26 = vld [vmem:[#allocation5 + $0x370] sm:$0xff] }
  0x89   : > { %3786 = vperm.xlu0 %5502, %v3768_v14   ;;  %v1021_v14 = vld [vmem:[#allocation5 + $0x3d0] sm:$0xff] }
  0x8b   : > { %3771 = vperm.xlu1 %5503, %v3765_v27   ;;  %v1008_v27 = vld [vmem:[#allocation5 + $0x368] sm:$0xff] }
  0x8d   : > { %3776 = vperm.xlu0 %5502, %v3766_v16   ;;  %v1019_v16 = vld [vmem:[#allocation5 + $0x3c0] sm:$0xff] }
  0xdc   : > { %v590_v28 = vpop.permute.xlu0 %589 }
  0xdd   : > { %v592_v29 = vmul.f32 %v590_v28, %v580_v3  ;;  %v593_v30 = vmul.f32 %v590_v28, %v581_v4  ;;  %v967_v3 = vld [vmem:[#allocation5 + $0x220] sm:$0xff]  ;;  %v966_v4 = vld [vmem:[#allocation5 + $0x218] sm:$0xff] }
  0xde   : > { %1054 = vmatpush1.msra.mxu0 %v967_v3  ;;  %v1007_v28 = vld [vmem:[#allocation5 + $0x360] sm:$0xff]  ;;  %v743_v3 = vld [vmem:[%s6268_s1 + $0x8] sm:$0xff] }
  0xdf   : > { %1055 = vmatprep.subr.mxu0 %v966_v4  ;;  %v925_v4 = vld [vmem:[#allocation5 + $0xd8] sm:$0xff] }
  0xe0   : > { %v598_v31 = vpop.permute.xlu0 %597  ;;  %1056 = vmatpush1.msra.mxu0 %v965_v5  ;;  %v924_v5 = vld [vmem:[#allocation5 + $0xd0] sm:$0xff] }
  0xe1   : > { %v600_v32 = vadd.f32 %v598_v31, %v592_v29  ;;  %v601_v33 = vadd.f32 %v598_v31, %v593_v30  ;;  %1057 = vmatprep.subr.mxu0 %v964_v7  ;;  %v1006_v29 = vld [vmem:[#allocation5 + $0x358] sm:$0xff]  ;;  %v1005_v30 = vld [vmem:[#allocation5 + $0x350] sm:$0xff]  ;;  %v1004_v31 = vld [vmem:[#allocation5 + $0x348] sm:$0xff] }
  0xe2   : > { %1058 = vmatpush1.msra.mxu0 %v963_v8  ;;  %v923_v7 = vld [vmem:[#allocation5 + $0xc8] sm:$0xff]  ;;  %v922_v8 = vld [vmem:[#allocation5 + $0xc0] sm:$0xff] }
  0xe3   : > { %v603_v34 = vmax.f32 %v601_v33, 0.0  ;;  %v602_v35 = vmax.f32 %v600_v32, 0.0  ;;  %1059 = vmatprep.subr.mxu0 %v1026_v9  ;;  %v1003_v32 = vld [vmem:[#allocation5 + $0x340] sm:$0xff]  ;;  %v1002_v33 = vld [vmem:[#allocation5 + $0x338] sm:$0xff]  ;;  %v744_v9 = vld [vmem:[%s6268_s1 + $0x10] sm:$0xff] }
  0xe4   : > { %1060 = vmatpush2.msra.mxu0 %v1025_v10  ;;  %v620_v47 = vpop.permute.xlu0 %619  ;;  %v921_v10 = vld [vmem:[#allocation5 + $0xb8] sm:$0xff] }
  0xe5   : > { %675 = vmatprep.subr.mxu1 %v603_v34  ;;  %1061 = vmatprep.subr.mxu0 %v1024_v11  ;;  %v920_v11 = vld [vmem:[#allocation5 + $0xb0] sm:$0xff] }
  0xe6   : > { %676 = vmatpush1.msra.mxu1 %v602_v35  ;;  %1062 = vmatpush2.msra.mxu0 %v1023_v12  ;;  %v919_v12 = vld [vmem:[#allocation5 + $0xa8] sm:$0xff] }
  0xe7   : > { %5393 = vmatmul.mubr.msk.f32.vlgmr.msra.gmra.mxu1 %vm632_vm0, %v604_v36  ;;  %1063 = vmatprep.subr.mxu0 %v1022_v13  ;;  %v918_v13 = vld [vmem:[#allocation5 + $0xa0] sm:$0xff] }
  0xe8   : > { %715 = vmatprep.mubr.f32.mxu1 %v5637_v6  ;;  %1064 = vmatpush2.msra.mxu0 %v1021_v14  ;;  %v745_v14 = vld [vmem:[%s6268_s1 + $0x18] sm:$0xff] }
  0xe9   : > { %1065 = vmatprep.subr.mxu0 %v1020_v15  ;;  %v917_v15 = vld [vmem:[#allocation5 + $0x98] sm:$0xff] }
  0xea   : > { %1066 = vmatpush2.msra.mxu0 %v1019_v16  ;;  %v916_v16 = vld [vmem:[#allocation5 + $0x90] sm:$0xff] }
  0xeb   : > { %5394 = vmatmul.mubr.msk.f32.gmra.mxu1 %vm632_vm0, %v605_v37  ;;  %1067 = vmatprep.subr.mxu0 %v1018_v17  ;;  %v630_v37 = vpop.permute.xlu1 %629  ;;  %v915_v17 = vld [vmem:[#allocation5 + $0x88] sm:$0xff] }
  0xec   : > { %721 = vmatprep.mubr.f32.mxu1 %v5637_v6  ;;  %1068 = vmatpush2.msra.mxu0 %v1017_v18  ;;  %v914_v18 = vld [vmem:[#allocation5 + $0x80] sm:$0xff] }
  0xed   : > { %1069 = vmatprep.subr.mxu0 %v1016_v19  ;;  %v746_v19 = vld [vmem:[%s6268_s1 + $0x20] sm:$0xff] }
  0xee   : > { %1070 = vmatpush2.msra.mxu0 %v1015_v20  ;;  %v913_v20 = vld [vmem:[#allocation5 + $0x78] sm:$0xff] }
  0xef   : > { %5395 = vmatmul.mubr.msk.f32.gmra.mxu1 %vm632_vm0, %v606_v38  ;;  %1071 = vmatprep.subr.mxu0 %v1014_v21  ;;  %v625_v41 = vpop.permute.xlu1 %624  ;;  %v912_v21 = vld [vmem:[#allocation5 + $0x70] sm:$0xff] }
  0xf0   : > { %727 = vmatprep.mubr.f32.mxu1 %v5637_v6  ;;  %1072 = vmatpush2.msra.mxu0 %v1013_v22  ;;  %v911_v22 = vld [vmem:[#allocation5 + $0x68] sm:$0xff] }
  0xf1   : > { %1073 = vmatprep.subr.mxu0 %v1012_v23  ;;  %v910_v23 = vld [vmem:[#allocation5 + $0x60] sm:$0xff] }
  0xf2   : > { %1074 = vmatpush2.msra.mxu0 %v1011_v24  ;;  %v747_v24 = vld [vmem:[%s6268_s1 + $0x28] sm:$0xff] }
  0xf3   : > { %5396 = vmatmul.mubr.msk.f32.gmra.mxu1 %vm632_vm0, %v607_v39  ;;  %1075 = vmatprep.subr.mxu0 %v1010_v25  ;;  %v615_v51 = vpop.permute.xlu1 %614  ;;  %v909_v25 = vld [vmem:[#allocation5 + $0x58] sm:$0xff] }
  0xf4   : > { %843 = vmatprep.mubr.f32.mxu1 %v5637_v6  ;;  %1076 = vmatpush2.msra.mxu0 %v1009_v26  ;;  %v908_v26 = vld [vmem:[#allocation5 + $0x50] sm:$0xff] }
  0xf5   : > { %1077 = vmatprep.subr.mxu0 %v1008_v27  ;;  %v907_v27 = vld [vmem:[#allocation5 + $0x48] sm:$0xff] }
  0xf6   : > { %1078 = vmatpush2.msra.mxu0 %v1007_v28  ;;  %v906_v28 = vld [vmem:[#allocation5 + $0x40] sm:$0xff] }
  0xf7   : > { %1079 = vmatprep.subr.mxu0 %v1006_v29  ;;  %v905_v29 = vld [vmem:[#allocation5 + $0x38] sm:$0xff] }
  0xf8   : > { %1080 = vmatpush2.msra.mxu0 %v1005_v30  ;;  %v748_v30 = vld [vmem:[%s6268_s1 + $0x30] sm:$0xff] }
  0xf9   : > { %1081 = vmatprep.subr.mxu0 %v1004_v31  ;;  %v904_v31 = vld [vmem:[#allocation5 + $0x30] sm:$0xff] }
  0xfa   : > { %1082 = vmatpush2.msra.mxu0 %v1003_v32  ;;  %v903_v32 = vld [vmem:[#allocation5 + $0x28] sm:$0xff] }
  0xfb   : > { %1083 = vmatprep.subr.mxu0 %v1002_v33  ;;  %v902_v33 = vld [vmem:[#allocation5 + $0x20] sm:$0xff] }
 0x1a7   : > { %v711_v34 = vpop.f32.mrf.mxu1 }
 0x1a8   : > { %v712_v56 = vadd.f32 %v711_v34, %v615_v51  ;;  %v901_v34 = vld [vmem:[#allocation5 + $0x18] sm:$0xff] }
 0x1a9   : > { %v713_v35 = vpop.f32.mrf.mxu1 }
 0x1aa   : > { %v714_v54 = vadd.f32 %v713_v35, %v615_v51  ;;  %v734_v61 = vmax.f32 %v712_v56, 0.0  ;;  %v749_v35 = vld [vmem:[%s6268_s1 + $0x38] sm:$0xff]  ;;  %v944_v56 = vld [vmem:[#allocation5 + $0x170] sm:$0xff] }
 0x1ab   : > { %v717_v36 = vpop.f32.mrf.mxu1  ;;  %v949_v51 = vld [vmem:[#allocation5 + $0x198] sm:$0xff] }
 0x1ac   : > { %v718_v52 = vadd.f32 %v717_v36, %v620_v47  ;;  %v735_v60 = vmax.f32 %v714_v54, 0.0  ;;  %v900_v36 = vld [vmem:[#allocation5 + $0x10] sm:$0xff]  ;;  %v946_v54 = vld [vmem:[#allocation5 + $0x180] sm:$0xff] }
 0x1ad   : > { %v719_v38 = vpop.f32.mrf.mxu1 }
 0x1ae   : > { %v720_v49 = vadd.f32 %v719_v38, %v620_v47  ;;  %v736_v59 = vmax.f32 %v718_v52, 0.0  ;;  %v898_v38 = vld [vmem:[#allocation5] sm:$0xff]  ;;  %v953_v47 = vld [vmem:[#allocation5 + $0x1b8] sm:$0xff]  ;;  %v948_v52 = vld [vmem:[#allocation5 + $0x190] sm:$0xff] }
 0x1af   : > { %v723_v39 = vpop.f32.mrf.mxu1 }
 0x1b0   : > { %v724_v48 = vadd.f32 %v723_v39, %v625_v41  ;;  %v737_v58 = vmax.f32 %v720_v49, 0.0  ;;  %v961_v39 = vld [vmem:[#allocation5 + $0x1f8] sm:$0xff]  ;;  %v951_v49 = vld [vmem:[#allocation5 + $0x1a8] sm:$0xff] }
 0x1b1   : > { %v725_v40 = vpop.f32.mrf.mxu1 }
 0x1b2   : > { %v726_v45 = vadd.f32 %v725_v40, %v625_v41  ;;  %v738_v57 = vmax.f32 %v724_v48, 0.0  ;;  %v960_v40 = vld [vmem:[#allocation5 + $0x1f0] sm:$0xff]  ;;  %v959_v41 = vld [vmem:[#allocation5 + $0x1e8] sm:$0xff] }
 0x1b3   : > { %v729_v42 = vpop.f32.mrf.mxu1  ;;  %v952_v48 = vld [vmem:[#allocation5 + $0x1b0] sm:$0xff] }
 0x1b4   : > { %v730_v43 = vadd.f32 %v729_v42, %v630_v37  ;;  %v739_v55 = vmax.f32 %v726_v45, 0.0  ;;  %v958_v42 = vld [vmem:[#allocation5 + $0x1e0] sm:$0xff]  ;;  %v955_v45 = vld [vmem:[#allocation5 + $0x1c8] sm:$0xff] }
 0x1b5   : > { %v731_v44 = vpop.f32.mrf.mxu1 }
 0x1b6   : > { %v732_v46 = vadd.f32 %v731_v44, %v630_v37  ;;  %v740_v53 = vmax.f32 %v730_v43, 0.0  ;;  %v899_v37 = vld [vmem:[#allocation5 + $0x8] sm:$0xff]  ;;  %v957_v43 = vld [vmem:[#allocation5 + $0x1d8] sm:$0xff]  ;;  %v956_v44 = vld [vmem:[#allocation5 + $0x1d0] sm:$0xff] }
 0x1b8   : > { %v741_v50 = vmax.f32 %v732_v46, 0.0  ;;  %v954_v46 = vld [vmem:[#allocation5 + $0x1c0] sm:$0xff] }
 0x1ba   : > { %803 = vmatprep.subr.mxu1 %v741_v50  ;;  %v950_v50 = vld [vmem:[#allocation5 + $0x1a0] sm:$0xff] }
 0x1bb   : > { %804 = vmatpush1.msra.mxu1 %v740_v53  ;;  %v947_v53 = vld [vmem:[#allocation5 + $0x188] sm:$0xff] }
 0x1bc   : > { %805 = vmatprep.subr.mxu1 %v739_v55  ;;  %v945_v55 = vld [vmem:[#allocation5 + $0x178] sm:$0xff] }
 0x1bd   : > { %806 = vmatpush1.msra.mxu1 %v738_v57  ;;  %v943_v57 = vld [vmem:[#allocation5 + $0x168] sm:$0xff] }
 0x1be   : > { %807 = vmatprep.subr.mxu1 %v737_v58  ;;  %v942_v58 = vld [vmem:[#allocation5 + $0x160] sm:$0xff] }
 0x1bf   : > { %808 = vmatpush1.msra.mxu1 %v736_v59  ;;  %v941_v59 = vld [vmem:[#allocation5 + $0x158] sm:$0xff] }
 0x1c0   : > { %809 = vmatprep.subr.mxu1 %v735_v60  ;;  %v940_v60 = vld [vmem:[#allocation5 + $0x150] sm:$0xff] }
 0x1c1   : > { %810 = vmatpush1.msra.mxu1 %v734_v61  ;;  %v939_v61 = vld [vmem:[#allocation5 + $0x148] sm:$0xff] }
 0x1c2   : > { %5397 = vmatmul.mubr.msk.f32.vlgmr.msra.gmra.mxu1 %vm751_vm1, %v742_v62  ;;  %1098 = vmatprep.subr.mxu1 %v929_v63  ;;  %v938_v62 = vld [vmem:[#allocation5 + $0x140] sm:$0xff]  ;;  %v937_v63 = vld [vmem:[#allocation5 + $0x138] sm:$0xff] }
 0x1c3   : > { %849 = vmatprep.mubr.f32.mxu1 %v5637_v6  ;;  %1099 = vmatpush1.msra.mxu1 %v928_v0  ;;  %v936_v0 = vld [vmem:[#allocation5 + $0x130] sm:$0xff] }
 0x1c4   : > { %1100 = vmatprep.subr.mxu1 %v927_v1  ;;  %v935_v1 = vld [vmem:[#allocation5 + $0x128] sm:$0xff] }
 0x1c5   : > { %1101 = vmatpush1.msra.mxu1 %v926_v2  ;;  %v934_v2 = vld [vmem:[#allocation5 + $0x120] sm:$0xff] }
 0x1c6   : > { %5398 = vmatmul.mubr.msk.f32.gmra.mxu1 %vm751_vm1, %v743_v3  ;;  %1102 = vmatprep.subr.mxu1 %v925_v4  ;;  %v750_v3 = vld [vmem:[%s6268_s1 + $0x40] sm:$0xff]  ;;  %v1001_v4 = vld [vmem:[#allocation5 + $0x330] sm:$0xff]  ;;  %s5566_s1 = sshll.u32 %s5638_s30, 4  ;;  %s5567_s1 = int_to_ptr.vmem [resolvable:$false] %s5566_s1 }
 0x1c7   : > { %855 = vmatprep.mubr.f32.mxu1 %v5637_v6  ;;  %1103 = vmatpush1.msra.mxu1 %v924_v5  ;;  %v933_v5 = vld [vmem:[#allocation5 + $0x118] sm:$0xff]  ;;  %s5568_s6 = scalar_lea.vmem %s5567_s1, 2048  ;;  %p5569_p10 = scmp.lt.s32.totalorder %s6157_s17, %s5567_s1 }
 0x1c8   : > { %1104 = vmatprep.subr.mxu1 %v923_v7  ;;  %1084 = vmatpush2.msra.mxu0 %v1001_v4  ;;  %v1000_v7 = vld [vmem:[#allocation5 + $0x328] sm:$0xff]  ;;  %p5570_p2 = scmp.lt.s32.totalorder %s5568_s6, %s5562_s28 }
 0x1c9   : > { %1105 = vmatpush1.msra.mxu1 %v922_v8  ;;  %v932_v8 = vld [vmem:[#allocation5 + $0x110] sm:$0xff]  ;;  %1085 = vmatprep.subr.mxu0 %v1000_v7  ;;  %v1179_v4 = vld [vmem:[#allocation5 + $0x448] sm:$0xff]  ;;  %v1178_v7 = vld [vmem:[#allocation5 + $0x440] sm:$0xff] }
 0x1ca   : > { %5399 = vmatmul.mubr.msk.f32.gmra.mxu1 %vm751_vm1, %v744_v9  ;;  %1106 = vmatprep.subr.mxu1 %v921_v10  ;;  %v999_v9 = vld [vmem:[#allocation5 + $0x320] sm:$0xff]  ;;  %v931_v10 = vld [vmem:[#allocation5 + $0x108] sm:$0xff]  ;;  %p5571_p13 = por %p5570_p2, %p5569_p10 }
 0x1cb   : > { %861 = vmatprep.mubr.f32.mxu1 %v5637_v6  ;;  %1107 = vmatpush1.msra.mxu1 %v920_v11  ;;  %v998_v11 = vld [vmem:[#allocation5 + $0x318] sm:$0xff] }
 0x1cc   : > { %1108 = vmatprep.subr.mxu1 %v919_v12  ;;  %1086 = vmatpush2.msra.mxu0 %v999_v9  ;;  %v930_v12 = vld [vmem:[#allocation5 + $0x100] sm:$0xff]  ;;  %v1177_v9 = vld [vmem:[#allocation5 + $0x438] sm:$0xff]  ;;  %p5572_p0 = pnand %p5571_p13, %p5565_p7 }
 0x1cd   : > { %1109 = vmatpush1.msra.mxu1 %v918_v13  ;;  %1087 = vmatprep.subr.mxu0 %v998_v11  ;;  %v997_v13 = vld [vmem:[#allocation5 + $0x310] sm:$0xff] }
 0x1ce   : > { %5400 = vmatmul.mubr.msk.f32.gmra.mxu1 %vm751_vm1, %v745_v14  ;;  %1110 = vmatprep.subr.mxu1 %v917_v15  ;;  %v996_v14 = vld [vmem:[#allocation5 + $0x308] sm:$0xff]  ;;  %v995_v15 = vld [vmem:[#allocation5 + $0x300] sm:$0xff]  ;;  %v1176_v11 = vld [vmem:[#allocation5 + $0x430] sm:$0xff] }
 0x1cf   : > { %867 = vmatprep.mubr.f32.mxu1 %v5637_v6  ;;  %1111 = vmatpush1.msra.mxu1 %v916_v16  ;;  %v1201_v16 = vld [vmem:[#allocation5 + $0x4f8] sm:$0xff] }
 0x1d0   : > { %1112 = vmatprep.subr.mxu1 %v915_v17  ;;  %1088 = vmatpush2.msra.mxu0 %v997_v13  ;;  %v1339_v17 = vld [vmem:[#allocation5 + $0x6f8] sm:$0xff]  ;;  %v1175_v13 = vld [vmem:[#allocation5 + $0x428] sm:$0xff] }
 0x1d1   : > { %1113 = vmatpush1.msra.mxu1 %v914_v18  ;;  %1089 = vmatprep.subr.mxu0 %v996_v14  ;;  %v1309_v14 = vld [vmem:[#allocation5 + $0x608] sm:$0xff] }
 0x1d2   : > { %5401 = vmatmul.mubr.msk.f32.gmra.mxu1 %vm751_vm1, %v746_v19  ;;  %1114 = vmatprep.subr.mxu1 %v913_v20  ;;  %v1338_v20 = vld [vmem:[#allocation5 + $0x6f0] sm:$0xff] }
 0x1d3   : > { %873 = vmatprep.mubr.f32.mxu1 %v5637_v6  ;;  %1115 = vmatpush1.msra.mxu1 %v912_v21  ;;  %v1337_v21 = vld [vmem:[#allocation5 + $0x6e8] sm:$0xff] }
 0x1d4   : > { %1116 = vmatprep.subr.mxu1 %v911_v22  ;;  %1090 = vmatpush2.msra.mxu0 %v995_v15  ;;  %v1174_v15 = vld [vmem:[#allocation5 + $0x420] sm:$0xff] }
 0x1d5   : > { %1117 = vmatpush1.msra.mxu1 %v910_v23  ;;  %1234 = vmatprep.subr.mxu0 %v1201_v16  ;;  %v1336_v23 = vld [vmem:[#allocation5 + $0x6e0] sm:$0xff] }
 0x1d6   : > { %5402 = vmatmul.mubr.msk.f32.gmra.mxu1 %vm751_vm1, %v747_v24  ;;  %1118 = vmatprep.subr.mxu1 %v909_v25  ;;  %v1335_v24 = vld [vmem:[#allocation5 + $0x6d8] sm:$0xff]  ;;  %v1308_v16 = vld [vmem:[#allocation5 + $0x600] sm:$0xff] }
 0x1d7   : > { %1119 = vmatpush1.msra.mxu1 %v908_v26  ;;  %879 = vmatprep.mubr.f32.mxu1 %v5637_v6  ;;  %v1200_v26 = vld [vmem:[#allocation5 + $0x4f0] sm:$0xff] }
 0x1d8   : > { %1120 = vmatprep.subr.mxu1 %v907_v27  ;;  %v1334_v27 = vld [vmem:[#allocation5 + $0x6d0] sm:$0xff] }
 0x1d9   : > { %1121 = vmatpush1.msra.mxu1 %v906_v28  ;;  %v1199_v28 = vld [vmem:[#allocation5 + $0x4e8] sm:$0xff] }
 0x1da   : > { %1122 = vmatprep.subr.mxu1 %v905_v29  ;;  %5403 = vmatmul.mubr.msk.f32.gmra.mxu1 %vm751_vm1, %v748_v30  ;;  %v1333_v29 = vld [vmem:[#allocation5 + $0x6c8] sm:$0xff]  ;;  %v1198_v30 = vld [vmem:[#allocation5 + $0x4e0] sm:$0xff] }
 0x1db   : > { %1123 = vmatpush1.msra.mxu1 %v904_v31  ;;  %885 = vmatprep.mubr.f32.mxu1 %v5637_v6  ;;  %v1332_v31 = vld [vmem:[#allocation5 + $0x6c0] sm:$0xff] }
 0x1dc   : > { %1124 = vmatprep.subr.mxu1 %v903_v32  ;;  %v1197_v32 = vld [vmem:[#allocation5 + $0x4d8] sm:$0xff] }
 0x1dd   : > { %1125 = vmatpush1.msra.mxu1 %v902_v33  ;;  %v1331_v33 = vld [vmem:[#allocation5 + $0x6b8] sm:$0xff] }
 0x1de   : > { %1126 = vmatprep.subr.mxu1 %v901_v34  ;;  %5404 = vmatmul.mubr.msk.f32.gmra.mxu1 %vm751_vm1, %v749_v35  ;;  %v1196_v34 = vld [vmem:[#allocation5 + $0x4d0] sm:$0xff] }
 0x1df   : > { %1127 = vmatpush1.msra.mxu1 %v900_v36  ;;  %891 = vmatprep.mubr.f32.mxu1 %v5637_v6  ;;  %v1330_v35 = vld [vmem:[#allocation5 + $0x6b0] sm:$0xff]  ;;  %v1195_v36 = vld [vmem:[#allocation5 + $0x4c8] sm:$0xff] }
 0x1e0   : > { %1128 = vmatprep.subr.mxu1 %v899_v37  ;;  %v1329_v37 = vld [vmem:[#allocation5 + $0x6a8] sm:$0xff] }
 0x1e1   : > { %1129 = vmatpush1.msra.mxu1 %v898_v38  ;;  %v1194_v38 = vld [vmem:[#allocation5 + $0x4c0] sm:$0xff] }
 0x1e2   : > { %1130 = vmatprep.subr.mxu1 %v961_v39  ;;  %5405 = vmatmul.mubr.msk.f32.gmra.mxu1 %vm751_vm1, %v750_v3  ;;  %v1328_v39 = vld [vmem:[#allocation5 + $0x6a0] sm:$0xff]  ;;  %v1314_v3 = vld [vmem:[#allocation5 + $0x630] sm:$0xff] }
 0x1e3   : > { %1131 = vmatpush2.msra.mxu1 %v960_v40  ;;  %v1193_v40 = vld [vmem:[#allocation5 + $0x4b8] sm:$0xff] }
 0x1e4   : > { %1132 = vmatprep.subr.mxu1 %v959_v41  ;;  %v1327_v41 = vld [vmem:[#allocation5 + $0x698] sm:$0xff] }
 0x1e5   : > { %1133 = vmatpush2.msra.mxu1 %v958_v42  ;;  %v1192_v42 = vld [vmem:[#allocation5 + $0x4b0] sm:$0xff] }
 0x1e6   : > { %1134 = vmatprep.subr.mxu1 %v957_v43  ;;  %v1326_v43 = vld [vmem:[#allocation5 + $0x690] sm:$0xff] }
 0x1e7   : > { %1135 = vmatpush2.msra.mxu1 %v956_v44  ;;  %v1191_v44 = vld [vmem:[#allocation5 + $0x4a8] sm:$0xff] }
 0x1e8   : > { %1136 = vmatprep.subr.mxu1 %v955_v45  ;;  %v1325_v45 = vld [vmem:[#allocation5 + $0x688] sm:$0xff] }
 0x1e9   : > { %1137 = vmatpush2.msra.mxu1 %v954_v46  ;;  %v1190_v46 = vld [vmem:[#allocation5 + $0x4a0] sm:$0xff] }
 0x1ea   : > { %1138 = vmatprep.subr.mxu1 %v953_v47  ;;  %v1324_v47 = vld [vmem:[#allocation5 + $0x680] sm:$0xff] }
 0x1eb   : > { %1139 = vmatpush2.msra.mxu1 %v952_v48  ;;  %v1189_v48 = vld [vmem:[#allocation5 + $0x498] sm:$0xff] }
 0x1ec   : > { %1140 = vmatprep.subr.mxu1 %v951_v49  ;;  %v1323_v49 = vld [vmem:[#allocation5 + $0x678] sm:$0xff] }
 0x1ed   : > { %1141 = vmatpush2.msra.mxu1 %v950_v50  ;;  %v1188_v50 = vld [vmem:[#allocation5 + $0x490] sm:$0xff] }
 0x1ee   : > { %1142 = vmatprep.subr.mxu1 %v949_v51  ;;  %v1322_v51 = vld [vmem:[#allocation5 + $0x670] sm:$0xff] }
 0x1ef   : > { %1143 = vmatpush2.msra.mxu1 %v948_v52  ;;  %v1187_v52 = vld [vmem:[#allocation5 + $0x488] sm:$0xff] }
 0x1f0   : > { %1144 = vmatprep.subr.mxu1 %v947_v53  ;;  %v1321_v53 = vld [vmem:[#allocation5 + $0x668] sm:$0xff] }
 0x1f1   : > { %1145 = vmatpush2.msra.mxu1 %v946_v54  ;;  %v1186_v54 = vld [vmem:[#allocation5 + $0x480] sm:$0xff] }
 0x1f2   : > { %1146 = vmatprep.subr.mxu1 %v945_v55  ;;  %v1320_v55 = vld [vmem:[#allocation5 + $0x660] sm:$0xff] }
 0x1f3   : > { %1147 = vmatpush2.msra.mxu1 %v944_v56  ;;  %v1185_v56 = vld [vmem:[#allocation5 + $0x478] sm:$0xff] }
 0x1f4   : > { %1148 = vmatprep.subr.mxu1 %v943_v57  ;;  %v1319_v57 = vld [vmem:[#allocation5 + $0x658] sm:$0xff] }
 0x1f5   : > { %1149 = vmatpush2.msra.mxu1 %v942_v58  ;;  %v1184_v58 = vld [vmem:[#allocation5 + $0x470] sm:$0xff] }
 0x1f6   : > { %1150 = vmatprep.subr.mxu1 %v941_v59  ;;  %v1318_v59 = vld [vmem:[#allocation5 + $0x650] sm:$0xff] }
 0x1f7   : > { %1151 = vmatpush2.msra.mxu1 %v940_v60  ;;  %v1183_v60 = vld [vmem:[#allocation5 + $0x468] sm:$0xff] }
 0x1f8   : > { %1152 = vmatprep.subr.mxu1 %v939_v61  ;;  %v1317_v61 = vld [vmem:[#allocation5 + $0x648] sm:$0xff] }
 0x1f9   : > { %1153 = vmatpush2.msra.mxu1 %v938_v62  ;;  %v1182_v62 = vld [vmem:[#allocation5 + $0x460] sm:$0xff] }
 0x1fa   : > { %1154 = vmatprep.subr.mxu1 %v937_v63  ;;  %v1316_v63 = vld [vmem:[#allocation5 + $0x640] sm:$0xff] }
 0x1fb   : > { %1155 = vmatpush2.msra.mxu1 %v936_v0  ;;  %v1181_v0 = vld [vmem:[#allocation5 + $0x458] sm:$0xff] }
 0x1fc   : > { %1156 = vmatprep.subr.mxu1 %v935_v1  ;;  %v1315_v1 = vld [vmem:[#allocation5 + $0x638] sm:$0xff] }
 0x1fd   : > { %1157 = vmatpush2.msra.mxu1 %v934_v2  ;;  %v1180_v2 = vld [vmem:[#allocation5 + $0x450] sm:$0xff] }
 0x1fe   : > { %1158 = vmatprep.subr.mxu1 %v933_v5  ;;  %v1313_v5 = vld [vmem:[#allocation5 + $0x628] sm:$0xff] }
 0x1ff   : > { %1159 = vmatpush2.msra.mxu1 %v932_v8  ;;  %v1312_v8 = vld [vmem:[#allocation5 + $0x620] sm:$0xff] }
 0x200   : > { %1160 = vmatprep.subr.mxu1 %v931_v10  ;;  %v1311_v10 = vld [vmem:[#allocation5 + $0x618] sm:$0xff] }
 0x201   : > { %1161 = vmatpush2.msra.mxu1 %v930_v12  ;;  %v1310_v12 = vld [vmem:[#allocation5 + $0x610] sm:$0xff] }
 0x202   : > { %1372 = vmatprep.subr.mxu1 %v1339_v17  ;;  %v1173_v17 = vld [vmem:[#allocation5 + $0x418] sm:$0xff] }
 0x282   : > { %v845_v18 = vpop.f32.mrf.mxu1 }
 0x284   : > { %v847_v19 = vpop.f32.mrf.mxu1 }
 0x285   : > { %1162 = vmatprep.mubr.f32.mxu1 %v847_v19  ;;  %v1172_v19 = vld [vmem:[#allocation5 + $0x410] sm:$0xff] }
 0x286   : > { %v851_v22 = vpop.f32.mrf.mxu1  ;;  %1163 = vmatmul.mubr.f32.vlgmr.msra.gmra.mxu1 %v845_v18  ;;  %v1371_v18 = vld [vmem:[#allocation5 + $0x7f8] sm:$0xff] }
 0x287   : > { %1373 = vmatpush1.msra.mxu1 %v1338_v20  ;;  %v1370_v20 = vld [vmem:[#allocation5 + $0x7f0] sm:$0xff] }
 0x288   : > { %v853_v25 = vpop.f32.mrf.mxu1  ;;  %1374 = vmatprep.subr.mxu1 %v1337_v21  ;;  %v1171_v21 = vld [vmem:[#allocation5 + $0x408] sm:$0xff] }
 0x289   : > { %1091 = vmatprep.mubr.f32.mxu0 %v853_v25  ;;  %1375 = vmatpush1.msra.mxu1 %v1336_v23  ;;  %v1170_v23 = vld [vmem:[#allocation5 + $0x400] sm:$0xff]  ;;  %v1233_v25 = vld [vmem:[#allocation5 + $0x5f8] sm:$0xff] }
 0x28a   : > { %1092 = vmatmul.mubr.f32.vlgmr.msra.gmra.mxu0 %v851_v22  ;;  %1376 = vmatprep.subr.mxu1 %v1335_v24  ;;  %v1369_v22 = vld [vmem:[#allocation5 + $0x7e8] sm:$0xff]  ;;  %v1368_v24 = vld [vmem:[#allocation5 + $0x7e0] sm:$0xff] }
 0x28b   : > { %1235 = vmatpush1.msra.mxu0 %v1200_v26  ;;  %1377 = vmatpush1.msra.mxu1 %v1334_v27  ;;  %v1367_v26 = vld [vmem:[#allocation5 + $0x7d8] sm:$0xff]  ;;  %v1232_v27 = vld [vmem:[#allocation5 + $0x5f0] sm:$0xff] }
 0x28c   : > { %1236 = vmatprep.subr.mxu0 %v1199_v28  ;;  %1378 = vmatprep.subr.mxu1 %v1333_v29  ;;  %v1366_v28 = vld [vmem:[#allocation5 + $0x7d0] sm:$0xff]  ;;  %v1231_v29 = vld [vmem:[#allocation5 + $0x5e8] sm:$0xff] }
 0x28d   : > { %1237 = vmatpush1.msra.mxu0 %v1198_v30  ;;  %1379 = vmatpush1.msra.mxu1 %v1332_v31  ;;  %v1365_v30 = vld [vmem:[#allocation5 + $0x7c8] sm:$0xff]  ;;  %v1230_v31 = vld [vmem:[#allocation5 + $0x5e0] sm:$0xff] }
 0x28e   : > { %1238 = vmatprep.subr.mxu0 %v1197_v32  ;;  %1380 = vmatprep.subr.mxu1 %v1331_v33  ;;  %v1364_v32 = vld [vmem:[#allocation5 + $0x7c0] sm:$0xff]  ;;  %v1229_v33 = vld [vmem:[#allocation5 + $0x5d8] sm:$0xff] }
 0x28f   : > { %1239 = vmatpush1.msra.mxu0 %v1196_v34  ;;  %1381 = vmatpush1.msra.mxu1 %v1330_v35  ;;  %v1363_v34 = vld [vmem:[#allocation5 + $0x7b8] sm:$0xff]  ;;  %v1228_v35 = vld [vmem:[#allocation5 + $0x5d0] sm:$0xff] }
 0x290   : > { %1240 = vmatprep.subr.mxu0 %v1195_v36  ;;  %1382 = vmatprep.subr.mxu1 %v1329_v37  ;;  %v1362_v36 = vld [vmem:[#allocation5 + $0x7b0] sm:$0xff]  ;;  %v1227_v37 = vld [vmem:[#allocation5 + $0x5c8] sm:$0xff] }
 0x291   : > { %1241 = vmatpush1.msra.mxu0 %v1194_v38  ;;  %1383 = vmatpush1.msra.mxu1 %v1328_v39  ;;  %v1361_v38 = vld [vmem:[#allocation5 + $0x7a8] sm:$0xff]  ;;  %v1226_v39 = vld [vmem:[#allocation5 + $0x5c0] sm:$0xff] }
 0x292   : > { %1242 = vmatprep.subr.mxu0 %v1193_v40  ;;  %1384 = vmatprep.subr.mxu1 %v1327_v41  ;;  %v1360_v40 = vld [vmem:[#allocation5 + $0x7a0] sm:$0xff]  ;;  %v1225_v41 = vld [vmem:[#allocation5 + $0x5b8] sm:$0xff] }
 0x293   : > { %1243 = vmatpush1.msra.mxu0 %v1192_v42  ;;  %1385 = vmatpush1.msra.mxu1 %v1326_v43  ;;  %v1359_v42 = vld [vmem:[#allocation5 + $0x798] sm:$0xff]  ;;  %v1224_v43 = vld [vmem:[#allocation5 + $0x5b0] sm:$0xff] }
 0x294   : > { %1244 = vmatprep.subr.mxu0 %v1191_v44  ;;  %1386 = vmatprep.subr.mxu1 %v1325_v45  ;;  %v1358_v44 = vld [vmem:[#allocation5 + $0x790] sm:$0xff]  ;;  %v1223_v45 = vld [vmem:[#allocation5 + $0x5a8] sm:$0xff] }
 0x295   : > { %1245 = vmatpush1.msra.mxu0 %v1190_v46  ;;  %1387 = vmatpush1.msra.mxu1 %v1324_v47  ;;  %v1357_v46 = vld [vmem:[#allocation5 + $0x788] sm:$0xff]  ;;  %v1222_v47 = vld [vmem:[#allocation5 + $0x5a0] sm:$0xff] }
 0x296   : > { %1246 = vmatprep.subr.mxu0 %v1189_v48  ;;  %1388 = vmatprep.subr.mxu1 %v1323_v49  ;;  %v1356_v48 = vld [vmem:[#allocation5 + $0x780] sm:$0xff]  ;;  %v1221_v49 = vld [vmem:[#allocation5 + $0x598] sm:$0xff] }
 0x297   : > { %1247 = vmatpush1.msra.mxu0 %v1188_v50  ;;  %1389 = vmatpush1.msra.mxu1 %v1322_v51  ;;  %v1355_v50 = vld [vmem:[#allocation5 + $0x778] sm:$0xff]  ;;  %v1220_v51 = vld [vmem:[#allocation5 + $0x590] sm:$0xff] }
 0x298   : > { %1248 = vmatprep.subr.mxu0 %v1187_v52  ;;  %1390 = vmatprep.subr.mxu1 %v1321_v53  ;;  %v1354_v52 = vld [vmem:[#allocation5 + $0x770] sm:$0xff]  ;;  %v1219_v53 = vld [vmem:[#allocation5 + $0x588] sm:$0xff] }
 0x299   : > { %1249 = vmatpush1.msra.mxu0 %v1186_v54  ;;  %1391 = vmatpush1.msra.mxu1 %v1320_v55  ;;  %v1353_v54 = vld [vmem:[#allocation5 + $0x768] sm:$0xff]  ;;  %v1218_v55 = vld [vmem:[#allocation5 + $0x580] sm:$0xff] }
 0x29a   : > { %1250 = vmatprep.subr.mxu0 %v1185_v56  ;;  %1392 = vmatprep.subr.mxu1 %v1319_v57  ;;  %v1352_v56 = vld [vmem:[#allocation5 + $0x760] sm:$0xff]  ;;  %v1217_v57 = vld [vmem:[#allocation5 + $0x578] sm:$0xff] }
 0x29b   : > { %1251 = vmatpush1.msra.mxu0 %v1184_v58  ;;  %1393 = vmatpush1.msra.mxu1 %v1318_v59  ;;  %v1351_v58 = vld [vmem:[#allocation5 + $0x758] sm:$0xff]  ;;  %v1216_v59 = vld [vmem:[#allocation5 + $0x570] sm:$0xff] }
 0x29c   : > { %1252 = vmatprep.subr.mxu0 %v1183_v60  ;;  %1394 = vmatprep.subr.mxu1 %v1317_v61  ;;  %v1350_v60 = vld [vmem:[#allocation5 + $0x750] sm:$0xff]  ;;  %v5988_v61 = vpop.f32.mrf.mxu1 }
 0x29d   : > { %1253 = vmatpush1.msra.mxu0 %v1182_v62  ;;  %1395 = vmatpush1.msra.mxu1 %v1316_v63  ;;  %v1215_v62 = vld [vmem:[#allocation5 + $0x568] sm:$0xff] }
 0x29e   : > { %1254 = vmatprep.subr.mxu0 %v1181_v0  ;;  %1396 = vmatprep.subr.mxu1 %v1315_v1  ;;  %v1349_v63 = vld [vmem:[#allocation5 + $0x748] sm:$0xff]  ;;  %v1214_v0 = vld [vmem:[#allocation5 + $0x560] sm:$0xff] }
 0x29f   : > { %1255 = vmatpush1.msra.mxu0 %v1180_v2  ;;  %1397 = vmatpush1.msra.mxu1 %v1314_v3  ;;  %v1348_v1 = vld [vmem:[#allocation5 + $0x740] sm:$0xff]  ;;  %v1213_v2 = vld [vmem:[#allocation5 + $0x558] sm:$0xff] }
 0x2a0   : > { %1256 = vmatprep.subr.mxu0 %v1179_v4  ;;  %1398 = vmatprep.subr.mxu1 %v1313_v5  ;;  %v1347_v3 = vld [vmem:[#allocation5 + $0x738] sm:$0xff]  ;;  %v1212_v4 = vld [vmem:[#allocation5 + $0x550] sm:$0xff] }
 0x2a1   : > { %1257 = vmatpush1.msra.mxu0 %v1178_v7  ;;  %1399 = vmatpush1.msra.mxu1 %v1312_v8  ;;  %v1346_v5 = vld [vmem:[#allocation5 + $0x730] sm:$0xff]  ;;  %v859_v7 = vpop.f32.mrf.mxu1  ;;  %v1211_v8 = vld [vmem:[#allocation5 + $0x548] sm:$0xff] }
 0x2a2   : > { %1258 = vmatprep.subr.mxu0 %v1177_v9  ;;  %1400 = vmatprep.subr.mxu1 %v1311_v10  ;;  %v1345_v9 = vld [vmem:[#allocation5 + $0x728] sm:$0xff]  ;;  %v1210_v10 = vld [vmem:[#allocation5 + $0x540] sm:$0xff] }
 0x2a3   : > { %1259 = vmatpush1.msra.mxu0 %v1176_v11  ;;  %1401 = vmatpush1.msra.mxu1 %v1310_v12  ;;  %v1344_v11 = vld [vmem:[#allocation5 + $0x720] sm:$0xff]  ;;  %v1209_v12 = vld [vmem:[#allocation5 + $0x538] sm:$0xff] }
 0x2a4   : > { %1260 = vmatprep.subr.mxu0 %v1175_v13  ;;  %1402 = vmatprep.subr.mxu1 %v1309_v14  ;;  %v1208_v13 = vld [vmem:[#allocation5 + $0x530] sm:$0xff]  ;;  %v863_v14 = vpop.f32.mrf.mxu1 }
 0x2a5   : > { %1261 = vmatpush1.msra.mxu0 %v1174_v15  ;;  %1403 = vmatpush1.msra.mxu1 %v1308_v16  ;;  %v1343_v15 = vld [vmem:[#allocation5 + $0x718] sm:$0xff]  ;;  %v1207_v16 = vld [vmem:[#allocation5 + $0x528] sm:$0xff] }
 0x2a6   : > { %1262 = vmatprep.subr.mxu0 %v1173_v17  ;;  %1404 = vmatprep.subr.mxu1 %v1371_v18  ;;  %v1342_v17 = vld [vmem:[#allocation5 + $0x710] sm:$0xff]  ;;  %v1206_v18 = vld [vmem:[#allocation5 + $0x520] sm:$0xff] }
 0x2a7   : > { %1263 = vmatpush1.msra.mxu0 %v1172_v19  ;;  %1405 = vmatpush2.msra.mxu1 %v1370_v20  ;;  %v1341_v19 = vld [vmem:[#allocation5 + $0x708] sm:$0xff]  ;;  %v1205_v20 = vld [vmem:[#allocation5 + $0x518] sm:$0xff] }
 0x2a8   : > { %1264 = vmatprep.subr.mxu0 %v1171_v21  ;;  %1406 = vmatprep.subr.mxu1 %v1369_v22  ;;  %v1340_v21 = vld [vmem:[#allocation5 + $0x700] sm:$0xff]  ;;  %v1204_v22 = vld [vmem:[#allocation5 + $0x510] sm:$0xff] }
 0x2a9   : > { %1265 = vmatpush1.msra.mxu0 %v1170_v23  ;;  %1407 = vmatpush2.msra.mxu1 %v1368_v24  ;;  %v865_v23 = vpop.f32.mrf.mxu1  ;;  %v1203_v24 = vld [vmem:[#allocation5 + $0x508] sm:$0xff] }
 0x2aa   : > { %1266 = vmatprep.subr.mxu0 %v1233_v25  ;;  %1408 = vmatprep.subr.mxu1 %v1367_v26  ;;  %v1202_v25 = vld [vmem:[#allocation5 + $0x500] sm:$0xff]  ;;  %v1615_v26 = vld [vmem:[#allocation5 + $0xaf8] sm:$0xff] }
 0x2ab   : > { %1267 = vmatpush2.msra.mxu0 %v1232_v27  ;;  %1409 = vmatpush2.msra.mxu1 %v1366_v28  ;;  %v1477_v27 = vld [vmem:[#allocation5 + $0x8f8] sm:$0xff]  ;;  %v1476_v28 = vld [vmem:[#allocation5 + $0x8f0] sm:$0xff] }
 0x2ac   : > { %1268 = vmatprep.subr.mxu0 %v1231_v29  ;;  %1410 = vmatprep.subr.mxu1 %v1365_v30  ;;  %v1614_v29 = vld [vmem:[#allocation5 + $0xaf0] sm:$0xff]  ;;  %v1475_v30 = vld [vmem:[#allocation5 + $0x8e8] sm:$0xff] }
 0x2ad   : > { %1269 = vmatpush2.msra.mxu0 %v1230_v31  ;;  %1411 = vmatpush2.msra.mxu1 %v1364_v32  ;;  %v1613_v31 = vld [vmem:[#allocation5 + $0xae8] sm:$0xff]  ;;  %v1474_v32 = vld [vmem:[#allocation5 + $0x8e0] sm:$0xff] }
 0x2ae   : > { %1270 = vmatprep.subr.mxu0 %v1229_v33  ;;  %1412 = vmatprep.subr.mxu1 %v1363_v34  ;;  %v1612_v33 = vld [vmem:[#allocation5 + $0xae0] sm:$0xff]  ;;  %v1473_v34 = vld [vmem:[#allocation5 + $0x8d8] sm:$0xff] }
 0x2af   : > { %1271 = vmatpush2.msra.mxu0 %v1228_v35  ;;  %1413 = vmatpush2.msra.mxu1 %v1362_v36  ;;  %v1611_v35 = vld [vmem:[#allocation5 + $0xad8] sm:$0xff]  ;;  %v1472_v36 = vld [vmem:[#allocation5 + $0x8d0] sm:$0xff] }
 0x2b0   : > { %1272 = vmatprep.subr.mxu0 %v1227_v37  ;;  %1414 = vmatprep.subr.mxu1 %v1361_v38  ;;  %v1610_v37 = vld [vmem:[#allocation5 + $0xad0] sm:$0xff]  ;;  %v1471_v38 = vld [vmem:[#allocation5 + $0x8c8] sm:$0xff] }
 0x2b1   : > { %1273 = vmatpush2.msra.mxu0 %v1226_v39  ;;  %1415 = vmatpush2.msra.mxu1 %v1360_v40  ;;  %v1609_v39 = vld [vmem:[#allocation5 + $0xac8] sm:$0xff]  ;;  %v1470_v40 = vld [vmem:[#allocation5 + $0x8c0] sm:$0xff] }
 0x2b2   : > { %1274 = vmatprep.subr.mxu0 %v1225_v41  ;;  %1416 = vmatprep.subr.mxu1 %v1359_v42  ;;  %v1608_v41 = vld [vmem:[#allocation5 + $0xac0] sm:$0xff]  ;;  %v1469_v42 = vld [vmem:[#allocation5 + $0x8b8] sm:$0xff] }
 0x2b3   : > { %1275 = vmatpush2.msra.mxu0 %v1224_v43  ;;  %1417 = vmatpush2.msra.mxu1 %v1358_v44  ;;  %v1607_v43 = vld [vmem:[#allocation5 + $0xab8] sm:$0xff]  ;;  %v1468_v44 = vld [vmem:[#allocation5 + $0x8b0] sm:$0xff] }
 0x2b4   : > { %1276 = vmatprep.subr.mxu0 %v1223_v45  ;;  %1418 = vmatprep.subr.mxu1 %v1357_v46  ;;  %v1606_v45 = vld [vmem:[#allocation5 + $0xab0] sm:$0xff]  ;;  %v1467_v46 = vld [vmem:[#allocation5 + $0x8a8] sm:$0xff] }
 0x2b5   : > { %1277 = vmatpush2.msra.mxu0 %v1222_v47  ;;  %1419 = vmatpush2.msra.mxu1 %v1356_v48  ;;  %v1605_v47 = vld [vmem:[#allocation5 + $0xaa8] sm:$0xff]  ;;  %v1466_v48 = vld [vmem:[#allocation5 + $0x8a0] sm:$0xff] }
 0x2b6   : > { %1278 = vmatprep.subr.mxu0 %v1221_v49  ;;  %1420 = vmatprep.subr.mxu1 %v1355_v50  ;;  %v1604_v49 = vld [vmem:[#allocation5 + $0xaa0] sm:$0xff]  ;;  %v1465_v50 = vld [vmem:[#allocation5 + $0x898] sm:$0xff] }
 0x2b7   : > { %1279 = vmatpush2.msra.mxu0 %v1220_v51  ;;  %1421 = vmatpush2.msra.mxu1 %v1354_v52  ;;  %v1603_v51 = vld [vmem:[#allocation5 + $0xa98] sm:$0xff]  ;;  %v1464_v52 = vld [vmem:[#allocation5 + $0x890] sm:$0xff] }
 0x2b8   : > { %1280 = vmatprep.subr.mxu0 %v1219_v53  ;;  %1422 = vmatprep.subr.mxu1 %v1353_v54  ;;  %v1602_v53 = vld [vmem:[#allocation5 + $0xa90] sm:$0xff]  ;;  %v1463_v54 = vld [vmem:[#allocation5 + $0x888] sm:$0xff] }
 0x2b9   : > { %1281 = vmatpush2.msra.mxu0 %v1218_v55  ;;  %1423 = vmatpush2.msra.mxu1 %v1352_v56  ;;  %v1601_v55 = vld [vmem:[#allocation5 + $0xa88] sm:$0xff]  ;;  %v1462_v56 = vld [vmem:[#allocation5 + $0x880] sm:$0xff] }
 0x2ba   : > { %1282 = vmatprep.subr.mxu0 %v1217_v57  ;;  %1424 = vmatprep.subr.mxu1 %v1351_v58  ;;  %v1600_v57 = vld [vmem:[#allocation5 + $0xa80] sm:$0xff]  ;;  %v1461_v58 = vld [vmem:[#allocation5 + $0x878] sm:$0xff] }
 0x2bb   : > { %1283 = vmatpush2.msra.mxu0 %v1216_v59  ;;  %1425 = vmatpush2.msra.mxu1 %v1350_v60  ;;  %v1599_v59 = vld [vmem:[#allocation5 + $0xa78] sm:$0xff]  ;;  %v1460_v60 = vld [vmem:[#allocation5 + $0x870] sm:$0xff] }
 0x2bc   : > { %1284 = vmatprep.subr.mxu0 %v1215_v62  ;;  %1426 = vmatprep.subr.mxu1 %v1349_v63  ;;  %v1459_v62 = vld [vmem:[#allocation5 + $0x868] sm:$0xff] }
 0x2bd   : > { %1285 = vmatpush2.msra.mxu0 %v1214_v0  ;;  %1427 = vmatpush2.msra.mxu1 %v1348_v1  ;;  %v1597_v63 = vld [vmem:[#allocation5 + $0xa68] sm:$0xff]  ;;  %v1458_v0 = vld [vmem:[#allocation5 + $0x860] sm:$0xff] }
 0x2be   : > { %1286 = vmatprep.subr.mxu0 %v1213_v2  ;;  %1428 = vmatprep.subr.mxu1 %v1347_v3  ;;  %v1596_v1 = vld [vmem:[#allocation5 + $0xa60] sm:$0xff]  ;;  %v1457_v2 = vld [vmem:[#allocation5 + $0x858] sm:$0xff] }
 0x2bf   : > { %1287 = vmatpush2.msra.mxu0 %v1212_v4  ;;  %1429 = vmatpush2.msra.mxu1 %v1346_v5  ;;  %v1595_v3 = vld [vmem:[#allocation5 + $0xa58] sm:$0xff]  ;;  %v1456_v4 = vld [vmem:[#allocation5 + $0x850] sm:$0xff] }
 0x2c0   : > { %1288 = vmatprep.subr.mxu0 %v1211_v8  ;;  %1430 = vmatprep.subr.mxu1 %v1345_v9  ;;  %v1594_v5 = vld [vmem:[#allocation5 + $0xa50] sm:$0xff]  ;;  %v1593_v8 = vld [vmem:[#allocation5 + $0xa48] sm:$0xff]  ;;  %v1454_v9 = vld [vmem:[#allocation5 + $0x840] sm:$0xff] }
 0x2c1   : > { %1289 = vmatpush2.msra.mxu0 %v1210_v10  ;;  %1431 = vmatpush2.msra.mxu1 %v1344_v11  ;;  %v1592_v10 = vld [vmem:[#allocation5 + $0xa40] sm:$0xff]  ;;  %v1453_v11 = vld [vmem:[#allocation5 + $0x838] sm:$0xff] }
 0x2c2   : > { %1290 = vmatprep.subr.mxu0 %v1209_v12  ;;  %1298 = vmatprep.mubr.f32.mxu0 %v859_v7  ;;  %v1455_v7 = vld [vmem:[#allocation5 + $0x848] sm:$0xff]  ;;  %v1591_v12 = vld [vmem:[#allocation5 + $0xa38] sm:$0xff] }
 0x2c3   : > { %1291 = vmatpush2.msra.mxu0 %v1208_v13  ;;  %1432 = vmatprep.subr.mxu1 %v1343_v15  ;;  %v1452_v13 = vld [vmem:[#allocation5 + $0x830] sm:$0xff]  ;;  %v1451_v15 = vld [vmem:[#allocation5 + $0x828] sm:$0xff] }
 0x2c4   : > { %1292 = vmatprep.subr.mxu0 %v1207_v16  ;;  %1433 = vmatpush2.msra.mxu1 %v1342_v17  ;;  %v1589_v16 = vld [vmem:[#allocation5 + $0xa28] sm:$0xff]  ;;  %v1450_v17 = vld [vmem:[#allocation5 + $0x820] sm:$0xff] }
 0x2c5   : > { %1293 = vmatpush2.msra.mxu0 %v1206_v18  ;;  %1434 = vmatprep.subr.mxu1 %v1341_v19  ;;  %v1588_v18 = vld [vmem:[#allocation5 + $0xa20] sm:$0xff]  ;;  %v1449_v19 = vld [vmem:[#allocation5 + $0x818] sm:$0xff] }
 0x2c6   : > { %1294 = vmatprep.subr.mxu0 %v1205_v20  ;;  %1435 = vmatpush2.msra.mxu1 %v1340_v21  ;;  %v1587_v20 = vld [vmem:[#allocation5 + $0xa18] sm:$0xff]  ;;  %v1448_v21 = vld [vmem:[#allocation5 + $0x810] sm:$0xff] }
 0x2c7   : > { %1295 = vmatpush2.msra.mxu0 %v1204_v22  ;;  %1436 = vmatprep.mubr.f32.mxu1 %v865_v23  ;;  %v1586_v22 = vld [vmem:[#allocation5 + $0xa10] sm:$0xff]  ;;  %v1447_v23 = vld [vmem:[#allocation5 + $0x808] sm:$0xff] }
 0x2c8   : > { %1296 = vmatprep.subr.mxu0 %v1203_v24  ;;  %1437 = vmatmul.mubr.f32.vlgmr.msra.gmra.mxu1 %v863_v14  ;;  %v1590_v14 = vld [vmem:[#allocation5 + $0xa30] sm:$0xff]  ;;  %v1585_v24 = vld [vmem:[#allocation5 + $0xa08] sm:$0xff] }
 0x2c9   : > { %1297 = vmatpush2.msra.mxu0 %v1202_v25  ;;  %1648 = vmatprep.subr.mxu1 %v1615_v26  ;;  %v1446_v25 = vld [vmem:[#allocation5 + $0x800] sm:$0xff] }
 0x2ca   : > { %1299 = vmatmul.mubr.f32.vlgmr.msra.gmra.mxu0 %v5988_v61  ;;  %1510 = vmatprep.subr.mxu0 %v1477_v27  ;;  %v1598_v61 = vld [vmem:[#allocation5 + $0xa70] sm:$0xff]  ;;  %v1584_v26 = vld [vmem:[#allocation5 + $0xa00] sm:$0xff]  ;;  %v1509_v27 = vld [vmem:[#allocation5 + $0x9f8] sm:$0xff] }
 0x2cb   : > { %1511 = vmatpush1.msra.mxu0 %v1476_v28  ;;  %1649 = vmatpush1.msra.mxu1 %v1614_v29  ;;  %v1647_v28 = vld [vmem:[#allocation5 + $0xbf8] sm:$0xff]  ;;  %v1508_v29 = vld [vmem:[#allocation5 + $0x9f0] sm:$0xff] }
 0x2cc   : > { %1512 = vmatprep.subr.mxu0 %v1475_v30  ;;  %1650 = vmatprep.subr.mxu1 %v1613_v31  ;;  %v1646_v30 = vld [vmem:[#allocation5 + $0xbf0] sm:$0xff]  ;;  %v1507_v31 = vld [vmem:[#allocation5 + $0x9e8] sm:$0xff] }
 0x2cd   : > { %1513 = vmatpush1.msra.mxu0 %v1474_v32  ;;  %1651 = vmatpush1.msra.mxu1 %v1612_v33  ;;  %v1645_v32 = vld [vmem:[#allocation5 + $0xbe8] sm:$0xff]  ;;  %v1506_v33 = vld [vmem:[#allocation5 + $0x9e0] sm:$0xff] }
 0x2ce   : > { %1514 = vmatprep.subr.mxu0 %v1473_v34  ;;  %1652 = vmatprep.subr.mxu1 %v1611_v35  ;;  %v1644_v34 = vld [vmem:[#allocation5 + $0xbe0] sm:$0xff]  ;;  %v1505_v35 = vld [vmem:[#allocation5 + $0x9d8] sm:$0xff] }
 0x2cf   : > { %1515 = vmatpush1.msra.mxu0 %v1472_v36  ;;  %1653 = vmatpush1.msra.mxu1 %v1610_v37  ;;  %v1643_v36 = vld [vmem:[#allocation5 + $0xbd8] sm:$0xff]  ;;  %v1504_v37 = vld [vmem:[#allocation5 + $0x9d0] sm:$0xff] }
 0x2d0   : > { %1516 = vmatprep.subr.mxu0 %v1471_v38  ;;  %1654 = vmatprep.subr.mxu1 %v1609_v39  ;;  %v1642_v38 = vld [vmem:[#allocation5 + $0xbd0] sm:$0xff]  ;;  %v1503_v39 = vld [vmem:[#allocation5 + $0x9c8] sm:$0xff] }
 0x2d1   : > { %1517 = vmatpush1.msra.mxu0 %v1470_v40  ;;  %1655 = vmatpush1.msra.mxu1 %v1608_v41  ;;  %v1641_v40 = vld [vmem:[#allocation5 + $0xbc8] sm:$0xff]  ;;  %v1502_v41 = vld [vmem:[#allocation5 + $0x9c0] sm:$0xff] }
 0x2d2   : > { %1518 = vmatprep.subr.mxu0 %v1469_v42  ;;  %1656 = vmatprep.subr.mxu1 %v1607_v43  ;;  %v1640_v42 = vld [vmem:[#allocation5 + $0xbc0] sm:$0xff]  ;;  %v1501_v43 = vld [vmem:[#allocation5 + $0x9b8] sm:$0xff] }
 0x2d3   : > { %1519 = vmatpush1.msra.mxu0 %v1468_v44  ;;  %1657 = vmatpush1.msra.mxu1 %v1606_v45  ;;  %v1639_v44 = vld [vmem:[#allocation5 + $0xbb8] sm:$0xff]  ;;  %v1500_v45 = vld [vmem:[#allocation5 + $0x9b0] sm:$0xff] }
 0x2d4   : > { %1520 = vmatprep.subr.mxu0 %v1467_v46  ;;  %1658 = vmatprep.subr.mxu1 %v1605_v47  ;;  %v1638_v46 = vld [vmem:[#allocation5 + $0xbb0] sm:$0xff]  ;;  %v1499_v47 = vld [vmem:[#allocation5 + $0x9a8] sm:$0xff] }
 0x2d5   : > { %1521 = vmatpush1.msra.mxu0 %v1466_v48  ;;  %1659 = vmatpush1.msra.mxu1 %v1604_v49  ;;  %v1637_v48 = vld [vmem:[#allocation5 + $0xba8] sm:$0xff]  ;;  %v1498_v49 = vld [vmem:[#allocation5 + $0x9a0] sm:$0xff] }
 0x2d6   : > { %1522 = vmatprep.subr.mxu0 %v1465_v50  ;;  %1660 = vmatprep.subr.mxu1 %v1603_v51  ;;  %v1636_v50 = vld [vmem:[#allocation5 + $0xba0] sm:$0xff]  ;;  %v1497_v51 = vld [vmem:[#allocation5 + $0x998] sm:$0xff] }
 0x2d7   : > { %1523 = vmatpush1.msra.mxu0 %v1464_v52  ;;  %1661 = vmatpush1.msra.mxu1 %v1602_v53  ;;  %v1635_v52 = vld [vmem:[#allocation5 + $0xb98] sm:$0xff]  ;;  %v1496_v53 = vld [vmem:[#allocation5 + $0x990] sm:$0xff] }
 0x2d8   : > { %1524 = vmatprep.subr.mxu0 %v1463_v54  ;;  %1662 = vmatprep.subr.mxu1 %v1601_v55  ;;  %v1634_v54 = vld [vmem:[#allocation5 + $0xb90] sm:$0xff]  ;;  %v1495_v55 = vld [vmem:[#allocation5 + $0x988] sm:$0xff] }
 0x2d9   : > { %1525 = vmatpush1.msra.mxu0 %v1462_v56  ;;  %1663 = vmatpush1.msra.mxu1 %v1600_v57  ;;  %v1633_v56 = vld [vmem:[#allocation5 + $0xb88] sm:$0xff]  ;;  %v1494_v57 = vld [vmem:[#allocation5 + $0x980] sm:$0xff] }
 0x2da   : > { %1526 = vmatprep.subr.mxu0 %v1461_v58  ;;  %1664 = vmatprep.subr.mxu1 %v1599_v59  ;;  %v1632_v58 = vld [vmem:[#allocation5 + $0xb80] sm:$0xff]  ;;  %v1493_v59 = vld [vmem:[#allocation5 + $0x978] sm:$0xff] }
 0x2db   : > { %1527 = vmatpush1.msra.mxu0 %v1460_v60  ;;  %1665 = vmatpush1.msra.mxu1 %v1598_v61  ;;  %v1631_v60 = vld [vmem:[#allocation5 + $0xb78] sm:$0xff]  ;;  %v1492_v61 = vld [vmem:[#allocation5 + $0x970] sm:$0xff] }
 0x2dc   : > { %1528 = vmatprep.subr.mxu0 %v1459_v62  ;;  %1666 = vmatprep.subr.mxu1 %v1597_v63  ;;  %v1630_v62 = vld [vmem:[#allocation5 + $0xb70] sm:$0xff]  ;;  %v1491_v63 = vld [vmem:[#allocation5 + $0x968] sm:$0xff] }
 0x2dd   : > { %1529 = vmatpush1.msra.mxu0 %v1458_v0  ;;  %1667 = vmatpush1.msra.mxu1 %v1596_v1  ;;  %v1629_v0 = vld [vmem:[#allocation5 + $0xb68] sm:$0xff]  ;;  %v1490_v1 = vld [vmem:[#allocation5 + $0x960] sm:$0xff] }
 0x2de   : > { %1530 = vmatprep.subr.mxu0 %v1457_v2  ;;  %1668 = vmatprep.subr.mxu1 %v1595_v3  ;;  %v1628_v2 = vld [vmem:[#allocation5 + $0xb60] sm:$0xff]  ;;  %v1489_v3 = vld [vmem:[#allocation5 + $0x958] sm:$0xff] }
 0x2df   : > { %1531 = vmatpush1.msra.mxu0 %v1456_v4  ;;  %1669 = vmatpush1.msra.mxu1 %v1594_v5  ;;  %v1627_v4 = vld [vmem:[#allocation5 + $0xb58] sm:$0xff]  ;;  %v1488_v5 = vld [vmem:[#allocation5 + $0x950] sm:$0xff] }
 0x2e0   : > { %1532 = vmatprep.subr.mxu0 %v1455_v7  ;;  %1670 = vmatprep.subr.mxu1 %v1593_v8  ;;  %v1626_v7 = vld [vmem:[#allocation5 + $0xb50] sm:$0xff]  ;;  %v869_v8 = vpop.f32.mrf.mxu1 }
 0x2e1   : > { %1533 = vmatpush1.msra.mxu0 %v1454_v9  ;;  %1671 = vmatpush1.msra.mxu1 %v1592_v10  ;;  %v1487_v9 = vld [vmem:[#allocation5 + $0x948] sm:$0xff] }
 0x2e2   : > { %1534 = vmatprep.subr.mxu0 %v1453_v11  ;;  %1672 = vmatprep.subr.mxu1 %v1591_v12  ;;  %v1625_v10 = vld [vmem:[#allocation5 + $0xb48] sm:$0xff]  ;;  %v1486_v11 = vld [vmem:[#allocation5 + $0x940] sm:$0xff] }
 0x2e3   : > { %1535 = vmatpush1.msra.mxu0 %v1452_v13  ;;  %1673 = vmatpush1.msra.mxu1 %v1590_v14  ;;  %v1624_v12 = vld [vmem:[#allocation5 + $0xb40] sm:$0xff]  ;;  %v1485_v13 = vld [vmem:[#allocation5 + $0x938] sm:$0xff] }
 0x2e4   : > { %1536 = vmatprep.subr.mxu0 %v1451_v15  ;;  %1674 = vmatprep.subr.mxu1 %v1589_v16  ;;  %v1623_v14 = vld [vmem:[#allocation5 + $0xb38] sm:$0xff]  ;;  %v1484_v15 = vld [vmem:[#allocation5 + $0x930] sm:$0xff] }
 0x2e5   : > { %1537 = vmatpush1.msra.mxu0 %v1450_v17  ;;  %1675 = vmatpush1.msra.mxu1 %v1588_v18  ;;  %v1622_v16 = vld [vmem:[#allocation5 + $0xb30] sm:$0xff]  ;;  %v871_v17 = vpop.f32.mrf.mxu1  ;;  %v1483_v18 = vld [vmem:[#allocation5 + $0x928] sm:$0xff] }
 0x2e6   : > { %1538 = vmatprep.subr.mxu0 %v1449_v19  ;;  %1676 = vmatprep.subr.mxu1 %v1587_v20  ;;  %v1621_v19 = vld [vmem:[#allocation5 + $0xb28] sm:$0xff]  ;;  %v1482_v20 = vld [vmem:[#allocation5 + $0x920] sm:$0xff] }
 0x2e7   : > { %1539 = vmatpush1.msra.mxu0 %v1448_v21  ;;  %1677 = vmatpush1.msra.mxu1 %v1586_v22  ;;  %v1620_v21 = vld [vmem:[#allocation5 + $0xb20] sm:$0xff]  ;;  %v1481_v22 = vld [vmem:[#allocation5 + $0x918] sm:$0xff] }
 0x2e8   : > { %1540 = vmatprep.subr.mxu0 %v1447_v23  ;;  %1678 = vmatprep.subr.mxu1 %v1585_v24  ;;  %v1480_v23 = vld [vmem:[#allocation5 + $0x910] sm:$0xff]  ;;  %v875_v24 = vpop.f32.mrf.mxu1 }
 0x2e9   : > { %1541 = vmatpush1.msra.mxu0 %v1446_v25  ;;  %1679 = vmatpush1.msra.mxu1 %v1584_v26  ;;  %v1619_v25 = vld [vmem:[#allocation5 + $0xb18] sm:$0xff]  ;;  %v1479_v26 = vld [vmem:[#allocation5 + $0x908] sm:$0xff] }
 0x2ea   : > { %1542 = vmatprep.subr.mxu0 %v1509_v27  ;;  %1680 = vmatprep.subr.mxu1 %v1647_v28  ;;  %v1618_v27 = vld [vmem:[#allocation5 + $0xb10] sm:$0xff]  ;;  %v1478_v28 = vld [vmem:[#allocation5 + $0x900] sm:$0xff] }
 0x2eb   : > { %1543 = vmatpush2.msra.mxu0 %v1508_v29  ;;  %1681 = vmatpush2.msra.mxu1 %v1646_v30  ;;  %v1617_v29 = vld [vmem:[#allocation5 + $0xb08] sm:$0xff]  ;;  %v1753_v30 = vld [vmem:[#allocation5 + $0xcf8] sm:$0xff] }
 0x2ec   : > { %1544 = vmatprep.subr.mxu0 %v1507_v31  ;;  %1682 = vmatprep.subr.mxu1 %v1645_v32  ;;  %v877_v31 = vpop.f32.mrf.mxu1  ;;  %v1616_v32 = vld [vmem:[#allocation5 + $0xb00] sm:$0xff] }
 0x2ed   : > { %1545 = vmatpush2.msra.mxu0 %v1506_v33  ;;  %1683 = vmatpush2.msra.mxu1 %v1644_v34  ;;  %v1752_v33 = vld [vmem:[#allocation5 + $0xcf0] sm:$0xff]  ;;  %v1751_v34 = vld [vmem:[#allocation5 + $0xce8] sm:$0xff] }
 0x2ee   : > { %1546 = vmatprep.subr.mxu0 %v1505_v35  ;;  %1684 = vmatprep.subr.mxu1 %v1643_v36  ;;  %v1891_v35 = vld [vmem:[#allocation5 + $0xef8] sm:$0xff]  ;;  %v1750_v36 = vld [vmem:[#allocation5 + $0xce0] sm:$0xff] }
 0x2ef   : > { %1547 = vmatpush2.msra.mxu0 %v1504_v37  ;;  %1685 = vmatpush2.msra.mxu1 %v1642_v38  ;;  %v1890_v37 = vld [vmem:[#allocation5 + $0xef0] sm:$0xff]  ;;  %v1749_v38 = vld [vmem:[#allocation5 + $0xcd8] sm:$0xff] }
 0x2f0   : > { %1548 = vmatprep.subr.mxu0 %v1503_v39  ;;  %1686 = vmatprep.subr.mxu1 %v1641_v40  ;;  %v1889_v39 = vld [vmem:[#allocation5 + $0xee8] sm:$0xff]  ;;  %v1748_v40 = vld [vmem:[#allocation5 + $0xcd0] sm:$0xff] }
 0x2f1   : > { %1549 = vmatpush2.msra.mxu0 %v1502_v41  ;;  %1687 = vmatpush2.msra.mxu1 %v1640_v42  ;;  %v1888_v41 = vld [vmem:[#allocation5 + $0xee0] sm:$0xff]  ;;  %v1747_v42 = vld [vmem:[#allocation5 + $0xcc8] sm:$0xff] }
 0x2f2   : > { %1550 = vmatprep.subr.mxu0 %v1501_v43  ;;  %1688 = vmatprep.subr.mxu1 %v1639_v44  ;;  %v1887_v43 = vld [vmem:[#allocation5 + $0xed8] sm:$0xff]  ;;  %v1746_v44 = vld [vmem:[#allocation5 + $0xcc0] sm:$0xff] }
 0x2f3   : > { %1551 = vmatpush2.msra.mxu0 %v1500_v45  ;;  %1689 = vmatpush2.msra.mxu1 %v1638_v46  ;;  %v1886_v45 = vld [vmem:[#allocation5 + $0xed0] sm:$0xff]  ;;  %v1745_v46 = vld [vmem:[#allocation5 + $0xcb8] sm:$0xff] }
 0x2f4   : > { %1552 = vmatprep.subr.mxu0 %v1499_v47  ;;  %1690 = vmatprep.subr.mxu1 %v1637_v48  ;;  %v1885_v47 = vld [vmem:[#allocation5 + $0xec8] sm:$0xff]  ;;  %v1744_v48 = vld [vmem:[#allocation5 + $0xcb0] sm:$0xff] }
 0x2f5   : > { %1553 = vmatpush2.msra.mxu0 %v1498_v49  ;;  %1691 = vmatpush2.msra.mxu1 %v1636_v50  ;;  %v1884_v49 = vld [vmem:[#allocation5 + $0xec0] sm:$0xff]  ;;  %v1743_v50 = vld [vmem:[#allocation5 + $0xca8] sm:$0xff] }
 0x2f6   : > { %1554 = vmatprep.subr.mxu0 %v1497_v51  ;;  %1692 = vmatprep.subr.mxu1 %v1635_v52  ;;  %v1883_v51 = vld [vmem:[#allocation5 + $0xeb8] sm:$0xff]  ;;  %v1742_v52 = vld [vmem:[#allocation5 + $0xca0] sm:$0xff] }
 0x2f7   : > { %1555 = vmatpush2.msra.mxu0 %v1496_v53  ;;  %1693 = vmatpush2.msra.mxu1 %v1634_v54  ;;  %v1882_v53 = vld [vmem:[#allocation5 + $0xeb0] sm:$0xff]  ;;  %v1741_v54 = vld [vmem:[#allocation5 + $0xc98] sm:$0xff] }
 0x2f8   : > { %1556 = vmatprep.subr.mxu0 %v1495_v55  ;;  %1694 = vmatprep.subr.mxu1 %v1633_v56  ;;  %v1881_v55 = vld [vmem:[#allocation5 + $0xea8] sm:$0xff]  ;;  %v1740_v56 = vld [vmem:[#allocation5 + $0xc90] sm:$0xff] }
 0x2f9   : > { %1557 = vmatpush2.msra.mxu0 %v1494_v57  ;;  %1695 = vmatpush2.msra.mxu1 %v1632_v58  ;;  %v1880_v57 = vld [vmem:[#allocation5 + $0xea0] sm:$0xff]  ;;  %v1739_v58 = vld [vmem:[#allocation5 + $0xc88] sm:$0xff] }
 0x2fa   : > { %1558 = vmatprep.subr.mxu0 %v1493_v59  ;;  %1696 = vmatprep.subr.mxu1 %v1631_v60  ;;  %v1879_v59 = vld [vmem:[#allocation5 + $0xe98] sm:$0xff]  ;;  %v1738_v60 = vld [vmem:[#allocation5 + $0xc80] sm:$0xff] }
 0x2fb   : > { %1559 = vmatpush2.msra.mxu0 %v1492_v61  ;;  %1697 = vmatpush2.msra.mxu1 %v1630_v62  ;;  %v1878_v61 = vld [vmem:[#allocation5 + $0xe90] sm:$0xff]  ;;  %v1737_v62 = vld [vmem:[#allocation5 + $0xc78] sm:$0xff] }
 0x2fc   : > { %1560 = vmatprep.subr.mxu0 %v1491_v63  ;;  %1698 = vmatprep.subr.mxu1 %v1629_v0  ;;  %v1877_v63 = vld [vmem:[#allocation5 + $0xe88] sm:$0xff]  ;;  %v1736_v0 = vld [vmem:[#allocation5 + $0xc70] sm:$0xff] }
 0x2fd   : > { %1561 = vmatpush2.msra.mxu0 %v1490_v1  ;;  %1699 = vmatpush2.msra.mxu1 %v1628_v2  ;;  %v1876_v1 = vld [vmem:[#allocation5 + $0xe80] sm:$0xff]  ;;  %v1735_v2 = vld [vmem:[#allocation5 + $0xc68] sm:$0xff] }
 0x2fe   : > { %1562 = vmatprep.subr.mxu0 %v1489_v3  ;;  %1700 = vmatprep.subr.mxu1 %v1627_v4  ;;  %v1875_v3 = vld [vmem:[#allocation5 + $0xe78] sm:$0xff]  ;;  %v1734_v4 = vld [vmem:[#allocation5 + $0xc60] sm:$0xff] }
 0x2ff   : > { %1563 = vmatpush2.msra.mxu0 %v1488_v5  ;;  %1701 = vmatpush2.msra.mxu1 %v1626_v7  ;;  %v1874_v5 = vld [vmem:[#allocation5 + $0xe70] sm:$0xff]  ;;  %v1733_v7 = vld [vmem:[#allocation5 + $0xc58] sm:$0xff] }
 0x300   : > { %1564 = vmatprep.subr.mxu0 %v1487_v9  ;;  %1702 = vmatprep.subr.mxu1 %v1625_v10  ;;  %v1732_v9 = vld [vmem:[#allocation5 + $0xc50] sm:$0xff]  ;;  %v1872_v10 = vld [vmem:[#allocation5 + $0xe60] sm:$0xff] }
 0x301   : > { %1565 = vmatpush2.msra.mxu0 %v1486_v11  ;;  %1703 = vmatpush2.msra.mxu1 %v1624_v12  ;;  %v1731_v11 = vld [vmem:[#allocation5 + $0xc48] sm:$0xff]  ;;  %v1871_v12 = vld [vmem:[#allocation5 + $0xe58] sm:$0xff] }
 0x302   : > { %1566 = vmatprep.subr.mxu0 %v1485_v13  ;;  %1704 = vmatprep.subr.mxu1 %v1623_v14  ;;  %v1730_v13 = vld [vmem:[#allocation5 + $0xc40] sm:$0xff]  ;;  %v1870_v14 = vld [vmem:[#allocation5 + $0xe50] sm:$0xff] }
 0x303   : > { %1567 = vmatpush2.msra.mxu0 %v1484_v15  ;;  %1705 = vmatpush2.msra.mxu1 %v1622_v16  ;;  %v1729_v15 = vld [vmem:[#allocation5 + $0xc38] sm:$0xff]  ;;  %v1869_v16 = vld [vmem:[#allocation5 + $0xe48] sm:$0xff] }
 0x304   : > { %1568 = vmatprep.subr.mxu0 %v1483_v18  ;;  %1706 = vmatprep.subr.mxu1 %v1621_v19  ;;  %v1868_v18 = vld [vmem:[#allocation5 + $0xe40] sm:$0xff]  ;;  %v1727_v19 = vld [vmem:[#allocation5 + $0xc28] sm:$0xff] }
 0x305   : > { %1569 = vmatpush2.msra.mxu0 %v1482_v20  ;;  %1707 = vmatpush2.msra.mxu1 %v1620_v21  ;;  %v1867_v20 = vld [vmem:[#allocation5 + $0xe38] sm:$0xff]  ;;  %v1726_v21 = vld [vmem:[#allocation5 + $0xc20] sm:$0xff] }
 0x306   : > { %1570 = vmatprep.subr.mxu0 %v1481_v22  ;;  %1574 = vmatprep.mubr.f32.mxu0 %v871_v17  ;;  %v1728_v17 = vld [vmem:[#allocation5 + $0xc30] sm:$0xff] }
 0x307   : > { %1571 = vmatpush2.msra.mxu0 %v1480_v23  ;;  %1708 = vmatprep.subr.mxu1 %v1619_v25  ;;  %v1866_v22 = vld [vmem:[#allocation5 + $0xe30] sm:$0xff]  ;;  %v1725_v23 = vld [vmem:[#allocation5 + $0xc18] sm:$0xff] }
 0x308   : > { %1572 = vmatprep.subr.mxu0 %v1479_v26  ;;  %1709 = vmatpush2.msra.mxu1 %v1618_v27  ;;  %v1724_v25 = vld [vmem:[#allocation5 + $0xc10] sm:$0xff]  ;;  %v1864_v26 = vld [vmem:[#allocation5 + $0xe20] sm:$0xff]  ;;  %v1723_v27 = vld [vmem:[#allocation5 + $0xc08] sm:$0xff] }
 0x309   : > { %1573 = vmatpush2.msra.mxu0 %v1478_v28  ;;  %1710 = vmatprep.subr.mxu1 %v1617_v29  ;;  %v1863_v28 = vld [vmem:[#allocation5 + $0xe18] sm:$0xff]  ;;  %v1722_v29 = vld [vmem:[#allocation5 + $0xc00] sm:$0xff] }
 0x30a   : > { %1575 = vmatmul.mubr.f32.vlgmr.msra.gmra.mxu0 %v869_v8  ;;  %1786 = vmatprep.subr.mxu0 %v1753_v30  ;;  %v1873_v8 = vld [vmem:[#allocation5 + $0xe68] sm:$0xff]  ;;  %v1862_v30 = vld [vmem:[#allocation5 + $0xe10] sm:$0xff] }
 0x30b   : > { %1711 = vmatpush2.msra.mxu1 %v1616_v32  ;;  %1712 = vmatprep.mubr.f32.mxu1 %v877_v31  ;;  %v1785_v31 = vld [vmem:[#allocation5 + $0xdf8] sm:$0xff]  ;;  %v1861_v32 = vld [vmem:[#allocation5 + $0xe08] sm:$0xff] }
 0x30c   : > { %1787 = vmatpush1.msra.mxu0 %v1752_v33  ;;  %1713 = vmatmul.mubr.f32.vlgmr.msra.gmra.mxu1 %v875_v24  ;;  %v1865_v24 = vld [vmem:[#allocation5 + $0xe28] sm:$0xff]  ;;  %v1784_v33 = vld [vmem:[#allocation5 + $0xdf0] sm:$0xff] }
 0x30d   : > { %1788 = vmatprep.subr.mxu0 %v1751_v34  ;;  %1924 = vmatprep.subr.mxu1 %v1891_v35  ;;  %v1860_v34 = vld [vmem:[#allocation5 + $0xe00] sm:$0xff]  ;;  %v1783_v35 = vld [vmem:[#allocation5 + $0xde8] sm:$0xff] }
 0x30e   : > { %1789 = vmatpush1.msra.mxu0 %v1750_v36  ;;  %1925 = vmatpush1.msra.mxu1 %v1890_v37  ;;  %v1923_v36 = vld [vmem:[#allocation5 + $0xff8] sm:$0xff]  ;;  %v1782_v37 = vld [vmem:[#allocation5 + $0xde0] sm:$0xff] }
 0x30f   : > { %1790 = vmatprep.subr.mxu0 %v1749_v38  ;;  %1926 = vmatprep.subr.mxu1 %v1889_v39  ;;  %v1922_v38 = vld [vmem:[#allocation5 + $0xff0] sm:$0xff]  ;;  %v1781_v39 = vld [vmem:[#allocation5 + $0xdd8] sm:$0xff] }
 0x310   : > { %1791 = vmatpush1.msra.mxu0 %v1748_v40  ;;  %1927 = vmatpush1.msra.mxu1 %v1888_v41  ;;  %v1921_v40 = vld [vmem:[#allocation5 + $0xfe8] sm:$0xff]  ;;  %v1780_v41 = vld [vmem:[#allocation5 + $0xdd0] sm:$0xff] }
 0x311   : > { %1792 = vmatprep.subr.mxu0 %v1747_v42  ;;  %1928 = vmatprep.subr.mxu1 %v1887_v43  ;;  %v1920_v42 = vld [vmem:[#allocation5 + $0xfe0] sm:$0xff]  ;;  %v1779_v43 = vld [vmem:[#allocation5 + $0xdc8] sm:$0xff] }
 0x312   : > { %1793 = vmatpush1.msra.mxu0 %v1746_v44  ;;  %1929 = vmatpush1.msra.mxu1 %v1886_v45  ;;  %v1919_v44 = vld [vmem:[#allocation5 + $0xfd8] sm:$0xff]  ;;  %v1778_v45 = vld [vmem:[#allocation5 + $0xdc0] sm:$0xff] }
 0x313   : > { %1794 = vmatprep.subr.mxu0 %v1745_v46  ;;  %1930 = vmatprep.subr.mxu1 %v1885_v47  ;;  %v1918_v46 = vld [vmem:[#allocation5 + $0xfd0] sm:$0xff]  ;;  %v1777_v47 = vld [vmem:[#allocation5 + $0xdb8] sm:$0xff] }
 0x314   : > { %1795 = vmatpush1.msra.mxu0 %v1744_v48  ;;  %1931 = vmatpush1.msra.mxu1 %v1884_v49  ;;  %v1917_v48 = vld [vmem:[#allocation5 + $0xfc8] sm:$0xff]  ;;  %v1776_v49 = vld [vmem:[#allocation5 + $0xdb0] sm:$0xff] }
 0x315   : > { %1796 = vmatprep.subr.mxu0 %v1743_v50  ;;  %1932 = vmatprep.subr.mxu1 %v1883_v51  ;;  %v1916_v50 = vld [vmem:[#allocation5 + $0xfc0] sm:$0xff]  ;;  %v1775_v51 = vld [vmem:[#allocation5 + $0xda8] sm:$0xff] }
 0x316   : > { %1797 = vmatpush1.msra.mxu0 %v1742_v52  ;;  %1933 = vmatpush1.msra.mxu1 %v1882_v53  ;;  %v1915_v52 = vld [vmem:[#allocation5 + $0xfb8] sm:$0xff]  ;;  %v1774_v53 = vld [vmem:[#allocation5 + $0xda0] sm:$0xff] }
 0x317   : > { %1798 = vmatprep.subr.mxu0 %v1741_v54  ;;  %1934 = vmatprep.subr.mxu1 %v1881_v55  ;;  %v1914_v54 = vld [vmem:[#allocation5 + $0xfb0] sm:$0xff]  ;;  %v1773_v55 = vld [vmem:[#allocation5 + $0xd98] sm:$0xff] }
 0x318   : > { %1799 = vmatpush1.msra.mxu0 %v1740_v56  ;;  %1935 = vmatpush1.msra.mxu1 %v1880_v57  ;;  %v1913_v56 = vld [vmem:[#allocation5 + $0xfa8] sm:$0xff]  ;;  %v1772_v57 = vld [vmem:[#allocation5 + $0xd90] sm:$0xff] }
 0x319   : > { %1800 = vmatprep.subr.mxu0 %v1739_v58  ;;  %1936 = vmatprep.subr.mxu1 %v1879_v59  ;;  %v1912_v58 = vld [vmem:[#allocation5 + $0xfa0] sm:$0xff]  ;;  %v1771_v59 = vld [vmem:[#allocation5 + $0xd88] sm:$0xff] }
 0x31a   : > { %1801 = vmatpush1.msra.mxu0 %v1738_v60  ;;  %1937 = vmatpush1.msra.mxu1 %v1878_v61  ;;  %v1911_v60 = vld [vmem:[#allocation5 + $0xf98] sm:$0xff]  ;;  %v1770_v61 = vld [vmem:[#allocation5 + $0xd80] sm:$0xff] }
 0x31b   : > { %1802 = vmatprep.subr.mxu0 %v1737_v62  ;;  %1938 = vmatprep.subr.mxu1 %v1877_v63  ;;  %v1910_v62 = vld [vmem:[#allocation5 + $0xf90] sm:$0xff]  ;;  %v1769_v63 = vld [vmem:[#allocation5 + $0xd78] sm:$0xff] }
 0x31c   : > { %1803 = vmatpush1.msra.mxu0 %v1736_v0  ;;  %1939 = vmatpush1.msra.mxu1 %v1876_v1  ;;  %v1909_v0 = vld [vmem:[#allocation5 + $0xf88] sm:$0xff]  ;;  %v1768_v1 = vld [vmem:[#allocation5 + $0xd70] sm:$0xff] }
 0x31d   : > { %1804 = vmatprep.subr.mxu0 %v1735_v2  ;;  %1940 = vmatprep.subr.mxu1 %v1875_v3  ;;  %v1908_v2 = vld [vmem:[#allocation5 + $0xf80] sm:$0xff]  ;;  %v5991_v3 = vpop.f32.mrf.mxu1 }
 0x31e   : > { %1805 = vmatpush1.msra.mxu0 %v1734_v4  ;;  %1941 = vmatpush1.msra.mxu1 %v1874_v5  ;;  %v1767_v4 = vld [vmem:[#allocation5 + $0xd68] sm:$0xff]  ;;  %v1907_v5 = vld [vmem:[#allocation5 + $0xf78] sm:$0xff] }
 0x31f   : > { %1806 = vmatprep.subr.mxu0 %v1733_v7  ;;  %1942 = vmatprep.subr.mxu1 %v1873_v8  ;;  %v1766_v7 = vld [vmem:[#allocation5 + $0xd60] sm:$0xff]  ;;  %v1906_v8 = vld [vmem:[#allocation5 + $0xf70] sm:$0xff] }
 0x320   : > { %1807 = vmatpush1.msra.mxu0 %v1732_v9  ;;  %1943 = vmatpush1.msra.mxu1 %v1872_v10  ;;  %v1765_v9 = vld [vmem:[#allocation5 + $0xd58] sm:$0xff]  ;;  %v1905_v10 = vld [vmem:[#allocation5 + $0xf68] sm:$0xff] }
 0x321   : > { %1808 = vmatprep.subr.mxu0 %v1731_v11  ;;  %1944 = vmatprep.subr.mxu1 %v1871_v12  ;;  %v1764_v11 = vld [vmem:[#allocation5 + $0xd50] sm:$0xff]  ;;  %v1904_v12 = vld [vmem:[#allocation5 + $0xf60] sm:$0xff] }
 0x322   : > { %1809 = vmatpush1.msra.mxu0 %v1730_v13  ;;  %1945 = vmatpush1.msra.mxu1 %v1870_v14  ;;  %v883_v13 = vpop.f32.mrf.mxu1  ;;  %v1763_v14 = vld [vmem:[#allocation5 + $0xd48] sm:$0xff] }
 0x323   : > { %1810 = vmatprep.subr.mxu0 %v1729_v15  ;;  %1946 = vmatprep.subr.mxu1 %v1869_v16  ;;  %v1903_v15 = vld [vmem:[#allocation5 + $0xf58] sm:$0xff]  ;;  %v1762_v16 = vld [vmem:[#allocation5 + $0xd40] sm:$0xff] }
 0x324   : > { %1811 = vmatpush1.msra.mxu0 %v1728_v17  ;;  %1947 = vmatpush1.msra.mxu1 %v1868_v18  ;;  %v1902_v17 = vld [vmem:[#allocation5 + $0xf50] sm:$0xff]  ;;  %v1761_v18 = vld [vmem:[#allocation5 + $0xd38] sm:$0xff] }
 0x325   : > { %1812 = vmatprep.subr.mxu0 %v1727_v19  ;;  %1948 = vmatprep.subr.mxu1 %v1867_v20  ;;  %v1901_v19 = vld [vmem:[#allocation5 + $0xf48] sm:$0xff]  ;;  %v1760_v20 = vld [vmem:[#allocation5 + $0xd30] sm:$0xff] }
 0x326   : > { %1813 = vmatpush1.msra.mxu0 %v1726_v21  ;;  %1949 = vmatpush1.msra.mxu1 %v1866_v22  ;;  %v1900_v21 = vld [vmem:[#allocation5 + $0xf40] sm:$0xff]  ;;  %v887_v22 = vpop.f32.mrf.mxu1 }
 0x327   : > { %1814 = vmatprep.subr.mxu0 %v1725_v23  ;;  %1950 = vmatprep.subr.mxu1 %v1865_v24  ;;  %v1759_v23 = vld [vmem:[#allocation5 + $0xd28] sm:$0xff]  ;;  %v1899_v24 = vld [vmem:[#allocation5 + $0xf38] sm:$0xff] }
 0x328   : > { %1815 = vmatpush1.msra.mxu0 %v1724_v25  ;;  %1951 = vmatpush1.msra.mxu1 %v1864_v26  ;;  %v1758_v25 = vld [vmem:[#allocation5 + $0xd20] sm:$0xff]  ;;  %v1898_v26 = vld [vmem:[#allocation5 + $0xf30] sm:$0xff] }
 0x329   : > { %1816 = vmatprep.subr.mxu0 %v1723_v27  ;;  %1952 = vmatprep.subr.mxu1 %v1863_v28  ;;  %v1757_v27 = vld [vmem:[#allocation5 + $0xd18] sm:$0xff]  ;;  %v1897_v28 = vld [vmem:[#allocation5 + $0xf28] sm:$0xff] }
 0x32a   : > { %1817 = vmatpush1.msra.mxu0 %v1722_v29  ;;  %1953 = vmatpush1.msra.mxu1 %v1862_v30  ;;  %v1756_v29 = vld [vmem:[#allocation5 + $0xd10] sm:$0xff]  ;;  %v1896_v30 = vld [vmem:[#allocation5 + $0xf20] sm:$0xff] }
 0x32b   : > { %1818 = vmatprep.subr.mxu0 %v1785_v31  ;;  %1954 = vmatprep.subr.mxu1 %v1861_v32  ;;  %v889_v31 = vpop.f32.mrf.mxu1  ;;  %v1755_v32 = vld [vmem:[#allocation5 + $0xd08] sm:$0xff] }
 0x32c   : > { %1819 = vmatpush2.msra.mxu0 %v1784_v33  ;;  %1955 = vmatpush1.msra.mxu1 %v1860_v34  ;;  %v1895_v33 = vld [vmem:[#allocation5 + $0xf18] sm:$0xff]  ;;  %v1754_v34 = vld [vmem:[#allocation5 + $0xd00] sm:$0xff] }
 0x32d   : > { %1820 = vmatprep.subr.mxu0 %v1783_v35  ;;  %1956 = vmatprep.subr.mxu1 %v1923_v36  ;;  %v1894_v35 = vld [vmem:[#allocation5 + $0xf10] sm:$0xff]  ;;  %v1893_v36 = vld [vmem:[#allocation5 + $0xf08] sm:$0xff] }
 0x32e   : > { %1821 = vmatpush2.msra.mxu0 %v1782_v37  ;;  %1957 = vmatpush2.msra.mxu1 %v1922_v38  ;;  %v2029_v37 = vld [vmem:[#allocation5 + $0x10f8] sm:$0xff]  ;;  %v5993_v38 = vpop.f32.mrf.mxu1 }
 0x32f   : > { %1822 = vmatprep.subr.mxu0 %v1781_v39  ;;  %1958 = vmatprep.subr.mxu1 %v1921_v40  ;;  %v1892_v39 = vld [vmem:[#allocation5 + $0xf00] sm:$0xff]  ;;  %v2028_v40 = vld [vmem:[#allocation5 + $0x10f0] sm:$0xff] }
 0x330   : > { %1823 = vmatpush2.msra.mxu0 %v1780_v41  ;;  %1959 = vmatpush2.msra.mxu1 %v1920_v42  ;;  %v2027_v41 = vld [vmem:[#allocation5 + $0x10e8] sm:$0xff]  ;;  %v2026_v42 = vld [vmem:[#allocation5 + $0x10e0] sm:$0xff] }
 0x331   : > { %1824 = vmatprep.subr.mxu0 %v1779_v43  ;;  %1960 = vmatprep.subr.mxu1 %v1919_v44  ;;  %v895_v43 = vpop.f32.mrf.mxu1  ;;  %v2025_v44 = vld [vmem:[#allocation5 + $0x10d8] sm:$0xff] }
 0x332   : > { %1825 = vmatpush2.msra.mxu0 %v1778_v45  ;;  %1961 = vmatpush2.msra.mxu1 %v1918_v46  ;;  %v2024_v45 = vld [vmem:[#allocation5 + $0x10d0] sm:$0xff]  ;;  %v2023_v46 = vld [vmem:[#allocation5 + $0x10c8] sm:$0xff] }
 0x333   : > { %1826 = vmatprep.subr.mxu0 %v1777_v47  ;;  %1962 = vmatprep.subr.mxu1 %v1917_v48  ;;  %v2022_v47 = vld [vmem:[#allocation5 + $0x10c0] sm:$0xff]  ;;  %v2021_v48 = vld [vmem:[#allocation5 + $0x10b8] sm:$0xff] }
 0x334   : > { %1827 = vmatpush2.msra.mxu0 %v1776_v49  ;;  %1963 = vmatpush2.msra.mxu1 %v1916_v50  ;;  %v2020_v49 = vld [vmem:[#allocation5 + $0x10b0] sm:$0xff]  ;;  %v2019_v50 = vld [vmem:[#allocation5 + $0x10a8] sm:$0xff] }
 0x335   : > { %1828 = vmatprep.subr.mxu0 %v1775_v51  ;;  %1964 = vmatprep.subr.mxu1 %v1915_v52  ;;  %v2018_v51 = vld [vmem:[#allocation5 + $0x10a0] sm:$0xff]  ;;  %v2017_v52 = vld [vmem:[#allocation5 + $0x1098] sm:$0xff] }
 0x336   : > { %1829 = vmatpush2.msra.mxu0 %v1774_v53  ;;  %1965 = vmatpush2.msra.mxu1 %v1914_v54  ;;  %v2016_v53 = vld [vmem:[#allocation5 + $0x1090] sm:$0xff]  ;;  %v2015_v54 = vld [vmem:[#allocation5 + $0x1088] sm:$0xff] }
 0x337   : > { %1830 = vmatprep.subr.mxu0 %v1773_v55  ;;  %1966 = vmatprep.subr.mxu1 %v1913_v56  ;;  %v2014_v55 = vld [vmem:[#allocation5 + $0x1080] sm:$0xff]  ;;  %v2013_v56 = vld [vmem:[#allocation5 + $0x1078] sm:$0xff] }
 0x338   : > { %1831 = vmatpush2.msra.mxu0 %v1772_v57  ;;  %1967 = vmatpush2.msra.mxu1 %v1912_v58  ;;  %v2012_v57 = vld [vmem:[#allocation5 + $0x1070] sm:$0xff]  ;;  %v2011_v58 = vld [vmem:[#allocation5 + $0x1068] sm:$0xff] }
 0x339   : > { %1832 = vmatprep.subr.mxu0 %v1771_v59  ;;  %1968 = vmatprep.subr.mxu1 %v1911_v60  ;;  %v2010_v59 = vld [vmem:[#allocation5 + $0x1060] sm:$0xff]  ;;  %v2009_v60 = vld [vmem:[#allocation5 + $0x1058] sm:$0xff] }
 0x33a   : > { %1833 = vmatpush2.msra.mxu0 %v1770_v61  ;;  %1969 = vmatpush2.msra.mxu1 %v1910_v62  ;;  %v2008_v61 = vld [vmem:[#allocation5 + $0x1050] sm:$0xff]  ;;  %v2007_v62 = vld [vmem:[#allocation5 + $0x1048] sm:$0xff] }
 0x33b   : > { %1834 = vmatprep.subr.mxu0 %v1769_v63  ;;  %1970 = vmatprep.subr.mxu1 %v1909_v0  ;;  %v2006_v63 = vld [vmem:[#allocation5 + $0x1040] sm:$0xff]  ;;  %v2005_v0 = vld [vmem:[#allocation5 + $0x1038] sm:$0xff] }
 0x33c   : > { %1835 = vmatpush2.msra.mxu0 %v1768_v1  ;;  %1971 = vmatpush2.msra.mxu1 %v1908_v2  ;;  %v2004_v1 = vld [vmem:[#allocation5 + $0x1030] sm:$0xff]  ;;  %v2003_v2 = vld [vmem:[#allocation5 + $0x1028] sm:$0xff] }
 0x33d   : > { %1836 = vmatprep.subr.mxu0 %v1767_v4  ;;  %1972 = vmatprep.subr.mxu1 %v1907_v5  ;;  %v2001_v4 = vld [vmem:[#allocation5 + $0x1018] sm:$0xff]  ;;  %v2000_v5 = vld [vmem:[#allocation5 + $0x1010] sm:$0xff] }
 0x33e   : > { %1837 = vmatpush2.msra.mxu0 %v1766_v7  ;;  %1973 = vmatpush2.msra.mxu1 %v1906_v8  ;;  %v1999_v7 = vld [vmem:[#allocation5 + $0x1008] sm:$0xff]  ;;  %v1998_v8 = vld [vmem:[#allocation5 + $0x1000] sm:$0xff] }
 0x33f   : > { %1838 = vmatprep.subr.mxu0 %v1765_v9  ;;  %1974 = vmatprep.subr.mxu1 %v1905_v10  ;;  %v2061_v9 = vld [vmem:[#allocation5 + $0x11f8] sm:$0xff]  ;;  %v2060_v10 = vld [vmem:[#allocation5 + $0x11f0] sm:$0xff] }
 0x340   : > { %1839 = vmatpush2.msra.mxu0 %v1764_v11  ;;  %1975 = vmatpush2.msra.mxu1 %v1904_v12  ;;  %v2059_v11 = vld [vmem:[#allocation5 + $0x11e8] sm:$0xff]  ;;  %v2058_v12 = vld [vmem:[#allocation5 + $0x11e0] sm:$0xff] }
 0x341   : > { %1840 = vmatprep.subr.mxu0 %v1763_v14  ;;  %1976 = vmatprep.subr.mxu1 %v1903_v15  ;;  %v2056_v14 = vld [vmem:[#allocation5 + $0x11d0] sm:$0xff]  ;;  %v2055_v15 = vld [vmem:[#allocation5 + $0x11c8] sm:$0xff] }
 0x342   : > { %1841 = vmatpush2.msra.mxu0 %v1762_v16  ;;  %1977 = vmatpush2.msra.mxu1 %v1902_v17  ;;  %v2054_v16 = vld [vmem:[#allocation5 + $0x11c0] sm:$0xff]  ;;  %v2053_v17 = vld [vmem:[#allocation5 + $0x11b8] sm:$0xff] }
 0x343   : > { %1842 = vmatprep.subr.mxu0 %v1761_v18  ;;  %1978 = vmatprep.subr.mxu1 %v1901_v19  ;;  %v2052_v18 = vld [vmem:[#allocation5 + $0x11b0] sm:$0xff]  ;;  %v2051_v19 = vld [vmem:[#allocation5 + $0x11a8] sm:$0xff] }
 0x344   : > { %1843 = vmatpush2.msra.mxu0 %v1760_v20  ;;  %1979 = vmatpush2.msra.mxu1 %v1900_v21  ;;  %v2050_v20 = vld [vmem:[#allocation5 + $0x11a0] sm:$0xff]  ;;  %v2049_v21 = vld [vmem:[#allocation5 + $0x1198] sm:$0xff] }
 0x345   : > { %1844 = vmatprep.subr.mxu0 %v1759_v23  ;;  %1980 = vmatprep.subr.mxu1 %v1899_v24  ;;  %v2047_v23 = vld [vmem:[#allocation5 + $0x1188] sm:$0xff]  ;;  %v2046_v24 = vld [vmem:[#allocation5 + $0x1180] sm:$0xff] }
 0x346   : > { %1845 = vmatpush2.msra.mxu0 %v1758_v25  ;;  %1981 = vmatpush2.msra.mxu1 %v1898_v26  ;;  %v2045_v25 = vld [vmem:[#allocation5 + $0x1178] sm:$0xff]  ;;  %v2044_v26 = vld [vmem:[#allocation5 + $0x1170] sm:$0xff] }
 0x347   : > { %1846 = vmatprep.subr.mxu0 %v1757_v27  ;;  %1982 = vmatprep.subr.mxu1 %v1897_v28  ;;  %v2043_v27 = vld [vmem:[#allocation5 + $0x1168] sm:$0xff]  ;;  %v2042_v28 = vld [vmem:[#allocation5 + $0x1160] sm:$0xff] }
 0x348   : > { %1847 = vmatpush2.msra.mxu0 %v1756_v29  ;;  %1983 = vmatpush2.msra.mxu1 %v1896_v30  ;;  %v2041_v29 = vld [vmem:[#allocation5 + $0x1158] sm:$0xff]  ;;  %v2040_v30 = vld [vmem:[#allocation5 + $0x1150] sm:$0xff] }
 0x349   : > { %1848 = vmatprep.subr.mxu0 %v1755_v32  ;;  %1850 = vmatprep.mubr.f32.mxu0 %v883_v13  ;;  %v2057_v13 = vld [vmem:[#allocation5 + $0x11d8] sm:$0xff]  ;;  %v2038_v32 = vld [vmem:[#allocation5 + $0x1140] sm:$0xff] }
 0x34a   : > { %1984 = vmatprep.subr.mxu1 %v1895_v33  ;;  %1849 = vmatpush2.msra.mxu0 %v1754_v34  ;;  %v2037_v33 = vld [vmem:[#allocation5 + $0x1138] sm:$0xff]  ;;  %v2036_v34 = vld [vmem:[#allocation5 + $0x1130] sm:$0xff] }
 0x34b   : > { %1985 = vmatpush2.msra.mxu1 %v1894_v35  ;;  %1851 = vmatmul.mubr.f32.vlgmr.msra.gmra.mxu0 %v5991_v3  ;;  %v2002_v3 = vld [vmem:[#allocation5 + $0x1020] sm:$0xff]  ;;  %v2035_v35 = vld [vmem:[#allocation5 + $0x1128] sm:$0xff] }
 0x34c   : > { %1986 = vmatprep.subr.mxu1 %v1893_v36  ;;  %2062 = vmatprep.subr.mxu0 %v2029_v37  ;;  %v2034_v36 = vld [vmem:[#allocation5 + $0x1120] sm:$0xff]  ;;  %v2033_v37 = vld [vmem:[#allocation5 + $0x1118] sm:$0xff] }
 0x34d   : > { %1987 = vmatpush2.msra.mxu1 %v1892_v39  ;;  %1988 = vmatprep.mubr.f32.mxu1 %v889_v31  ;;  %v2039_v31 = vld [vmem:[#allocation5 + $0x1148] sm:$0xff]  ;;  %v2032_v39 = vld [vmem:[#allocation5 + $0x1110] sm:$0xff] }
 0x34e   : > { %2063 = vmatpush1.msra.mxu0 %v2028_v40  ;;  %1989 = vmatmul.mubr.f32.vlgmr.msra.gmra.mxu1 %v887_v22  ;;  %v2048_v22 = vld [vmem:[#allocation5 + $0x1190] sm:$0xff]  ;;  %v2031_v40 = vld [vmem:[#allocation5 + $0x1108] sm:$0xff] }
 0x34f   : > { %2064 = vmatprep.subr.mxu0 %v2027_v41  ;;  %2126 = vmatprep.mubr.f32.mxu0 %v895_v43  ;;  %v2030_v41 = vld [vmem:[#allocation5 + $0x1100] sm:$0xff]  ;;  %v1164_v43 = vpop.f32.mrf.mxu1 }
 0x350   : > { %2065 = vmatpush1.msra.mxu0 %v2026_v42  ;;  %2282 = vmatprep.mubr.f32.mxu1 %v5637_v6  ;;  %v1093_v42 = vpop.f32.mrf.mxu0 }
 0x351   : > { %2066 = vmatprep.subr.mxu0 %v2025_v44 }
 0x352   : > { %2067 = vmatpush1.msra.mxu0 %v2024_v45  ;;  %v1095_v44 = vpop.f32.mrf.mxu0 }
 0x353   : > { %2068 = vmatprep.subr.mxu0 %v2023_v46  ;;  %v1166_v46 = vpop.f32.mrf.mxu1 }
 0x354   : > { %2069 = vmatpush1.msra.mxu0 %v2022_v47  ;;  %v1165_v47 = vadd.f32 %v1164_v43, %v1093_v42  ;;  %v2494_v42 = vld [vmem:[#allocation5 + $0xc0] sm:$0xff]  ;;  %v2493_v43 = vld [vmem:[#allocation5 + $0xb8] sm:$0xff] }
 0x355   : > { %2070 = vmatprep.subr.mxu0 %v2021_v48 }
 0x356   : > { %2071 = vmatpush1.msra.mxu0 %v2020_v49 }
 0x357   : > { %2072 = vmatprep.subr.mxu0 %v2019_v50  ;;  %v1167_v50 = vadd.f32 %v1166_v46, %v1095_v44  ;;  %v2492_v44 = vld [vmem:[#allocation5 + $0xb0] sm:$0xff]  ;;  %v2490_v46 = vld [vmem:[#allocation5 + $0xa0] sm:$0xff] }
 0x358   : > { %2073 = vmatpush1.msra.mxu0 %v2018_v51 }
 0x359   : > { %2074 = vmatprep.subr.mxu0 %v2017_v52 }
 0x35a   : > { %2075 = vmatpush1.msra.mxu0 %v2016_v53 }
 0x35b   : > { %2076 = vmatprep.subr.mxu0 %v2015_v54 }
 0x35c   : > { %2077 = vmatpush1.msra.mxu0 %v2014_v55 }
 0x35d   : > { %2078 = vmatprep.subr.mxu0 %v2013_v56 }
 0x35e   : > { %2079 = vmatpush1.msra.mxu0 %v2012_v57 }
 0x35f   : > { %2080 = vmatprep.subr.mxu0 %v2011_v58 }
 0x360   : > { %2081 = vmatpush1.msra.mxu0 %v2010_v59 }
 0x361   : > { %2082 = vmatprep.subr.mxu0 %v2009_v60 }
 0x362   : > { %2083 = vmatpush1.msra.mxu0 %v2008_v61 }
 0x363   : > { %2084 = vmatprep.subr.mxu0 %v2007_v62 }
 0x364   : > { %2085 = vmatpush1.msra.mxu0 %v2006_v63 }
 0x365   : > { %2086 = vmatprep.subr.mxu0 %v2005_v0 }
 0x366   : > { %2087 = vmatpush1.msra.mxu0 %v2004_v1 }
 0x367   : > { %2088 = vmatprep.subr.mxu0 %v2003_v2 }
 0x368   : > { %2089 = vmatpush1.msra.mxu0 %v2002_v3 }
 0x369   : > { %2090 = vmatprep.subr.mxu0 %v2001_v4 }
 0x36a   : > { %2091 = vmatpush1.msra.mxu0 %v2000_v5  ;;  %v2151_v5 = vpop.permute.xlu0 %2150 }
 0x36b   : > { %2092 = vmatprep.subr.mxu0 %v1999_v7 }
 0x36c   : > { %2093 = vmatpush1.msra.mxu0 %v1998_v8  ;;  %v2146_v8 = vpop.permute.xlu1 %2145 }
 0x36d   : > { %2094 = vmatprep.subr.mxu0 %v2061_v9 }
 0x36e   : > { %2095 = vmatpush2.msra.mxu0 %v2060_v10 }
 0x36f   : > { %2096 = vmatprep.subr.mxu0 %v2059_v11 }
 0x370   : > { %2097 = vmatpush2.msra.mxu0 %v2058_v12 }
 0x371   : > { %2098 = vmatprep.subr.mxu0 %v2057_v13  ;;  %v5504_v13 = vld [vmem:[%s5857_s0 + $0x8] sm:$0xff] }
 0x372   : > { %2099 = vmatpush2.msra.mxu0 %v2056_v14  ;;  %v2154_v14 = vmul.f32 %v5504_v13, %v2146_v8  ;;  %v2523_v13 = vld [vmem:[#allocation5 + $0x1a8] sm:$0xff] }
 0x373   : > { %2100 = vmatprep.subr.mxu0 %v2055_v15 }
 0x374   : > { %2101 = vmatpush2.msra.mxu0 %v2054_v16 }
 0x375   : > { %2102 = vmatprep.subr.mxu0 %v2053_v17  ;;  %v5505_v17 = vld [vmem:[%s5857_s0] sm:$0xff] }
 0x376   : > { %2103 = vmatpush2.msra.mxu0 %v2052_v18  ;;  %v2153_v18 = vmul.f32 %v5505_v17, %v2146_v8  ;;  %v2528_v8 = vld [vmem:[#allocation5 + $0x1d0] sm:$0xff]  ;;  %v2519_v17 = vld [vmem:[#allocation5 + $0x188] sm:$0xff] }
 0x377   : > { %2104 = vmatprep.subr.mxu0 %v2051_v19  ;;  %v2167_v19 = vpop.permute.xlu0 %2166 }
 0x378   : > { %2105 = vmatpush2.msra.mxu0 %v2050_v20 }
 0x379   : > { %2106 = vmatprep.subr.mxu0 %v2049_v21  ;;  %v2162_v21 = vpop.permute.xlu1 %2161 }
 0x37a   : > { %2107 = vmatpush2.msra.mxu0 %v2048_v22 }
 0x37b   : > { %2108 = vmatprep.subr.mxu0 %v2047_v23  ;;  %v2170_v23 = vadd.f32 %v2162_v21, %v2154_v14  ;;  %v2522_v14 = vld [vmem:[#allocation5 + $0x1a0] sm:$0xff] }
 0x37c   : > { %2109 = vmatpush2.msra.mxu0 %v2046_v24 }
 0x37d   : > { %2110 = vmatprep.subr.mxu0 %v2045_v25  ;;  %v2169_v25 = vadd.f32 %v2162_v21, %v2153_v18  ;;  %v2518_v18 = vld [vmem:[#allocation5 + $0x180] sm:$0xff]  ;;  %v2515_v21 = vld [vmem:[#allocation5 + $0x168] sm:$0xff] }
 0x37e   : > { %2111 = vmatpush2.msra.mxu0 %v2044_v26 }
 0x37f   : > { %2112 = vmatprep.subr.mxu0 %v2043_v27 }
 0x380   : > { %2113 = vmatpush2.msra.mxu0 %v2042_v28  ;;  %v2174_v28 = vmax.f32 %v2170_v23, 0.0  ;;  %v2513_v23 = vld [vmem:[#allocation5 + $0x158] sm:$0xff] }
 0x381   : > { %2114 = vmatprep.subr.mxu0 %v2041_v29  ;;  %v2173_v29 = vmax.f32 %v2169_v25, 0.0  ;;  %v2511_v25 = vld [vmem:[#allocation5 + $0x148] sm:$0xff] }
 0x382   : > { %2115 = vmatpush2.msra.mxu0 %v2040_v30  ;;  %v2177_v30 = vld [vmem:[%s6269_s11] sm:$0xff] }
 0x383   : > { %2116 = vmatprep.subr.mxu0 %v2039_v31  ;;  %v2178_v31 = vld [vmem:[%s6269_s11 + $0x8] sm:$0xff] }
 0x384   : > { %2117 = vmatpush2.msra.mxu0 %v2038_v32  ;;  %v2179_v32 = vld [vmem:[%s6269_s11 + $0x10] sm:$0xff] }
 0x385   : > { %2118 = vmatprep.subr.mxu0 %v2037_v33  ;;  %v2180_v33 = vld [vmem:[%s6269_s11 + $0x18] sm:$0xff] }
 0x386   : > { %2119 = vmatpush2.msra.mxu0 %v2036_v34  ;;  %v2501_v34 = vld [vmem:[#allocation5 + $0xf8] sm:$0xff] }
 0x387   : > { %2120 = vmatprep.subr.mxu0 %v2035_v35  ;;  %v2500_v35 = vld [vmem:[#allocation5 + $0xf0] sm:$0xff] }
 0x388   : > { %2121 = vmatpush2.msra.mxu0 %v2034_v36  ;;  %v1438_v49 = vpop.f32.mrf.mxu1  ;;  %v2499_v36 = vld [vmem:[#allocation5 + $0xe8] sm:$0xff] }
 0x389   : > { %2122 = vmatprep.subr.mxu0 %v2033_v37  ;;  %v2498_v37 = vld [vmem:[#allocation5 + $0xe0] sm:$0xff] }
 0x38a   : > { %2123 = vmatpush2.msra.mxu0 %v2032_v39  ;;  %v1300_v45 = vpop.f32.mrf.mxu0  ;;  %v1440_v54 = vpop.f32.mrf.mxu1  ;;  %v2497_v39 = vld [vmem:[#allocation5 + $0xd8] sm:$0xff] }
 0x38b   : > { %2124 = vmatprep.subr.mxu0 %v2031_v40  ;;  %v1305_v51 = vadd.f32 %v1300_v45, %v1165_v47  ;;  %v2496_v40 = vld [vmem:[#allocation5 + $0xd0] sm:$0xff]  ;;  %v2491_v45 = vld [vmem:[#allocation5 + $0xa8] sm:$0xff]  ;;  %v2489_v47 = vld [vmem:[#allocation5 + $0x98] sm:$0xff] }
 0x38c   : > { %2125 = vmatpush2.msra.mxu0 %v2030_v41  ;;  %v1302_v48 = vpop.f32.mrf.mxu0  ;;  %v2495_v41 = vld [vmem:[#allocation5 + $0xc8] sm:$0xff] }
 0x38d   : > { %2127 = vmatmul.mubr.f32.vlgmr.msra.gmra.mxu0 %v5993_v38  ;;  %v1306_v53 = vadd.f32 %v1302_v48, %v1167_v50  ;;  %v1443_v55 = vadd.f32 %v1438_v49, %v1305_v51  ;;  %2669 = vmatprep.subr.mxu0 %v2501_v34  ;;  %v2488_v48 = vld [vmem:[#allocation5 + $0x90] sm:$0xff]  ;;  %v2487_v49 = vld [vmem:[#allocation5 + $0x88] sm:$0xff]  ;;  %v2486_v50 = vld [vmem:[#allocation5 + $0x80] sm:$0xff] }
 0x38e   : > { %2670 = vmatpush1.msra.mxu0 %v2500_v35  ;;  %v2485_v51 = vld [vmem:[#allocation5 + $0x78] sm:$0xff] }
 0x38f   : > { %v1444_v58 = vadd.f32 %v1440_v54, %v1306_v53  ;;  %2671 = vmatprep.subr.mxu0 %v2499_v36  ;;  %v2483_v53 = vld [vmem:[#allocation5 + $0x68] sm:$0xff]  ;;  %v2482_v54 = vld [vmem:[#allocation5 + $0x60] sm:$0xff] }
 0x390   : > { %2672 = vmatpush1.msra.mxu0 %v2498_v37  ;;  %v2203_v37 = vpop.permute.xlu0 %2202 }
 0x391   : > { %2673 = vmatprep.subr.mxu0 %v2497_v39 }
 0x392   : > { %2674 = vmatpush1.msra.mxu0 %v2496_v40  ;;  %v2198_v40 = vpop.permute.xlu1 %2197 }
 0x393   : > { %2675 = vmatprep.subr.mxu0 %v2495_v41 }
 0x394   : > { %2676 = vmatpush1.msra.mxu0 %v2494_v42 }
 0x395   : > { %2677 = vmatprep.subr.mxu0 %v2493_v43 }
 0x396   : > { %2678 = vmatpush1.msra.mxu0 %v2492_v44 }
 0x397   : > { %2679 = vmatprep.subr.mxu0 %v2491_v45 }
 0x398   : > { %2680 = vmatpush1.msra.mxu0 %v2490_v46  ;;  %v2193_v46 = vpop.permute.xlu0 %2192 }
 0x399   : > { %2681 = vmatprep.subr.mxu0 %v2489_v47 }
 0x39a   : > { %2682 = vmatpush1.msra.mxu0 %v2488_v48 }
 0x39b   : > { %2683 = vmatprep.subr.mxu0 %v2487_v49 }
 0x39c   : > { %2684 = vmatpush1.msra.mxu0 %v2486_v50  ;;  %v2188_v50 = vpop.permute.xlu1 %2187 }
 0x39d   : > { %2685 = vmatprep.subr.mxu0 %v2485_v51 }
 0x3ca   : > { %v1576_v52 = vpop.f32.mrf.mxu0 }
 0x3cb   : > { %v1581_v59 = vadd.f32 %v1576_v52, %v1443_v55  ;;  %v2484_v52 = vld [vmem:[#allocation5 + $0x70] sm:$0xff]  ;;  %v2481_v55 = vld [vmem:[#allocation5 + $0x58] sm:$0xff] }
 0x3cc   : > { %v1578_v56 = vpop.f32.mrf.mxu0  ;;  %v1714_v57 = vpop.f32.mrf.mxu1  ;;  %2686 = vmatpush1.msra.mxu0 %v2484_v52 }
 0x3cd   : > { %v1582_v38 = vadd.f32 %v1578_v56, %v1444_v58  ;;  %v1719_v62 = vadd.f32 %v1714_v57, %v1581_v59  ;;  %2687 = vmatprep.subr.mxu0 %v2483_v53  ;;  %v2480_v56 = vld [vmem:[#allocation5 + $0x50] sm:$0xff]  ;;  %v2479_v57 = vld [vmem:[#allocation5 + $0x48] sm:$0xff]  ;;  %v2478_v58 = vld [vmem:[#allocation5 + $0x40] sm:$0xff] }
 0x3ce   : > { %v1716_v61 = vpop.f32.mrf.mxu1  ;;  %2688 = vmatpush1.msra.mxu0 %v2482_v54  ;;  %v2477_v59 = vld [vmem:[#allocation5 + $0x38] sm:$0xff] }
 0x3cf   : > { %v1720_v1 = vadd.f32 %v1716_v61, %v1582_v38  ;;  %2689 = vmatprep.subr.mxu0 %v2481_v55  ;;  %v2475_v38 = vld [vmem:[#allocation5 + $0x28] sm:$0xff]  ;;  %v2474_v61 = vld [vmem:[#allocation5 + $0x20] sm:$0xff] }
 0x3d0   : > { %2690 = vmatpush1.msra.mxu0 %v2480_v56 }
 0x3d1   : > { %2691 = vmatprep.subr.mxu0 %v2479_v57 }
 0x3d2   : > { %2692 = vmatpush1.msra.mxu0 %v2478_v58 }
 0x3d3   : > { %2693 = vmatprep.subr.mxu0 %v2477_v59 }
 0x40b   : > { %v1852_v60 = vpop.f32.mrf.mxu0 }
 0x40c   : > { %v1857_v2 = vadd.f32 %v1852_v60, %v1719_v62  ;;  %v2476_v60 = vld [vmem:[#allocation5 + $0x30] sm:$0xff]  ;;  %v2473_v62 = vld [vmem:[#allocation5 + $0x18] sm:$0xff] }
 0x40d   : > { %v1854_v63 = vpop.f32.mrf.mxu0  ;;  %2694 = vmatpush1.msra.mxu0 %v2476_v60 }
 0x40e   : > { %v1990_v0 = vpop.f32.mrf.mxu1  ;;  %v1858_v3 = vadd.f32 %v1854_v63, %v1720_v1  ;;  %2695 = vmatprep.subr.mxu0 %v2475_v38  ;;  %v2472_v63 = vld [vmem:[#allocation5 + $0x10] sm:$0xff]  ;;  %v2470_v1 = vld [vmem:[#allocation5] sm:$0xff] }
 0x40f   : > { %v1995_v7 = vadd.f32 %v1990_v0, %v1857_v2  ;;  %2696 = vmatpush1.msra.mxu0 %v2474_v61  ;;  %v2471_v0 = vld [vmem:[#allocation5 + $0x8] sm:$0xff]  ;;  %v2533_v2 = vld [vmem:[#allocation5 + $0x1f8] sm:$0xff]  ;;  %v2315_v38 = vld [vmem:[%s6270_s20] sm:$0xff] }
 0x410   : > { %v1992_v4 = vpop.f32.mrf.mxu1  ;;  %2697 = vmatprep.subr.mxu0 %v2473_v62  ;;  %v2565_v61 = vld [vmem:[#allocation5 + $0x2f8] sm:$0xff]  ;;  %v2564_v62 = vld [vmem:[#allocation5 + $0x2f0] sm:$0xff] }
 0x411   : > { %v1996_v10 = vadd.f32 %v1992_v4, %v1858_v3  ;;  %2698 = vmatpush1.msra.mxu0 %v2472_v63  ;;  %v2532_v3 = vld [vmem:[#allocation5 + $0x1f0] sm:$0xff]  ;;  %v2531_v4 = vld [vmem:[#allocation5 + $0x1e8] sm:$0xff] }
 0x412   : > { %2699 = vmatprep.subr.mxu0 %v2471_v0  ;;  %v2563_v63 = vld [vmem:[#allocation5 + $0x2e8] sm:$0xff]  ;;  %v2562_v0 = vld [vmem:[#allocation5 + $0x2e0] sm:$0xff] }
 0x413   : > { %2700 = vmatpush1.msra.mxu0 %v2470_v1  ;;  %v2316_v1 = vld [vmem:[%s6270_s20 + $0x8] sm:$0xff] }
 0x414   : > { %2701 = vmatprep.subr.mxu0 %v2533_v2  ;;  %v2561_v2 = vld [vmem:[#allocation5 + $0x2d8] sm:$0xff] }
 0x415   : > { %2702 = vmatpush2.msra.mxu0 %v2532_v3  ;;  %v2560_v3 = vld [vmem:[#allocation5 + $0x2d0] sm:$0xff] }
 0x416   : > { %2703 = vmatprep.subr.mxu0 %v2531_v4  ;;  %v2559_v4 = vld [vmem:[#allocation5 + $0x2c8] sm:$0xff] }
 0x44d   : > { %v2128_v9 = vpop.f32.mrf.mxu0 }
 0x44e   : > { %v2133_v11 = vadd.f32 %v2128_v9, %v1995_v7  ;;  %v2529_v7 = vld [vmem:[#allocation5 + $0x1d8] sm:$0xff]  ;;  %v2527_v9 = vld [vmem:[#allocation5 + $0x1c8] sm:$0xff] }
 0x44f   : > { %v2130_v12 = vpop.f32.mrf.mxu0 }
 0x450   : > { %2135 = vst [vmem:[%s5857_s0 + $0x10] sm:$0xff] %v2133_v11  ;;  %v2134_v15 = vadd.f32 %v2130_v12, %v1996_v10  ;;  %v2155_v16 = vmul.f32 %v2151_v5, %v2133_v11  ;;  %v2526_v10 = vld [vmem:[#allocation5 + $0x1c0] sm:$0xff]  ;;  %v2525_v11 = vld [vmem:[#allocation5 + $0x1b8] sm:$0xff]  ;;  %v2524_v12 = vld [vmem:[#allocation5 + $0x1b0] sm:$0xff] }
 0x452   : > { %2136 = vst [vmem:[%s5857_s0 + $0x18] sm:$0xff] %v2134_v15  ;;  %v2156_v20 = vmul.f32 %v2151_v5, %v2134_v15  ;;  %v2171_v22 = vadd.f32 %v2167_v19, %v2155_v16  ;;  %v2530_v5 = vld [vmem:[#allocation5 + $0x1e0] sm:$0xff]  ;;  %v2521_v15 = vld [vmem:[#allocation5 + $0x198] sm:$0xff]  ;;  %v2520_v16 = vld [vmem:[#allocation5 + $0x190] sm:$0xff] }
 0x453   : > { %2704 = vmatpush2.msra.mxu0 %v2530_v5  ;;  %v2558_v5 = vld [vmem:[#allocation5 + $0x2c0] sm:$0xff] }
 0x454   : > { %v2172_v24 = vadd.f32 %v2167_v19, %v2156_v20  ;;  %v2175_v27 = vmax.f32 %v2171_v22, 0.0  ;;  %2705 = vmatprep.subr.mxu0 %v2529_v7  ;;  %v2517_v19 = vld [vmem:[#allocation5 + $0x178] sm:$0xff]  ;;  %v2516_v20 = vld [vmem:[#allocation5 + $0x170] sm:$0xff]  ;;  %v2514_v22 = vld [vmem:[#allocation5 + $0x160] sm:$0xff] }
 0x455   : > { %2706 = vmatpush2.msra.mxu0 %v2528_v8  ;;  %v2317_v7 = vld [vmem:[%s6270_s20 + $0x10] sm:$0xff]  ;;  %v2557_v8 = vld [vmem:[#allocation5 + $0x2b8] sm:$0xff] }
 0x456   : > { %v2176_v26 = vmax.f32 %v2172_v24, 0.0  ;;  %2707 = vmatprep.subr.mxu0 %v2527_v9  ;;  %v2512_v24 = vld [vmem:[#allocation5 + $0x150] sm:$0xff] }
 0x457   : > { %2708 = vmatpush2.msra.mxu0 %v2526_v10  ;;  %v2556_v9 = vld [vmem:[#allocation5 + $0x2b0] sm:$0xff]  ;;  %v2555_v10 = vld [vmem:[#allocation5 + $0x2a8] sm:$0xff] }
 0x458   : > { %2246 = vmatprep.subr.mxu1 %v2176_v26  ;;  %2709 = vmatprep.subr.mxu0 %v2525_v11  ;;  %v2510_v26 = vld [vmem:[#allocation5 + $0x140] sm:$0xff] }
 0x459   : > { %2247 = vmatpush1.msra.mxu1 %v2175_v27  ;;  %2710 = vmatpush2.msra.mxu0 %v2524_v12  ;;  %v2509_v27 = vld [vmem:[#allocation5 + $0x138] sm:$0xff]  ;;  %v2554_v11 = vld [vmem:[#allocation5 + $0x2a0] sm:$0xff] }
 0x45a   : > { %2248 = vmatprep.subr.mxu1 %v2174_v28  ;;  %2711 = vmatprep.subr.mxu0 %v2523_v13  ;;  %v2508_v28 = vld [vmem:[#allocation5 + $0x130] sm:$0xff]  ;;  %v2318_v12 = vld [vmem:[%s6270_s20 + $0x18] sm:$0xff] }
 0x45b   : > { %2249 = vmatpush1.msra.mxu1 %v2173_v29  ;;  %2712 = vmatpush2.msra.mxu0 %v2522_v14  ;;  %v2507_v29 = vld [vmem:[#allocation5 + $0x128] sm:$0xff]  ;;  %v2553_v13 = vld [vmem:[#allocation5 + $0x298] sm:$0xff]  ;;  %v2552_v14 = vld [vmem:[#allocation5 + $0x290] sm:$0xff] }
 0x45c   : > { %5406 = vmatmul.mubr.msk.f32.vlgmr.msra.gmra.mxu1 %vm2205_vm2, %v2177_v30  ;;  %2713 = vmatprep.subr.mxu0 %v2521_v15  ;;  %v2506_v30 = vld [vmem:[#allocation5 + $0x120] sm:$0xff]  ;;  %v2551_v15 = vld [vmem:[#allocation5 + $0x288] sm:$0xff] }
 0x45d   : > { %2288 = vmatprep.mubr.f32.mxu1 %v5637_v6  ;;  %2714 = vmatpush2.msra.mxu0 %v2520_v16  ;;  %v2550_v16 = vld [vmem:[#allocation5 + $0x280] sm:$0xff] }
 0x45e   : > { %2715 = vmatprep.subr.mxu0 %v2519_v17  ;;  %v2319_v17 = vld [vmem:[%s6270_s20 + $0x20] sm:$0xff] }
 0x45f   : > { %2716 = vmatpush2.msra.mxu0 %v2518_v18  ;;  %v2549_v18 = vld [vmem:[#allocation5 + $0x278] sm:$0xff] }
 0x460   : > { %5407 = vmatmul.mubr.msk.f32.gmra.mxu1 %vm2205_vm2, %v2178_v31  ;;  %2717 = vmatprep.subr.mxu0 %v2517_v19  ;;  %v2505_v31 = vld [vmem:[#allocation5 + $0x118] sm:$0xff]  ;;  %v2548_v19 = vld [vmem:[#allocation5 + $0x270] sm:$0xff] }
 0x461   : > { %2294 = vmatprep.mubr.f32.mxu1 %v5637_v6  ;;  %2718 = vmatpush2.msra.mxu0 %v2516_v20  ;;  %v2547_v20 = vld [vmem:[#allocation5 + $0x268] sm:$0xff] }
 0x462   : > { %2719 = vmatprep.subr.mxu0 %v2515_v21  ;;  %v2546_v21 = vld [vmem:[#allocation5 + $0x260] sm:$0xff] }
 0x463   : > { %2720 = vmatpush2.msra.mxu0 %v2514_v22  ;;  %v2320_v22 = vld [vmem:[%s6270_s20 + $0x28] sm:$0xff] }
 0x464   : > { %5408 = vmatmul.mubr.msk.f32.gmra.mxu1 %vm2205_vm2, %v2179_v32  ;;  %2721 = vmatprep.subr.mxu0 %v2513_v23  ;;  %v2545_v23 = vld [vmem:[#allocation5 + $0x258] sm:$0xff] }
 0x465   : > { %2300 = vmatprep.mubr.f32.mxu1 %v5637_v6  ;;  %2722 = vmatpush2.msra.mxu0 %v2512_v24  ;;  %v2544_v24 = vld [vmem:[#allocation5 + $0x250] sm:$0xff] }
 0x466   : > { %2723 = vmatprep.subr.mxu0 %v2511_v25  ;;  %v2543_v25 = vld [vmem:[#allocation5 + $0x248] sm:$0xff] }
 0x467   : > { %2724 = vmatpush2.msra.mxu0 %v2510_v26  ;;  %v2542_v26 = vld [vmem:[#allocation5 + $0x240] sm:$0xff] }
 0x468   : > { %5409 = vmatmul.mubr.msk.f32.gmra.mxu1 %vm2205_vm2, %v2180_v33  ;;  %2725 = vmatprep.subr.mxu0 %v2509_v27  ;;  %v2541_v27 = vld [vmem:[#allocation5 + $0x238] sm:$0xff] }
 0x469   : > { %2415 = vmatprep.mubr.f32.mxu1 %v5637_v6  ;;  %2726 = vmatpush2.msra.mxu0 %v2508_v28  ;;  %v2321_v28 = vld [vmem:[%s6270_s20 + $0x30] sm:$0xff] }
 0x46a   : > { %2727 = vmatprep.subr.mxu0 %v2507_v29  ;;  %v2540_v29 = vld [vmem:[#allocation5 + $0x230] sm:$0xff] }
 0x46b   : > { %2728 = vmatpush2.msra.mxu0 %v2506_v30  ;;  %v2539_v30 = vld [vmem:[#allocation5 + $0x228] sm:$0xff] }
 0x46c   : > { %2729 = vmatprep.subr.mxu0 %v2505_v31  ;;  %v2538_v31 = vld [vmem:[#allocation5 + $0x220] sm:$0xff] }
 0x51c   : > { %v2284_v32 = vpop.f32.mrf.mxu1 }
 0x51d   : > { %v2285_v55 = vadd.f32 %v2284_v32, %v2188_v50  ;;  %v2537_v32 = vld [vmem:[#allocation5 + $0x218] sm:$0xff] }
 0x51e   : > { %v2286_v33 = vpop.f32.mrf.mxu1 }
 0x51f   : > { %v2287_v53 = vadd.f32 %v2286_v33, %v2188_v50  ;;  %v2307_v60 = vmax.f32 %v2285_v55, 0.0  ;;  %v2322_v33 = vld [vmem:[%s6270_s20 + $0x38] sm:$0xff]  ;;  %v2580_v55 = vld [vmem:[#allocation5 + $0x370] sm:$0xff] }
 0x520   : > { %v2290_v34 = vpop.f32.mrf.mxu1  ;;  %v2585_v50 = vld [vmem:[#allocation5 + $0x398] sm:$0xff] }
 0x521   : > { %v2291_v51 = vadd.f32 %v2290_v34, %v2193_v46  ;;  %v2308_v59 = vmax.f32 %v2287_v53, 0.0  ;;  %v2536_v34 = vld [vmem:[#allocation5 + $0x210] sm:$0xff]  ;;  %v2582_v53 = vld [vmem:[#allocation5 + $0x380] sm:$0xff] }
 0x522   : > { %v2292_v35 = vpop.f32.mrf.mxu1 }
 0x523   : > { %v2293_v48 = vadd.f32 %v2292_v35, %v2193_v46  ;;  %v2309_v58 = vmax.f32 %v2291_v51, 0.0  ;;  %v2535_v35 = vld [vmem:[#allocation5 + $0x208] sm:$0xff]  ;;  %v2589_v46 = vld [vmem:[#allocation5 + $0x3b8] sm:$0xff]  ;;  %v2584_v51 = vld [vmem:[#allocation5 + $0x390] sm:$0xff] }
 0x524   : > { %v2296_v36 = vpop.f32.mrf.mxu1 }
 0x525   : > { %v2297_v47 = vadd.f32 %v2296_v36, %v2198_v40  ;;  %v2310_v57 = vmax.f32 %v2293_v48, 0.0  ;;  %v2534_v36 = vld [vmem:[#allocation5 + $0x200] sm:$0xff]  ;;  %v2587_v48 = vld [vmem:[#allocation5 + $0x3a8] sm:$0xff] }
 0x526   : > { %v2298_v39 = vpop.f32.mrf.mxu1 }
 0x527   : > { %v2299_v44 = vadd.f32 %v2298_v39, %v2198_v40  ;;  %v2311_v56 = vmax.f32 %v2297_v47, 0.0  ;;  %v2596_v39 = vld [vmem:[#allocation5 + $0x3f0] sm:$0xff]  ;;  %v2595_v40 = vld [vmem:[#allocation5 + $0x3e8] sm:$0xff] }
 0x528   : > { %v2302_v41 = vpop.f32.mrf.mxu1  ;;  %v2588_v47 = vld [vmem:[#allocation5 + $0x3b0] sm:$0xff] }
 0x529   : > { %v2303_v42 = vadd.f32 %v2302_v41, %v2203_v37  ;;  %v2312_v54 = vmax.f32 %v2299_v44, 0.0  ;;  %v2594_v41 = vld [vmem:[#allocation5 + $0x3e0] sm:$0xff]  ;;  %v2591_v44 = vld [vmem:[#allocation5 + $0x3c8] sm:$0xff] }
 0x52a   : > { %v2304_v43 = vpop.f32.mrf.mxu1 }
 0x52b   : > { %v2305_v45 = vadd.f32 %v2304_v43, %v2203_v37  ;;  %v2313_v52 = vmax.f32 %v2303_v42, 0.0  ;;  %v2597_v37 = vld [vmem:[#allocation5 + $0x3f8] sm:$0xff]  ;;  %v2592_v43 = vld [vmem:[#allocation5 + $0x3d0] sm:$0xff] }
 0x52c   : > { %v2593_v42 = vld [vmem:[#allocation5 + $0x3d8] sm:$0xff] }
 0x52d   : > { %v2314_v49 = vmax.f32 %v2305_v45, 0.0  ;;  %v2590_v45 = vld [vmem:[#allocation5 + $0x3c0] sm:$0xff] }
 0x52f   : > { %2375 = vmatprep.subr.mxu1 %v2314_v49  ;;  %v2586_v49 = vld [vmem:[#allocation5 + $0x3a0] sm:$0xff] }
 0x530   : > { %2376 = vmatpush1.msra.mxu1 %v2313_v52  ;;  %v2583_v52 = vld [vmem:[#allocation5 + $0x388] sm:$0xff] }
 0x531   : > { %2377 = vmatprep.subr.mxu1 %v2312_v54  ;;  %v2581_v54 = vld [vmem:[#allocation5 + $0x378] sm:$0xff] }
 0x532   : > { %2378 = vmatpush1.msra.mxu1 %v2311_v56  ;;  %v2579_v56 = vld [vmem:[#allocation5 + $0x368] sm:$0xff] }
 0x533   : > { %2379 = vmatprep.subr.mxu1 %v2310_v57  ;;  %v2578_v57 = vld [vmem:[#allocation5 + $0x360] sm:$0xff] }
 0x534   : > { %2380 = vmatpush1.msra.mxu1 %v2309_v58  ;;  %v2577_v58 = vld [vmem:[#allocation5 + $0x358] sm:$0xff] }
 0x535   : > { %2381 = vmatprep.subr.mxu1 %v2308_v59  ;;  %v2576_v59 = vld [vmem:[#allocation5 + $0x350] sm:$0xff] }
 0x536   : > { %2382 = vmatpush1.msra.mxu1 %v2307_v60  ;;  %v2575_v60 = vld [vmem:[#allocation5 + $0x348] sm:$0xff] }
 0x537   : > { %5410 = vmatmul.mubr.msk.f32.vlgmr.msra.gmra.mxu1 %vm751_vm1, %v2315_v38  ;;  %2598 = vmatprep.subr.mxu1 %v2565_v61  ;;  %v2574_v38 = vld [vmem:[#allocation5 + $0x340] sm:$0xff]  ;;  %v2573_v61 = vld [vmem:[#allocation5 + $0x338] sm:$0xff] }
 0x538   : > { %2421 = vmatprep.mubr.f32.mxu1 %v5637_v6  ;;  %2599 = vmatpush1.msra.mxu1 %v2564_v62  ;;  %v2572_v62 = vld [vmem:[#allocation5 + $0x330] sm:$0xff] }
 0x539   : > { %2600 = vmatprep.subr.mxu1 %v2563_v63  ;;  %v2504_v63 = vld [vmem:[#allocation5 + $0x110] sm:$0xff] }
 0x53a   : > { %2601 = vmatpush1.msra.mxu1 %v2562_v0  ;;  %2730 = vmatpush2.msra.mxu0 %v2504_v63  ;;  %v2571_v0 = vld [vmem:[#allocation5 + $0x328] sm:$0xff] }
 0x53b   : > { %5411 = vmatmul.mubr.msk.f32.gmra.mxu1 %vm751_vm1, %v2316_v1  ;;  %2602 = vmatprep.subr.mxu1 %v2561_v2  ;;  %v2503_v1 = vld [vmem:[#allocation5 + $0x108] sm:$0xff]  ;;  %v2323_v2 = vld [vmem:[%s6270_s20 + $0x40] sm:$0xff] }
 0x53c   : > { %2427 = vmatprep.mubr.f32.mxu1 %v5637_v6  ;;  %2603 = vmatpush1.msra.mxu1 %v2560_v3  ;;  %v2570_v3 = vld [vmem:[#allocation5 + $0x320] sm:$0xff]  ;;  %v2882_v63 = vld [vmem:[#allocation5 + $0x628] sm:$0xff] }
 0x53d   : > { %2604 = vmatprep.subr.mxu1 %v2559_v4  ;;  %2731 = vmatprep.subr.mxu0 %v2503_v1  ;;  %v2502_v4 = vld [vmem:[#allocation5 + $0x100] sm:$0xff] }
 0x53e   : > { %2605 = vmatpush1.msra.mxu1 %v2558_v5  ;;  %2732 = vmatpush2.msra.mxu0 %v2502_v4  ;;  %v2569_v5 = vld [vmem:[#allocation5 + $0x318] sm:$0xff]  ;;  %v2881_v1 = vld [vmem:[#allocation5 + $0x620] sm:$0xff]  ;;  %v2746_v4 = vld [vmem:[#allocation5 + $0x430] sm:$0xff] }
 0x53f   : > { %5412 = vmatmul.mubr.msk.f32.gmra.mxu1 %vm751_vm1, %v2317_v7  ;;  %2606 = vmatprep.subr.mxu1 %v2557_v8  ;;  %v2908_v7 = vld [vmem:[#allocation5 + $0x6f8] sm:$0xff]  ;;  %v2568_v8 = vld [vmem:[#allocation5 + $0x310] sm:$0xff] }
 0x540   : > { %2433 = vmatprep.mubr.f32.mxu1 %v5637_v6  ;;  %2607 = vmatpush1.msra.mxu1 %v2556_v9  ;;  %v2567_v9 = vld [vmem:[#allocation5 + $0x308] sm:$0xff] }
 0x541   : > { %2608 = vmatprep.subr.mxu1 %v2555_v10  ;;  %2941 = vmatprep.subr.mxu0 %v2908_v7  ;;  %v2566_v10 = vld [vmem:[#allocation5 + $0x300] sm:$0xff]  ;;  %v2745_v7 = vld [vmem:[#allocation5 + $0x428] sm:$0xff] }
 0x542   : > { %2609 = vmatpush1.msra.mxu1 %v2554_v11  ;;  %v2771_v11 = vld [vmem:[#allocation5 + $0x4f8] sm:$0xff] }
 0x543   : > { %5413 = vmatmul.mubr.msk.f32.gmra.mxu1 %vm751_vm1, %v2318_v12  ;;  %2610 = vmatprep.subr.mxu1 %v2553_v13 }
 0x544   : > { %2439 = vmatprep.mubr.f32.mxu1 %v5637_v6  ;;  %2611 = vmatpush1.msra.mxu1 %v2552_v14  ;;  %v2907_v14 = vld [vmem:[#allocation5 + $0x6f0] sm:$0xff] }
 0x545   : > { %2612 = vmatprep.subr.mxu1 %v2551_v15  ;;  %v2906_v15 = vld [vmem:[#allocation5 + $0x6e8] sm:$0xff] }
 0x546   : > { %2613 = vmatpush1.msra.mxu1 %v2550_v16 }
 0x547   : > { %5414 = vmatmul.mubr.msk.f32.gmra.mxu1 %vm751_vm1, %v2319_v17  ;;  %2614 = vmatprep.subr.mxu1 %v2549_v18  ;;  %v2905_v17 = vld [vmem:[#allocation5 + $0x6e0] sm:$0xff]  ;;  %v2904_v18 = vld [vmem:[#allocation5 + $0x6d8] sm:$0xff] }
 0x548   : > { %2445 = vmatprep.mubr.f32.mxu1 %v5637_v6  ;;  %2615 = vmatpush1.msra.mxu1 %v2548_v19 }
 0x549   : > { %2616 = vmatprep.subr.mxu1 %v2547_v20  ;;  %v2770_v20 = vld [vmem:[#allocation5 + $0x4f0] sm:$0xff] }
 0x54a   : > { %2617 = vmatpush1.msra.mxu1 %v2546_v21  ;;  %v2903_v21 = vld [vmem:[#allocation5 + $0x6d0] sm:$0xff] }
 0x54b   : > { %5415 = vmatmul.mubr.msk.f32.gmra.mxu1 %vm751_vm1, %v2320_v22  ;;  %2618 = vmatprep.subr.mxu1 %v2545_v23  ;;  %v2769_v22 = vld [vmem:[#allocation5 + $0x4e8] sm:$0xff] }
 0x54c   : > { %2619 = vmatpush1.msra.mxu1 %v2544_v24  ;;  %2451 = vmatprep.mubr.f32.mxu1 %v5637_v6  ;;  %v2902_v23 = vld [vmem:[#allocation5 + $0x6c8] sm:$0xff]  ;;  %v2768_v24 = vld [vmem:[#allocation5 + $0x4e0] sm:$0xff] }
 0x54d   : > { %2620 = vmatprep.subr.mxu1 %v2543_v25  ;;  %v2901_v25 = vld [vmem:[#allocation5 + $0x6c0] sm:$0xff] }
 0x54e   : > { %2621 = vmatpush1.msra.mxu1 %v2542_v26  ;;  %v2767_v26 = vld [vmem:[#allocation5 + $0x4d8] sm:$0xff] }
 0x54f   : > { %2622 = vmatprep.subr.mxu1 %v2541_v27  ;;  %5416 = vmatmul.mubr.msk.f32.gmra.mxu1 %vm751_vm1, %v2321_v28  ;;  %v2900_v27 = vld [vmem:[#allocation5 + $0x6b8] sm:$0xff]  ;;  %v2766_v28 = vld [vmem:[#allocation5 + $0x4d0] sm:$0xff] }
 0x550   : > { %2623 = vmatpush1.msra.mxu1 %v2540_v29  ;;  %2457 = vmatprep.mubr.f32.mxu1 %v5637_v6  ;;  %v2899_v29 = vld [vmem:[#allocation5 + $0x6b0] sm:$0xff] }
 0x551   : > { %2624 = vmatprep.subr.mxu1 %v2539_v30  ;;  %v2765_v30 = vld [vmem:[#allocation5 + $0x4c8] sm:$0xff] }
 0x552   : > { %2625 = vmatpush1.msra.mxu1 %v2538_v31  ;;  %v2898_v31 = vld [vmem:[#allocation5 + $0x6a8] sm:$0xff] }
 0x553   : > { %2626 = vmatprep.subr.mxu1 %v2537_v32  ;;  %5417 = vmatmul.mubr.msk.f32.gmra.mxu1 %vm751_vm1, %v2322_v33  ;;  %v2764_v32 = vld [vmem:[#allocation5 + $0x4c0] sm:$0xff] }
 0x554   : > { %2627 = vmatpush1.msra.mxu1 %v2536_v34  ;;  %2463 = vmatprep.mubr.f32.mxu1 %v5637_v6  ;;  %v2897_v33 = vld [vmem:[#allocation5 + $0x6a0] sm:$0xff]  ;;  %v2763_v34 = vld [vmem:[#allocation5 + $0x4b8] sm:$0xff] }
 0x555   : > { %2628 = vmatprep.subr.mxu1 %v2535_v35  ;;  %v2896_v35 = vld [vmem:[#allocation5 + $0x698] sm:$0xff] }
 0x556   : > { %2629 = vmatpush1.msra.mxu1 %v2534_v36  ;;  %v2762_v36 = vld [vmem:[#allocation5 + $0x4b0] sm:$0xff] }
 0x557   : > { %2630 = vmatprep.subr.mxu1 %v2597_v37  ;;  %5418 = vmatmul.mubr.msk.f32.gmra.mxu1 %vm751_vm1, %v2323_v2  ;;  %v2895_v37 = vld [vmem:[#allocation5 + $0x690] sm:$0xff]  ;;  %v2747_v2 = vld [vmem:[#allocation5 + $0x438] sm:$0xff] }
 0x558   : > { %2631 = vmatpush2.msra.mxu1 %v2596_v39  ;;  %v2761_v39 = vld [vmem:[#allocation5 + $0x4a8] sm:$0xff] }
 0x559   : > { %2632 = vmatprep.subr.mxu1 %v2595_v40  ;;  %v2894_v40 = vld [vmem:[#allocation5 + $0x688] sm:$0xff] }
 0x55a   : > { %2633 = vmatpush2.msra.mxu1 %v2594_v41  ;;  %v2760_v41 = vld [vmem:[#allocation5 + $0x4a0] sm:$0xff] }
 0x55b   : > { %2634 = vmatprep.subr.mxu1 %v2593_v42  ;;  %v2893_v42 = vld [vmem:[#allocation5 + $0x680] sm:$0xff] }
 0x55c   : > { %2635 = vmatpush2.msra.mxu1 %v2592_v43  ;;  %v2759_v43 = vld [vmem:[#allocation5 + $0x498] sm:$0xff] }
 0x55d   : > { %2636 = vmatprep.subr.mxu1 %v2591_v44  ;;  %v2892_v44 = vld [vmem:[#allocation5 + $0x678] sm:$0xff] }
 0x55e   : > { %2637 = vmatpush2.msra.mxu1 %v2590_v45  ;;  %v2758_v45 = vld [vmem:[#allocation5 + $0x490] sm:$0xff] }
 0x55f   : > { %2638 = vmatprep.subr.mxu1 %v2589_v46  ;;  %v2891_v46 = vld [vmem:[#allocation5 + $0x670] sm:$0xff] }
 0x560   : > { %2639 = vmatpush2.msra.mxu1 %v2588_v47  ;;  %v2757_v47 = vld [vmem:[#allocation5 + $0x488] sm:$0xff] }
 0x561   : > { %2640 = vmatprep.subr.mxu1 %v2587_v48  ;;  %v2890_v48 = vld [vmem:[#allocation5 + $0x668] sm:$0xff] }
 0x562   : > { %2641 = vmatpush2.msra.mxu1 %v2586_v49  ;;  %v2756_v49 = vld [vmem:[#allocation5 + $0x480] sm:$0xff] }
 0x563   : > { %2642 = vmatprep.subr.mxu1 %v2585_v50  ;;  %v2889_v50 = vld [vmem:[#allocation5 + $0x660] sm:$0xff] }
 0x564   : > { %2643 = vmatpush2.msra.mxu1 %v2584_v51  ;;  %v2755_v51 = vld [vmem:[#allocation5 + $0x478] sm:$0xff] }
 0x565   : > { %2644 = vmatprep.subr.mxu1 %v2583_v52  ;;  %v2888_v52 = vld [vmem:[#allocation5 + $0x658] sm:$0xff] }
 0x566   : > { %2645 = vmatpush2.msra.mxu1 %v2582_v53  ;;  %v2754_v53 = vld [vmem:[#allocation5 + $0x470] sm:$0xff] }
 0x567   : > { %2646 = vmatprep.subr.mxu1 %v2581_v54  ;;  %v2887_v54 = vld [vmem:[#allocation5 + $0x650] sm:$0xff] }
 0x568   : > { %2647 = vmatpush2.msra.mxu1 %v2580_v55  ;;  %v2753_v55 = vld [vmem:[#allocation5 + $0x468] sm:$0xff] }
 0x569   : > { %2648 = vmatprep.subr.mxu1 %v2579_v56  ;;  %v2886_v56 = vld [vmem:[#allocation5 + $0x648] sm:$0xff] }
 0x56a   : > { %2649 = vmatpush2.msra.mxu1 %v2578_v57  ;;  %v2752_v57 = vld [vmem:[#allocation5 + $0x460] sm:$0xff] }
 0x56b   : > { %2650 = vmatprep.subr.mxu1 %v2577_v58  ;;  %v2885_v58 = vld [vmem:[#allocation5 + $0x640] sm:$0xff] }
 0x56c   : > { %2651 = vmatpush2.msra.mxu1 %v2576_v59  ;;  %v2751_v59 = vld [vmem:[#allocation5 + $0x458] sm:$0xff] }
 0x56d   : > { %2652 = vmatprep.subr.mxu1 %v2575_v60  ;;  %v2884_v60 = vld [vmem:[#allocation5 + $0x638] sm:$0xff] }
 0x56e   : > { %2653 = vmatpush2.msra.mxu1 %v2574_v38  ;;  %v2750_v38 = vld [vmem:[#allocation5 + $0x450] sm:$0xff] }
 0x56f   : > { %2654 = vmatprep.subr.mxu1 %v2573_v61  ;;  %v2883_v61 = vld [vmem:[#allocation5 + $0x630] sm:$0xff] }
 0x570   : > { %2655 = vmatpush2.msra.mxu1 %v2572_v62  ;;  %v2749_v62 = vld [vmem:[#allocation5 + $0x448] sm:$0xff] }
 0x571   : > { %2656 = vmatprep.subr.mxu1 %v2571_v0  ;;  %v2748_v0 = vld [vmem:[#allocation5 + $0x440] sm:$0xff] }
 0x572   : > { %2657 = vmatpush2.msra.mxu1 %v2570_v3  ;;  %v2880_v3 = vld [vmem:[#allocation5 + $0x618] sm:$0xff] }
 0x573   : > { %2658 = vmatprep.subr.mxu1 %v2569_v5  ;;  %v2879_v5 = vld [vmem:[#allocation5 + $0x610] sm:$0xff] }
 0x574   : > { %2659 = vmatpush2.msra.mxu1 %v2568_v8  ;;  %v2878_v8 = vld [vmem:[#allocation5 + $0x608] sm:$0xff] }
 0x575   : > { %2660 = vmatprep.subr.mxu1 %v2567_v9  ;;  %v2744_v9 = vld [vmem:[#allocation5 + $0x420] sm:$0xff] }
 0x576   : > { %2661 = vmatpush2.msra.mxu1 %v2566_v10  ;;  %v2877_v10 = vld [vmem:[#allocation5 + $0x600] sm:$0xff] }
 0x577   : > { %2804 = vmatprep.subr.mxu1 %v2771_v11  ;;  %v2743_v11 = vld [vmem:[#allocation5 + $0x418] sm:$0xff] }
 0x5f7   : > { %v2417_v12 = vpop.f32.mrf.mxu1 }
 0x5f9   : > { %v2419_v13 = vpop.f32.mrf.mxu1 }
 0x5fa   : > { %2733 = vmatprep.mubr.f32.mxu0 %v2419_v13  ;;  %v2742_v13 = vld [vmem:[#allocation5 + $0x410] sm:$0xff] }
 0x5fb   : > { %v2423_v16 = vpop.f32.mrf.mxu1  ;;  %2734 = vmatmul.mubr.f32.vlgmr.msra.gmra.mxu0 %v2417_v12  ;;  %v2940_v12 = vld [vmem:[#allocation5 + $0x7f8] sm:$0xff] }
 0x5fc   : > { %2942 = vmatpush1.msra.mxu0 %v2907_v14  ;;  %v2939_v14 = vld [vmem:[#allocation5 + $0x7f0] sm:$0xff] }
 0x5fd   : > { %2943 = vmatprep.subr.mxu0 %v2906_v15  ;;  %v2425_v19 = vpop.f32.mrf.mxu1  ;;  %v2741_v15 = vld [vmem:[#allocation5 + $0x408] sm:$0xff] }
 0x5fe   : > { %2944 = vmatpush1.msra.mxu0 %v2905_v17  ;;  %2662 = vmatprep.mubr.f32.mxu1 %v2425_v19  ;;  %v2740_v17 = vld [vmem:[#allocation5 + $0x400] sm:$0xff]  ;;  %v2803_v19 = vld [vmem:[#allocation5 + $0x5f8] sm:$0xff] }
 0x5ff   : > { %2945 = vmatprep.subr.mxu0 %v2904_v18  ;;  %2663 = vmatmul.mubr.f32.vlgmr.msra.gmra.mxu1 %v2423_v16  ;;  %v2938_v16 = vld [vmem:[#allocation5 + $0x7e8] sm:$0xff]  ;;  %v2937_v18 = vld [vmem:[#allocation5 + $0x7e0] sm:$0xff] }
 0x600   : > { %2805 = vmatpush1.msra.mxu1 %v2770_v20  ;;  %2946 = vmatpush1.msra.mxu0 %v2903_v21  ;;  %v2936_v20 = vld [vmem:[#allocation5 + $0x7d8] sm:$0xff]  ;;  %v2802_v21 = vld [vmem:[#allocation5 + $0x5f0] sm:$0xff] }
 0x601   : > { %2806 = vmatprep.subr.mxu1 %v2769_v22  ;;  %2947 = vmatprep.subr.mxu0 %v2902_v23  ;;  %v2935_v22 = vld [vmem:[#allocation5 + $0x7d0] sm:$0xff]  ;;  %v2801_v23 = vld [vmem:[#allocation5 + $0x5e8] sm:$0xff] }
 0x602   : > { %2807 = vmatpush1.msra.mxu1 %v2768_v24  ;;  %2948 = vmatpush1.msra.mxu0 %v2901_v25  ;;  %v2934_v24 = vld [vmem:[#allocation5 + $0x7c8] sm:$0xff]  ;;  %v2800_v25 = vld [vmem:[#allocation5 + $0x5e0] sm:$0xff] }
 0x603   : > { %2808 = vmatprep.subr.mxu1 %v2767_v26  ;;  %2949 = vmatprep.subr.mxu0 %v2900_v27  ;;  %v2933_v26 = vld [vmem:[#allocation5 + $0x7c0] sm:$0xff]  ;;  %v2799_v27 = vld [vmem:[#allocation5 + $0x5d8] sm:$0xff] }
 0x604   : > { %2809 = vmatpush1.msra.mxu1 %v2766_v28  ;;  %2950 = vmatpush1.msra.mxu0 %v2899_v29  ;;  %v2932_v28 = vld [vmem:[#allocation5 + $0x7b8] sm:$0xff]  ;;  %v2798_v29 = vld [vmem:[#allocation5 + $0x5d0] sm:$0xff] }
 0x605   : > { %2810 = vmatprep.subr.mxu1 %v2765_v30  ;;  %2951 = vmatprep.subr.mxu0 %v2898_v31  ;;  %v2931_v30 = vld [vmem:[#allocation5 + $0x7b0] sm:$0xff]  ;;  %v2797_v31 = vld [vmem:[#allocation5 + $0x5c8] sm:$0xff] }
 0x606   : > { %2811 = vmatpush1.msra.mxu1 %v2764_v32  ;;  %2952 = vmatpush1.msra.mxu0 %v2897_v33  ;;  %v2930_v32 = vld [vmem:[#allocation5 + $0x7a8] sm:$0xff]  ;;  %v2796_v33 = vld [vmem:[#allocation5 + $0x5c0] sm:$0xff] }
 0x607   : > { %2812 = vmatprep.subr.mxu1 %v2763_v34  ;;  %2953 = vmatprep.subr.mxu0 %v2896_v35  ;;  %v2929_v34 = vld [vmem:[#allocation5 + $0x7a0] sm:$0xff]  ;;  %v2795_v35 = vld [vmem:[#allocation5 + $0x5b8] sm:$0xff] }
 0x608   : > { %2813 = vmatpush1.msra.mxu1 %v2762_v36  ;;  %2954 = vmatpush1.msra.mxu0 %v2895_v37  ;;  %v2928_v36 = vld [vmem:[#allocation5 + $0x798] sm:$0xff]  ;;  %v2794_v37 = vld [vmem:[#allocation5 + $0x5b0] sm:$0xff] }
 0x609   : > { %2814 = vmatprep.subr.mxu1 %v2761_v39  ;;  %2955 = vmatprep.subr.mxu0 %v2894_v40  ;;  %v2927_v39 = vld [vmem:[#allocation5 + $0x790] sm:$0xff]  ;;  %v2793_v40 = vld [vmem:[#allocation5 + $0x5a8] sm:$0xff] }
 0x60a   : > { %2815 = vmatpush1.msra.mxu1 %v2760_v41  ;;  %2956 = vmatpush1.msra.mxu0 %v2893_v42  ;;  %v2926_v41 = vld [vmem:[#allocation5 + $0x788] sm:$0xff]  ;;  %v2792_v42 = vld [vmem:[#allocation5 + $0x5a0] sm:$0xff] }
 0x60b   : > { %2816 = vmatprep.subr.mxu1 %v2759_v43  ;;  %2957 = vmatprep.subr.mxu0 %v2892_v44  ;;  %v2925_v43 = vld [vmem:[#allocation5 + $0x780] sm:$0xff]  ;;  %v2791_v44 = vld [vmem:[#allocation5 + $0x598] sm:$0xff] }
 0x60c   : > { %2817 = vmatpush1.msra.mxu1 %v2758_v45  ;;  %2958 = vmatpush1.msra.mxu0 %v2891_v46  ;;  %v2924_v45 = vld [vmem:[#allocation5 + $0x778] sm:$0xff]  ;;  %v2790_v46 = vld [vmem:[#allocation5 + $0x590] sm:$0xff] }
 0x60d   : > { %2818 = vmatprep.subr.mxu1 %v2757_v47  ;;  %2959 = vmatprep.subr.mxu0 %v2890_v48  ;;  %v2923_v47 = vld [vmem:[#allocation5 + $0x770] sm:$0xff]  ;;  %v2789_v48 = vld [vmem:[#allocation5 + $0x588] sm:$0xff] }
 0x60e   : > { %2819 = vmatpush1.msra.mxu1 %v2756_v49  ;;  %2960 = vmatpush1.msra.mxu0 %v2889_v50  ;;  %v2922_v49 = vld [vmem:[#allocation5 + $0x768] sm:$0xff]  ;;  %v2788_v50 = vld [vmem:[#allocation5 + $0x580] sm:$0xff] }
 0x60f   : > { %2820 = vmatprep.subr.mxu1 %v2755_v51  ;;  %2961 = vmatprep.subr.mxu0 %v2888_v52  ;;  %v2921_v51 = vld [vmem:[#allocation5 + $0x760] sm:$0xff]  ;;  %v2787_v52 = vld [vmem:[#allocation5 + $0x578] sm:$0xff] }
 0x610   : > { %2821 = vmatpush1.msra.mxu1 %v2754_v53  ;;  %2962 = vmatpush1.msra.mxu0 %v2887_v54  ;;  %v2920_v53 = vld [vmem:[#allocation5 + $0x758] sm:$0xff]  ;;  %v6062_v54 = vpop.f32.mrf.mxu1 }
 0x611   : > { %2822 = vmatprep.subr.mxu1 %v2753_v55  ;;  %2963 = vmatprep.subr.mxu0 %v2886_v56  ;;  %v2786_v55 = vld [vmem:[#allocation5 + $0x570] sm:$0xff] }
 0x612   : > { %2823 = vmatpush1.msra.mxu1 %v2752_v57  ;;  %2964 = vmatpush1.msra.mxu0 %v2885_v58  ;;  %v2919_v56 = vld [vmem:[#allocation5 + $0x750] sm:$0xff]  ;;  %v2785_v57 = vld [vmem:[#allocation5 + $0x568] sm:$0xff] }
 0x613   : > { %2824 = vmatprep.subr.mxu1 %v2751_v59  ;;  %2965 = vmatprep.subr.mxu0 %v2884_v60  ;;  %v2918_v58 = vld [vmem:[#allocation5 + $0x748] sm:$0xff]  ;;  %v2784_v59 = vld [vmem:[#allocation5 + $0x560] sm:$0xff] }
 0x614   : > { %2825 = vmatpush1.msra.mxu1 %v2750_v38  ;;  %2966 = vmatpush1.msra.mxu0 %v2883_v61  ;;  %v2917_v60 = vld [vmem:[#allocation5 + $0x740] sm:$0xff]  ;;  %v2783_v38 = vld [vmem:[#allocation5 + $0x558] sm:$0xff] }
 0x615   : > { %2826 = vmatprep.subr.mxu1 %v2749_v62  ;;  %2967 = vmatprep.subr.mxu0 %v2882_v63  ;;  %v2916_v61 = vld [vmem:[#allocation5 + $0x738] sm:$0xff]  ;;  %v2431_v62 = vpop.f32.mrf.mxu1  ;;  %v2782_v63 = vld [vmem:[#allocation5 + $0x550] sm:$0xff] }
 0x616   : > { %2827 = vmatpush1.msra.mxu1 %v2748_v0  ;;  %2968 = vmatpush1.msra.mxu0 %v2881_v1  ;;  %v2915_v0 = vld [vmem:[#allocation5 + $0x730] sm:$0xff]  ;;  %v2781_v1 = vld [vmem:[#allocation5 + $0x548] sm:$0xff] }
 0x617   : > { %2828 = vmatprep.subr.mxu1 %v2747_v2  ;;  %2969 = vmatprep.subr.mxu0 %v2880_v3  ;;  %v2914_v2 = vld [vmem:[#allocation5 + $0x728] sm:$0xff]  ;;  %v2780_v3 = vld [vmem:[#allocation5 + $0x540] sm:$0xff] }
 0x618   : > { %2829 = vmatpush1.msra.mxu1 %v2746_v4  ;;  %2970 = vmatpush1.msra.mxu0 %v2879_v5  ;;  %v2913_v4 = vld [vmem:[#allocation5 + $0x720] sm:$0xff]  ;;  %v2779_v5 = vld [vmem:[#allocation5 + $0x538] sm:$0xff] }
 0x619   : > { %2830 = vmatprep.subr.mxu1 %v2745_v7  ;;  %2971 = vmatprep.subr.mxu0 %v2878_v8  ;;  %v2912_v7 = vld [vmem:[#allocation5 + $0x718] sm:$0xff]  ;;  %v2435_v8 = vpop.f32.mrf.mxu1 }
 0x61a   : > { %2831 = vmatpush1.msra.mxu1 %v2744_v9  ;;  %2972 = vmatpush1.msra.mxu0 %v2877_v10  ;;  %v2778_v9 = vld [vmem:[#allocation5 + $0x530] sm:$0xff] }
 0x61b   : > { %2832 = vmatprep.subr.mxu1 %v2743_v11  ;;  %2973 = vmatprep.subr.mxu0 %v2940_v12  ;;  %v2911_v10 = vld [vmem:[#allocation5 + $0x710] sm:$0xff]  ;;  %v2777_v11 = vld [vmem:[#allocation5 + $0x528] sm:$0xff] }
 0x61c   : > { %2833 = vmatpush1.msra.mxu1 %v2742_v13  ;;  %2974 = vmatpush2.msra.mxu0 %v2939_v14  ;;  %v2910_v12 = vld [vmem:[#allocation5 + $0x708] sm:$0xff]  ;;  %v2776_v13 = vld [vmem:[#allocation5 + $0x520] sm:$0xff] }
 0x61d   : > { %2834 = vmatprep.subr.mxu1 %v2741_v15  ;;  %2975 = vmatprep.subr.mxu0 %v2938_v16  ;;  %v2909_v14 = vld [vmem:[#allocation5 + $0x700] sm:$0xff]  ;;  %v2437_v15 = vpop.f32.mrf.mxu1  ;;  %v2775_v16 = vld [vmem:[#allocation5 + $0x518] sm:$0xff] }
 0x61e   : > { %2835 = vmatpush1.msra.mxu1 %v2740_v17  ;;  %2976 = vmatpush2.msra.mxu0 %v2937_v18  ;;  %v3182_v17 = vld [vmem:[#allocation5 + $0xaf8] sm:$0xff]  ;;  %v2774_v18 = vld [vmem:[#allocation5 + $0x510] sm:$0xff] }
 0x61f   : > { %2836 = vmatprep.subr.mxu1 %v2803_v19  ;;  %2977 = vmatprep.subr.mxu0 %v2936_v20  ;;  %v2773_v19 = vld [vmem:[#allocation5 + $0x508] sm:$0xff]  ;;  %v3181_v20 = vld [vmem:[#allocation5 + $0xaf0] sm:$0xff] }
 0x620   : > { %2837 = vmatpush2.msra.mxu1 %v2802_v21  ;;  %2978 = vmatpush2.msra.mxu0 %v2935_v22  ;;  %v3180_v21 = vld [vmem:[#allocation5 + $0xae8] sm:$0xff]  ;;  %v2772_v22 = vld [vmem:[#allocation5 + $0x500] sm:$0xff] }
 0x621   : > { %2838 = vmatprep.subr.mxu1 %v2801_v23  ;;  %2979 = vmatprep.subr.mxu0 %v2934_v24  ;;  %v3179_v23 = vld [vmem:[#allocation5 + $0xae0] sm:$0xff]  ;;  %v3045_v24 = vld [vmem:[#allocation5 + $0x8f8] sm:$0xff] }
 0x622   : > { %2839 = vmatpush2.msra.mxu1 %v2800_v25  ;;  %2980 = vmatpush2.msra.mxu0 %v2933_v26  ;;  %v3178_v25 = vld [vmem:[#allocation5 + $0xad8] sm:$0xff]  ;;  %v3044_v26 = vld [vmem:[#allocation5 + $0x8f0] sm:$0xff] }
 0x623   : > { %2840 = vmatprep.subr.mxu1 %v2799_v27  ;;  %2981 = vmatprep.subr.mxu0 %v2932_v28  ;;  %v3177_v27 = vld [vmem:[#allocation5 + $0xad0] sm:$0xff]  ;;  %v3043_v28 = vld [vmem:[#allocation5 + $0x8e8] sm:$0xff] }
 0x624   : > { %2841 = vmatpush2.msra.mxu1 %v2798_v29  ;;  %2982 = vmatpush2.msra.mxu0 %v2931_v30  ;;  %v3176_v29 = vld [vmem:[#allocation5 + $0xac8] sm:$0xff]  ;;  %v3042_v30 = vld [vmem:[#allocation5 + $0x8e0] sm:$0xff] }
 0x625   : > { %2842 = vmatprep.subr.mxu1 %v2797_v31  ;;  %2983 = vmatprep.subr.mxu0 %v2930_v32  ;;  %v3175_v31 = vld [vmem:[#allocation5 + $0xac0] sm:$0xff]  ;;  %v3041_v32 = vld [vmem:[#allocation5 + $0x8d8] sm:$0xff] }
 0x626   : > { %2843 = vmatpush2.msra.mxu1 %v2796_v33  ;;  %2984 = vmatpush2.msra.mxu0 %v2929_v34  ;;  %v3174_v33 = vld [vmem:[#allocation5 + $0xab8] sm:$0xff]  ;;  %v3040_v34 = vld [vmem:[#allocation5 + $0x8d0] sm:$0xff] }
 0x627   : > { %2844 = vmatprep.subr.mxu1 %v2795_v35  ;;  %2985 = vmatprep.subr.mxu0 %v2928_v36  ;;  %v3173_v35 = vld [vmem:[#allocation5 + $0xab0] sm:$0xff]  ;;  %v3039_v36 = vld [vmem:[#allocation5 + $0x8c8] sm:$0xff] }
 0x628   : > { %2845 = vmatpush2.msra.mxu1 %v2794_v37  ;;  %2986 = vmatpush2.msra.mxu0 %v2927_v39  ;;  %v3172_v37 = vld [vmem:[#allocation5 + $0xaa8] sm:$0xff]  ;;  %v3038_v39 = vld [vmem:[#allocation5 + $0x8c0] sm:$0xff] }
 0x629   : > { %2846 = vmatprep.subr.mxu1 %v2793_v40  ;;  %2987 = vmatprep.subr.mxu0 %v2926_v41  ;;  %v3171_v40 = vld [vmem:[#allocation5 + $0xaa0] sm:$0xff]  ;;  %v3037_v41 = vld [vmem:[#allocation5 + $0x8b8] sm:$0xff] }
 0x62a   : > { %2847 = vmatpush2.msra.mxu1 %v2792_v42  ;;  %2988 = vmatpush2.msra.mxu0 %v2925_v43  ;;  %v3170_v42 = vld [vmem:[#allocation5 + $0xa98] sm:$0xff]  ;;  %v3036_v43 = vld [vmem:[#allocation5 + $0x8b0] sm:$0xff] }
 0x62b   : > { %2848 = vmatprep.subr.mxu1 %v2791_v44  ;;  %2989 = vmatprep.subr.mxu0 %v2924_v45  ;;  %v3169_v44 = vld [vmem:[#allocation5 + $0xa90] sm:$0xff]  ;;  %v3035_v45 = vld [vmem:[#allocation5 + $0x8a8] sm:$0xff] }
 0x62c   : > { %2849 = vmatpush2.msra.mxu1 %v2790_v46  ;;  %2990 = vmatpush2.msra.mxu0 %v2923_v47  ;;  %v3168_v46 = vld [vmem:[#allocation5 + $0xa88] sm:$0xff]  ;;  %v3034_v47 = vld [vmem:[#allocation5 + $0x8a0] sm:$0xff] }
 0x62d   : > { %2850 = vmatprep.subr.mxu1 %v2789_v48  ;;  %2991 = vmatprep.subr.mxu0 %v2922_v49  ;;  %v3167_v48 = vld [vmem:[#allocation5 + $0xa80] sm:$0xff]  ;;  %v3033_v49 = vld [vmem:[#allocation5 + $0x898] sm:$0xff] }
 0x62e   : > { %2851 = vmatpush2.msra.mxu1 %v2788_v50  ;;  %2992 = vmatpush2.msra.mxu0 %v2921_v51  ;;  %v3166_v50 = vld [vmem:[#allocation5 + $0xa78] sm:$0xff]  ;;  %v3032_v51 = vld [vmem:[#allocation5 + $0x890] sm:$0xff] }
 0x62f   : > { %2852 = vmatprep.subr.mxu1 %v2787_v52  ;;  %2993 = vmatprep.subr.mxu0 %v2920_v53  ;;  %v3165_v52 = vld [vmem:[#allocation5 + $0xa70] sm:$0xff]  ;;  %v3031_v53 = vld [vmem:[#allocation5 + $0x888] sm:$0xff] }
 0x630   : > { %2853 = vmatpush2.msra.mxu1 %v2786_v55  ;;  %2994 = vmatpush2.msra.mxu0 %v2919_v56  ;;  %v3030_v55 = vld [vmem:[#allocation5 + $0x880] sm:$0xff] }
 0x631   : > { %2854 = vmatprep.subr.mxu1 %v2785_v57  ;;  %2995 = vmatprep.subr.mxu0 %v2918_v58  ;;  %v3163_v56 = vld [vmem:[#allocation5 + $0xa60] sm:$0xff]  ;;  %v3029_v57 = vld [vmem:[#allocation5 + $0x878] sm:$0xff] }
 0x632   : > { %2855 = vmatpush2.msra.mxu1 %v2784_v59  ;;  %2996 = vmatpush2.msra.mxu0 %v2917_v60  ;;  %v3162_v58 = vld [vmem:[#allocation5 + $0xa58] sm:$0xff]  ;;  %v3028_v59 = vld [vmem:[#allocation5 + $0x870] sm:$0xff] }
 0x633   : > { %2856 = vmatprep.subr.mxu1 %v2783_v38  ;;  %2997 = vmatprep.subr.mxu0 %v2916_v61  ;;  %v3161_v60 = vld [vmem:[#allocation5 + $0xa50] sm:$0xff]  ;;  %v3027_v38 = vld [vmem:[#allocation5 + $0x868] sm:$0xff] }
 0x634   : > { %2857 = vmatpush2.msra.mxu1 %v2782_v63  ;;  %2998 = vmatpush2.msra.mxu0 %v2915_v0  ;;  %v3160_v61 = vld [vmem:[#allocation5 + $0xa48] sm:$0xff]  ;;  %v3159_v63 = vld [vmem:[#allocation5 + $0xa40] sm:$0xff]  ;;  %v3025_v0 = vld [vmem:[#allocation5 + $0x858] sm:$0xff] }
 0x635   : > { %2858 = vmatprep.subr.mxu1 %v2781_v1  ;;  %2999 = vmatprep.subr.mxu0 %v2914_v2  ;;  %v3158_v1 = vld [vmem:[#allocation5 + $0xa38] sm:$0xff]  ;;  %v3024_v2 = vld [vmem:[#allocation5 + $0x850] sm:$0xff] }
 0x636   : > { %2859 = vmatpush2.msra.mxu1 %v2780_v3  ;;  %3000 = vmatpush2.msra.mxu0 %v2913_v4  ;;  %v3157_v3 = vld [vmem:[#allocation5 + $0xa30] sm:$0xff]  ;;  %v3023_v4 = vld [vmem:[#allocation5 + $0x848] sm:$0xff] }
 0x637   : > { %2860 = vmatprep.subr.mxu1 %v2779_v5  ;;  %3001 = vmatprep.subr.mxu0 %v2912_v7  ;;  %v3156_v5 = vld [vmem:[#allocation5 + $0xa28] sm:$0xff]  ;;  %v3022_v7 = vld [vmem:[#allocation5 + $0x840] sm:$0xff] }
 0x638   : > { %2861 = vmatpush2.msra.mxu1 %v2778_v9  ;;  %3002 = vmatpush2.msra.mxu0 %v2911_v10  ;;  %v3021_v9 = vld [vmem:[#allocation5 + $0x838] sm:$0xff] }
 0x639   : > { %2862 = vmatprep.subr.mxu1 %v2777_v11  ;;  %3003 = vmatprep.subr.mxu0 %v2910_v12  ;;  %v3154_v10 = vld [vmem:[#allocation5 + $0xa18] sm:$0xff]  ;;  %v3020_v11 = vld [vmem:[#allocation5 + $0x830] sm:$0xff] }
 0x63a   : > { %2863 = vmatpush2.msra.mxu1 %v2776_v13  ;;  %3004 = vmatpush2.msra.mxu0 %v2909_v14  ;;  %v3153_v12 = vld [vmem:[#allocation5 + $0xa10] sm:$0xff]  ;;  %v3019_v13 = vld [vmem:[#allocation5 + $0x828] sm:$0xff] }
 0x63b   : > { %2864 = vmatprep.subr.mxu1 %v2775_v16  ;;  %3005 = vmatprep.mubr.f32.mxu0 %v2437_v15  ;;  %v3152_v14 = vld [vmem:[#allocation5 + $0xa08] sm:$0xff]  ;;  %v3018_v15 = vld [vmem:[#allocation5 + $0x820] sm:$0xff] }
 0x63c   : > { %3215 = vmatprep.subr.mxu0 %v3182_v17  ;;  %2865 = vmatpush2.msra.mxu1 %v2774_v18  ;;  %v3151_v16 = vld [vmem:[#allocation5 + $0xa00] sm:$0xff]  ;;  %v3017_v17 = vld [vmem:[#allocation5 + $0x818] sm:$0xff] }
 0x63d   : > { %3006 = vmatmul.mubr.f32.vlgmr.msra.gmra.mxu0 %v2435_v8  ;;  %2866 = vmatprep.subr.mxu1 %v2773_v19  ;;  %v3155_v8 = vld [vmem:[#allocation5 + $0xa20] sm:$0xff]  ;;  %v3214_v18 = vld [vmem:[#allocation5 + $0xbf8] sm:$0xff]  ;;  %v3016_v19 = vld [vmem:[#allocation5 + $0x810] sm:$0xff] }
 0x63e   : > { %3216 = vmatpush1.msra.mxu0 %v3181_v20  ;;  %2868 = vmatprep.mubr.f32.mxu1 %v2431_v62  ;;  %v3026_v62 = vld [vmem:[#allocation5 + $0x860] sm:$0xff]  ;;  %v3213_v20 = vld [vmem:[#allocation5 + $0xbf0] sm:$0xff] }
 0x63f   : > { %3217 = vmatprep.subr.mxu0 %v3180_v21  ;;  %2867 = vmatpush2.msra.mxu1 %v2772_v22  ;;  %v3015_v21 = vld [vmem:[#allocation5 + $0x808] sm:$0xff] }
 0x640   : > { %3218 = vmatpush1.msra.mxu0 %v3179_v23  ;;  %2869 = vmatmul.mubr.f32.vlgmr.msra.gmra.mxu1 %v6062_v54  ;;  %v3164_v54 = vld [vmem:[#allocation5 + $0xa68] sm:$0xff]  ;;  %v3014_v23 = vld [vmem:[#allocation5 + $0x800] sm:$0xff] }
 0x641   : > { %3078 = vmatprep.subr.mxu1 %v3045_v24  ;;  %3219 = vmatprep.subr.mxu0 %v3178_v25  ;;  %v3212_v22 = vld [vmem:[#allocation5 + $0xbe8] sm:$0xff]  ;;  %v3211_v24 = vld [vmem:[#allocation5 + $0xbe0] sm:$0xff]  ;;  %v3077_v25 = vld [vmem:[#allocation5 + $0x9f8] sm:$0xff] }
 0x642   : > { %3079 = vmatpush1.msra.mxu1 %v3044_v26  ;;  %3220 = vmatpush1.msra.mxu0 %v3177_v27  ;;  %v3210_v26 = vld [vmem:[#allocation5 + $0xbd8] sm:$0xff]  ;;  %v3076_v27 = vld [vmem:[#allocation5 + $0x9f0] sm:$0xff] }
 0x643   : > { %3080 = vmatprep.subr.mxu1 %v3043_v28  ;;  %3221 = vmatprep.subr.mxu0 %v3176_v29  ;;  %v3209_v28 = vld [vmem:[#allocation5 + $0xbd0] sm:$0xff]  ;;  %v3075_v29 = vld [vmem:[#allocation5 + $0x9e8] sm:$0xff] }
 0x644   : > { %3081 = vmatpush1.msra.mxu1 %v3042_v30  ;;  %3222 = vmatpush1.msra.mxu0 %v3175_v31  ;;  %v3208_v30 = vld [vmem:[#allocation5 + $0xbc8] sm:$0xff]  ;;  %v3074_v31 = vld [vmem:[#allocation5 + $0x9e0] sm:$0xff] }
 0x645   : > { %3082 = vmatprep.subr.mxu1 %v3041_v32  ;;  %3223 = vmatprep.subr.mxu0 %v3174_v33  ;;  %v3207_v32 = vld [vmem:[#allocation5 + $0xbc0] sm:$0xff]  ;;  %v3073_v33 = vld [vmem:[#allocation5 + $0x9d8] sm:$0xff] }
 0x646   : > { %3083 = vmatpush1.msra.mxu1 %v3040_v34  ;;  %3224 = vmatpush1.msra.mxu0 %v3173_v35  ;;  %v3206_v34 = vld [vmem:[#allocation5 + $0xbb8] sm:$0xff]  ;;  %v3072_v35 = vld [vmem:[#allocation5 + $0x9d0] sm:$0xff] }
 0x647   : > { %3084 = vmatprep.subr.mxu1 %v3039_v36  ;;  %3225 = vmatprep.subr.mxu0 %v3172_v37  ;;  %v3205_v36 = vld [vmem:[#allocation5 + $0xbb0] sm:$0xff]  ;;  %v3071_v37 = vld [vmem:[#allocation5 + $0x9c8] sm:$0xff] }
 0x648   : > { %3085 = vmatpush1.msra.mxu1 %v3038_v39  ;;  %3226 = vmatpush1.msra.mxu0 %v3171_v40  ;;  %v3204_v39 = vld [vmem:[#allocation5 + $0xba8] sm:$0xff]  ;;  %v3070_v40 = vld [vmem:[#allocation5 + $0x9c0] sm:$0xff] }
 0x649   : > { %3086 = vmatprep.subr.mxu1 %v3037_v41  ;;  %3227 = vmatprep.subr.mxu0 %v3170_v42  ;;  %v3203_v41 = vld [vmem:[#allocation5 + $0xba0] sm:$0xff]  ;;  %v3069_v42 = vld [vmem:[#allocation5 + $0x9b8] sm:$0xff] }
 0x64a   : > { %3087 = vmatpush1.msra.mxu1 %v3036_v43  ;;  %3228 = vmatpush1.msra.mxu0 %v3169_v44  ;;  %v3202_v43 = vld [vmem:[#allocation5 + $0xb98] sm:$0xff]  ;;  %v3068_v44 = vld [vmem:[#allocation5 + $0x9b0] sm:$0xff] }
 0x64b   : > { %3088 = vmatprep.subr.mxu1 %v3035_v45  ;;  %3229 = vmatprep.subr.mxu0 %v3168_v46  ;;  %v3201_v45 = vld [vmem:[#allocation5 + $0xb90] sm:$0xff]  ;;  %v3067_v46 = vld [vmem:[#allocation5 + $0x9a8] sm:$0xff] }
 0x64c   : > { %3089 = vmatpush1.msra.mxu1 %v3034_v47  ;;  %3230 = vmatpush1.msra.mxu0 %v3167_v48  ;;  %v3200_v47 = vld [vmem:[#allocation5 + $0xb88] sm:$0xff]  ;;  %v3066_v48 = vld [vmem:[#allocation5 + $0x9a0] sm:$0xff] }
 0x64d   : > { %3090 = vmatprep.subr.mxu1 %v3033_v49  ;;  %3231 = vmatprep.subr.mxu0 %v3166_v50  ;;  %v3199_v49 = vld [vmem:[#allocation5 + $0xb80] sm:$0xff]  ;;  %v3065_v50 = vld [vmem:[#allocation5 + $0x998] sm:$0xff] }
 0x64e   : > { %3091 = vmatpush1.msra.mxu1 %v3032_v51  ;;  %3232 = vmatpush1.msra.mxu0 %v3165_v52  ;;  %v3198_v51 = vld [vmem:[#allocation5 + $0xb78] sm:$0xff]  ;;  %v3064_v52 = vld [vmem:[#allocation5 + $0x990] sm:$0xff] }
 0x64f   : > { %3092 = vmatprep.subr.mxu1 %v3031_v53  ;;  %3233 = vmatprep.subr.mxu0 %v3164_v54  ;;  %v3197_v53 = vld [vmem:[#allocation5 + $0xb70] sm:$0xff]  ;;  %v3063_v54 = vld [vmem:[#allocation5 + $0x988] sm:$0xff] }
 0x650   : > { %3093 = vmatpush1.msra.mxu1 %v3030_v55  ;;  %3234 = vmatpush1.msra.mxu0 %v3163_v56  ;;  %v3196_v55 = vld [vmem:[#allocation5 + $0xb68] sm:$0xff]  ;;  %v3062_v56 = vld [vmem:[#allocation5 + $0x980] sm:$0xff] }
 0x651   : > { %3094 = vmatprep.subr.mxu1 %v3029_v57  ;;  %3235 = vmatprep.subr.mxu0 %v3162_v58  ;;  %v3195_v57 = vld [vmem:[#allocation5 + $0xb60] sm:$0xff]  ;;  %v3061_v58 = vld [vmem:[#allocation5 + $0x978] sm:$0xff] }
 0x652   : > { %3095 = vmatpush1.msra.mxu1 %v3028_v59  ;;  %3236 = vmatpush1.msra.mxu0 %v3161_v60  ;;  %v3194_v59 = vld [vmem:[#allocation5 + $0xb58] sm:$0xff]  ;;  %v6065_v60 = vpop.f32.mrf.mxu1 }
 0x653   : > { %3096 = vmatprep.subr.mxu1 %v3027_v38  ;;  %3237 = vmatprep.subr.mxu0 %v3160_v61  ;;  %v3060_v38 = vld [vmem:[#allocation5 + $0x970] sm:$0xff] }
 0x654   : > { %3097 = vmatpush1.msra.mxu1 %v3026_v62  ;;  %3238 = vmatpush1.msra.mxu0 %v3159_v63  ;;  %v3193_v61 = vld [vmem:[#allocation5 + $0xb50] sm:$0xff]  ;;  %v3059_v62 = vld [vmem:[#allocation5 + $0x968] sm:$0xff] }
 0x655   : > { %3098 = vmatprep.subr.mxu1 %v3025_v0  ;;  %3239 = vmatprep.subr.mxu0 %v3158_v1  ;;  %v3192_v63 = vld [vmem:[#allocation5 + $0xb48] sm:$0xff]  ;;  %v3058_v0 = vld [vmem:[#allocation5 + $0x960] sm:$0xff] }
 0x656   : > { %3099 = vmatpush1.msra.mxu1 %v3024_v2  ;;  %3240 = vmatpush1.msra.mxu0 %v3157_v3  ;;  %v3191_v1 = vld [vmem:[#allocation5 + $0xb40] sm:$0xff]  ;;  %v3057_v2 = vld [vmem:[#allocation5 + $0x958] sm:$0xff] }
 0x657   : > { %3100 = vmatprep.subr.mxu1 %v3023_v4  ;;  %3241 = vmatprep.subr.mxu0 %v3156_v5  ;;  %v3190_v3 = vld [vmem:[#allocation5 + $0xb38] sm:$0xff]  ;;  %v2443_v4 = vpop.f32.mrf.mxu1  ;;  %v3056_v5 = vld [vmem:[#allocation5 + $0x950] sm:$0xff] }
 0x658   : > { %3101 = vmatpush1.msra.mxu1 %v3022_v7  ;;  %3242 = vmatpush1.msra.mxu0 %v3155_v8  ;;  %v3189_v7 = vld [vmem:[#allocation5 + $0xb30] sm:$0xff]  ;;  %v3055_v8 = vld [vmem:[#allocation5 + $0x948] sm:$0xff] }
 0x659   : > { %3102 = vmatprep.subr.mxu1 %v3021_v9  ;;  %3243 = vmatprep.subr.mxu0 %v3154_v10  ;;  %v3188_v9 = vld [vmem:[#allocation5 + $0xb28] sm:$0xff]  ;;  %v3054_v10 = vld [vmem:[#allocation5 + $0x940] sm:$0xff] }
 0x65a   : > { %3103 = vmatpush1.msra.mxu1 %v3020_v11  ;;  %3244 = vmatpush1.msra.mxu0 %v3153_v12  ;;  %v3187_v11 = vld [vmem:[#allocation5 + $0xb20] sm:$0xff]  ;;  %v3053_v12 = vld [vmem:[#allocation5 + $0x938] sm:$0xff] }
 0x65b   : > { %3104 = vmatprep.subr.mxu1 %v3019_v13  ;;  %3245 = vmatprep.subr.mxu0 %v3152_v14  ;;  %v3186_v13 = vld [vmem:[#allocation5 + $0xb18] sm:$0xff]  ;;  %v2447_v14 = vpop.f32.mrf.mxu1 }
 0x65c   : > { %3105 = vmatpush1.msra.mxu1 %v3018_v15  ;;  %3246 = vmatpush1.msra.mxu0 %v3151_v16  ;;  %v3052_v15 = vld [vmem:[#allocation5 + $0x930] sm:$0xff] }
 0x65d   : > { %3106 = vmatprep.subr.mxu1 %v3017_v17  ;;  %3247 = vmatprep.subr.mxu0 %v3214_v18  ;;  %v3185_v16 = vld [vmem:[#allocation5 + $0xb10] sm:$0xff]  ;;  %v3051_v17 = vld [vmem:[#allocation5 + $0x928] sm:$0xff] }
 0x65e   : > { %3107 = vmatpush1.msra.mxu1 %v3016_v19  ;;  %3248 = vmatpush2.msra.mxu0 %v3213_v20  ;;  %v3184_v18 = vld [vmem:[#allocation5 + $0xb08] sm:$0xff]  ;;  %v3050_v19 = vld [vmem:[#allocation5 + $0x920] sm:$0xff] }
 0x65f   : > { %3108 = vmatprep.subr.mxu1 %v3015_v21  ;;  %3249 = vmatprep.subr.mxu0 %v3212_v22  ;;  %v3183_v20 = vld [vmem:[#allocation5 + $0xb00] sm:$0xff]  ;;  %v2449_v21 = vpop.f32.mrf.mxu1  ;;  %v3049_v22 = vld [vmem:[#allocation5 + $0x918] sm:$0xff] }
 0x660   : > { %3109 = vmatpush1.msra.mxu1 %v3014_v23  ;;  %3250 = vmatpush2.msra.mxu0 %v3211_v24  ;;  %v3456_v23 = vld [vmem:[#allocation5 + $0xef8] sm:$0xff]  ;;  %v3048_v24 = vld [vmem:[#allocation5 + $0x910] sm:$0xff] }
 0x661   : > { %3110 = vmatprep.subr.mxu1 %v3077_v25  ;;  %3251 = vmatprep.subr.mxu0 %v3210_v26  ;;  %v3047_v25 = vld [vmem:[#allocation5 + $0x908] sm:$0xff]  ;;  %v3455_v26 = vld [vmem:[#allocation5 + $0xef0] sm:$0xff] }
 0x662   : > { %3111 = vmatpush2.msra.mxu1 %v3076_v27  ;;  %3252 = vmatpush2.msra.mxu0 %v3209_v28  ;;  %v3454_v27 = vld [vmem:[#allocation5 + $0xee8] sm:$0xff]  ;;  %v3046_v28 = vld [vmem:[#allocation5 + $0x900] sm:$0xff] }
 0x663   : > { %3112 = vmatprep.subr.mxu1 %v3075_v29  ;;  %3253 = vmatprep.subr.mxu0 %v3208_v30  ;;  %v3453_v29 = vld [vmem:[#allocation5 + $0xee0] sm:$0xff]  ;;  %v3319_v30 = vld [vmem:[#allocation5 + $0xcf8] sm:$0xff] }
 0x664   : > { %3113 = vmatpush2.msra.mxu1 %v3074_v31  ;;  %3254 = vmatpush2.msra.mxu0 %v3207_v32  ;;  %v3452_v31 = vld [vmem:[#allocation5 + $0xed8] sm:$0xff]  ;;  %v3318_v32 = vld [vmem:[#allocation5 + $0xcf0] sm:$0xff] }
 0x665   : > { %3114 = vmatprep.subr.mxu1 %v3073_v33  ;;  %3255 = vmatprep.subr.mxu0 %v3206_v34  ;;  %v3451_v33 = vld [vmem:[#allocation5 + $0xed0] sm:$0xff]  ;;  %v3317_v34 = vld [vmem:[#allocation5 + $0xce8] sm:$0xff] }
 0x666   : > { %3115 = vmatpush2.msra.mxu1 %v3072_v35  ;;  %3256 = vmatpush2.msra.mxu0 %v3205_v36  ;;  %v3450_v35 = vld [vmem:[#allocation5 + $0xec8] sm:$0xff]  ;;  %v3316_v36 = vld [vmem:[#allocation5 + $0xce0] sm:$0xff] }
 0x667   : > { %3116 = vmatprep.subr.mxu1 %v3071_v37  ;;  %3257 = vmatprep.subr.mxu0 %v3204_v39  ;;  %v3449_v37 = vld [vmem:[#allocation5 + $0xec0] sm:$0xff]  ;;  %v3315_v39 = vld [vmem:[#allocation5 + $0xcd8] sm:$0xff] }
 0x668   : > { %3117 = vmatpush2.msra.mxu1 %v3070_v40  ;;  %3258 = vmatpush2.msra.mxu0 %v3203_v41  ;;  %v3448_v40 = vld [vmem:[#allocation5 + $0xeb8] sm:$0xff]  ;;  %v3314_v41 = vld [vmem:[#allocation5 + $0xcd0] sm:$0xff] }
 0x669   : > { %3118 = vmatprep.subr.mxu1 %v3069_v42  ;;  %3259 = vmatprep.subr.mxu0 %v3202_v43  ;;  %v3447_v42 = vld [vmem:[#allocation5 + $0xeb0] sm:$0xff]  ;;  %v3313_v43 = vld [vmem:[#allocation5 + $0xcc8] sm:$0xff] }
 0x66a   : > { %3119 = vmatpush2.msra.mxu1 %v3068_v44  ;;  %3260 = vmatpush2.msra.mxu0 %v3201_v45  ;;  %v3446_v44 = vld [vmem:[#allocation5 + $0xea8] sm:$0xff]  ;;  %v3312_v45 = vld [vmem:[#allocation5 + $0xcc0] sm:$0xff] }
 0x66b   : > { %3120 = vmatprep.subr.mxu1 %v3067_v46  ;;  %3261 = vmatprep.subr.mxu0 %v3200_v47  ;;  %v3445_v46 = vld [vmem:[#allocation5 + $0xea0] sm:$0xff]  ;;  %v3311_v47 = vld [vmem:[#allocation5 + $0xcb8] sm:$0xff] }
 0x66c   : > { %3121 = vmatpush2.msra.mxu1 %v3066_v48  ;;  %3262 = vmatpush2.msra.mxu0 %v3199_v49  ;;  %v3444_v48 = vld [vmem:[#allocation5 + $0xe98] sm:$0xff]  ;;  %v3310_v49 = vld [vmem:[#allocation5 + $0xcb0] sm:$0xff] }
 0x66d   : > { %3122 = vmatprep.subr.mxu1 %v3065_v50  ;;  %3263 = vmatprep.subr.mxu0 %v3198_v51  ;;  %v3443_v50 = vld [vmem:[#allocation5 + $0xe90] sm:$0xff]  ;;  %v3309_v51 = vld [vmem:[#allocation5 + $0xca8] sm:$0xff] }
 0x66e   : > { %3123 = vmatpush2.msra.mxu1 %v3064_v52  ;;  %3264 = vmatpush2.msra.mxu0 %v3197_v53  ;;  %v3442_v52 = vld [vmem:[#allocation5 + $0xe88] sm:$0xff]  ;;  %v3308_v53 = vld [vmem:[#allocation5 + $0xca0] sm:$0xff] }
 0x66f   : > { %3124 = vmatprep.subr.mxu1 %v3063_v54  ;;  %3265 = vmatprep.subr.mxu0 %v3196_v55  ;;  %v3441_v54 = vld [vmem:[#allocation5 + $0xe80] sm:$0xff]  ;;  %v3307_v55 = vld [vmem:[#allocation5 + $0xc98] sm:$0xff] }
 0x670   : > { %3125 = vmatpush2.msra.mxu1 %v3062_v56  ;;  %3266 = vmatpush2.msra.mxu0 %v3195_v57  ;;  %v3440_v56 = vld [vmem:[#allocation5 + $0xe78] sm:$0xff]  ;;  %v3306_v57 = vld [vmem:[#allocation5 + $0xc90] sm:$0xff] }
 0x671   : > { %3126 = vmatprep.subr.mxu1 %v3061_v58  ;;  %3267 = vmatprep.subr.mxu0 %v3194_v59  ;;  %v3439_v58 = vld [vmem:[#allocation5 + $0xe70] sm:$0xff]  ;;  %v3305_v59 = vld [vmem:[#allocation5 + $0xc88] sm:$0xff] }
 0x672   : > { %3127 = vmatpush2.msra.mxu1 %v3060_v38  ;;  %3268 = vmatpush2.msra.mxu0 %v3193_v61  ;;  %v3304_v38 = vld [vmem:[#allocation5 + $0xc80] sm:$0xff] }
 0x673   : > { %3128 = vmatprep.subr.mxu1 %v3059_v62  ;;  %3269 = vmatprep.subr.mxu0 %v3192_v63  ;;  %v3437_v61 = vld [vmem:[#allocation5 + $0xe60] sm:$0xff]  ;;  %v3303_v62 = vld [vmem:[#allocation5 + $0xc78] sm:$0xff] }
 0x674   : > { %3129 = vmatpush2.msra.mxu1 %v3058_v0  ;;  %3270 = vmatpush2.msra.mxu0 %v3191_v1  ;;  %v3436_v63 = vld [vmem:[#allocation5 + $0xe58] sm:$0xff]  ;;  %v3302_v0 = vld [vmem:[#allocation5 + $0xc70] sm:$0xff] }
 0x675   : > { %3130 = vmatprep.subr.mxu1 %v3057_v2  ;;  %3271 = vmatprep.subr.mxu0 %v3190_v3  ;;  %v3435_v1 = vld [vmem:[#allocation5 + $0xe50] sm:$0xff]  ;;  %v3301_v2 = vld [vmem:[#allocation5 + $0xc68] sm:$0xff] }
 0x676   : > { %3131 = vmatpush2.msra.mxu1 %v3056_v5  ;;  %3272 = vmatpush2.msra.mxu0 %v3189_v7  ;;  %v3434_v3 = vld [vmem:[#allocation5 + $0xe48] sm:$0xff]  ;;  %v3433_v5 = vld [vmem:[#allocation5 + $0xe40] sm:$0xff]  ;;  %v3299_v7 = vld [vmem:[#allocation5 + $0xc58] sm:$0xff] }
 0x677   : > { %3132 = vmatprep.subr.mxu1 %v3055_v8  ;;  %3273 = vmatprep.subr.mxu0 %v3188_v9  ;;  %v3432_v8 = vld [vmem:[#allocation5 + $0xe38] sm:$0xff]  ;;  %v3298_v9 = vld [vmem:[#allocation5 + $0xc50] sm:$0xff] }
 0x678   : > { %3133 = vmatpush2.msra.mxu1 %v3054_v10  ;;  %3274 = vmatpush2.msra.mxu0 %v3187_v11  ;;  %v3431_v10 = vld [vmem:[#allocation5 + $0xe30] sm:$0xff]  ;;  %v3297_v11 = vld [vmem:[#allocation5 + $0xc48] sm:$0xff] }
 0x679   : > { %3134 = vmatprep.subr.mxu1 %v3053_v12  ;;  %3275 = vmatprep.subr.mxu0 %v3186_v13  ;;  %v3430_v12 = vld [vmem:[#allocation5 + $0xe28] sm:$0xff]  ;;  %v3296_v13 = vld [vmem:[#allocation5 + $0xc40] sm:$0xff] }
 0x67a   : > { %3135 = vmatpush2.msra.mxu1 %v3052_v15  ;;  %3276 = vmatpush2.msra.mxu0 %v3185_v16  ;;  %v3295_v15 = vld [vmem:[#allocation5 + $0xc38] sm:$0xff] }
 0x67b   : > { %3136 = vmatprep.subr.mxu1 %v3051_v17  ;;  %3277 = vmatprep.subr.mxu0 %v3184_v18  ;;  %v3428_v16 = vld [vmem:[#allocation5 + $0xe18] sm:$0xff]  ;;  %v3294_v17 = vld [vmem:[#allocation5 + $0xc30] sm:$0xff] }
 0x67c   : > { %3137 = vmatpush2.msra.mxu1 %v3050_v19  ;;  %3278 = vmatpush2.msra.mxu0 %v3183_v20  ;;  %v3427_v18 = vld [vmem:[#allocation5 + $0xe10] sm:$0xff]  ;;  %v3293_v19 = vld [vmem:[#allocation5 + $0xc28] sm:$0xff] }
 0x67d   : > { %3138 = vmatprep.subr.mxu1 %v3049_v22  ;;  %3279 = vmatprep.mubr.f32.mxu0 %v2449_v21  ;;  %v3426_v20 = vld [vmem:[#allocation5 + $0xe08] sm:$0xff]  ;;  %v3292_v21 = vld [vmem:[#allocation5 + $0xc20] sm:$0xff] }
 0x67e   : > { %3489 = vmatprep.subr.mxu0 %v3456_v23  ;;  %3139 = vmatpush2.msra.mxu1 %v3048_v24  ;;  %v3425_v22 = vld [vmem:[#allocation5 + $0xe00] sm:$0xff]  ;;  %v3291_v23 = vld [vmem:[#allocation5 + $0xc18] sm:$0xff] }
 0x67f   : > { %3280 = vmatmul.mubr.f32.vlgmr.msra.gmra.mxu0 %v2447_v14  ;;  %3140 = vmatprep.subr.mxu1 %v3047_v25  ;;  %v3429_v14 = vld [vmem:[#allocation5 + $0xe20] sm:$0xff]  ;;  %v3488_v24 = vld [vmem:[#allocation5 + $0xff8] sm:$0xff]  ;;  %v3290_v25 = vld [vmem:[#allocation5 + $0xc10] sm:$0xff] }
 0x680   : > { %3490 = vmatpush1.msra.mxu0 %v3455_v26  ;;  %3142 = vmatprep.mubr.f32.mxu1 %v2443_v4  ;;  %v3300_v4 = vld [vmem:[#allocation5 + $0xc60] sm:$0xff]  ;;  %v3487_v26 = vld [vmem:[#allocation5 + $0xff0] sm:$0xff] }
 0x681   : > { %3491 = vmatprep.subr.mxu0 %v3454_v27  ;;  %3141 = vmatpush2.msra.mxu1 %v3046_v28  ;;  %v3289_v27 = vld [vmem:[#allocation5 + $0xc08] sm:$0xff] }
 0x682   : > { %3492 = vmatpush1.msra.mxu0 %v3453_v29  ;;  %3143 = vmatmul.mubr.f32.vlgmr.msra.gmra.mxu1 %v6065_v60  ;;  %v3438_v60 = vld [vmem:[#allocation5 + $0xe68] sm:$0xff]  ;;  %v3288_v29 = vld [vmem:[#allocation5 + $0xc00] sm:$0xff] }
 0x683   : > { %3352 = vmatprep.subr.mxu1 %v3319_v30  ;;  %3493 = vmatprep.subr.mxu0 %v3452_v31  ;;  %v3486_v28 = vld [vmem:[#allocation5 + $0xfe8] sm:$0xff]  ;;  %v3485_v30 = vld [vmem:[#allocation5 + $0xfe0] sm:$0xff]  ;;  %v3351_v31 = vld [vmem:[#allocation5 + $0xdf8] sm:$0xff] }
 0x684   : > { %3353 = vmatpush1.msra.mxu1 %v3318_v32  ;;  %3494 = vmatpush1.msra.mxu0 %v3451_v33  ;;  %v3484_v32 = vld [vmem:[#allocation5 + $0xfd8] sm:$0xff]  ;;  %v3350_v33 = vld [vmem:[#allocation5 + $0xdf0] sm:$0xff] }
 0x685   : > { %3354 = vmatprep.subr.mxu1 %v3317_v34  ;;  %3495 = vmatprep.subr.mxu0 %v3450_v35  ;;  %v3483_v34 = vld [vmem:[#allocation5 + $0xfd0] sm:$0xff]  ;;  %v3349_v35 = vld [vmem:[#allocation5 + $0xde8] sm:$0xff] }
 0x686   : > { %3355 = vmatpush1.msra.mxu1 %v3316_v36  ;;  %3496 = vmatpush1.msra.mxu0 %v3449_v37  ;;  %v3482_v36 = vld [vmem:[#allocation5 + $0xfc8] sm:$0xff]  ;;  %v3348_v37 = vld [vmem:[#allocation5 + $0xde0] sm:$0xff] }
 0x687   : > { %3356 = vmatprep.subr.mxu1 %v3315_v39  ;;  %3497 = vmatprep.subr.mxu0 %v3448_v40  ;;  %v3481_v39 = vld [vmem:[#allocation5 + $0xfc0] sm:$0xff]  ;;  %v3347_v40 = vld [vmem:[#allocation5 + $0xdd8] sm:$0xff] }
 0x688   : > { %3357 = vmatpush1.msra.mxu1 %v3314_v41  ;;  %3498 = vmatpush1.msra.mxu0 %v3447_v42  ;;  %v3480_v41 = vld [vmem:[#allocation5 + $0xfb8] sm:$0xff]  ;;  %v3346_v42 = vld [vmem:[#allocation5 + $0xdd0] sm:$0xff] }
 0x689   : > { %3358 = vmatprep.subr.mxu1 %v3313_v43  ;;  %3499 = vmatprep.subr.mxu0 %v3446_v44  ;;  %v3479_v43 = vld [vmem:[#allocation5 + $0xfb0] sm:$0xff]  ;;  %v3345_v44 = vld [vmem:[#allocation5 + $0xdc8] sm:$0xff] }
 0x68a   : > { %3359 = vmatpush1.msra.mxu1 %v3312_v45  ;;  %3500 = vmatpush1.msra.mxu0 %v3445_v46  ;;  %v3478_v45 = vld [vmem:[#allocation5 + $0xfa8] sm:$0xff]  ;;  %v3344_v46 = vld [vmem:[#allocation5 + $0xdc0] sm:$0xff] }
 0x68b   : > { %3360 = vmatprep.subr.mxu1 %v3311_v47  ;;  %3501 = vmatprep.subr.mxu0 %v3444_v48  ;;  %v3477_v47 = vld [vmem:[#allocation5 + $0xfa0] sm:$0xff]  ;;  %v3343_v48 = vld [vmem:[#allocation5 + $0xdb8] sm:$0xff] }
 0x68c   : > { %3361 = vmatpush1.msra.mxu1 %v3310_v49  ;;  %3502 = vmatpush1.msra.mxu0 %v3443_v50  ;;  %v3476_v49 = vld [vmem:[#allocation5 + $0xf98] sm:$0xff]  ;;  %v3342_v50 = vld [vmem:[#allocation5 + $0xdb0] sm:$0xff] }
 0x68d   : > { %3362 = vmatprep.subr.mxu1 %v3309_v51  ;;  %3503 = vmatprep.subr.mxu0 %v3442_v52  ;;  %v3475_v51 = vld [vmem:[#allocation5 + $0xf90] sm:$0xff]  ;;  %v3341_v52 = vld [vmem:[#allocation5 + $0xda8] sm:$0xff] }
 0x68e   : > { %3363 = vmatpush1.msra.mxu1 %v3308_v53  ;;  %3504 = vmatpush1.msra.mxu0 %v3441_v54  ;;  %v3474_v53 = vld [vmem:[#allocation5 + $0xf88] sm:$0xff]  ;;  %v3340_v54 = vld [vmem:[#allocation5 + $0xda0] sm:$0xff] }
 0x68f   : > { %3364 = vmatprep.subr.mxu1 %v3307_v55  ;;  %3505 = vmatprep.subr.mxu0 %v3440_v56  ;;  %v3473_v55 = vld [vmem:[#allocation5 + $0xf80] sm:$0xff]  ;;  %v3339_v56 = vld [vmem:[#allocation5 + $0xd98] sm:$0xff] }
 0x690   : > { %3365 = vmatpush1.msra.mxu1 %v3306_v57  ;;  %3506 = vmatpush1.msra.mxu0 %v3439_v58  ;;  %v3472_v57 = vld [vmem:[#allocation5 + $0xf78] sm:$0xff]  ;;  %v3338_v58 = vld [vmem:[#allocation5 + $0xd90] sm:$0xff] }
 0x691   : > { %3366 = vmatprep.subr.mxu1 %v3305_v59  ;;  %3507 = vmatprep.subr.mxu0 %v3438_v60  ;;  %v3471_v59 = vld [vmem:[#allocation5 + $0xf70] sm:$0xff]  ;;  %v3337_v60 = vld [vmem:[#allocation5 + $0xd88] sm:$0xff] }
 0x692   : > { %3367 = vmatpush1.msra.mxu1 %v3304_v38  ;;  %3508 = vmatpush1.msra.mxu0 %v3437_v61  ;;  %v3470_v38 = vld [vmem:[#allocation5 + $0xf68] sm:$0xff]  ;;  %v3336_v61 = vld [vmem:[#allocation5 + $0xd80] sm:$0xff] }
 0x693   : > { %3368 = vmatprep.subr.mxu1 %v3303_v62  ;;  %3509 = vmatprep.subr.mxu0 %v3436_v63  ;;  %v3469_v62 = vld [vmem:[#allocation5 + $0xf60] sm:$0xff]  ;;  %v6068_v63 = vpop.f32.mrf.mxu1 }
 0x694   : > { %3369 = vmatpush1.msra.mxu1 %v3302_v0  ;;  %3510 = vmatpush1.msra.mxu0 %v3435_v1  ;;  %v3335_v0 = vld [vmem:[#allocation5 + $0xd78] sm:$0xff] }
 0x695   : > { %3370 = vmatprep.subr.mxu1 %v3301_v2  ;;  %3511 = vmatprep.subr.mxu0 %v3434_v3  ;;  %v3468_v1 = vld [vmem:[#allocation5 + $0xf58] sm:$0xff]  ;;  %v3334_v2 = vld [vmem:[#allocation5 + $0xd70] sm:$0xff] }
 0x696   : > { %3371 = vmatpush1.msra.mxu1 %v3300_v4  ;;  %3512 = vmatpush1.msra.mxu0 %v3433_v5  ;;  %v3467_v3 = vld [vmem:[#allocation5 + $0xf50] sm:$0xff]  ;;  %v3333_v4 = vld [vmem:[#allocation5 + $0xd68] sm:$0xff] }
 0x697   : > { %3372 = vmatprep.subr.mxu1 %v3299_v7  ;;  %3513 = vmatprep.subr.mxu0 %v3432_v8  ;;  %v3466_v5 = vld [vmem:[#allocation5 + $0xf48] sm:$0xff]  ;;  %v3332_v7 = vld [vmem:[#allocation5 + $0xd60] sm:$0xff] }
 0x698   : > { %3373 = vmatpush1.msra.mxu1 %v3298_v9  ;;  %3514 = vmatpush1.msra.mxu0 %v3431_v10  ;;  %v3465_v8 = vld [vmem:[#allocation5 + $0xf40] sm:$0xff]  ;;  %v2455_v9 = vpop.f32.mrf.mxu1  ;;  %v3331_v10 = vld [vmem:[#allocation5 + $0xd58] sm:$0xff] }
 0x699   : > { %3374 = vmatprep.subr.mxu1 %v3297_v11  ;;  %3515 = vmatprep.subr.mxu0 %v3430_v12  ;;  %v3464_v11 = vld [vmem:[#allocation5 + $0xf38] sm:$0xff]  ;;  %v3330_v12 = vld [vmem:[#allocation5 + $0xd50] sm:$0xff] }
 0x69a   : > { %3375 = vmatpush1.msra.mxu1 %v3296_v13  ;;  %3516 = vmatpush1.msra.mxu0 %v3429_v14  ;;  %v3463_v13 = vld [vmem:[#allocation5 + $0xf30] sm:$0xff]  ;;  %v3329_v14 = vld [vmem:[#allocation5 + $0xd48] sm:$0xff] }
 0x69b   : > { %3376 = vmatprep.subr.mxu1 %v3295_v15  ;;  %3517 = vmatprep.subr.mxu0 %v3428_v16  ;;  %v3462_v15 = vld [vmem:[#allocation5 + $0xf28] sm:$0xff]  ;;  %v2459_v16 = vpop.f32.mrf.mxu1 }
 0x69c   : > { %3377 = vmatpush1.msra.mxu1 %v3294_v17  ;;  %3518 = vmatpush1.msra.mxu0 %v3427_v18  ;;  %v3328_v17 = vld [vmem:[#allocation5 + $0xd40] sm:$0xff] }
 0x69d   : > { %3378 = vmatprep.subr.mxu1 %v3293_v19  ;;  %3519 = vmatprep.subr.mxu0 %v3426_v20  ;;  %v3461_v18 = vld [vmem:[#allocation5 + $0xf20] sm:$0xff]  ;;  %v3327_v19 = vld [vmem:[#allocation5 + $0xd38] sm:$0xff] }
 0x69e   : > { %3379 = vmatpush1.msra.mxu1 %v3292_v21  ;;  %3520 = vmatpush1.msra.mxu0 %v3425_v22  ;;  %v3460_v20 = vld [vmem:[#allocation5 + $0xf18] sm:$0xff]  ;;  %v3326_v21 = vld [vmem:[#allocation5 + $0xd30] sm:$0xff] }
 0x69f   : > { %3380 = vmatprep.subr.mxu1 %v3291_v23  ;;  %3521 = vmatprep.subr.mxu0 %v3488_v24  ;;  %v3459_v22 = vld [vmem:[#allocation5 + $0xf10] sm:$0xff]  ;;  %v3325_v23 = vld [vmem:[#allocation5 + $0xd28] sm:$0xff]  ;;  %v2461_v24 = vpop.f32.mrf.mxu1 }
 0x6a0   : > { %3381 = vmatpush1.msra.mxu1 %v3290_v25  ;;  %3522 = vmatpush2.msra.mxu0 %v3487_v26  ;;  %v3458_v25 = vld [vmem:[#allocation5 + $0xf08] sm:$0xff]  ;;  %v3324_v26 = vld [vmem:[#allocation5 + $0xd20] sm:$0xff] }
 0x6a1   : > { %3382 = vmatprep.subr.mxu1 %v3289_v27  ;;  %3523 = vmatprep.subr.mxu0 %v3486_v28  ;;  %v3457_v27 = vld [vmem:[#allocation5 + $0xf00] sm:$0xff]  ;;  %v3323_v28 = vld [vmem:[#allocation5 + $0xd18] sm:$0xff] }
 0x6a2   : > { %3383 = vmatpush1.msra.mxu1 %v3288_v29  ;;  %3524 = vmatpush2.msra.mxu0 %v3485_v30  ;;  %v3322_v29 = vld [vmem:[#allocation5 + $0xd10] sm:$0xff]  ;;  %v3321_v30 = vld [vmem:[#allocation5 + $0xd08] sm:$0xff] }
 0x6a3   : > { %3384 = vmatprep.subr.mxu1 %v3351_v31  ;;  %3525 = vmatprep.subr.mxu0 %v3484_v32  ;;  %v6070_v31 = vpop.f32.mrf.mxu1  ;;  %v3320_v32 = vld [vmem:[#allocation5 + $0xd00] sm:$0xff] }
 0x6a4   : > { %3385 = vmatpush2.msra.mxu1 %v3350_v33  ;;  %3526 = vmatpush2.msra.mxu0 %v3483_v34  ;;  %v3593_v33 = vld [vmem:[#allocation5 + $0x10f8] sm:$0xff]  ;;  %v3592_v34 = vld [vmem:[#allocation5 + $0x10f0] sm:$0xff] }
 0x6a5   : > { %3386 = vmatprep.subr.mxu1 %v3349_v35  ;;  %3527 = vmatprep.subr.mxu0 %v3482_v36  ;;  %v3591_v35 = vld [vmem:[#allocation5 + $0x10e8] sm:$0xff]  ;;  %v2467_v36 = vpop.f32.mrf.mxu1 }
 0x6a6   : > { %3387 = vmatpush2.msra.mxu1 %v3348_v37  ;;  %3528 = vmatpush2.msra.mxu0 %v3481_v39  ;;  %v3590_v37 = vld [vmem:[#allocation5 + $0x10e0] sm:$0xff]  ;;  %v3589_v39 = vld [vmem:[#allocation5 + $0x10d8] sm:$0xff] }
 0x6a7   : > { %3388 = vmatprep.subr.mxu1 %v3347_v40  ;;  %3529 = vmatprep.subr.mxu0 %v3480_v41  ;;  %v3588_v40 = vld [vmem:[#allocation5 + $0x10d0] sm:$0xff]  ;;  %v3587_v41 = vld [vmem:[#allocation5 + $0x10c8] sm:$0xff] }
 0x6a8   : > { %3389 = vmatpush2.msra.mxu1 %v3346_v42  ;;  %3530 = vmatpush2.msra.mxu0 %v3479_v43  ;;  %v3586_v42 = vld [vmem:[#allocation5 + $0x10c0] sm:$0xff]  ;;  %v3585_v43 = vld [vmem:[#allocation5 + $0x10b8] sm:$0xff] }
 0x6a9   : > { %3390 = vmatprep.subr.mxu1 %v3345_v44  ;;  %3531 = vmatprep.subr.mxu0 %v3478_v45  ;;  %v3584_v44 = vld [vmem:[#allocation5 + $0x10b0] sm:$0xff]  ;;  %v3583_v45 = vld [vmem:[#allocation5 + $0x10a8] sm:$0xff] }
 0x6aa   : > { %3391 = vmatpush2.msra.mxu1 %v3344_v46  ;;  %3532 = vmatpush2.msra.mxu0 %v3477_v47  ;;  %v3582_v46 = vld [vmem:[#allocation5 + $0x10a0] sm:$0xff]  ;;  %v3581_v47 = vld [vmem:[#allocation5 + $0x1098] sm:$0xff] }
 0x6ab   : > { %3392 = vmatprep.subr.mxu1 %v3343_v48  ;;  %3533 = vmatprep.subr.mxu0 %v3476_v49  ;;  %v3580_v48 = vld [vmem:[#allocation5 + $0x1090] sm:$0xff]  ;;  %v3579_v49 = vld [vmem:[#allocation5 + $0x1088] sm:$0xff] }
 0x6ac   : > { %3393 = vmatpush2.msra.mxu1 %v3342_v50  ;;  %3534 = vmatpush2.msra.mxu0 %v3475_v51  ;;  %v3578_v50 = vld [vmem:[#allocation5 + $0x1080] sm:$0xff]  ;;  %v3577_v51 = vld [vmem:[#allocation5 + $0x1078] sm:$0xff] }
 0x6ad   : > { %3394 = vmatprep.subr.mxu1 %v3341_v52  ;;  %3535 = vmatprep.subr.mxu0 %v3474_v53  ;;  %v3576_v52 = vld [vmem:[#allocation5 + $0x1070] sm:$0xff]  ;;  %v3575_v53 = vld [vmem:[#allocation5 + $0x1068] sm:$0xff] }
 0x6ae   : > { %3395 = vmatpush2.msra.mxu1 %v3340_v54  ;;  %3536 = vmatpush2.msra.mxu0 %v3473_v55  ;;  %v3574_v54 = vld [vmem:[#allocation5 + $0x1060] sm:$0xff]  ;;  %v3573_v55 = vld [vmem:[#allocation5 + $0x1058] sm:$0xff] }
 0x6af   : > { %3396 = vmatprep.subr.mxu1 %v3339_v56  ;;  %3537 = vmatprep.subr.mxu0 %v3472_v57  ;;  %v3572_v56 = vld [vmem:[#allocation5 + $0x1050] sm:$0xff]  ;;  %v3571_v57 = vld [vmem:[#allocation5 + $0x1048] sm:$0xff] }
 0x6b0   : > { %3397 = vmatpush2.msra.mxu1 %v3338_v58  ;;  %3538 = vmatpush2.msra.mxu0 %v3471_v59  ;;  %v3570_v58 = vld [vmem:[#allocation5 + $0x1040] sm:$0xff]  ;;  %v3569_v59 = vld [vmem:[#allocation5 + $0x1038] sm:$0xff] }
 0x6b1   : > { %3398 = vmatprep.subr.mxu1 %v3337_v60  ;;  %3539 = vmatprep.subr.mxu0 %v3470_v38  ;;  %v3568_v60 = vld [vmem:[#allocation5 + $0x1030] sm:$0xff]  ;;  %v3567_v38 = vld [vmem:[#allocation5 + $0x1028] sm:$0xff] }
 0x6b2   : > { %3399 = vmatpush2.msra.mxu1 %v3336_v61  ;;  %3540 = vmatpush2.msra.mxu0 %v3469_v62  ;;  %v3566_v61 = vld [vmem:[#allocation5 + $0x1020] sm:$0xff]  ;;  %v3565_v62 = vld [vmem:[#allocation5 + $0x1018] sm:$0xff] }
 0x6b3   : > { %3400 = vmatprep.subr.mxu1 %v3335_v0  ;;  %3541 = vmatprep.subr.mxu0 %v3468_v1  ;;  %v3563_v0 = vld [vmem:[#allocation5 + $0x1008] sm:$0xff]  ;;  %v3562_v1 = vld [vmem:[#allocation5 + $0x1000] sm:$0xff] }
 0x6b4   : > { %3401 = vmatpush2.msra.mxu1 %v3334_v2  ;;  %3542 = vmatpush2.msra.mxu0 %v3467_v3  ;;  %v3625_v2 = vld [vmem:[#allocation5 + $0x11f8] sm:$0xff]  ;;  %v3624_v3 = vld [vmem:[#allocation5 + $0x11f0] sm:$0xff] }
 0x6b5   : > { %3402 = vmatprep.subr.mxu1 %v3333_v4  ;;  %3543 = vmatprep.subr.mxu0 %v3466_v5  ;;  %v3623_v4 = vld [vmem:[#allocation5 + $0x11e8] sm:$0xff]  ;;  %v3622_v5 = vld [vmem:[#allocation5 + $0x11e0] sm:$0xff] }
 0x6b6   : > { %3403 = vmatpush2.msra.mxu1 %v3332_v7  ;;  %3544 = vmatpush2.msra.mxu0 %v3465_v8  ;;  %v3621_v7 = vld [vmem:[#allocation5 + $0x11d8] sm:$0xff]  ;;  %v3620_v8 = vld [vmem:[#allocation5 + $0x11d0] sm:$0xff] }
 0x6b7   : > { %3404 = vmatprep.subr.mxu1 %v3331_v10  ;;  %3545 = vmatprep.subr.mxu0 %v3464_v11  ;;  %v3618_v10 = vld [vmem:[#allocation5 + $0x11c0] sm:$0xff]  ;;  %v3617_v11 = vld [vmem:[#allocation5 + $0x11b8] sm:$0xff] }
 0x6b8   : > { %3405 = vmatpush2.msra.mxu1 %v3330_v12  ;;  %3546 = vmatpush2.msra.mxu0 %v3463_v13  ;;  %v3616_v12 = vld [vmem:[#allocation5 + $0x11b0] sm:$0xff]  ;;  %v3615_v13 = vld [vmem:[#allocation5 + $0x11a8] sm:$0xff] }
 0x6b9   : > { %3406 = vmatprep.subr.mxu1 %v3329_v14  ;;  %3416 = vmatprep.mubr.f32.mxu1 %v2455_v9  ;;  %v3619_v9 = vld [vmem:[#allocation5 + $0x11c8] sm:$0xff]  ;;  %v3614_v14 = vld [vmem:[#allocation5 + $0x11a0] sm:$0xff] }
 0x6ba   : > { %3547 = vmatprep.subr.mxu0 %v3462_v15  ;;  %3407 = vmatpush2.msra.mxu1 %v3328_v17  ;;  %v3613_v15 = vld [vmem:[#allocation5 + $0x1198] sm:$0xff]  ;;  %v3611_v17 = vld [vmem:[#allocation5 + $0x1188] sm:$0xff] }
 0x6bb   : > { %3548 = vmatpush2.msra.mxu0 %v3461_v18  ;;  %3408 = vmatprep.subr.mxu1 %v3327_v19  ;;  %v3610_v18 = vld [vmem:[#allocation5 + $0x1180] sm:$0xff]  ;;  %v3609_v19 = vld [vmem:[#allocation5 + $0x1178] sm:$0xff] }
 0x6bc   : > { %3549 = vmatprep.subr.mxu0 %v3460_v20  ;;  %3409 = vmatpush2.msra.mxu1 %v3326_v21  ;;  %v3608_v20 = vld [vmem:[#allocation5 + $0x1170] sm:$0xff]  ;;  %v3607_v21 = vld [vmem:[#allocation5 + $0x1168] sm:$0xff] }
 0x6bd   : > { %3550 = vmatpush2.msra.mxu0 %v3459_v22  ;;  %3410 = vmatprep.subr.mxu1 %v3325_v23  ;;  %v3606_v22 = vld [vmem:[#allocation5 + $0x1160] sm:$0xff]  ;;  %v3605_v23 = vld [vmem:[#allocation5 + $0x1158] sm:$0xff] }
 0x6be   : > { %3551 = vmatprep.subr.mxu0 %v3458_v25  ;;  %3553 = vmatprep.mubr.f32.mxu0 %v2461_v24  ;;  %v3604_v24 = vld [vmem:[#allocation5 + $0x1150] sm:$0xff]  ;;  %v3603_v25 = vld [vmem:[#allocation5 + $0x1148] sm:$0xff] }
 0x6bf   : > { %3411 = vmatpush2.msra.mxu1 %v3324_v26  ;;  %3552 = vmatpush2.msra.mxu0 %v3457_v27  ;;  %v3602_v26 = vld [vmem:[#allocation5 + $0x1140] sm:$0xff]  ;;  %v3601_v27 = vld [vmem:[#allocation5 + $0x1138] sm:$0xff] }
 0x6c0   : > { %3412 = vmatprep.subr.mxu1 %v3323_v28  ;;  %3554 = vmatmul.mubr.f32.vlgmr.msra.gmra.mxu0 %v2459_v16  ;;  %v3612_v16 = vld [vmem:[#allocation5 + $0x1190] sm:$0xff] }
 0x6c1   : > { %3413 = vmatpush2.msra.mxu1 %v3322_v29  ;;  %v3600_v28 = vld [vmem:[#allocation5 + $0x1130] sm:$0xff]  ;;  %v3599_v29 = vld [vmem:[#allocation5 + $0x1128] sm:$0xff] }
 0x6c2   : > { %3414 = vmatprep.subr.mxu1 %v3321_v30  ;;  %v3598_v30 = vld [vmem:[#allocation5 + $0x1120] sm:$0xff] }
 0x6c3   : > { %3415 = vmatpush2.msra.mxu1 %v3320_v32  ;;  %v3597_v32 = vld [vmem:[#allocation5 + $0x1118] sm:$0xff] }
 0x6c4   : > { %3417 = vmatmul.mubr.f32.vlgmr.msra.gmra.mxu1 %v6068_v63  ;;  %3626 = vmatprep.subr.mxu1 %v3593_v33  ;;  %v3564_v63 = vld [vmem:[#allocation5 + $0x1010] sm:$0xff] }
 0x6c5   : > { %3627 = vmatpush1.msra.mxu1 %v3592_v34  ;;  %3690 = vmatprep.mubr.f32.mxu1 %v2467_v36  ;;  %v3596_v33 = vld [vmem:[#allocation5 + $0x1110] sm:$0xff]  ;;  %v3595_v34 = vld [vmem:[#allocation5 + $0x1108] sm:$0xff]  ;;  %v2664_v36 = vpop.f32.mrf.mxu1 }
 0x6c6   : > { %3628 = vmatprep.subr.mxu1 %v3591_v35  ;;  %v3594_v35 = vld [vmem:[#allocation5 + $0x1100] sm:$0xff] }
 0x6c7   : > { %3629 = vmatpush1.msra.mxu1 %v3590_v37  ;;  %v2735_v37 = vpop.f32.mrf.mxu0 }
 0x6c8   : > { %3630 = vmatprep.subr.mxu1 %v3589_v39  ;;  %v2666_v39 = vpop.f32.mrf.mxu1 }
 0x6c9   : > { %3631 = vmatpush1.msra.mxu1 %v3588_v40 }
 0x6ca   : > { %3632 = vmatprep.subr.mxu1 %v3587_v41  ;;  %v2737_v41 = vpop.f32.mrf.mxu0 }
 0x6cb   : > { %3633 = vmatpush1.msra.mxu1 %v3586_v42  ;;  %v2736_v42 = vadd.f32 %v2735_v37, %v2664_v36  ;;  %v3762_v36 = vld [vmem:[%s6271_s19 + $0x8] sm:$0xff]  ;;  %v3763_v37 = vld [vmem:[%s6271_s19 + $0x10] sm:$0xff] }
 0x6cc   : > { %3634 = vmatprep.subr.mxu1 %v3585_v43 }
 0x6cd   : > { %3635 = vmatpush1.msra.mxu1 %v3584_v44 }
 0x6ce   : > { %3636 = vmatprep.subr.mxu1 %v3583_v45  ;;  %v2738_v45 = vadd.f32 %v2737_v41, %v2666_v39  ;;  %v3764_v39 = vld [vmem:[%s6271_s19 + $0x18] sm:$0xff]  ;;  %v4148_v41 = vld [vmem:[#allocation5 + $0x2f0] sm:$0xff] }
 0x6cf   : > { %3637 = vmatpush1.msra.mxu1 %v3582_v46 }
 0x6d0   : > { %3638 = vmatprep.subr.mxu1 %v3581_v47 }
 0x6d1   : > { %3639 = vmatpush1.msra.mxu1 %v3580_v48 }
 0x6d2   : > { %3640 = vmatprep.subr.mxu1 %v3579_v49 }
 0x6d3   : > { %3641 = vmatpush1.msra.mxu1 %v3578_v50 }
 0x6d4   : > { %3642 = vmatprep.subr.mxu1 %v3577_v51 }
 0x6d5   : > { %3643 = vmatpush1.msra.mxu1 %v3576_v52 }
 0x6d6   : > { %3644 = vmatprep.subr.mxu1 %v3575_v53 }
 0x6d7   : > { %3645 = vmatpush1.msra.mxu1 %v3574_v54 }
 0x6d8   : > { %3646 = vmatprep.subr.mxu1 %v3573_v55 }
 0x6d9   : > { %3647 = vmatpush1.msra.mxu1 %v3572_v56 }
 0x6da   : > { %3648 = vmatprep.subr.mxu1 %v3571_v57  ;;  %v3723_v57 = vpop.permute.xlu0 %3722 }
 0x6db   : > { %3649 = vmatpush1.msra.mxu1 %v3570_v58 }
 0x6dc   : > { %3650 = vmatprep.subr.mxu1 %v3569_v59 }
 0x6dd   : > { %3651 = vmatpush1.msra.mxu1 %v3568_v60 }
 0x6de   : > { %3652 = vmatprep.subr.mxu1 %v3567_v38 }
 0x6df   : > { %3653 = vmatpush1.msra.mxu1 %v3566_v61  ;;  %v3718_v61 = vpop.permute.xlu1 %3717 }
 0x6e0   : > { %3654 = vmatprep.subr.mxu1 %v3565_v62 }
 0x6e1   : > { %3655 = vmatpush1.msra.mxu1 %v3564_v63 }
 0x6e2   : > { %3656 = vmatprep.subr.mxu1 %v3563_v0  ;;  %v3747_v0 = vpop.permute.xlu0 %3746 }
 0x6e3   : > { %3657 = vmatpush1.msra.mxu1 %v3562_v1 }
 0x6e4   : > { %3658 = vmatprep.subr.mxu1 %v3625_v2 }
 0x6e5   : > { %3659 = vmatpush2.msra.mxu1 %v3624_v3 }
 0x6e6   : > { %3660 = vmatprep.subr.mxu1 %v3623_v4  ;;  %v3704_v4 = vld [vmem:[%s5857_s0 + $0x18] sm:$0xff] }
 0x6e7   : > { %3661 = vmatpush2.msra.mxu1 %v3622_v5 }
 0x6e8   : > { %3662 = vmatprep.subr.mxu1 %v3621_v7 }
 0x6e9   : > { %3663 = vmatpush2.msra.mxu1 %v3620_v8  ;;  %v3703_v8 = vld [vmem:[%s5857_s0 + $0x10] sm:$0xff] }
 0x6ea   : > { %3664 = vmatprep.subr.mxu1 %v3619_v9  ;;  %v3713_v9 = vpop.permute.xlu1 %3712 }
 0x6eb   : > { %3665 = vmatpush2.msra.mxu1 %v3618_v10 }
 0x6ec   : > { %3666 = vmatprep.subr.mxu1 %v3617_v11 }
 0x6ed   : > { %3667 = vmatpush2.msra.mxu1 %v3616_v12 }
 0x6ee   : > { %3668 = vmatprep.subr.mxu1 %v3615_v13  ;;  %v3728_v13 = vmul.f32 %v3718_v61, %v3704_v4  ;;  %v4119_v4 = vld [vmem:[#allocation5 + $0x208] sm:$0xff] }
 0x6ef   : > { %3669 = vmatpush2.msra.mxu1 %v3614_v14  ;;  %v3727_v14 = vmul.f32 %v3718_v61, %v3703_v8  ;;  %v4126_v61 = vld [vmem:[#allocation5 + $0x240] sm:$0xff]  ;;  %v4180_v8 = vld [vmem:[#allocation5 + $0x3f0] sm:$0xff] }
 0x6f0   : > { %3670 = vmatprep.subr.mxu1 %v3613_v15  ;;  %v5506_v15 = vld [vmem:[%s5857_s0 + $0x8] sm:$0xff] }
 0x6f1   : > { %3671 = vmatpush2.msra.mxu1 %v3612_v16  ;;  %v3726_v16 = vmul.f32 %v5506_v15, %v3713_v9  ;;  %v4173_v15 = vld [vmem:[#allocation5 + $0x3b8] sm:$0xff] }
 0x6f2   : > { %3672 = vmatprep.subr.mxu1 %v3611_v17 }
 0x6f3   : > { %3673 = vmatpush2.msra.mxu1 %v3610_v18  ;;  %v3742_v18 = vpop.permute.xlu0 %3741 }
 0x6f4   : > { %3674 = vmatprep.subr.mxu1 %v3609_v19  ;;  %v5507_v19 = vld [vmem:[%s5857_s0] sm:$0xff] }
 0x6f5   : > { %3675 = vmatpush2.msra.mxu1 %v3608_v20  ;;  %v3725_v20 = vmul.f32 %v5507_v19, %v3713_v9  ;;  %v4179_v9 = vld [vmem:[#allocation5 + $0x3e8] sm:$0xff]  ;;  %v4169_v19 = vld [vmem:[#allocation5 + $0x398] sm:$0xff] }
 0x6f6   : > { %3676 = vmatprep.subr.mxu1 %v3607_v21 }
 0x6f7   : > { %3677 = vmatpush2.msra.mxu1 %v3606_v22 }
 0x6f8   : > { %3678 = vmatprep.subr.mxu1 %v3605_v23  ;;  %v3752_v23 = vadd.f32 %v3742_v18, %v3728_v13  ;;  %v4175_v13 = vld [vmem:[#allocation5 + $0x3c8] sm:$0xff] }
 0x6f9   : > { %3679 = vmatpush2.msra.mxu1 %v3604_v24  ;;  %v3737_v24 = vpop.permute.xlu1 %3736 }
 0x6fa   : > { %3680 = vmatprep.subr.mxu1 %v3603_v25  ;;  %v3751_v25 = vadd.f32 %v3742_v18, %v3727_v14  ;;  %v4174_v14 = vld [vmem:[#allocation5 + $0x3c0] sm:$0xff] }
 0x6fb   : > { %3681 = vmatpush2.msra.mxu1 %v3602_v26  ;;  %v3750_v26 = vadd.f32 %v3737_v24, %v3726_v16  ;;  %v4172_v16 = vld [vmem:[#allocation5 + $0x3b0] sm:$0xff]  ;;  %v4170_v18 = vld [vmem:[#allocation5 + $0x3a0] sm:$0xff] }
 0x6fc   : > { %3682 = vmatprep.subr.mxu1 %v3601_v27 }
 0x6fd   : > { %3683 = vmatpush2.msra.mxu1 %v3600_v28  ;;  %v3007_v44 = vpop.f32.mrf.mxu0  ;;  %v3749_v28 = vadd.f32 %v3737_v24, %v3725_v20  ;;  %v4168_v20 = vld [vmem:[#allocation5 + $0x390] sm:$0xff] }
 0x6fe   : > { %3684 = vmatprep.subr.mxu1 %v3599_v29  ;;  %v4164_v24 = vld [vmem:[#allocation5 + $0x370] sm:$0xff] }
 0x6ff   : > { %3685 = vmatpush2.msra.mxu1 %v3598_v30  ;;  %v3009_v49 = vpop.f32.mrf.mxu0  ;;  %v3758_v30 = vmax.f32 %v3752_v23, 0.0  ;;  %v4165_v23 = vld [vmem:[#allocation5 + $0x378] sm:$0xff] }
 0x700   : > { %3686 = vmatprep.subr.mxu1 %v3597_v32  ;;  %v2870_v40 = vpop.f32.mrf.mxu1  ;;  %v3757_v32 = vmax.f32 %v3751_v25, 0.0  ;;  %v4163_v25 = vld [vmem:[#allocation5 + $0x368] sm:$0xff] }
 0x701   : > { %3687 = vmatpush2.msra.mxu1 %v3596_v33  ;;  %v2875_v46 = vadd.f32 %v2870_v40, %v2736_v42  ;;  %v3756_v33 = vmax.f32 %v3750_v26, 0.0  ;;  %v4149_v40 = vld [vmem:[#allocation5 + $0x2f8] sm:$0xff]  ;;  %v4147_v42 = vld [vmem:[#allocation5 + $0x2e8] sm:$0xff]  ;;  %v4162_v26 = vld [vmem:[#allocation5 + $0x360] sm:$0xff] }
 0x702   : > { %3688 = vmatprep.subr.mxu1 %v3595_v34  ;;  %v2872_v43 = vpop.f32.mrf.mxu1  ;;  %v3755_v34 = vmax.f32 %v3749_v28, 0.0  ;;  %4182 = vmatprep.subr.mxu0 %v4149_v40  ;;  %v4160_v28 = vld [vmem:[#allocation5 + $0x350] sm:$0xff] }
 0x703   : > { %3689 = vmatpush2.msra.mxu1 %v3594_v35  ;;  %v2876_v48 = vadd.f32 %v2872_v43, %v2738_v45  ;;  %v3012_v50 = vadd.f32 %v3007_v44, %v2875_v46  ;;  %v3761_v35 = vld [vmem:[%s6271_s19] sm:$0xff]  ;;  %4183 = vmatpush1.msra.mxu0 %v4148_v41  ;;  %v4145_v44 = vld [vmem:[#allocation5 + $0x2d8] sm:$0xff]  ;;  %v4144_v45 = vld [vmem:[#allocation5 + $0x2d0] sm:$0xff]  ;;  %v3782_v41 = vpop.permute.xlu1 %3781 }
 0x704   : > { %3691 = vmatmul.mubr.f32.vlgmr.msra.gmra.mxu1 %v6070_v31  ;;  %v4146_v43 = vld [vmem:[#allocation5 + $0x2e0] sm:$0xff]  ;;  %4184 = vmatprep.subr.mxu0 %v4147_v42  ;;  %v4143_v46 = vld [vmem:[#allocation5 + $0x2c8] sm:$0xff] }
 0x705   : > { %3866 = vmatprep.mubr.f32.mxu1 %v5637_v6  ;;  %v3013_v53 = vadd.f32 %v3009_v49, %v2876_v48  ;;  %4185 = vmatpush1.msra.mxu0 %v4146_v43  ;;  %v4141_v48 = vld [vmem:[#allocation5 + $0x2b8] sm:$0xff]  ;;  %v4140_v49 = vld [vmem:[#allocation5 + $0x2b0] sm:$0xff] }
 0x706   : > { %4186 = vmatprep.subr.mxu0 %v4145_v44 }
 0x707   : > { %4187 = vmatpush1.msra.mxu0 %v4144_v45 }
 0x708   : > { %4188 = vmatprep.subr.mxu0 %v4143_v46 }
 0x73f   : > { %v3281_v52 = vpop.f32.mrf.mxu0 }
 0x741   : > { %v3283_v56 = vpop.f32.mrf.mxu0 }
 0x742   : > { %v3144_v47 = vpop.f32.mrf.mxu1 }
 0x743   : > { %v3149_v31 = vadd.f32 %v3144_v47, %v3012_v50  ;;  %v4142_v47 = vld [vmem:[#allocation5 + $0x2c0] sm:$0xff]  ;;  %v4139_v50 = vld [vmem:[#allocation5 + $0x2a8] sm:$0xff] }
 0x744   : > { %v3146_v51 = vpop.f32.mrf.mxu1  ;;  %4189 = vmatpush1.msra.mxu0 %v4142_v47 }
 0x745   : > { %v3150_v55 = vadd.f32 %v3146_v51, %v3013_v53  ;;  %v3286_v58 = vadd.f32 %v3281_v52, %v3149_v31  ;;  %4190 = vmatprep.subr.mxu0 %v4141_v48  ;;  %v4138_v51 = vld [vmem:[#allocation5 + $0x2a0] sm:$0xff]  ;;  %v4137_v52 = vld [vmem:[#allocation5 + $0x298] sm:$0xff]  ;;  %v4136_v53 = vld [vmem:[#allocation5 + $0x290] sm:$0xff] }
 0x746   : > { %4191 = vmatpush1.msra.mxu0 %v4140_v49  ;;  %v4135_v31 = vld [vmem:[#allocation5 + $0x288] sm:$0xff] }
 0x747   : > { %v3287_v60 = vadd.f32 %v3283_v56, %v3150_v55  ;;  %4192 = vmatprep.subr.mxu0 %v4139_v50  ;;  %v4133_v55 = vld [vmem:[#allocation5 + $0x278] sm:$0xff]  ;;  %v4132_v56 = vld [vmem:[#allocation5 + $0x270] sm:$0xff] }
 0x748   : > { %4193 = vmatpush1.msra.mxu0 %v4138_v51  ;;  %v3772_v51 = vpop.permute.xlu1 %3771 }
 0x749   : > { %4194 = vmatprep.subr.mxu0 %v4137_v52 }
 0x74a   : > { %4195 = vmatpush1.msra.mxu0 %v4136_v53 }
 0x74b   : > { %4196 = vmatprep.subr.mxu0 %v4135_v31 }
 0x780   : > { %v3555_v62 = vpop.f32.mrf.mxu0 }
 0x782   : > { %v3557_v2 = vpop.f32.mrf.mxu0 }
 0x784   : > { %v3418_v54 = vpop.f32.mrf.mxu1 }
 0x785   : > { %v3423_v38 = vadd.f32 %v3418_v54, %v3286_v58  ;;  %v4134_v54 = vld [vmem:[#allocation5 + $0x280] sm:$0xff] }
 0x786   : > { %v3420_v59 = vpop.f32.mrf.mxu1  ;;  %4197 = vmatpush1.msra.mxu0 %v4134_v54  ;;  %v4130_v58 = vld [vmem:[#allocation5 + $0x260] sm:$0xff] }
 0x787   : > { %v3424_v63 = vadd.f32 %v3420_v59, %v3287_v60  ;;  %v3560_v1 = vadd.f32 %v3555_v62, %v3423_v38  ;;  %4198 = vmatprep.subr.mxu0 %v4133_v55  ;;  %v4129_v59 = vld [vmem:[#allocation5 + $0x258] sm:$0xff]  ;;  %v4128_v60 = vld [vmem:[#allocation5 + $0x250] sm:$0xff]  ;;  %v4127_v38 = vld [vmem:[#allocation5 + $0x248] sm:$0xff] }
 0x788   : > { %4199 = vmatpush1.msra.mxu0 %v4132_v56  ;;  %v4125_v62 = vld [vmem:[#allocation5 + $0x238] sm:$0xff] }
 0x789   : > { %v3561_v7 = vadd.f32 %v3557_v2, %v3424_v63  ;;  %v4124_v63 = vld [vmem:[#allocation5 + $0x230] sm:$0xff]  ;;  %v4121_v2 = vld [vmem:[#allocation5 + $0x218] sm:$0xff] }
 0x7c4   : > { %v3692_v3 = vpop.f32.mrf.mxu1 }
 0x7c5   : > { %v3697_v5 = vadd.f32 %v3692_v3, %v3560_v1  ;;  %v4122_v1 = vld [vmem:[#allocation5 + $0x220] sm:$0xff]  ;;  %v4120_v3 = vld [vmem:[#allocation5 + $0x210] sm:$0xff] }
 0x7c6   : > { %v3694_v10 = vpop.f32.mrf.mxu1 }
 0x7c7   : > { %3699 = vst [vmem:[%s5857_s0 + $0x20] sm:$0xff] %v3697_v5  ;;  %v3698_v11 = vadd.f32 %v3694_v10, %v3561_v7  ;;  %v3729_v12 = vmul.f32 %v3723_v57, %v3697_v5  ;;  %v4118_v5 = vld [vmem:[#allocation5 + $0x200] sm:$0xff]  ;;  %v4181_v7 = vld [vmem:[#allocation5 + $0x3f8] sm:$0xff] }
 0x7c8   : > { %v4178_v10 = vld [vmem:[#allocation5 + $0x3e0] sm:$0xff] }
 0x7c9   : > { %3700 = vst [vmem:[%s5857_s0 + $0x28] sm:$0xff] %v3698_v11  ;;  %v3730_v17 = vmul.f32 %v3723_v57, %v3698_v11  ;;  %v3753_v21 = vadd.f32 %v3747_v0, %v3729_v12  ;;  %v4131_v57 = vld [vmem:[#allocation5 + $0x268] sm:$0xff]  ;;  %v4177_v11 = vld [vmem:[#allocation5 + $0x3d8] sm:$0xff]  ;;  %v4176_v12 = vld [vmem:[#allocation5 + $0x3d0] sm:$0xff] }
 0x7ca   : > { %4200 = vmatprep.subr.mxu0 %v4131_v57 }
 0x7cb   : > { %v3754_v22 = vadd.f32 %v3747_v0, %v3730_v17  ;;  %v3759_v29 = vmax.f32 %v3753_v21, 0.0  ;;  %4201 = vmatpush1.msra.mxu0 %v4130_v58  ;;  %v4123_v0 = vld [vmem:[#allocation5 + $0x228] sm:$0xff] }
 0x7cc   : > { %4202 = vmatprep.subr.mxu0 %v4129_v59  ;;  %v4171_v17 = vld [vmem:[#allocation5 + $0x3a8] sm:$0xff] }
 0x7cd   : > { %v3760_v27 = vmax.f32 %v3754_v22, 0.0  ;;  %4203 = vmatpush1.msra.mxu0 %v4128_v60  ;;  %v4167_v21 = vld [vmem:[#allocation5 + $0x388] sm:$0xff]  ;;  %v4166_v22 = vld [vmem:[#allocation5 + $0x380] sm:$0xff] }
 0x7ce   : > { %4204 = vmatprep.subr.mxu0 %v4127_v38  ;;  %v3899_v38 = vld [vmem:[%s6272_s21] sm:$0xff] }
 0x7cf   : > { %3828 = vmatprep.subr.mxu1 %v3760_v27  ;;  %4205 = vmatpush1.msra.mxu0 %v4126_v61  ;;  %v4161_v27 = vld [vmem:[#allocation5 + $0x358] sm:$0xff] }
 0x7d0   : > { %3829 = vmatpush1.msra.mxu1 %v3759_v29  ;;  %4206 = vmatprep.subr.mxu0 %v4125_v62  ;;  %v4159_v29 = vld [vmem:[#allocation5 + $0x348] sm:$0xff]  ;;  %v4085_v61 = vld [vmem:[#allocation5 + $0xf8] sm:$0xff]  ;;  %v4084_v62 = vld [vmem:[#allocation5 + $0xf0] sm:$0xff] }
 0x7d1   : > { %3830 = vmatprep.subr.mxu1 %v3758_v30  ;;  %4207 = vmatpush1.msra.mxu0 %v4124_v63  ;;  %v4158_v30 = vld [vmem:[#allocation5 + $0x340] sm:$0xff]  ;;  %v4083_v63 = vld [vmem:[#allocation5 + $0xe8] sm:$0xff] }
 0x7d2   : > { %3831 = vmatpush1.msra.mxu1 %v3757_v32  ;;  %4208 = vmatprep.subr.mxu0 %v4123_v0  ;;  %v4157_v32 = vld [vmem:[#allocation5 + $0x338] sm:$0xff]  ;;  %v4082_v0 = vld [vmem:[#allocation5 + $0xe0] sm:$0xff] }
 0x7d3   : > { %3832 = vmatprep.subr.mxu1 %v3756_v33  ;;  %4209 = vmatpush1.msra.mxu0 %v4122_v1  ;;  %v3900_v1 = vld [vmem:[%s6272_s21 + $0x8] sm:$0xff] }
 0x7d4   : > { %3833 = vmatpush1.msra.mxu1 %v3755_v34  ;;  %4210 = vmatprep.subr.mxu0 %v4121_v2  ;;  %v4081_v2 = vld [vmem:[#allocation5 + $0xd8] sm:$0xff] }
 0x7d5   : > { %5419 = vmatmul.mubr.msk.f32.vlgmr.msra.gmra.mxu1 %vm3789_vm3, %v3761_v35  ;;  %4211 = vmatpush1.msra.mxu0 %v4120_v3  ;;  %v4080_v3 = vld [vmem:[#allocation5 + $0xd0] sm:$0xff] }
 0x7d6   : > { %3872 = vmatprep.mubr.f32.mxu1 %v5637_v6  ;;  %4212 = vmatprep.subr.mxu0 %v4119_v4  ;;  %v4079_v4 = vld [vmem:[#allocation5 + $0xc8] sm:$0xff] }
 0x7d7   : > { %4213 = vmatpush1.msra.mxu0 %v4118_v5  ;;  %v4078_v5 = vld [vmem:[#allocation5 + $0xc0] sm:$0xff] }
 0x7d8   : > { %4214 = vmatprep.subr.mxu0 %v4181_v7  ;;  %v3901_v7 = vld [vmem:[%s6272_s21 + $0x10] sm:$0xff] }
 0x7d9   : > { %5420 = vmatmul.mubr.msk.f32.gmra.mxu1 %vm3789_vm3, %v3762_v36  ;;  %4215 = vmatpush2.msra.mxu0 %v4180_v8  ;;  %v4077_v8 = vld [vmem:[#allocation5 + $0xb8] sm:$0xff] }
 0x7da   : > { %3878 = vmatprep.mubr.f32.mxu1 %v5637_v6  ;;  %4216 = vmatprep.subr.mxu0 %v4179_v9  ;;  %v4076_v9 = vld [vmem:[#allocation5 + $0xb0] sm:$0xff] }
 0x7db   : > { %4217 = vmatpush2.msra.mxu0 %v4178_v10  ;;  %v4075_v10 = vld [vmem:[#allocation5 + $0xa8] sm:$0xff] }
 0x7dc   : > { %4218 = vmatprep.subr.mxu0 %v4177_v11  ;;  %v4074_v11 = vld [vmem:[#allocation5 + $0xa0] sm:$0xff] }
 0x7dd   : > { %5421 = vmatmul.mubr.msk.f32.gmra.mxu1 %vm3789_vm3, %v3763_v37  ;;  %4219 = vmatpush2.msra.mxu0 %v4176_v12  ;;  %v3902_v12 = vld [vmem:[%s6272_s21 + $0x18] sm:$0xff] }
 0x7de   : > { %3884 = vmatprep.mubr.f32.mxu1 %v5637_v6  ;;  %4220 = vmatprep.subr.mxu0 %v4175_v13  ;;  %v4073_v13 = vld [vmem:[#allocation5 + $0x98] sm:$0xff] }
 0x7df   : > { %4221 = vmatpush2.msra.mxu0 %v4174_v14  ;;  %v4072_v14 = vld [vmem:[#allocation5 + $0x90] sm:$0xff] }
 0x7e0   : > { %4222 = vmatprep.subr.mxu0 %v4173_v15  ;;  %v4071_v15 = vld [vmem:[#allocation5 + $0x88] sm:$0xff] }
 0x7e1   : > { %5422 = vmatmul.mubr.msk.f32.gmra.mxu1 %vm3789_vm3, %v3764_v39  ;;  %4223 = vmatpush2.msra.mxu0 %v4172_v16  ;;  %v3787_v39 = vpop.permute.xlu0 %3786  ;;  %v4070_v16 = vld [vmem:[#allocation5 + $0x80] sm:$0xff] }
 0x7e2   : > { %3999 = vmatprep.mubr.f32.mxu1 %v5637_v6  ;;  %4224 = vmatprep.subr.mxu0 %v4171_v17  ;;  %v3903_v17 = vld [vmem:[%s6272_s21 + $0x20] sm:$0xff] }
 0x7e3   : > { %4225 = vmatpush2.msra.mxu0 %v4170_v18  ;;  %v4069_v18 = vld [vmem:[#allocation5 + $0x78] sm:$0xff] }
 0x7e4   : > { %4226 = vmatprep.subr.mxu0 %v4169_v19  ;;  %v4068_v19 = vld [vmem:[#allocation5 + $0x70] sm:$0xff] }
 0x7e5   : > { %4227 = vmatpush2.msra.mxu0 %v4168_v20  ;;  %v3777_v47 = vpop.permute.xlu0 %3776  ;;  %v4067_v20 = vld [vmem:[#allocation5 + $0x68] sm:$0xff] }
 0x7e6   : > { %4228 = vmatprep.subr.mxu0 %v4167_v21  ;;  %v4066_v21 = vld [vmem:[#allocation5 + $0x60] sm:$0xff] }
 0x7e7   : > { %4229 = vmatpush2.msra.mxu0 %v4166_v22  ;;  %v3904_v22 = vld [vmem:[%s6272_s21 + $0x28] sm:$0xff] }
 0x7e8   : > { %4230 = vmatprep.subr.mxu0 %v4165_v23  ;;  %v4065_v23 = vld [vmem:[#allocation5 + $0x58] sm:$0xff] }
 0x7e9   : > { %4231 = vmatpush2.msra.mxu0 %v4164_v24  ;;  %v4064_v24 = vld [vmem:[#allocation5 + $0x50] sm:$0xff] }
 0x7ea   : > { %4232 = vmatprep.subr.mxu0 %v4163_v25  ;;  %v4063_v25 = vld [vmem:[#allocation5 + $0x48] sm:$0xff] }
 0x7eb   : > { %4233 = vmatpush2.msra.mxu0 %v4162_v26  ;;  %v4062_v26 = vld [vmem:[#allocation5 + $0x40] sm:$0xff] }
 0x7ec   : > { %4234 = vmatprep.subr.mxu0 %v4161_v27  ;;  %v4061_v27 = vld [vmem:[#allocation5 + $0x38] sm:$0xff] }
 0x7ed   : > { %4235 = vmatpush2.msra.mxu0 %v4160_v28  ;;  %v3905_v28 = vld [vmem:[%s6272_s21 + $0x30] sm:$0xff] }
 0x7ee   : > { %4236 = vmatprep.subr.mxu0 %v4159_v29  ;;  %v4060_v29 = vld [vmem:[#allocation5 + $0x30] sm:$0xff] }
 0x7ef   : > { %4237 = vmatpush2.msra.mxu0 %v4158_v30  ;;  %v4059_v30 = vld [vmem:[#allocation5 + $0x28] sm:$0xff] }
 0x7f0   : > { %4238 = vmatprep.subr.mxu0 %v4157_v32  ;;  %v4058_v32 = vld [vmem:[#allocation5 + $0x20] sm:$0xff] }
 0x895   : > { %v3868_v33 = vpop.f32.mrf.mxu1 }
 0x896   : > { %v3869_v55 = vadd.f32 %v3868_v33, %v3772_v51  ;;  %v4057_v33 = vld [vmem:[#allocation5 + $0x18] sm:$0xff] }
 0x897   : > { %v3870_v34 = vpop.f32.mrf.mxu1 }
 0x898   : > { %v3871_v31 = vadd.f32 %v3870_v34, %v3772_v51  ;;  %v3891_v60 = vmax.f32 %v3869_v55, 0.0  ;;  %v4056_v34 = vld [vmem:[#allocation5 + $0x10] sm:$0xff]  ;;  %v4099_v55 = vld [vmem:[#allocation5 + $0x168] sm:$0xff] }
 0x899   : > { %v3874_v35 = vpop.f32.mrf.mxu1  ;;  %v4104_v51 = vld [vmem:[#allocation5 + $0x190] sm:$0xff] }
 0x89a   : > { %v3875_v52 = vadd.f32 %v3874_v35, %v3777_v47  ;;  %v3892_v59 = vmax.f32 %v3871_v31, 0.0  ;;  %v4055_v35 = vld [vmem:[#allocation5 + $0x8] sm:$0xff]  ;;  %v4101_v31 = vld [vmem:[#allocation5 + $0x178] sm:$0xff] }
 0x89b   : > { %v3876_v36 = vpop.f32.mrf.mxu1 }
 0x89c   : > { %v3877_v49 = vadd.f32 %v3876_v36, %v3777_v47  ;;  %v3893_v58 = vmax.f32 %v3875_v52, 0.0  ;;  %v4054_v36 = vld [vmem:[#allocation5] sm:$0xff]  ;;  %v4108_v47 = vld [vmem:[#allocation5 + $0x1b0] sm:$0xff]  ;;  %v4103_v52 = vld [vmem:[#allocation5 + $0x188] sm:$0xff] }
 0x89d   : > { %v3880_v37 = vpop.f32.mrf.mxu1 }
 0x89e   : > { %v3881_v48 = vadd.f32 %v3880_v37, %v3782_v41  ;;  %v3894_v57 = vmax.f32 %v3877_v49, 0.0  ;;  %v4117_v37 = vld [vmem:[#allocation5 + $0x1f8] sm:$0xff]  ;;  %v4106_v49 = vld [vmem:[#allocation5 + $0x1a0] sm:$0xff] }
 0x89f   : > { %v3882_v40 = vpop.f32.mrf.mxu1 }
 0x8a0   : > { %v3883_v45 = vadd.f32 %v3882_v40, %v3782_v41  ;;  %v3895_v56 = vmax.f32 %v3881_v48, 0.0  ;;  %v4115_v40 = vld [vmem:[#allocation5 + $0x1e8] sm:$0xff]  ;;  %v4114_v41 = vld [vmem:[#allocation5 + $0x1e0] sm:$0xff] }
 0x8a1   : > { %v3886_v42 = vpop.f32.mrf.mxu1  ;;  %v4107_v48 = vld [vmem:[#allocation5 + $0x1a8] sm:$0xff] }
 0x8a2   : > { %v3887_v43 = vadd.f32 %v3886_v42, %v3787_v39  ;;  %v3896_v54 = vmax.f32 %v3883_v45, 0.0  ;;  %v4113_v42 = vld [vmem:[#allocation5 + $0x1d8] sm:$0xff]  ;;  %v4110_v45 = vld [vmem:[#allocation5 + $0x1c0] sm:$0xff] }
 0x8a3   : > { %v3888_v44 = vpop.f32.mrf.mxu1 }
 0x8a4   : > { %v3889_v46 = vadd.f32 %v3888_v44, %v3787_v39  ;;  %v3897_v53 = vmax.f32 %v3887_v43, 0.0  ;;  %v4116_v39 = vld [vmem:[#allocation5 + $0x1f0] sm:$0xff]  ;;  %v4111_v44 = vld [vmem:[#allocation5 + $0x1c8] sm:$0xff] }
 0x8a5   : > { %v4112_v43 = vld [vmem:[#allocation5 + $0x1d0] sm:$0xff] }
 0x8a6   : > { %v3898_v50 = vmax.f32 %v3889_v46, 0.0  ;;  %v4109_v46 = vld [vmem:[#allocation5 + $0x1b8] sm:$0xff] }
 0x8a8   : > { %3959 = vmatprep.subr.mxu1 %v3898_v50  ;;  %v4105_v50 = vld [vmem:[#allocation5 + $0x198] sm:$0xff] }
 0x8a9   : > { %3960 = vmatpush1.msra.mxu1 %v3897_v53  ;;  %v4102_v53 = vld [vmem:[#allocation5 + $0x180] sm:$0xff] }
 0x8aa   : > { %3961 = vmatprep.subr.mxu1 %v3896_v54  ;;  %v4100_v54 = vld [vmem:[#allocation5 + $0x170] sm:$0xff] }
 0x8ab   : > { %3962 = vmatpush1.msra.mxu1 %v3895_v56  ;;  %v4098_v56 = vld [vmem:[#allocation5 + $0x160] sm:$0xff] }
 0x8ac   : > { %3963 = vmatprep.subr.mxu1 %v3894_v57  ;;  %v4097_v57 = vld [vmem:[#allocation5 + $0x158] sm:$0xff] }
 0x8ad   : > { %3964 = vmatpush1.msra.mxu1 %v3893_v58  ;;  %v4096_v58 = vld [vmem:[#allocation5 + $0x150] sm:$0xff] }
 0x8ae   : > { %3965 = vmatprep.subr.mxu1 %v3892_v59  ;;  %v4095_v59 = vld [vmem:[#allocation5 + $0x148] sm:$0xff] }
 0x8af   : > { %3966 = vmatpush1.msra.mxu1 %v3891_v60  ;;  %v4094_v60 = vld [vmem:[#allocation5 + $0x140] sm:$0xff] }
 0x8b0   : > { %5423 = vmatmul.mubr.msk.f32.vlgmr.msra.gmra.mxu1 %vm751_vm1, %v3899_v38  ;;  %4253 = vmatprep.subr.mxu1 %v4085_v61  ;;  %v3906_v38 = vld [vmem:[%s6272_s21 + $0x38] sm:$0xff] }
 0x8b1   : > { %4005 = vmatprep.mubr.f32.mxu1 %v5637_v6  ;;  %4254 = vmatpush1.msra.mxu1 %v4084_v62  ;;  %v4093_v61 = vld [vmem:[#allocation5 + $0x138] sm:$0xff]  ;;  %v4092_v62 = vld [vmem:[#allocation5 + $0x130] sm:$0xff] }
 0x8b2   : > { %4255 = vmatprep.subr.mxu1 %v4083_v63  ;;  %v4091_v63 = vld [vmem:[#allocation5 + $0x128] sm:$0xff] }
 0x8b3   : > { %4256 = vmatpush1.msra.mxu1 %v4082_v0  ;;  %v4090_v0 = vld [vmem:[#allocation5 + $0x120] sm:$0xff] }
 0x8b4   : > { %5424 = vmatmul.mubr.msk.f32.gmra.mxu1 %vm751_vm1, %v3900_v1  ;;  %4257 = vmatprep.subr.mxu1 %v4081_v2  ;;  %v4156_v1 = vld [vmem:[#allocation5 + $0x330] sm:$0xff]  ;;  %v3907_v2 = vld [vmem:[%s6272_s21 + $0x40] sm:$0xff] }
 0x8b5   : > { %4011 = vmatprep.mubr.f32.mxu1 %v5637_v6  ;;  %4258 = vmatpush1.msra.mxu1 %v4080_v3  ;;  %v4089_v3 = vld [vmem:[#allocation5 + $0x118] sm:$0xff] }
 0x8b6   : > { %4259 = vmatprep.subr.mxu1 %v4079_v4  ;;  %4239 = vmatpush2.msra.mxu0 %v4156_v1  ;;  %v4155_v4 = vld [vmem:[#allocation5 + $0x328] sm:$0xff] }
 0x8b7   : > { %4260 = vmatpush1.msra.mxu1 %v4078_v5  ;;  %v4088_v5 = vld [vmem:[#allocation5 + $0x110] sm:$0xff]  ;;  %4240 = vmatprep.subr.mxu0 %v4155_v4  ;;  %v4333_v1 = vld [vmem:[#allocation5 + $0x448] sm:$0xff]  ;;  %v4465_v4 = vld [vmem:[#allocation5 + $0x620] sm:$0xff] }
 0x8b8   : > { %5425 = vmatmul.mubr.msk.f32.gmra.mxu1 %vm751_vm1, %v3901_v7  ;;  %4261 = vmatprep.subr.mxu1 %v4077_v8  ;;  %v4154_v7 = vld [vmem:[#allocation5 + $0x320] sm:$0xff]  ;;  %v4087_v8 = vld [vmem:[#allocation5 + $0x108] sm:$0xff] }
 0x8b9   : > { %4017 = vmatprep.mubr.f32.mxu1 %v5637_v6  ;;  %4262 = vmatpush1.msra.mxu1 %v4076_v9  ;;  %v4086_v9 = vld [vmem:[#allocation5 + $0x100] sm:$0xff] }
 0x8ba   : > { %4263 = vmatprep.subr.mxu1 %v4075_v10  ;;  %4241 = vmatpush2.msra.mxu0 %v4154_v7  ;;  %v4152_v10 = vld [vmem:[#allocation5 + $0x310] sm:$0xff]  ;;  %v4464_v7 = vld [vmem:[#allocation5 + $0x618] sm:$0xff] }
 0x8bb   : > { %4264 = vmatpush1.msra.mxu1 %v4074_v11  ;;  %v4151_v11 = vld [vmem:[#allocation5 + $0x308] sm:$0xff] }
 0x8bc   : > { %5426 = vmatmul.mubr.msk.f32.gmra.mxu1 %vm751_vm1, %v3902_v12  ;;  %4265 = vmatprep.subr.mxu1 %v4073_v13  ;;  %v4150_v12 = vld [vmem:[#allocation5 + $0x300] sm:$0xff]  ;;  %v4355_v13 = vld [vmem:[#allocation5 + $0x4f8] sm:$0xff] }
 0x8bd   : > { %4023 = vmatprep.mubr.f32.mxu1 %v5637_v6  ;;  %4266 = vmatpush1.msra.mxu1 %v4072_v14  ;;  %v4492_v14 = vld [vmem:[#allocation5 + $0x6f8] sm:$0xff] }
 0x8be   : > { %4267 = vmatprep.subr.mxu1 %v4071_v15 }
 0x8bf   : > { %4268 = vmatpush1.msra.mxu1 %v4070_v16 }
 0x8c0   : > { %5427 = vmatmul.mubr.msk.f32.gmra.mxu1 %vm751_vm1, %v3903_v17  ;;  %4269 = vmatprep.subr.mxu1 %v4069_v18  ;;  %v4491_v17 = vld [vmem:[#allocation5 + $0x6f0] sm:$0xff]  ;;  %v4490_v18 = vld [vmem:[#allocation5 + $0x6e8] sm:$0xff] }
 0x8c1   : > { %4029 = vmatprep.mubr.f32.mxu1 %v5637_v6  ;;  %4270 = vmatpush1.msra.mxu1 %v4068_v19 }
 0x8c2   : > { %4271 = vmatprep.subr.mxu1 %v4067_v20  ;;  %v4489_v20 = vld [vmem:[#allocation5 + $0x6e0] sm:$0xff] }
 0x8c3   : > { %4272 = vmatpush1.msra.mxu1 %v4066_v21  ;;  %v4488_v21 = vld [vmem:[#allocation5 + $0x6d8] sm:$0xff] }
 0x8c4   : > { %5428 = vmatmul.mubr.msk.f32.gmra.mxu1 %vm751_vm1, %v3904_v22  ;;  %4273 = vmatprep.subr.mxu1 %v4065_v23  ;;  %v4354_v23 = vld [vmem:[#allocation5 + $0x4f0] sm:$0xff] }
 0x8c5   : > { %4274 = vmatpush1.msra.mxu1 %v4064_v24  ;;  %4035 = vmatprep.mubr.f32.mxu1 %v5637_v6  ;;  %v4487_v24 = vld [vmem:[#allocation5 + $0x6d0] sm:$0xff] }
 0x8c6   : > { %4275 = vmatprep.subr.mxu1 %v4063_v25  ;;  %v4353_v25 = vld [vmem:[#allocation5 + $0x4e8] sm:$0xff] }
 0x8c7   : > { %4276 = vmatpush1.msra.mxu1 %v4062_v26  ;;  %v4486_v26 = vld [vmem:[#allocation5 + $0x6c8] sm:$0xff] }
 0x8c8   : > { %4277 = vmatprep.subr.mxu1 %v4061_v27  ;;  %5429 = vmatmul.mubr.msk.f32.gmra.mxu1 %vm751_vm1, %v3905_v28  ;;  %v4352_v27 = vld [vmem:[#allocation5 + $0x4e0] sm:$0xff] }
 0x8c9   : > { %4278 = vmatpush1.msra.mxu1 %v4060_v29  ;;  %4041 = vmatprep.mubr.f32.mxu1 %v5637_v6  ;;  %v4485_v28 = vld [vmem:[#allocation5 + $0x6c0] sm:$0xff]  ;;  %v4351_v29 = vld [vmem:[#allocation5 + $0x4d8] sm:$0xff] }
 0x8ca   : > { %4279 = vmatprep.subr.mxu1 %v4059_v30  ;;  %v4484_v30 = vld [vmem:[#allocation5 + $0x6b8] sm:$0xff] }
 0x8cb   : > { %4280 = vmatpush1.msra.mxu1 %v4058_v32  ;;  %v4350_v32 = vld [vmem:[#allocation5 + $0x4d0] sm:$0xff] }
 0x8cc   : > { %4281 = vmatprep.subr.mxu1 %v4057_v33  ;;  %5430 = vmatmul.mubr.msk.f32.gmra.mxu1 %vm751_vm1, %v3906_v38  ;;  %v4483_v33 = vld [vmem:[#allocation5 + $0x6b0] sm:$0xff]  ;;  %v4469_v38 = vld [vmem:[#allocation5 + $0x640] sm:$0xff] }
 0x8cd   : > { %4282 = vmatpush1.msra.mxu1 %v4056_v34  ;;  %4047 = vmatprep.mubr.f32.mxu1 %v5637_v6  ;;  %v4153_v6 = vld [vmem:[#allocation5 + $0x318] sm:$0xff]  ;;  %v4349_v34 = vld [vmem:[#allocation5 + $0x4c8] sm:$0xff] }
 0x8ce   : > { %4283 = vmatprep.subr.mxu1 %v4055_v35  ;;  %4242 = vmatprep.subr.mxu0 %v4153_v6  ;;  %v4482_v35 = vld [vmem:[#allocation5 + $0x6a8] sm:$0xff]  ;;  %v4463_v6 = vld [vmem:[#allocation5 + $0x610] sm:$0xff] }
 0x8cf   : > { %4284 = vmatpush1.msra.mxu1 %v4054_v36  ;;  %4243 = vmatpush2.msra.mxu0 %v4152_v10  ;;  %v4348_v36 = vld [vmem:[#allocation5 + $0x4c0] sm:$0xff]  ;;  %v4462_v10 = vld [vmem:[#allocation5 + $0x608] sm:$0xff] }
 0x8d0   : > { %4285 = vmatprep.subr.mxu1 %v4117_v37  ;;  %5431 = vmatmul.mubr.msk.f32.gmra.mxu1 %vm751_vm1, %v3907_v2  ;;  %v4481_v37 = vld [vmem:[#allocation5 + $0x6a0] sm:$0xff]  ;;  %v4466_v2 = vld [vmem:[#allocation5 + $0x628] sm:$0xff] }
 0x8d1   : > { %4286 = vmatpush2.msra.mxu1 %v4116_v39  ;;  %4244 = vmatprep.subr.mxu0 %v4151_v11  ;;  %v4347_v39 = vld [vmem:[#allocation5 + $0x4b8] sm:$0xff]  ;;  %v4328_v11 = vld [vmem:[#allocation5 + $0x420] sm:$0xff] }
 0x8d2   : > { %4287 = vmatprep.subr.mxu1 %v4115_v40  ;;  %4245 = vmatpush2.msra.mxu0 %v4150_v12  ;;  %v4480_v40 = vld [vmem:[#allocation5 + $0x698] sm:$0xff]  ;;  %v4461_v12 = vld [vmem:[#allocation5 + $0x600] sm:$0xff] }
 0x8d3   : > { %4288 = vmatpush2.msra.mxu1 %v4114_v41  ;;  %4388 = vmatprep.subr.mxu0 %v4355_v13  ;;  %v4346_v41 = vld [vmem:[#allocation5 + $0x4b0] sm:$0xff]  ;;  %v4327_v13 = vld [vmem:[#allocation5 + $0x418] sm:$0xff] }
 0x8d4   : > { %4289 = vmatprep.subr.mxu1 %v4113_v42  ;;  %v4479_v42 = vld [vmem:[#allocation5 + $0x690] sm:$0xff] }
 0x8d5   : > { %4290 = vmatpush2.msra.mxu1 %v4112_v43  ;;  %v4345_v43 = vld [vmem:[#allocation5 + $0x4a8] sm:$0xff] }
 0x8d6   : > { %4291 = vmatprep.subr.mxu1 %v4111_v44  ;;  %v4478_v44 = vld [vmem:[#allocation5 + $0x688] sm:$0xff] }
 0x8d7   : > { %4292 = vmatpush2.msra.mxu1 %v4110_v45  ;;  %v4344_v45 = vld [vmem:[#allocation5 + $0x4a0] sm:$0xff] }
 0x8d8   : > { %4293 = vmatprep.subr.mxu1 %v4109_v46  ;;  %v4477_v46 = vld [vmem:[#allocation5 + $0x680] sm:$0xff] }
 0x8d9   : > { %4294 = vmatpush2.msra.mxu1 %v4108_v47  ;;  %v4343_v47 = vld [vmem:[#allocation5 + $0x498] sm:$0xff] }
 0x8da   : > { %4295 = vmatprep.subr.mxu1 %v4107_v48  ;;  %v4476_v48 = vld [vmem:[#allocation5 + $0x678] sm:$0xff] }
 0x8db   : > { %4296 = vmatpush2.msra.mxu1 %v4106_v49  ;;  %v4342_v49 = vld [vmem:[#allocation5 + $0x490] sm:$0xff] }
 0x8dc   : > { %4297 = vmatprep.subr.mxu1 %v4105_v50  ;;  %v4475_v50 = vld [vmem:[#allocation5 + $0x670] sm:$0xff] }
 0x8dd   : > { %4298 = vmatpush2.msra.mxu1 %v4104_v51  ;;  %v4341_v51 = vld [vmem:[#allocation5 + $0x488] sm:$0xff] }
 0x8de   : > { %4299 = vmatprep.subr.mxu1 %v4103_v52  ;;  %v4474_v52 = vld [vmem:[#allocation5 + $0x668] sm:$0xff] }
 0x8df   : > { %4300 = vmatpush2.msra.mxu1 %v4102_v53  ;;  %v4340_v53 = vld [vmem:[#allocation5 + $0x480] sm:$0xff] }
 0x8e0   : > { %4301 = vmatprep.subr.mxu1 %v4101_v31  ;;  %v4473_v31 = vld [vmem:[#allocation5 + $0x660] sm:$0xff] }
 0x8e1   : > { %4302 = vmatpush2.msra.mxu1 %v4100_v54  ;;  %v4339_v54 = vld [vmem:[#allocation5 + $0x478] sm:$0xff] }
 0x8e2   : > { %4303 = vmatprep.subr.mxu1 %v4099_v55  ;;  %v4472_v55 = vld [vmem:[#allocation5 + $0x658] sm:$0xff] }
 0x8e3   : > { %4304 = vmatpush2.msra.mxu1 %v4098_v56  ;;  %v4338_v56 = vld [vmem:[#allocation5 + $0x470] sm:$0xff] }
 0x8e4   : > { %4305 = vmatprep.subr.mxu1 %v4097_v57  ;;  %v4471_v57 = vld [vmem:[#allocation5 + $0x650] sm:$0xff] }
 0x8e5   : > { %4306 = vmatpush2.msra.mxu1 %v4096_v58  ;;  %v4337_v58 = vld [vmem:[#allocation5 + $0x468] sm:$0xff] }
 0x8e6   : > { %4307 = vmatprep.subr.mxu1 %v4095_v59  ;;  %v4470_v59 = vld [vmem:[#allocation5 + $0x648] sm:$0xff] }
 0x8e7   : > { %4308 = vmatpush2.msra.mxu1 %v4094_v60  ;;  %v4336_v60 = vld [vmem:[#allocation5 + $0x460] sm:$0xff] }
 0x8e8   : > { %4309 = vmatprep.subr.mxu1 %v4093_v61  ;;  %v4335_v61 = vld [vmem:[#allocation5 + $0x458] sm:$0xff] }
 0x8e9   : > { %4310 = vmatpush2.msra.mxu1 %v4092_v62  ;;  %v4468_v62 = vld [vmem:[#allocation5 + $0x638] sm:$0xff] }
 0x8ea   : > { %4311 = vmatprep.subr.mxu1 %v4091_v63  ;;  %v4334_v63 = vld [vmem:[#allocation5 + $0x450] sm:$0xff] }
 0x8eb   : > { %4312 = vmatpush2.msra.mxu1 %v4090_v0  ;;  %v4467_v0 = vld [vmem:[#allocation5 + $0x630] sm:$0xff] }
 0x8ec   : > { %4313 = vmatprep.subr.mxu1 %v4089_v3  ;;  %v4332_v3 = vld [vmem:[#allocation5 + $0x440] sm:$0xff] }
 0x8ed   : > { %4314 = vmatpush2.msra.mxu1 %v4088_v5  ;;  %v4331_v5 = vld [vmem:[#allocation5 + $0x438] sm:$0xff] }
 0x8ee   : > { %4315 = vmatprep.subr.mxu1 %v4087_v8  ;;  %v4330_v8 = vld [vmem:[#allocation5 + $0x430] sm:$0xff] }
 0x8ef   : > { %4316 = vmatpush2.msra.mxu1 %v4086_v9  ;;  %v4329_v9 = vld [vmem:[#allocation5 + $0x428] sm:$0xff] }
 0x8f0   : > { %4525 = vmatprep.subr.mxu1 %v4492_v14  ;;  %v4524_v14 = vld [vmem:[#allocation5 + $0x7f8] sm:$0xff] }
 0x970   : > { %v4001_v15 = vpop.f32.mrf.mxu1 }
 0x972   : > { %v4003_v16 = vpop.f32.mrf.mxu1 }
 0x973   : > { %4317 = vmatprep.mubr.f32.mxu1 %v4003_v16  ;;  %v4523_v16 = vld [vmem:[#allocation5 + $0x7f0] sm:$0xff] }
 0x974   : > { %v4007_v19 = vpop.f32.mrf.mxu1  ;;  %4318 = vmatmul.mubr.f32.vlgmr.msra.gmra.mxu1 %v4001_v15  ;;  %v4326_v15 = vld [vmem:[#allocation5 + $0x410] sm:$0xff] }
 0x975   : > { %4526 = vmatpush1.msra.mxu1 %v4491_v17  ;;  %v4325_v17 = vld [vmem:[#allocation5 + $0x408] sm:$0xff] }
 0x976   : > { %v4009_v22 = vpop.f32.mrf.mxu1  ;;  %4527 = vmatprep.subr.mxu1 %v4490_v18  ;;  %v4522_v18 = vld [vmem:[#allocation5 + $0x7e8] sm:$0xff] }
 0x977   : > { %4246 = vmatprep.mubr.f32.mxu0 %v4009_v22  ;;  %4528 = vmatpush1.msra.mxu1 %v4489_v20  ;;  %v4521_v20 = vld [vmem:[#allocation5 + $0x7e0] sm:$0xff]  ;;  %v4520_v22 = vld [vmem:[#allocation5 + $0x7d8] sm:$0xff] }
 0x978   : > { %4247 = vmatmul.mubr.f32.vlgmr.msra.gmra.mxu0 %v4007_v19  ;;  %4529 = vmatprep.subr.mxu1 %v4488_v21  ;;  %v4324_v19 = vld [vmem:[#allocation5 + $0x400] sm:$0xff]  ;;  %v4387_v21 = vld [vmem:[#allocation5 + $0x5f8] sm:$0xff] }
 0x979   : > { %4389 = vmatpush1.msra.mxu0 %v4354_v23  ;;  %4530 = vmatpush1.msra.mxu1 %v4487_v24  ;;  %v4386_v23 = vld [vmem:[#allocation5 + $0x5f0] sm:$0xff] }
 0x97a   : > { %4390 = vmatprep.subr.mxu0 %v4353_v25  ;;  %4531 = vmatprep.subr.mxu1 %v4486_v26  ;;  %v4519_v24 = vld [vmem:[#allocation5 + $0x7d0] sm:$0xff]  ;;  %v4385_v25 = vld [vmem:[#allocation5 + $0x5e8] sm:$0xff] }
 0x97b   : > { %4391 = vmatpush1.msra.mxu0 %v4352_v27  ;;  %4532 = vmatpush1.msra.mxu1 %v4485_v28  ;;  %v4518_v26 = vld [vmem:[#allocation5 + $0x7c8] sm:$0xff]  ;;  %v4384_v27 = vld [vmem:[#allocation5 + $0x5e0] sm:$0xff] }
 0x97c   : > { %4392 = vmatprep.subr.mxu0 %v4351_v29  ;;  %4533 = vmatprep.subr.mxu1 %v4484_v30  ;;  %v4517_v28 = vld [vmem:[#allocation5 + $0x7c0] sm:$0xff]  ;;  %v4383_v29 = vld [vmem:[#allocation5 + $0x5d8] sm:$0xff] }
 0x97d   : > { %4393 = vmatpush1.msra.mxu0 %v4350_v32  ;;  %4534 = vmatpush1.msra.mxu1 %v4483_v33  ;;  %v4516_v30 = vld [vmem:[#allocation5 + $0x7b8] sm:$0xff]  ;;  %v4382_v32 = vld [vmem:[#allocation5 + $0x5d0] sm:$0xff] }
 0x97e   : > { %4394 = vmatprep.subr.mxu0 %v4349_v34  ;;  %4535 = vmatprep.subr.mxu1 %v4482_v35  ;;  %v4515_v33 = vld [vmem:[#allocation5 + $0x7b0] sm:$0xff]  ;;  %v4381_v34 = vld [vmem:[#allocation5 + $0x5c8] sm:$0xff] }
 0x97f   : > { %4395 = vmatpush1.msra.mxu0 %v4348_v36  ;;  %4536 = vmatpush1.msra.mxu1 %v4481_v37  ;;  %v4514_v35 = vld [vmem:[#allocation5 + $0x7a8] sm:$0xff]  ;;  %v4380_v36 = vld [vmem:[#allocation5 + $0x5c0] sm:$0xff] }
 0x980   : > { %4396 = vmatprep.subr.mxu0 %v4347_v39  ;;  %4537 = vmatprep.subr.mxu1 %v4480_v40  ;;  %v4513_v37 = vld [vmem:[#allocation5 + $0x7a0] sm:$0xff]  ;;  %v4379_v39 = vld [vmem:[#allocation5 + $0x5b8] sm:$0xff] }
 0x981   : > { %4397 = vmatpush1.msra.mxu0 %v4346_v41  ;;  %4538 = vmatpush1.msra.mxu1 %v4479_v42  ;;  %v4512_v40 = vld [vmem:[#allocation5 + $0x798] sm:$0xff]  ;;  %v4378_v41 = vld [vmem:[#allocation5 + $0x5b0] sm:$0xff] }
 0x982   : > { %4398 = vmatprep.subr.mxu0 %v4345_v43  ;;  %4539 = vmatprep.subr.mxu1 %v4478_v44  ;;  %v4511_v42 = vld [vmem:[#allocation5 + $0x790] sm:$0xff]  ;;  %v4377_v43 = vld [vmem:[#allocation5 + $0x5a8] sm:$0xff] }
 0x983   : > { %4399 = vmatpush1.msra.mxu0 %v4344_v45  ;;  %4540 = vmatpush1.msra.mxu1 %v4477_v46  ;;  %v4510_v44 = vld [vmem:[#allocation5 + $0x788] sm:$0xff]  ;;  %v4376_v45 = vld [vmem:[#allocation5 + $0x5a0] sm:$0xff] }
 0x984   : > { %4400 = vmatprep.subr.mxu0 %v4343_v47  ;;  %4541 = vmatprep.subr.mxu1 %v4476_v48  ;;  %v4509_v46 = vld [vmem:[#allocation5 + $0x780] sm:$0xff]  ;;  %v4375_v47 = vld [vmem:[#allocation5 + $0x598] sm:$0xff] }
 0x985   : > { %4401 = vmatpush1.msra.mxu0 %v4342_v49  ;;  %4542 = vmatpush1.msra.mxu1 %v4475_v50  ;;  %v4508_v48 = vld [vmem:[#allocation5 + $0x778] sm:$0xff]  ;;  %v4374_v49 = vld [vmem:[#allocation5 + $0x590] sm:$0xff] }
 0x986   : > { %4402 = vmatprep.subr.mxu0 %v4341_v51  ;;  %4543 = vmatprep.subr.mxu1 %v4474_v52  ;;  %v4507_v50 = vld [vmem:[#allocation5 + $0x770] sm:$0xff]  ;;  %v4373_v51 = vld [vmem:[#allocation5 + $0x588] sm:$0xff] }
 0x987   : > { %4403 = vmatpush1.msra.mxu0 %v4340_v53  ;;  %4544 = vmatpush1.msra.mxu1 %v4473_v31  ;;  %v4506_v52 = vld [vmem:[#allocation5 + $0x768] sm:$0xff]  ;;  %v4372_v53 = vld [vmem:[#allocation5 + $0x580] sm:$0xff] }
 0x988   : > { %4404 = vmatprep.subr.mxu0 %v4339_v54  ;;  %4545 = vmatprep.subr.mxu1 %v4472_v55  ;;  %v4505_v31 = vld [vmem:[#allocation5 + $0x760] sm:$0xff]  ;;  %v4371_v54 = vld [vmem:[#allocation5 + $0x578] sm:$0xff] }
 0x989   : > { %4405 = vmatpush1.msra.mxu0 %v4338_v56  ;;  %4546 = vmatpush1.msra.mxu1 %v4471_v57  ;;  %v4504_v55 = vld [vmem:[#allocation5 + $0x758] sm:$0xff]  ;;  %v4370_v56 = vld [vmem:[#allocation5 + $0x570] sm:$0xff] }
 0x98a   : > { %4406 = vmatprep.subr.mxu0 %v4337_v58  ;;  %4547 = vmatprep.subr.mxu1 %v4470_v59  ;;  %v4503_v57 = vld [vmem:[#allocation5 + $0x750] sm:$0xff]  ;;  %v6141_v58 = vpop.f32.mrf.mxu1  ;;  %v4369_v59 = vld [vmem:[#allocation5 + $0x568] sm:$0xff] }
 0x98b   : > { %4407 = vmatpush1.msra.mxu0 %v4336_v60  ;;  %4548 = vmatpush1.msra.mxu1 %v4469_v38  ;;  %v4502_v60 = vld [vmem:[#allocation5 + $0x748] sm:$0xff]  ;;  %v4368_v38 = vld [vmem:[#allocation5 + $0x560] sm:$0xff] }
 0x98c   : > { %4408 = vmatprep.subr.mxu0 %v4335_v61  ;;  %4549 = vmatprep.subr.mxu1 %v4468_v62  ;;  %v4501_v61 = vld [vmem:[#allocation5 + $0x740] sm:$0xff]  ;;  %v4367_v62 = vld [vmem:[#allocation5 + $0x558] sm:$0xff] }
 0x98d   : > { %4409 = vmatpush1.msra.mxu0 %v4334_v63  ;;  %4550 = vmatpush1.msra.mxu1 %v4467_v0  ;;  %v4500_v63 = vld [vmem:[#allocation5 + $0x738] sm:$0xff]  ;;  %v4366_v0 = vld [vmem:[#allocation5 + $0x550] sm:$0xff] }
 0x98e   : > { %4410 = vmatprep.subr.mxu0 %v4333_v1  ;;  %4551 = vmatprep.subr.mxu1 %v4466_v2  ;;  %v4499_v1 = vld [vmem:[#allocation5 + $0x730] sm:$0xff]  ;;  %v4015_v2 = vpop.f32.mrf.mxu1 }
 0x98f   : > { %4411 = vmatpush1.msra.mxu0 %v4332_v3  ;;  %4552 = vmatpush1.msra.mxu1 %v4465_v4  ;;  %v4365_v3 = vld [vmem:[#allocation5 + $0x548] sm:$0xff] }
 0x990   : > { %4412 = vmatprep.subr.mxu0 %v4331_v5  ;;  %4553 = vmatprep.subr.mxu1 %v4464_v7  ;;  %v4498_v4 = vld [vmem:[#allocation5 + $0x728] sm:$0xff]  ;;  %v4364_v5 = vld [vmem:[#allocation5 + $0x540] sm:$0xff] }
 0x991   : > { %4413 = vmatpush1.msra.mxu0 %v4330_v8  ;;  %4554 = vmatpush1.msra.mxu1 %v4463_v6  ;;  %v4497_v7 = vld [vmem:[#allocation5 + $0x720] sm:$0xff]  ;;  %v4363_v8 = vld [vmem:[#allocation5 + $0x538] sm:$0xff] }
 0x992   : > { %4414 = vmatprep.subr.mxu0 %v4329_v9  ;;  %4555 = vmatprep.subr.mxu1 %v4462_v10  ;;  %v4496_v6 = vld [vmem:[#allocation5 + $0x718] sm:$0xff]  ;;  %v4362_v9 = vld [vmem:[#allocation5 + $0x530] sm:$0xff]  ;;  %v4019_v10 = vpop.f32.mrf.mxu1 }
 0x993   : > { %4415 = vmatpush1.msra.mxu0 %v4328_v11  ;;  %4556 = vmatpush1.msra.mxu1 %v4461_v12  ;;  %v4361_v11 = vld [vmem:[#allocation5 + $0x528] sm:$0xff]  ;;  %v4495_v12 = vld [vmem:[#allocation5 + $0x710] sm:$0xff] }
 0x994   : > { %4416 = vmatprep.subr.mxu0 %v4327_v13  ;;  %4557 = vmatprep.subr.mxu1 %v4524_v14  ;;  %v4360_v13 = vld [vmem:[#allocation5 + $0x520] sm:$0xff]  ;;  %v4494_v14 = vld [vmem:[#allocation5 + $0x708] sm:$0xff] }
 0x995   : > { %4417 = vmatpush1.msra.mxu0 %v4326_v15  ;;  %4558 = vmatpush2.msra.mxu1 %v4523_v16  ;;  %v4359_v15 = vld [vmem:[#allocation5 + $0x518] sm:$0xff]  ;;  %v4493_v16 = vld [vmem:[#allocation5 + $0x700] sm:$0xff] }
 0x996   : > { %4418 = vmatprep.subr.mxu0 %v4325_v17  ;;  %4559 = vmatprep.subr.mxu1 %v4522_v18  ;;  %v4358_v17 = vld [vmem:[#allocation5 + $0x510] sm:$0xff]  ;;  %v4021_v18 = vpop.f32.mrf.mxu1 }
 0x997   : > { %4419 = vmatpush1.msra.mxu0 %v4324_v19  ;;  %4560 = vmatpush2.msra.mxu1 %v4521_v20  ;;  %v4357_v19 = vld [vmem:[#allocation5 + $0x508] sm:$0xff]  ;;  %v4356_v20 = vld [vmem:[#allocation5 + $0x500] sm:$0xff] }
 0x998   : > { %4420 = vmatprep.subr.mxu0 %v4387_v21  ;;  %4561 = vmatprep.subr.mxu1 %v4520_v22  ;;  %v4766_v21 = vld [vmem:[#allocation5 + $0xaf8] sm:$0xff] }
 0x999   : > { %4421 = vmatpush2.msra.mxu0 %v4386_v23  ;;  %4562 = vmatpush2.msra.mxu1 %v4519_v24  ;;  %v4629_v22 = vld [vmem:[#allocation5 + $0x8f8] sm:$0xff]  ;;  %v4628_v23 = vld [vmem:[#allocation5 + $0x8f0] sm:$0xff] }
 0x99a   : > { %4422 = vmatprep.subr.mxu0 %v4385_v25  ;;  %4563 = vmatprep.subr.mxu1 %v4518_v26  ;;  %v4765_v24 = vld [vmem:[#allocation5 + $0xaf0] sm:$0xff]  ;;  %v4627_v25 = vld [vmem:[#allocation5 + $0x8e8] sm:$0xff] }
 0x99b   : > { %4423 = vmatpush2.msra.mxu0 %v4384_v27  ;;  %4564 = vmatpush2.msra.mxu1 %v4517_v28  ;;  %v4764_v26 = vld [vmem:[#allocation5 + $0xae8] sm:$0xff]  ;;  %v4626_v27 = vld [vmem:[#allocation5 + $0x8e0] sm:$0xff] }
 0x99c   : > { %4424 = vmatprep.subr.mxu0 %v4383_v29  ;;  %4565 = vmatprep.subr.mxu1 %v4516_v30  ;;  %v4763_v28 = vld [vmem:[#allocation5 + $0xae0] sm:$0xff]  ;;  %v4625_v29 = vld [vmem:[#allocation5 + $0x8d8] sm:$0xff] }
 0x99d   : > { %4425 = vmatpush2.msra.mxu0 %v4382_v32  ;;  %4566 = vmatpush2.msra.mxu1 %v4515_v33  ;;  %v4762_v30 = vld [vmem:[#allocation5 + $0xad8] sm:$0xff]  ;;  %v4624_v32 = vld [vmem:[#allocation5 + $0x8d0] sm:$0xff] }
 0x99e   : > { %4426 = vmatprep.subr.mxu0 %v4381_v34  ;;  %4567 = vmatprep.subr.mxu1 %v4514_v35  ;;  %v4761_v33 = vld [vmem:[#allocation5 + $0xad0] sm:$0xff]  ;;  %v4623_v34 = vld [vmem:[#allocation5 + $0x8c8] sm:$0xff] }
 0x99f   : > { %4427 = vmatpush2.msra.mxu0 %v4380_v36  ;;  %4568 = vmatpush2.msra.mxu1 %v4513_v37  ;;  %v4760_v35 = vld [vmem:[#allocation5 + $0xac8] sm:$0xff]  ;;  %v4622_v36 = vld [vmem:[#allocation5 + $0x8c0] sm:$0xff] }
 0x9a0   : > { %4428 = vmatprep.subr.mxu0 %v4379_v39  ;;  %4569 = vmatprep.subr.mxu1 %v4512_v40  ;;  %v4759_v37 = vld [vmem:[#allocation5 + $0xac0] sm:$0xff]  ;;  %v4621_v39 = vld [vmem:[#allocation5 + $0x8b8] sm:$0xff] }
 0x9a1   : > { %4429 = vmatpush2.msra.mxu0 %v4378_v41  ;;  %4570 = vmatpush2.msra.mxu1 %v4511_v42  ;;  %v4758_v40 = vld [vmem:[#allocation5 + $0xab8] sm:$0xff]  ;;  %v4620_v41 = vld [vmem:[#allocation5 + $0x8b0] sm:$0xff] }
 0x9a2   : > { %4430 = vmatprep.subr.mxu0 %v4377_v43  ;;  %4571 = vmatprep.subr.mxu1 %v4510_v44  ;;  %v4757_v42 = vld [vmem:[#allocation5 + $0xab0] sm:$0xff]  ;;  %v4619_v43 = vld [vmem:[#allocation5 + $0x8a8] sm:$0xff] }
 0x9a3   : > { %4431 = vmatpush2.msra.mxu0 %v4376_v45  ;;  %4572 = vmatpush2.msra.mxu1 %v4509_v46  ;;  %v4756_v44 = vld [vmem:[#allocation5 + $0xaa8] sm:$0xff]  ;;  %v4618_v45 = vld [vmem:[#allocation5 + $0x8a0] sm:$0xff] }
 0x9a4   : > { %4432 = vmatprep.subr.mxu0 %v4375_v47  ;;  %4573 = vmatprep.subr.mxu1 %v4508_v48  ;;  %v4755_v46 = vld [vmem:[#allocation5 + $0xaa0] sm:$0xff]  ;;  %v4617_v47 = vld [vmem:[#allocation5 + $0x898] sm:$0xff] }
 0x9a5   : > { %4433 = vmatpush2.msra.mxu0 %v4374_v49  ;;  %4574 = vmatpush2.msra.mxu1 %v4507_v50  ;;  %v4754_v48 = vld [vmem:[#allocation5 + $0xa98] sm:$0xff]  ;;  %v4616_v49 = vld [vmem:[#allocation5 + $0x890] sm:$0xff] }
 0x9a6   : > { %4434 = vmatprep.subr.mxu0 %v4373_v51  ;;  %4575 = vmatprep.subr.mxu1 %v4506_v52  ;;  %v4753_v50 = vld [vmem:[#allocation5 + $0xa90] sm:$0xff]  ;;  %v4615_v51 = vld [vmem:[#allocation5 + $0x888] sm:$0xff] }
 0x9a7   : > { %4435 = vmatpush2.msra.mxu0 %v4372_v53  ;;  %4576 = vmatpush2.msra.mxu1 %v4505_v31  ;;  %v4752_v52 = vld [vmem:[#allocation5 + $0xa88] sm:$0xff]  ;;  %v4614_v53 = vld [vmem:[#allocation5 + $0x880] sm:$0xff] }
 0x9a8   : > { %4436 = vmatprep.subr.mxu0 %v4371_v54  ;;  %4577 = vmatprep.subr.mxu1 %v4504_v55  ;;  %v4751_v31 = vld [vmem:[#allocation5 + $0xa80] sm:$0xff]  ;;  %v4613_v54 = vld [vmem:[#allocation5 + $0x878] sm:$0xff] }
 0x9a9   : > { %4437 = vmatpush2.msra.mxu0 %v4370_v56  ;;  %4578 = vmatpush2.msra.mxu1 %v4503_v57  ;;  %v4750_v55 = vld [vmem:[#allocation5 + $0xa78] sm:$0xff]  ;;  %v4612_v56 = vld [vmem:[#allocation5 + $0x870] sm:$0xff] }
 0x9aa   : > { %4438 = vmatprep.subr.mxu0 %v4369_v59  ;;  %4579 = vmatprep.subr.mxu1 %v4502_v60  ;;  %v4749_v57 = vld [vmem:[#allocation5 + $0xa70] sm:$0xff]  ;;  %v4748_v59 = vld [vmem:[#allocation5 + $0xa68] sm:$0xff]  ;;  %v4610_v60 = vld [vmem:[#allocation5 + $0x860] sm:$0xff] }
 0x9ab   : > { %4439 = vmatpush2.msra.mxu0 %v4368_v38  ;;  %4580 = vmatpush2.msra.mxu1 %v4501_v61  ;;  %v4747_v38 = vld [vmem:[#allocation5 + $0xa60] sm:$0xff]  ;;  %v4609_v61 = vld [vmem:[#allocation5 + $0x858] sm:$0xff] }
 0x9ac   : > { %4440 = vmatprep.subr.mxu0 %v4367_v62  ;;  %4581 = vmatprep.subr.mxu1 %v4500_v63  ;;  %v4746_v62 = vld [vmem:[#allocation5 + $0xa58] sm:$0xff]  ;;  %v4608_v63 = vld [vmem:[#allocation5 + $0x850] sm:$0xff] }
 0x9ad   : > { %4441 = vmatpush2.msra.mxu0 %v4366_v0  ;;  %4582 = vmatpush2.msra.mxu1 %v4499_v1  ;;  %v4745_v0 = vld [vmem:[#allocation5 + $0xa50] sm:$0xff]  ;;  %v4607_v1 = vld [vmem:[#allocation5 + $0x848] sm:$0xff] }
 0x9ae   : > { %4442 = vmatprep.subr.mxu0 %v4365_v3  ;;  %4583 = vmatprep.subr.mxu1 %v4498_v4  ;;  %v4606_v3 = vld [vmem:[#allocation5 + $0x840] sm:$0xff] }
 0x9af   : > { %4443 = vmatpush2.msra.mxu0 %v4364_v5  ;;  %4584 = vmatpush2.msra.mxu1 %v4497_v7  ;;  %v4743_v4 = vld [vmem:[#allocation5 + $0xa40] sm:$0xff]  ;;  %v4605_v5 = vld [vmem:[#allocation5 + $0x838] sm:$0xff] }
 0x9b0   : > { %4444 = vmatprep.subr.mxu0 %v4363_v8  ;;  %4585 = vmatprep.subr.mxu1 %v4496_v6  ;;  %v4742_v7 = vld [vmem:[#allocation5 + $0xa38] sm:$0xff]  ;;  %v4604_v8 = vld [vmem:[#allocation5 + $0x830] sm:$0xff] }
 0x9b1   : > { %4445 = vmatpush2.msra.mxu0 %v4362_v9  ;;  %4452 = vmatprep.mubr.f32.mxu0 %v4015_v2  ;;  %v4744_v2 = vld [vmem:[#allocation5 + $0xa48] sm:$0xff]  ;;  %v4741_v6 = vld [vmem:[#allocation5 + $0xa30] sm:$0xff] }
 0x9b2   : > { %4446 = vmatprep.subr.mxu0 %v4361_v11  ;;  %4586 = vmatpush2.msra.mxu1 %v4495_v12  ;;  %v4603_v9 = vld [vmem:[#allocation5 + $0x828] sm:$0xff]  ;;  %v4602_v11 = vld [vmem:[#allocation5 + $0x820] sm:$0xff] }
 0x9b3   : > { %4447 = vmatpush2.msra.mxu0 %v4360_v13  ;;  %4587 = vmatprep.subr.mxu1 %v4494_v14  ;;  %v4739_v12 = vld [vmem:[#allocation5 + $0xa20] sm:$0xff]  ;;  %v4601_v13 = vld [vmem:[#allocation5 + $0x818] sm:$0xff] }
 0x9b4   : > { %4448 = vmatprep.subr.mxu0 %v4359_v15  ;;  %4588 = vmatpush2.msra.mxu1 %v4493_v16  ;;  %v4738_v14 = vld [vmem:[#allocation5 + $0xa18] sm:$0xff]  ;;  %v4600_v15 = vld [vmem:[#allocation5 + $0x810] sm:$0xff] }
 0x9b5   : > { %4449 = vmatpush2.msra.mxu0 %v4358_v17  ;;  %4589 = vmatprep.mubr.f32.mxu1 %v4021_v18  ;;  %v4737_v16 = vld [vmem:[#allocation5 + $0xa10] sm:$0xff]  ;;  %v4599_v17 = vld [vmem:[#allocation5 + $0x808] sm:$0xff] }
 0x9b6   : > { %4450 = vmatprep.subr.mxu0 %v4357_v19  ;;  %4590 = vmatmul.mubr.f32.vlgmr.msra.gmra.mxu1 %v4019_v10  ;;  %v4740_v10 = vld [vmem:[#allocation5 + $0xa28] sm:$0xff]  ;;  %v4598_v19 = vld [vmem:[#allocation5 + $0x800] sm:$0xff] }
 0x9b7   : > { %4451 = vmatpush2.msra.mxu0 %v4356_v20  ;;  %4799 = vmatprep.subr.mxu1 %v4766_v21  ;;  %v4736_v18 = vld [vmem:[#allocation5 + $0xa08] sm:$0xff]  ;;  %v4735_v20 = vld [vmem:[#allocation5 + $0xa00] sm:$0xff]  ;;  %v4661_v21 = vld [vmem:[#allocation5 + $0x9f8] sm:$0xff] }
 0x9b8   : > { %4453 = vmatmul.mubr.f32.vlgmr.msra.gmra.mxu0 %v6141_v58  ;;  %4662 = vmatprep.subr.mxu0 %v4629_v22  ;;  %v4611_v58 = vld [vmem:[#allocation5 + $0x868] sm:$0xff]  ;;  %v4798_v22 = vld [vmem:[#allocation5 + $0xbf8] sm:$0xff] }
 0x9b9   : > { %4663 = vmatpush1.msra.mxu0 %v4628_v23  ;;  %4800 = vmatpush1.msra.mxu1 %v4765_v24  ;;  %v4660_v23 = vld [vmem:[#allocation5 + $0x9f0] sm:$0xff] }
 0x9ba   : > { %4664 = vmatprep.subr.mxu0 %v4627_v25  ;;  %4801 = vmatprep.subr.mxu1 %v4764_v26  ;;  %v4797_v24 = vld [vmem:[#allocation5 + $0xbf0] sm:$0xff]  ;;  %v4659_v25 = vld [vmem:[#allocation5 + $0x9e8] sm:$0xff] }
 0x9bb   : > { %4665 = vmatpush1.msra.mxu0 %v4626_v27  ;;  %4802 = vmatpush1.msra.mxu1 %v4763_v28  ;;  %v4796_v26 = vld [vmem:[#allocation5 + $0xbe8] sm:$0xff]  ;;  %v4658_v27 = vld [vmem:[#allocation5 + $0x9e0] sm:$0xff] }
 0x9bc   : > { %4666 = vmatprep.subr.mxu0 %v4625_v29  ;;  %4803 = vmatprep.subr.mxu1 %v4762_v30  ;;  %v4795_v28 = vld [vmem:[#allocation5 + $0xbe0] sm:$0xff]  ;;  %v4657_v29 = vld [vmem:[#allocation5 + $0x9d8] sm:$0xff] }
 0x9bd   : > { %4667 = vmatpush1.msra.mxu0 %v4624_v32  ;;  %4804 = vmatpush1.msra.mxu1 %v4761_v33  ;;  %v4794_v30 = vld [vmem:[#allocation5 + $0xbd8] sm:$0xff]  ;;  %v4656_v32 = vld [vmem:[#allocation5 + $0x9d0] sm:$0xff] }
 0x9be   : > { %4668 = vmatprep.subr.mxu0 %v4623_v34  ;;  %4805 = vmatprep.subr.mxu1 %v4760_v35  ;;  %v4793_v33 = vld [vmem:[#allocation5 + $0xbd0] sm:$0xff]  ;;  %v4655_v34 = vld [vmem:[#allocation5 + $0x9c8] sm:$0xff] }
 0x9bf   : > { %4669 = vmatpush1.msra.mxu0 %v4622_v36  ;;  %4806 = vmatpush1.msra.mxu1 %v4759_v37  ;;  %v4792_v35 = vld [vmem:[#allocation5 + $0xbc8] sm:$0xff]  ;;  %v4654_v36 = vld [vmem:[#allocation5 + $0x9c0] sm:$0xff] }
 0x9c0   : > { %4670 = vmatprep.subr.mxu0 %v4621_v39  ;;  %4807 = vmatprep.subr.mxu1 %v4758_v40  ;;  %v4791_v37 = vld [vmem:[#allocation5 + $0xbc0] sm:$0xff]  ;;  %v4653_v39 = vld [vmem:[#allocation5 + $0x9b8] sm:$0xff] }
 0x9c1   : > { %4671 = vmatpush1.msra.mxu0 %v4620_v41  ;;  %4808 = vmatpush1.msra.mxu1 %v4757_v42  ;;  %v4790_v40 = vld [vmem:[#allocation5 + $0xbb8] sm:$0xff]  ;;  %v4652_v41 = vld [vmem:[#allocation5 + $0x9b0] sm:$0xff] }
 0x9c2   : > { %4672 = vmatprep.subr.mxu0 %v4619_v43  ;;  %4809 = vmatprep.subr.mxu1 %v4756_v44  ;;  %v4789_v42 = vld [vmem:[#allocation5 + $0xbb0] sm:$0xff]  ;;  %v4651_v43 = vld [vmem:[#allocation5 + $0x9a8] sm:$0xff] }
 0x9c3   : > { %4673 = vmatpush1.msra.mxu0 %v4618_v45  ;;  %4810 = vmatpush1.msra.mxu1 %v4755_v46  ;;  %v4788_v44 = vld [vmem:[#allocation5 + $0xba8] sm:$0xff]  ;;  %v4650_v45 = vld [vmem:[#allocation5 + $0x9a0] sm:$0xff] }
 0x9c4   : > { %4674 = vmatprep.subr.mxu0 %v4617_v47  ;;  %4811 = vmatprep.subr.mxu1 %v4754_v48  ;;  %v4787_v46 = vld [vmem:[#allocation5 + $0xba0] sm:$0xff]  ;;  %v4649_v47 = vld [vmem:[#allocation5 + $0x998] sm:$0xff] }
 0x9c5   : > { %4675 = vmatpush1.msra.mxu0 %v4616_v49  ;;  %4812 = vmatpush1.msra.mxu1 %v4753_v50  ;;  %v4786_v48 = vld [vmem:[#allocation5 + $0xb98] sm:$0xff]  ;;  %v4648_v49 = vld [vmem:[#allocation5 + $0x990] sm:$0xff] }
 0x9c6   : > { %4676 = vmatprep.subr.mxu0 %v4615_v51  ;;  %4813 = vmatprep.subr.mxu1 %v4752_v52  ;;  %v4785_v50 = vld [vmem:[#allocation5 + $0xb90] sm:$0xff]  ;;  %v4647_v51 = vld [vmem:[#allocation5 + $0x988] sm:$0xff] }
 0x9c7   : > { %4677 = vmatpush1.msra.mxu0 %v4614_v53  ;;  %4814 = vmatpush1.msra.mxu1 %v4751_v31  ;;  %v4784_v52 = vld [vmem:[#allocation5 + $0xb88] sm:$0xff]  ;;  %v4646_v53 = vld [vmem:[#allocation5 + $0x980] sm:$0xff] }
 0x9c8   : > { %4678 = vmatprep.subr.mxu0 %v4613_v54  ;;  %4815 = vmatprep.subr.mxu1 %v4750_v55  ;;  %v4783_v31 = vld [vmem:[#allocation5 + $0xb80] sm:$0xff]  ;;  %v4645_v54 = vld [vmem:[#allocation5 + $0x978] sm:$0xff] }
 0x9c9   : > { %4679 = vmatpush1.msra.mxu0 %v4612_v56  ;;  %4816 = vmatpush1.msra.mxu1 %v4749_v57  ;;  %v4782_v55 = vld [vmem:[#allocation5 + $0xb78] sm:$0xff]  ;;  %v4644_v56 = vld [vmem:[#allocation5 + $0x970] sm:$0xff] }
 0x9ca   : > { %4680 = vmatprep.subr.mxu0 %v4611_v58  ;;  %4817 = vmatprep.subr.mxu1 %v4748_v59  ;;  %v4781_v57 = vld [vmem:[#allocation5 + $0xb70] sm:$0xff]  ;;  %v4643_v58 = vld [vmem:[#allocation5 + $0x968] sm:$0xff] }
 0x9cb   : > { %4681 = vmatpush1.msra.mxu0 %v4610_v60  ;;  %4818 = vmatpush1.msra.mxu1 %v4747_v38  ;;  %v4780_v59 = vld [vmem:[#allocation5 + $0xb68] sm:$0xff]  ;;  %v4642_v60 = vld [vmem:[#allocation5 + $0x960] sm:$0xff] }
 0x9cc   : > { %4682 = vmatprep.subr.mxu0 %v4609_v61  ;;  %4819 = vmatprep.subr.mxu1 %v4746_v62  ;;  %v4779_v38 = vld [vmem:[#allocation5 + $0xb60] sm:$0xff]  ;;  %v4641_v61 = vld [vmem:[#allocation5 + $0x958] sm:$0xff] }
 0x9cd   : > { %4683 = vmatpush1.msra.mxu0 %v4608_v63  ;;  %4820 = vmatpush1.msra.mxu1 %v4745_v0  ;;  %v4778_v62 = vld [vmem:[#allocation5 + $0xb58] sm:$0xff]  ;;  %v4640_v63 = vld [vmem:[#allocation5 + $0x950] sm:$0xff] }
 0x9ce   : > { %4684 = vmatprep.subr.mxu0 %v4607_v1  ;;  %4821 = vmatprep.subr.mxu1 %v4744_v2  ;;  %v4777_v0 = vld [vmem:[#allocation5 + $0xb50] sm:$0xff]  ;;  %v4025_v1 = vpop.f32.mrf.mxu1  ;;  %v4639_v2 = vld [vmem:[#allocation5 + $0x948] sm:$0xff] }
 0x9cf   : > { %4685 = vmatpush1.msra.mxu0 %v4606_v3  ;;  %4822 = vmatpush1.msra.mxu1 %v4743_v4  ;;  %v4776_v3 = vld [vmem:[#allocation5 + $0xb48] sm:$0xff]  ;;  %v4638_v4 = vld [vmem:[#allocation5 + $0x940] sm:$0xff] }
 0x9d0   : > { %4686 = vmatprep.subr.mxu0 %v4605_v5  ;;  %4823 = vmatprep.subr.mxu1 %v4742_v7  ;;  %v4775_v5 = vld [vmem:[#allocation5 + $0xb40] sm:$0xff]  ;;  %v4637_v7 = vld [vmem:[#allocation5 + $0x938] sm:$0xff] }
 0x9d1   : > { %4687 = vmatpush1.msra.mxu0 %v4604_v8  ;;  %4824 = vmatpush1.msra.mxu1 %v4741_v6  ;;  %v4774_v8 = vld [vmem:[#allocation5 + $0xb38] sm:$0xff]  ;;  %v4636_v6 = vld [vmem:[#allocation5 + $0x930] sm:$0xff] }
 0x9d2   : > { %4688 = vmatprep.subr.mxu0 %v4603_v9  ;;  %4825 = vmatprep.subr.mxu1 %v4740_v10  ;;  %v4773_v9 = vld [vmem:[#allocation5 + $0xb30] sm:$0xff]  ;;  %v4027_v10 = vpop.f32.mrf.mxu1 }
 0x9d3   : > { %4689 = vmatpush1.msra.mxu0 %v4602_v11  ;;  %4826 = vmatpush1.msra.mxu1 %v4739_v12  ;;  %v4635_v11 = vld [vmem:[#allocation5 + $0x928] sm:$0xff] }
 0x9d4   : > { %4690 = vmatprep.subr.mxu0 %v4601_v13  ;;  %4827 = vmatprep.subr.mxu1 %v4738_v14  ;;  %v4772_v12 = vld [vmem:[#allocation5 + $0xb28] sm:$0xff]  ;;  %v4634_v13 = vld [vmem:[#allocation5 + $0x920] sm:$0xff] }
 0x9d5   : > { %4691 = vmatpush1.msra.mxu0 %v4600_v15  ;;  %4828 = vmatpush1.msra.mxu1 %v4737_v16  ;;  %v4771_v14 = vld [vmem:[#allocation5 + $0xb20] sm:$0xff]  ;;  %v4633_v15 = vld [vmem:[#allocation5 + $0x918] sm:$0xff] }
 0x9d6   : > { %4692 = vmatprep.subr.mxu0 %v4599_v17  ;;  %4829 = vmatprep.subr.mxu1 %v4736_v18  ;;  %v4770_v16 = vld [vmem:[#allocation5 + $0xb18] sm:$0xff]  ;;  %v4632_v17 = vld [vmem:[#allocation5 + $0x910] sm:$0xff]  ;;  %v4031_v18 = vpop.f32.mrf.mxu1 }
 0x9d7   : > { %4693 = vmatpush1.msra.mxu0 %v4598_v19  ;;  %4830 = vmatpush1.msra.mxu1 %v4735_v20  ;;  %v4631_v19 = vld [vmem:[#allocation5 + $0x908] sm:$0xff]  ;;  %v4769_v20 = vld [vmem:[#allocation5 + $0xb10] sm:$0xff] }
 0x9d8   : > { %4694 = vmatprep.subr.mxu0 %v4661_v21  ;;  %4831 = vmatprep.subr.mxu1 %v4798_v22  ;;  %v4630_v21 = vld [vmem:[#allocation5 + $0x900] sm:$0xff]  ;;  %v4768_v22 = vld [vmem:[#allocation5 + $0xb08] sm:$0xff] }
 0x9d9   : > { %4695 = vmatpush2.msra.mxu0 %v4660_v23  ;;  %4832 = vmatpush2.msra.mxu1 %v4797_v24  ;;  %v4903_v23 = vld [vmem:[#allocation5 + $0xcf8] sm:$0xff]  ;;  %v4033_v24 = vpop.f32.mrf.mxu1 }
 0x9da   : > { %4696 = vmatprep.subr.mxu0 %v4659_v25  ;;  %4833 = vmatprep.subr.mxu1 %v4796_v26  ;;  %v4767_v25 = vld [vmem:[#allocation5 + $0xb00] sm:$0xff]  ;;  %v4902_v26 = vld [vmem:[#allocation5 + $0xcf0] sm:$0xff] }
 0x9db   : > { %4697 = vmatpush2.msra.mxu0 %v4658_v27  ;;  %4834 = vmatpush2.msra.mxu1 %v4795_v28  ;;  %v4901_v27 = vld [vmem:[#allocation5 + $0xce8] sm:$0xff]  ;;  %v5040_v28 = vld [vmem:[#allocation5 + $0xef8] sm:$0xff] }
 0x9dc   : > { %4698 = vmatprep.subr.mxu0 %v4657_v29  ;;  %4835 = vmatprep.subr.mxu1 %v4794_v30  ;;  %v4900_v29 = vld [vmem:[#allocation5 + $0xce0] sm:$0xff]  ;;  %v5039_v30 = vld [vmem:[#allocation5 + $0xef0] sm:$0xff] }
 0x9dd   : > { %4699 = vmatpush2.msra.mxu0 %v4656_v32  ;;  %4836 = vmatpush2.msra.mxu1 %v4793_v33  ;;  %v4899_v32 = vld [vmem:[#allocation5 + $0xcd8] sm:$0xff]  ;;  %v5038_v33 = vld [vmem:[#allocation5 + $0xee8] sm:$0xff] }
 0x9de   : > { %4700 = vmatprep.subr.mxu0 %v4655_v34  ;;  %4837 = vmatprep.subr.mxu1 %v4792_v35  ;;  %v4898_v34 = vld [vmem:[#allocation5 + $0xcd0] sm:$0xff]  ;;  %v5037_v35 = vld [vmem:[#allocation5 + $0xee0] sm:$0xff] }
 0x9df   : > { %4701 = vmatpush2.msra.mxu0 %v4654_v36  ;;  %4838 = vmatpush2.msra.mxu1 %v4791_v37  ;;  %v4897_v36 = vld [vmem:[#allocation5 + $0xcc8] sm:$0xff]  ;;  %v5036_v37 = vld [vmem:[#allocation5 + $0xed8] sm:$0xff] }
 0x9e0   : > { %4702 = vmatprep.subr.mxu0 %v4653_v39  ;;  %4839 = vmatprep.subr.mxu1 %v4790_v40  ;;  %v4896_v39 = vld [vmem:[#allocation5 + $0xcc0] sm:$0xff]  ;;  %v5035_v40 = vld [vmem:[#allocation5 + $0xed0] sm:$0xff] }
 0x9e1   : > { %4703 = vmatpush2.msra.mxu0 %v4652_v41  ;;  %4840 = vmatpush2.msra.mxu1 %v4789_v42  ;;  %v4895_v41 = vld [vmem:[#allocation5 + $0xcb8] sm:$0xff]  ;;  %v5034_v42 = vld [vmem:[#allocation5 + $0xec8] sm:$0xff] }
 0x9e2   : > { %4704 = vmatprep.subr.mxu0 %v4651_v43  ;;  %4841 = vmatprep.subr.mxu1 %v4788_v44  ;;  %v4894_v43 = vld [vmem:[#allocation5 + $0xcb0] sm:$0xff]  ;;  %v5033_v44 = vld [vmem:[#allocation5 + $0xec0] sm:$0xff] }
 0x9e3   : > { %4705 = vmatpush2.msra.mxu0 %v4650_v45  ;;  %4842 = vmatpush2.msra.mxu1 %v4787_v46  ;;  %v4893_v45 = vld [vmem:[#allocation5 + $0xca8] sm:$0xff]  ;;  %v5032_v46 = vld [vmem:[#allocation5 + $0xeb8] sm:$0xff] }
 0x9e4   : > { %4706 = vmatprep.subr.mxu0 %v4649_v47  ;;  %4843 = vmatprep.subr.mxu1 %v4786_v48  ;;  %v4892_v47 = vld [vmem:[#allocation5 + $0xca0] sm:$0xff]  ;;  %v5031_v48 = vld [vmem:[#allocation5 + $0xeb0] sm:$0xff] }
 0x9e5   : > { %4707 = vmatpush2.msra.mxu0 %v4648_v49  ;;  %4844 = vmatpush2.msra.mxu1 %v4785_v50  ;;  %v4891_v49 = vld [vmem:[#allocation5 + $0xc98] sm:$0xff]  ;;  %v5030_v50 = vld [vmem:[#allocation5 + $0xea8] sm:$0xff] }
 0x9e6   : > { %4708 = vmatprep.subr.mxu0 %v4647_v51  ;;  %4845 = vmatprep.subr.mxu1 %v4784_v52  ;;  %v4890_v51 = vld [vmem:[#allocation5 + $0xc90] sm:$0xff]  ;;  %v5029_v52 = vld [vmem:[#allocation5 + $0xea0] sm:$0xff] }
 0x9e7   : > { %4709 = vmatpush2.msra.mxu0 %v4646_v53  ;;  %4846 = vmatpush2.msra.mxu1 %v4783_v31  ;;  %v4889_v53 = vld [vmem:[#allocation5 + $0xc88] sm:$0xff]  ;;  %v5028_v31 = vld [vmem:[#allocation5 + $0xe98] sm:$0xff] }
 0x9e8   : > { %4710 = vmatprep.subr.mxu0 %v4645_v54  ;;  %4847 = vmatprep.subr.mxu1 %v4782_v55  ;;  %v4888_v54 = vld [vmem:[#allocation5 + $0xc80] sm:$0xff]  ;;  %v5027_v55 = vld [vmem:[#allocation5 + $0xe90] sm:$0xff] }
 0x9e9   : > { %4711 = vmatpush2.msra.mxu0 %v4644_v56  ;;  %4848 = vmatpush2.msra.mxu1 %v4781_v57  ;;  %v4887_v56 = vld [vmem:[#allocation5 + $0xc78] sm:$0xff]  ;;  %v5026_v57 = vld [vmem:[#allocation5 + $0xe88] sm:$0xff] }
 0x9ea   : > { %4712 = vmatprep.subr.mxu0 %v4643_v58  ;;  %4849 = vmatprep.subr.mxu1 %v4780_v59  ;;  %v4886_v58 = vld [vmem:[#allocation5 + $0xc70] sm:$0xff]  ;;  %v5025_v59 = vld [vmem:[#allocation5 + $0xe80] sm:$0xff] }
 0x9eb   : > { %4713 = vmatpush2.msra.mxu0 %v4642_v60  ;;  %4850 = vmatpush2.msra.mxu1 %v4779_v38  ;;  %v4885_v60 = vld [vmem:[#allocation5 + $0xc68] sm:$0xff]  ;;  %v5024_v38 = vld [vmem:[#allocation5 + $0xe78] sm:$0xff] }
 0x9ec   : > { %4714 = vmatprep.subr.mxu0 %v4641_v61  ;;  %4851 = vmatprep.subr.mxu1 %v4778_v62  ;;  %v4884_v61 = vld [vmem:[#allocation5 + $0xc60] sm:$0xff]  ;;  %v5023_v62 = vld [vmem:[#allocation5 + $0xe70] sm:$0xff] }
 0x9ed   : > { %4715 = vmatpush2.msra.mxu0 %v4640_v63  ;;  %4852 = vmatpush2.msra.mxu1 %v4777_v0  ;;  %v4883_v63 = vld [vmem:[#allocation5 + $0xc58] sm:$0xff]  ;;  %v5022_v0 = vld [vmem:[#allocation5 + $0xe68] sm:$0xff] }
 0x9ee   : > { %4716 = vmatprep.subr.mxu0 %v4639_v2  ;;  %4853 = vmatprep.subr.mxu1 %v4776_v3  ;;  %v5021_v2 = vld [vmem:[#allocation5 + $0xe60] sm:$0xff]  ;;  %v4881_v3 = vld [vmem:[#allocation5 + $0xc48] sm:$0xff] }
 0x9ef   : > { %4717 = vmatpush2.msra.mxu0 %v4638_v4  ;;  %4854 = vmatpush2.msra.mxu1 %v4775_v5  ;;  %v5020_v4 = vld [vmem:[#allocation5 + $0xe58] sm:$0xff]  ;;  %v4880_v5 = vld [vmem:[#allocation5 + $0xc40] sm:$0xff] }
 0x9f0   : > { %4718 = vmatprep.subr.mxu0 %v4637_v7  ;;  %4855 = vmatprep.subr.mxu1 %v4774_v8  ;;  %v5019_v7 = vld [vmem:[#allocation5 + $0xe50] sm:$0xff]  ;;  %v4879_v8 = vld [vmem:[#allocation5 + $0xc38] sm:$0xff] }
 0x9f1   : > { %4719 = vmatpush2.msra.mxu0 %v4636_v6  ;;  %4856 = vmatpush2.msra.mxu1 %v4773_v9  ;;  %v5018_v6 = vld [vmem:[#allocation5 + $0xe48] sm:$0xff]  ;;  %v4878_v9 = vld [vmem:[#allocation5 + $0xc30] sm:$0xff] }
 0x9f2   : > { %4720 = vmatprep.subr.mxu0 %v4635_v11  ;;  %4857 = vmatprep.subr.mxu1 %v4772_v12  ;;  %v4877_v11 = vld [vmem:[#allocation5 + $0xc28] sm:$0xff]  ;;  %v5016_v12 = vld [vmem:[#allocation5 + $0xe38] sm:$0xff] }
 0x9f3   : > { %4721 = vmatpush2.msra.mxu0 %v4634_v13  ;;  %4858 = vmatpush2.msra.mxu1 %v4771_v14  ;;  %v4876_v13 = vld [vmem:[#allocation5 + $0xc20] sm:$0xff]  ;;  %v5015_v14 = vld [vmem:[#allocation5 + $0xe30] sm:$0xff] }
 0x9f4   : > { %4722 = vmatprep.subr.mxu0 %v4633_v15  ;;  %4859 = vmatprep.subr.mxu1 %v4770_v16  ;;  %v4875_v15 = vld [vmem:[#allocation5 + $0xc18] sm:$0xff]  ;;  %v5014_v16 = vld [vmem:[#allocation5 + $0xe28] sm:$0xff] }
 0x9f5   : > { %4723 = vmatpush2.msra.mxu0 %v4632_v17  ;;  %4726 = vmatprep.mubr.f32.mxu0 %v4027_v10  ;;  %v5017_v10 = vld [vmem:[#allocation5 + $0xe40] sm:$0xff]  ;;  %v4874_v17 = vld [vmem:[#allocation5 + $0xc10] sm:$0xff] }
 0x9f6   : > { %4724 = vmatprep.subr.mxu0 %v4631_v19  ;;  %4860 = vmatpush2.msra.mxu1 %v4769_v20  ;;  %v4873_v19 = vld [vmem:[#allocation5 + $0xc08] sm:$0xff]  ;;  %v5012_v20 = vld [vmem:[#allocation5 + $0xe18] sm:$0xff] }
 0x9f7   : > { %4725 = vmatpush2.msra.mxu0 %v4630_v21  ;;  %4861 = vmatprep.subr.mxu1 %v4768_v22  ;;  %v4872_v21 = vld [vmem:[#allocation5 + $0xc00] sm:$0xff]  ;;  %v5011_v22 = vld [vmem:[#allocation5 + $0xe10] sm:$0xff] }
 0x9f8   : > { %4727 = vmatmul.mubr.f32.vlgmr.msra.gmra.mxu0 %v4025_v1  ;;  %4936 = vmatprep.subr.mxu0 %v4903_v23  ;;  %v4882_v1 = vld [vmem:[#allocation5 + $0xc50] sm:$0xff]  ;;  %v4935_v23 = vld [vmem:[#allocation5 + $0xdf8] sm:$0xff] }
 0x9f9   : > { %4862 = vmatpush2.msra.mxu1 %v4767_v25  ;;  %4863 = vmatprep.mubr.f32.mxu1 %v4033_v24  ;;  %v5010_v24 = vld [vmem:[#allocation5 + $0xe08] sm:$0xff]  ;;  %v4934_v25 = vld [vmem:[#allocation5 + $0xdf0] sm:$0xff] }
 0x9fa   : > { %4937 = vmatpush1.msra.mxu0 %v4902_v26  ;;  %4864 = vmatmul.mubr.f32.vlgmr.msra.gmra.mxu1 %v4031_v18  ;;  %v5013_v18 = vld [vmem:[#allocation5 + $0xe20] sm:$0xff] }
 0x9fb   : > { %4938 = vmatprep.subr.mxu0 %v4901_v27  ;;  %5073 = vmatprep.subr.mxu1 %v5040_v28  ;;  %v5009_v26 = vld [vmem:[#allocation5 + $0xe00] sm:$0xff]  ;;  %v4933_v27 = vld [vmem:[#allocation5 + $0xde8] sm:$0xff]  ;;  %v5072_v28 = vld [vmem:[#allocation5 + $0xff8] sm:$0xff] }
 0x9fc   : > { %4939 = vmatpush1.msra.mxu0 %v4900_v29  ;;  %5074 = vmatpush1.msra.mxu1 %v5039_v30  ;;  %v4932_v29 = vld [vmem:[#allocation5 + $0xde0] sm:$0xff]  ;;  %v5071_v30 = vld [vmem:[#allocation5 + $0xff0] sm:$0xff] }
 0x9fd   : > { %4940 = vmatprep.subr.mxu0 %v4899_v32  ;;  %5075 = vmatprep.subr.mxu1 %v5038_v33  ;;  %v4931_v32 = vld [vmem:[#allocation5 + $0xdd8] sm:$0xff]  ;;  %v5070_v33 = vld [vmem:[#allocation5 + $0xfe8] sm:$0xff] }
 0x9fe   : > { %4941 = vmatpush1.msra.mxu0 %v4898_v34  ;;  %5076 = vmatpush1.msra.mxu1 %v5037_v35  ;;  %v4930_v34 = vld [vmem:[#allocation5 + $0xdd0] sm:$0xff]  ;;  %v5069_v35 = vld [vmem:[#allocation5 + $0xfe0] sm:$0xff] }
 0x9ff   : > { %4942 = vmatprep.subr.mxu0 %v4897_v36  ;;  %5077 = vmatprep.subr.mxu1 %v5036_v37  ;;  %v4929_v36 = vld [vmem:[#allocation5 + $0xdc8] sm:$0xff]  ;;  %v5068_v37 = vld [vmem:[#allocation5 + $0xfd8] sm:$0xff] }
 0xa00   : > { %4943 = vmatpush1.msra.mxu0 %v4896_v39  ;;  %5078 = vmatpush1.msra.mxu1 %v5035_v40  ;;  %v4928_v39 = vld [vmem:[#allocation5 + $0xdc0] sm:$0xff]  ;;  %v5067_v40 = vld [vmem:[#allocation5 + $0xfd0] sm:$0xff] }
 0xa01   : > { %4944 = vmatprep.subr.mxu0 %v4895_v41  ;;  %5079 = vmatprep.subr.mxu1 %v5034_v42  ;;  %v4927_v41 = vld [vmem:[#allocation5 + $0xdb8] sm:$0xff]  ;;  %v5066_v42 = vld [vmem:[#allocation5 + $0xfc8] sm:$0xff] }
 0xa02   : > { %4945 = vmatpush1.msra.mxu0 %v4894_v43  ;;  %5080 = vmatpush1.msra.mxu1 %v5033_v44  ;;  %v4926_v43 = vld [vmem:[#allocation5 + $0xdb0] sm:$0xff]  ;;  %v5065_v44 = vld [vmem:[#allocation5 + $0xfc0] sm:$0xff] }
 0xa03   : > { %4946 = vmatprep.subr.mxu0 %v4893_v45  ;;  %5081 = vmatprep.subr.mxu1 %v5032_v46  ;;  %v4925_v45 = vld [vmem:[#allocation5 + $0xda8] sm:$0xff]  ;;  %v5064_v46 = vld [vmem:[#allocation5 + $0xfb8] sm:$0xff] }
 0xa04   : > { %4947 = vmatpush1.msra.mxu0 %v4892_v47  ;;  %5082 = vmatpush1.msra.mxu1 %v5031_v48  ;;  %v4924_v47 = vld [vmem:[#allocation5 + $0xda0] sm:$0xff]  ;;  %v5063_v48 = vld [vmem:[#allocation5 + $0xfb0] sm:$0xff] }
 0xa05   : > { %4948 = vmatprep.subr.mxu0 %v4891_v49  ;;  %5083 = vmatprep.subr.mxu1 %v5030_v50  ;;  %v4923_v49 = vld [vmem:[#allocation5 + $0xd98] sm:$0xff]  ;;  %v5062_v50 = vld [vmem:[#allocation5 + $0xfa8] sm:$0xff] }
 0xa06   : > { %4949 = vmatpush1.msra.mxu0 %v4890_v51  ;;  %5084 = vmatpush1.msra.mxu1 %v5029_v52  ;;  %v4922_v51 = vld [vmem:[#allocation5 + $0xd90] sm:$0xff]  ;;  %v5061_v52 = vld [vmem:[#allocation5 + $0xfa0] sm:$0xff] }
 0xa07   : > { %4950 = vmatprep.subr.mxu0 %v4889_v53  ;;  %5085 = vmatprep.subr.mxu1 %v5028_v31  ;;  %v4921_v53 = vld [vmem:[#allocation5 + $0xd88] sm:$0xff]  ;;  %v5060_v31 = vld [vmem:[#allocation5 + $0xf98] sm:$0xff] }
 0xa08   : > { %4951 = vmatpush1.msra.mxu0 %v4888_v54  ;;  %5086 = vmatpush1.msra.mxu1 %v5027_v55  ;;  %v4920_v54 = vld [vmem:[#allocation5 + $0xd80] sm:$0xff]  ;;  %v5059_v55 = vld [vmem:[#allocation5 + $0xf90] sm:$0xff] }
 0xa09   : > { %4952 = vmatprep.subr.mxu0 %v4887_v56  ;;  %5087 = vmatprep.subr.mxu1 %v5026_v57  ;;  %v4919_v56 = vld [vmem:[#allocation5 + $0xd78] sm:$0xff]  ;;  %v5058_v57 = vld [vmem:[#allocation5 + $0xf88] sm:$0xff] }
 0xa0a   : > { %4953 = vmatpush1.msra.mxu0 %v4886_v58  ;;  %5088 = vmatpush1.msra.mxu1 %v5025_v59  ;;  %v4918_v58 = vld [vmem:[#allocation5 + $0xd70] sm:$0xff]  ;;  %v5057_v59 = vld [vmem:[#allocation5 + $0xf80] sm:$0xff] }
 0xa0b   : > { %4954 = vmatprep.subr.mxu0 %v4885_v60  ;;  %5089 = vmatprep.subr.mxu1 %v5024_v38  ;;  %v4917_v60 = vld [vmem:[#allocation5 + $0xd68] sm:$0xff]  ;;  %v5056_v38 = vld [vmem:[#allocation5 + $0xf78] sm:$0xff] }
 0xa0c   : > { %4955 = vmatpush1.msra.mxu0 %v4884_v61  ;;  %5090 = vmatpush1.msra.mxu1 %v5023_v62  ;;  %v6144_v61 = vpop.f32.mrf.mxu1  ;;  %v4916_v62 = vld [vmem:[#allocation5 + $0xd60] sm:$0xff] }
 0xa0d   : > { %4956 = vmatprep.subr.mxu0 %v4883_v63  ;;  %5091 = vmatprep.subr.mxu1 %v5022_v0  ;;  %v5055_v63 = vld [vmem:[#allocation5 + $0xf70] sm:$0xff]  ;;  %v4915_v0 = vld [vmem:[#allocation5 + $0xd58] sm:$0xff] }
 0xa0e   : > { %4957 = vmatpush1.msra.mxu0 %v4882_v1  ;;  %5092 = vmatpush1.msra.mxu1 %v5021_v2  ;;  %v5054_v1 = vld [vmem:[#allocation5 + $0xf68] sm:$0xff]  ;;  %v4914_v2 = vld [vmem:[#allocation5 + $0xd50] sm:$0xff] }
 0xa0f   : > { %4958 = vmatprep.subr.mxu0 %v4881_v3  ;;  %5093 = vmatprep.subr.mxu1 %v5020_v4  ;;  %v5053_v3 = vld [vmem:[#allocation5 + $0xf60] sm:$0xff]  ;;  %v4913_v4 = vld [vmem:[#allocation5 + $0xd48] sm:$0xff] }
 0xa10   : > { %4959 = vmatpush1.msra.mxu0 %v4880_v5  ;;  %5094 = vmatpush1.msra.mxu1 %v5019_v7  ;;  %v5052_v5 = vld [vmem:[#allocation5 + $0xf58] sm:$0xff]  ;;  %v4039_v7 = vpop.f32.mrf.mxu1 }
 0xa11   : > { %4960 = vmatprep.subr.mxu0 %v4879_v8  ;;  %5095 = vmatprep.subr.mxu1 %v5018_v6  ;;  %v4912_v8 = vld [vmem:[#allocation5 + $0xd40] sm:$0xff]  ;;  %v5051_v6 = vld [vmem:[#allocation5 + $0xf50] sm:$0xff] }
 0xa12   : > { %4961 = vmatpush1.msra.mxu0 %v4878_v9  ;;  %5096 = vmatpush1.msra.mxu1 %v5017_v10  ;;  %v4911_v9 = vld [vmem:[#allocation5 + $0xd38] sm:$0xff]  ;;  %v5050_v10 = vld [vmem:[#allocation5 + $0xf48] sm:$0xff] }
 0xa13   : > { %4962 = vmatprep.subr.mxu0 %v4877_v11  ;;  %5097 = vmatprep.subr.mxu1 %v5016_v12  ;;  %v4910_v11 = vld [vmem:[#allocation5 + $0xd30] sm:$0xff]  ;;  %v5049_v12 = vld [vmem:[#allocation5 + $0xf40] sm:$0xff] }
 0xa14   : > { %4963 = vmatpush1.msra.mxu0 %v4876_v13  ;;  %5098 = vmatpush1.msra.mxu1 %v5015_v14  ;;  %v4043_v13 = vpop.f32.mrf.mxu1  ;;  %v4909_v14 = vld [vmem:[#allocation5 + $0xd28] sm:$0xff] }
 0xa15   : > { %4964 = vmatprep.subr.mxu0 %v4875_v15  ;;  %5099 = vmatprep.subr.mxu1 %v5014_v16  ;;  %v5048_v15 = vld [vmem:[#allocation5 + $0xf38] sm:$0xff]  ;;  %v4908_v16 = vld [vmem:[#allocation5 + $0xd20] sm:$0xff] }
 0xa16   : > { %4965 = vmatpush1.msra.mxu0 %v4874_v17  ;;  %5100 = vmatpush1.msra.mxu1 %v5013_v18  ;;  %v5047_v17 = vld [vmem:[#allocation5 + $0xf30] sm:$0xff]  ;;  %v4907_v18 = vld [vmem:[#allocation5 + $0xd18] sm:$0xff] }
 0xa17   : > { %4966 = vmatprep.subr.mxu0 %v4873_v19  ;;  %5101 = vmatprep.subr.mxu1 %v5012_v20  ;;  %v5046_v19 = vld [vmem:[#allocation5 + $0xf28] sm:$0xff]  ;;  %v4906_v20 = vld [vmem:[#allocation5 + $0xd10] sm:$0xff] }
 0xa18   : > { %4967 = vmatpush1.msra.mxu0 %v4872_v21  ;;  %5102 = vmatpush1.msra.mxu1 %v5011_v22  ;;  %v5045_v21 = vld [vmem:[#allocation5 + $0xf20] sm:$0xff]  ;;  %v4045_v22 = vpop.f32.mrf.mxu1 }
 0xa19   : > { %4968 = vmatprep.subr.mxu0 %v4935_v23  ;;  %5103 = vmatprep.subr.mxu1 %v5010_v24  ;;  %v4905_v23 = vld [vmem:[#allocation5 + $0xd08] sm:$0xff]  ;;  %v5044_v24 = vld [vmem:[#allocation5 + $0xf18] sm:$0xff] }
 0xa1a   : > { %4969 = vmatpush2.msra.mxu0 %v4934_v25  ;;  %5104 = vmatpush1.msra.mxu1 %v5009_v26  ;;  %v4904_v25 = vld [vmem:[#allocation5 + $0xd00] sm:$0xff]  ;;  %v5043_v26 = vld [vmem:[#allocation5 + $0xf10] sm:$0xff] }
 0xa1b   : > { %4970 = vmatprep.subr.mxu0 %v4933_v27  ;;  %5105 = vmatprep.subr.mxu1 %v5072_v28  ;;  %v5042_v27 = vld [vmem:[#allocation5 + $0xf08] sm:$0xff]  ;;  %v5177_v28 = vld [vmem:[#allocation5 + $0x10f8] sm:$0xff] }
 0xa1c   : > { %4971 = vmatpush2.msra.mxu0 %v4932_v29  ;;  %5106 = vmatpush2.msra.mxu1 %v5071_v30  ;;  %v6146_v29 = vpop.f32.mrf.mxu1  ;;  %v5041_v30 = vld [vmem:[#allocation5 + $0xf00] sm:$0xff] }
 0xa1d   : > { %4972 = vmatprep.subr.mxu0 %v4931_v32  ;;  %5107 = vmatprep.subr.mxu1 %v5070_v33  ;;  %v5176_v32 = vld [vmem:[#allocation5 + $0x10f0] sm:$0xff]  ;;  %v5175_v33 = vld [vmem:[#allocation5 + $0x10e8] sm:$0xff] }
 0xa1e   : > { %4973 = vmatpush2.msra.mxu0 %v4930_v34  ;;  %5108 = vmatpush2.msra.mxu1 %v5069_v35  ;;  %v5174_v34 = vld [vmem:[#allocation5 + $0x10e0] sm:$0xff]  ;;  %v4051_v35 = vpop.f32.mrf.mxu1 }
 0xa1f   : > { %4974 = vmatprep.subr.mxu0 %v4929_v36  ;;  %5109 = vmatprep.subr.mxu1 %v5068_v37  ;;  %v5173_v36 = vld [vmem:[#allocation5 + $0x10d8] sm:$0xff]  ;;  %v5172_v37 = vld [vmem:[#allocation5 + $0x10d0] sm:$0xff] }
 0xa20   : > { %4975 = vmatpush2.msra.mxu0 %v4928_v39  ;;  %5110 = vmatpush2.msra.mxu1 %v5067_v40  ;;  %v5171_v39 = vld [vmem:[#allocation5 + $0x10c8] sm:$0xff]  ;;  %v5170_v40 = vld [vmem:[#allocation5 + $0x10c0] sm:$0xff] }
 0xa21   : > { %4976 = vmatprep.subr.mxu0 %v4927_v41  ;;  %5111 = vmatprep.subr.mxu1 %v5066_v42  ;;  %v5169_v41 = vld [vmem:[#allocation5 + $0x10b8] sm:$0xff]  ;;  %v5168_v42 = vld [vmem:[#allocation5 + $0x10b0] sm:$0xff] }
 0xa22   : > { %4977 = vmatpush2.msra.mxu0 %v4926_v43  ;;  %5112 = vmatpush2.msra.mxu1 %v5065_v44  ;;  %v5167_v43 = vld [vmem:[#allocation5 + $0x10a8] sm:$0xff]  ;;  %v5166_v44 = vld [vmem:[#allocation5 + $0x10a0] sm:$0xff] }
 0xa23   : > { %4978 = vmatprep.subr.mxu0 %v4925_v45  ;;  %5113 = vmatprep.subr.mxu1 %v5064_v46  ;;  %v5165_v45 = vld [vmem:[#allocation5 + $0x1098] sm:$0xff]  ;;  %v5164_v46 = vld [vmem:[#allocation5 + $0x1090] sm:$0xff] }
 0xa24   : > { %4979 = vmatpush2.msra.mxu0 %v4924_v47  ;;  %5114 = vmatpush2.msra.mxu1 %v5063_v48  ;;  %v5163_v47 = vld [vmem:[#allocation5 + $0x1088] sm:$0xff]  ;;  %v5162_v48 = vld [vmem:[#allocation5 + $0x1080] sm:$0xff] }
 0xa25   : > { %4980 = vmatprep.subr.mxu0 %v4923_v49  ;;  %5115 = vmatprep.subr.mxu1 %v5062_v50  ;;  %v5161_v49 = vld [vmem:[#allocation5 + $0x1078] sm:$0xff]  ;;  %v5160_v50 = vld [vmem:[#allocation5 + $0x1070] sm:$0xff] }
 0xa26   : > { %4981 = vmatpush2.msra.mxu0 %v4922_v51  ;;  %5116 = vmatpush2.msra.mxu1 %v5061_v52  ;;  %v5159_v51 = vld [vmem:[#allocation5 + $0x1068] sm:$0xff]  ;;  %v5158_v52 = vld [vmem:[#allocation5 + $0x1060] sm:$0xff] }
 0xa27   : > { %4982 = vmatprep.subr.mxu0 %v4921_v53  ;;  %5117 = vmatprep.subr.mxu1 %v5060_v31  ;;  %v5157_v53 = vld [vmem:[#allocation5 + $0x1058] sm:$0xff]  ;;  %v5156_v31 = vld [vmem:[#allocation5 + $0x1050] sm:$0xff] }
 0xa28   : > { %4983 = vmatpush2.msra.mxu0 %v4920_v54  ;;  %5118 = vmatpush2.msra.mxu1 %v5059_v55  ;;  %v5155_v54 = vld [vmem:[#allocation5 + $0x1048] sm:$0xff]  ;;  %v5154_v55 = vld [vmem:[#allocation5 + $0x1040] sm:$0xff] }
 0xa29   : > { %4984 = vmatprep.subr.mxu0 %v4919_v56  ;;  %5119 = vmatprep.subr.mxu1 %v5058_v57  ;;  %v5153_v56 = vld [vmem:[#allocation5 + $0x1038] sm:$0xff]  ;;  %v5152_v57 = vld [vmem:[#allocation5 + $0x1030] sm:$0xff] }
 0xa2a   : > { %4985 = vmatpush2.msra.mxu0 %v4918_v58  ;;  %5120 = vmatpush2.msra.mxu1 %v5057_v59  ;;  %v5151_v58 = vld [vmem:[#allocation5 + $0x1028] sm:$0xff]  ;;  %v5150_v59 = vld [vmem:[#allocation5 + $0x1020] sm:$0xff] }
 0xa2b   : > { %4986 = vmatprep.subr.mxu0 %v4917_v60  ;;  %5121 = vmatprep.subr.mxu1 %v5056_v38  ;;  %v5149_v60 = vld [vmem:[#allocation5 + $0x1018] sm:$0xff]  ;;  %v5148_v38 = vld [vmem:[#allocation5 + $0x1010] sm:$0xff] }
 0xa2c   : > { %4987 = vmatpush2.msra.mxu0 %v4916_v62  ;;  %5122 = vmatpush2.msra.mxu1 %v5055_v63  ;;  %v5146_v62 = vld [vmem:[#allocation5 + $0x1000] sm:$0xff]  ;;  %v5209_v63 = vld [vmem:[#allocation5 + $0x11f8] sm:$0xff] }
 0xa2d   : > { %4988 = vmatprep.subr.mxu0 %v4915_v0  ;;  %5123 = vmatprep.subr.mxu1 %v5054_v1  ;;  %v5208_v0 = vld [vmem:[#allocation5 + $0x11f0] sm:$0xff]  ;;  %v5207_v1 = vld [vmem:[#allocation5 + $0x11e8] sm:$0xff] }
 0xa2e   : > { %4989 = vmatpush2.msra.mxu0 %v4914_v2  ;;  %5124 = vmatpush2.msra.mxu1 %v5053_v3  ;;  %v5206_v2 = vld [vmem:[#allocation5 + $0x11e0] sm:$0xff]  ;;  %v5205_v3 = vld [vmem:[#allocation5 + $0x11d8] sm:$0xff] }
 0xa2f   : > { %4990 = vmatprep.subr.mxu0 %v4913_v4  ;;  %5125 = vmatprep.subr.mxu1 %v5052_v5  ;;  %v5204_v4 = vld [vmem:[#allocation5 + $0x11d0] sm:$0xff]  ;;  %v5203_v5 = vld [vmem:[#allocation5 + $0x11c8] sm:$0xff] }
 0xa30   : > { %4991 = vmatpush2.msra.mxu0 %v4912_v8  ;;  %5126 = vmatpush2.msra.mxu1 %v5051_v6  ;;  %v5201_v8 = vld [vmem:[#allocation5 + $0x11b8] sm:$0xff]  ;;  %v5200_v6 = vld [vmem:[#allocation5 + $0x11b0] sm:$0xff] }
 0xa31   : > { %4992 = vmatprep.subr.mxu0 %v4911_v9  ;;  %5127 = vmatprep.subr.mxu1 %v5050_v10  ;;  %v5199_v9 = vld [vmem:[#allocation5 + $0x11a8] sm:$0xff]  ;;  %v5198_v10 = vld [vmem:[#allocation5 + $0x11a0] sm:$0xff] }
 0xa32   : > { %4993 = vmatpush2.msra.mxu0 %v4910_v11  ;;  %5128 = vmatpush2.msra.mxu1 %v5049_v12  ;;  %v5197_v11 = vld [vmem:[#allocation5 + $0x1198] sm:$0xff]  ;;  %v5196_v12 = vld [vmem:[#allocation5 + $0x1190] sm:$0xff] }
 0xa33   : > { %4994 = vmatprep.subr.mxu0 %v4909_v14  ;;  %5129 = vmatprep.subr.mxu1 %v5048_v15  ;;  %v5194_v14 = vld [vmem:[#allocation5 + $0x1180] sm:$0xff]  ;;  %v5193_v15 = vld [vmem:[#allocation5 + $0x1178] sm:$0xff] }
 0xa34   : > { %4995 = vmatpush2.msra.mxu0 %v4908_v16  ;;  %5130 = vmatpush2.msra.mxu1 %v5047_v17  ;;  %v5192_v16 = vld [vmem:[#allocation5 + $0x1170] sm:$0xff]  ;;  %v5191_v17 = vld [vmem:[#allocation5 + $0x1168] sm:$0xff] }
 0xa35   : > { %4996 = vmatprep.subr.mxu0 %v4907_v18  ;;  %5131 = vmatprep.subr.mxu1 %v5046_v19  ;;  %v5190_v18 = vld [vmem:[#allocation5 + $0x1160] sm:$0xff]  ;;  %v5189_v19 = vld [vmem:[#allocation5 + $0x1158] sm:$0xff] }
 0xa36   : > { %4997 = vmatpush2.msra.mxu0 %v4906_v20  ;;  %5132 = vmatpush2.msra.mxu1 %v5045_v21  ;;  %v5188_v20 = vld [vmem:[#allocation5 + $0x1150] sm:$0xff]  ;;  %v5187_v21 = vld [vmem:[#allocation5 + $0x1148] sm:$0xff] }
 0xa37   : > { %4998 = vmatprep.subr.mxu0 %v4905_v23  ;;  %5133 = vmatprep.subr.mxu1 %v5044_v24  ;;  %v5185_v23 = vld [vmem:[#allocation5 + $0x1138] sm:$0xff]  ;;  %v5184_v24 = vld [vmem:[#allocation5 + $0x1130] sm:$0xff] }
 0xa38   : > { %4999 = vmatpush2.msra.mxu0 %v4904_v25  ;;  %5000 = vmatprep.mubr.f32.mxu0 %v4039_v7  ;;  %v5202_v7 = vld [vmem:[#allocation5 + $0x11c0] sm:$0xff]  ;;  %v5183_v25 = vld [vmem:[#allocation5 + $0x1128] sm:$0xff] }
 0xa39   : > { %5134 = vmatpush2.msra.mxu1 %v5043_v26  ;;  %5001 = vmatmul.mubr.f32.vlgmr.msra.gmra.mxu0 %v6144_v61  ;;  %v5147_v61 = vld [vmem:[#allocation5 + $0x1008] sm:$0xff]  ;;  %v5182_v26 = vld [vmem:[#allocation5 + $0x1120] sm:$0xff] }
 0xa3a   : > { %5135 = vmatprep.subr.mxu1 %v5042_v27  ;;  %5210 = vmatprep.subr.mxu0 %v5177_v28  ;;  %v5181_v27 = vld [vmem:[#allocation5 + $0x1118] sm:$0xff]  ;;  %v5180_v28 = vld [vmem:[#allocation5 + $0x1110] sm:$0xff] }
 0xa3b   : > { %5136 = vmatpush2.msra.mxu1 %v5041_v30  ;;  %5137 = vmatprep.mubr.f32.mxu1 %v4045_v22  ;;  %v5186_v22 = vld [vmem:[#allocation5 + $0x1140] sm:$0xff]  ;;  %v5179_v30 = vld [vmem:[#allocation5 + $0x1108] sm:$0xff] }
 0xa3c   : > { %5211 = vmatpush1.msra.mxu0 %v5176_v32  ;;  %5138 = vmatmul.mubr.f32.vlgmr.msra.gmra.mxu1 %v4043_v13  ;;  %v5195_v13 = vld [vmem:[#allocation5 + $0x1188] sm:$0xff]  ;;  %v5178_v32 = vld [vmem:[#allocation5 + $0x1100] sm:$0xff] }
 0xa3d   : > { %5212 = vmatprep.subr.mxu0 %v5175_v33  ;;  %5274 = vmatprep.mubr.f32.mxu0 %v4051_v35  ;;  %v4248_v33 = vpop.f32.mrf.mxu0 }
 0xa3e   : > { %5213 = vmatpush1.msra.mxu0 %v5174_v34  ;;  %v4319_v34 = vpop.f32.mrf.mxu1 }
 0xa3f   : > { %5214 = vmatprep.subr.mxu0 %v5173_v36  ;;  %v4250_v35 = vpop.f32.mrf.mxu0 }
 0xa40   : > { %5215 = vmatpush1.msra.mxu0 %v5172_v37  ;;  %v4321_v37 = vpop.f32.mrf.mxu1 }
 0xa41   : > { %5216 = vmatprep.subr.mxu0 %v5171_v39  ;;  %v4320_v39 = vadd.f32 %v4319_v34, %v4248_v33 }
 0xa42   : > { %5217 = vmatpush1.msra.mxu0 %v5170_v40 }
 0xa43   : > { %5218 = vmatprep.subr.mxu0 %v5169_v41 }
 0xa44   : > { %5219 = vmatpush1.msra.mxu0 %v5168_v42  ;;  %v4322_v42 = vadd.f32 %v4321_v37, %v4250_v35 }
 0xa45   : > { %5220 = vmatprep.subr.mxu0 %v5167_v43 }
 0xa46   : > { %5221 = vmatpush1.msra.mxu0 %v5166_v44 }
 0xa47   : > { %5222 = vmatprep.subr.mxu0 %v5165_v45 }
 0xa48   : > { %5223 = vmatpush1.msra.mxu0 %v5164_v46 }
 0xa49   : > { %5224 = vmatprep.subr.mxu0 %v5163_v47 }
 0xa4a   : > { %5225 = vmatpush1.msra.mxu0 %v5162_v48 }
 0xa4b   : > { %5226 = vmatprep.subr.mxu0 %v5161_v49 }
 0xa4c   : > { %5227 = vmatpush1.msra.mxu0 %v5160_v50 }
 0xa4d   : > { %5228 = vmatprep.subr.mxu0 %v5159_v51 }
 0xa4e   : > { %5229 = vmatpush1.msra.mxu0 %v5158_v52 }
 0xa4f   : > { %5230 = vmatprep.subr.mxu0 %v5157_v53 }
 0xa50   : > { %5231 = vmatpush1.msra.mxu0 %v5156_v31 }
 0xa51   : > { %5232 = vmatprep.subr.mxu0 %v5155_v54 }
 0xa52   : > { %5233 = vmatpush1.msra.mxu0 %v5154_v55 }
 0xa53   : > { %5234 = vmatprep.subr.mxu0 %v5153_v56 }
 0xa54   : > { %5235 = vmatpush1.msra.mxu0 %v5152_v57 }
 0xa55   : > { %5236 = vmatprep.subr.mxu0 %v5151_v58 }
 0xa56   : > { %5237 = vmatpush1.msra.mxu0 %v5150_v59 }
 0xa57   : > { %5238 = vmatprep.subr.mxu0 %v5149_v60 }
 0xa58   : > { %5239 = vmatpush1.msra.mxu0 %v5148_v38 }
 0xa59   : > { %5240 = vmatprep.subr.mxu0 %v5147_v61 }
 0xa5a   : > { %5241 = vmatpush1.msra.mxu0 %v5146_v62 }
 0xa5b   : > { %5242 = vmatprep.subr.mxu0 %v5209_v63 }
 0xa5c   : > { %5243 = vmatpush2.msra.mxu0 %v5208_v0 }
 0xa5d   : > { %5244 = vmatprep.subr.mxu0 %v5207_v1 }
 0xa5e   : > { %5245 = vmatpush2.msra.mxu0 %v5206_v2 }
 0xa5f   : > { %5246 = vmatprep.subr.mxu0 %v5205_v3 }
 0xa60   : > { %5247 = vmatpush2.msra.mxu0 %v5204_v4 }
 0xa61   : > { %5248 = vmatprep.subr.mxu0 %v5203_v5 }
 0xa62   : > { %5249 = vmatpush2.msra.mxu0 %v5202_v7 }
 0xa63   : > { %5250 = vmatprep.subr.mxu0 %v5201_v8 }
 0xa64   : > { %5251 = vmatpush2.msra.mxu0 %v5200_v6 }
 0xa65   : > { %5252 = vmatprep.subr.mxu0 %v5199_v9 }
 0xa66   : > { %5253 = vmatpush2.msra.mxu0 %v5198_v10 }
 0xa67   : > { %5254 = vmatprep.subr.mxu0 %v5197_v11 }
 0xa68   : > { %5255 = vmatpush2.msra.mxu0 %v5196_v12 }
 0xa69   : > { %5256 = vmatprep.subr.mxu0 %v5195_v13 }
 0xa6a   : > { %5257 = vmatpush2.msra.mxu0 %v5194_v14 }
 0xa6b   : > { %5258 = vmatprep.subr.mxu0 %v5193_v15 }
 0xa6c   : > { %5259 = vmatpush2.msra.mxu0 %v5192_v16 }
 0xa6d   : > { %5260 = vmatprep.subr.mxu0 %v5191_v17 }
 0xa6e   : > { %5261 = vmatpush2.msra.mxu0 %v5190_v18 }
 0xa6f   : > { %5262 = vmatprep.subr.mxu0 %v5189_v19 }
 0xa70   : > { %5263 = vmatpush2.msra.mxu0 %v5188_v20 }
 0xa71   : > { %5264 = vmatprep.subr.mxu0 %v5187_v21 }
 0xa72   : > { %5265 = vmatpush2.msra.mxu0 %v5186_v22 }
 0xa73   : > { %5266 = vmatprep.subr.mxu0 %v5185_v23 }
 0xa74   : > { %5267 = vmatpush2.msra.mxu0 %v5184_v24 }
 0xa75   : > { %5268 = vmatprep.subr.mxu0 %v5183_v25 }
 0xa76   : > { %5269 = vmatpush2.msra.mxu0 %v5182_v26  ;;  %v4591_v41 = vpop.f32.mrf.mxu1 }
 0xa77   : > { %5270 = vmatprep.subr.mxu0 %v5181_v27 }
 0xa78   : > { %5271 = vmatpush2.msra.mxu0 %v5180_v28  ;;  %v4454_v36 = vpop.f32.mrf.mxu0  ;;  %v4593_v46 = vpop.f32.mrf.mxu1 }
 0xa79   : > { %5272 = vmatprep.subr.mxu0 %v5179_v30  ;;  %v4459_v43 = vadd.f32 %v4454_v36, %v4320_v39 }
 0xa7a   : > { %5273 = vmatpush2.msra.mxu0 %v5178_v32  ;;  %v4456_v40 = vpop.f32.mrf.mxu0 }
 0xa7b   : > { %5275 = vmatmul.mubr.f32.vlgmr.msra.gmra.mxu0 %v6146_v29  ;;  %v4460_v45 = vadd.f32 %v4456_v40, %v4322_v42  ;;  %v4596_v47 = vadd.f32 %v4591_v41, %v4459_v43 }
 0xa7d   : > { %v4597_v50 = vadd.f32 %v4593_v46, %v4460_v45 }
 0xab8   : > { %v4728_v44 = vpop.f32.mrf.mxu0 }
 0xab9   : > { %v4733_v29 = vadd.f32 %v4728_v44, %v4596_v47 }
 0xaba   : > { %v4730_v48 = vpop.f32.mrf.mxu0  ;;  %v4865_v49 = vpop.f32.mrf.mxu1 }
 0xabb   : > { %v4734_v52 = vadd.f32 %v4730_v48, %v4597_v50  ;;  %v4870_v31 = vadd.f32 %v4865_v49, %v4733_v29 }
 0xabc   : > { %v4867_v53 = vpop.f32.mrf.mxu1 }
 0xabd   : > { %v4871_v56 = vadd.f32 %v4867_v53, %v4734_v52 }
 0xaf9   : > { %v5002_v51 = vpop.f32.mrf.mxu0 }
 0xafa   : > { %v5007_v57 = vadd.f32 %v5002_v51, %v4870_v31 }
 0xafb   : > { %v5004_v54 = vpop.f32.mrf.mxu0 }
 0xafc   : > { %v5139_v55 = vpop.f32.mrf.mxu1  ;;  %v5008_v58 = vadd.f32 %v5004_v54, %v4871_v56 }
 0xafd   : > { %v5144_v60 = vadd.f32 %v5139_v55, %v5007_v57 }
 0xafe   : > { %v5141_v59 = vpop.f32.mrf.mxu1 }
 0xaff   : > { %v5145_v61 = vadd.f32 %v5141_v59, %v5008_v58 }
 0xb3b   : > { %v5276_v38 = vpop.f32.mrf.mxu0 }
 0xb3c   : > { %v5281_v62 = vadd.f32 %v5276_v38, %v5144_v60 }
 0xb3d   : > { %v5278_v63 = vpop.f32.mrf.mxu0 }
 0xb3e   : > { %5283 = vst [vmem:[%s5857_s0 + $0x30] sm:$0xff] %v5281_v62  ;;  %v5282_v0 = vadd.f32 %v5278_v63, %v5145_v61 }
 0xb40   : > { %5284 = vst [vmem:[%s5857_s0 + $0x38] sm:$0xff] %v5282_v0 }
 0xb41   : > { %5575 = shalt.err (!%p5572_p0)
}
 0xb42   : > { %s5576_s0 = scalar_lea.hbm %s6155_s29, 1024  ;;  %s5580_s30 = scalar_lea.hbm %s6273_s18, 2048 }
 0xb43   : > { %p5577_p5 = scmp.ne.s32.totalorder %s6155_s29, %s5576_s0  ;;  %p5581_p1 = scmp.lt.s32.totalorder %s6155_s29, %s6273_s18 }
 0xb44   : > { %p5582_p4 = scmp.lt.s32.totalorder %s5580_s30, %s5576_s0 }
 0xb45   : > { %p5578_p9 = pnand %p5577_p5, %p6274_p3 }
 0xb46   : > { %p5583_p6 = por %p5582_p4, %p5581_p1 }
 0xb47   : > { %p5579_p12 = pneg %p5578_p9 }
 0xb49   : > { %p5584_p8 = pnand %p5583_p6, %p5579_p12 }
 0xb4b   : > { %5587 = shalt.err (!%p5584_p8)
}
 0xb4c   : > { %s5639_s1 = smov 256   ;;  %s5640_s28 = smov 16  }
 0xb4d   : > { %s6275_s6 = scalar_lea.sflag [#allocation4], %s5838_s22 }
 0xb4e   : > { %5445 = dma.vmem_to_hbm [thread:$0]  (%p6274_p3), %s6157_s17, 1024, %s6155_s29, %s6275_s6, %s5639_s1, %s5639_s1, %s5640_s28  }
 0xb4f PF: > { %s6276_s9 = sld [smem:[#allocation11_spill]]  ;;  %p6279_p7 = scmp.ge.s32.totalorder %s5630_s27, 2 }
 0xb50   : > { %s6277_s23 = sld [smem:[#allocation12_spill]] }
 0xb55   : > { %s5314_s3 = sand.u32 1, %s6276_s9  }
 0xb56   : > { %p6278_p11 = scmp.ne.s32.totalorder %s6277_s23, 0  ;;  %s5315_s2 = scalar_lea.sflag [#allocation4], %s5314_s3 }
 0xb58   : > { %p5456_p10 = pnand %p6279_p7, %p6278_p11 }
 0xb5a   : > { %p5457_p2 = pneg %p5456_p10 }
 0xb5c   : > { %5613 = dma.done.wait (%p5457_p2), %s5315_s2, 1024  }
 0xb5d   : > { %5615 = vsyncadd (%p5457_p2), %s5315_s2, 4294966272  ;;  %s6280_s27 = sld [smem:[#allocation13_spill]]  ;;  %s6282_s24 = smov %s5622_s25 }
 0xb5e   : > { %s6281_s0 = sld [smem:[#allocation14_spill]]  ;;  %s6283_s25 = smov %s5626_s26 }
 0xb63   : > { %p31_p13 = scmp.ge.s32.totalorder %s6280_s27, 4  }
 0xb64   : > { %s6284_s26 = smov %s6281_s0 }
 0xb65   :  { %33 = sbr.rel (!%p31_p13) target bundleno = 18 (0x12), region = 145 }
 0xb6a   :  { %5320 = vsyncpa [#allocation3], 1 }
 0xb6b   :  { %5322 = vsyncpa [#allocation3 + $0x1], 1 }
 0xb6c   :  { %5323 = vsyncpa [#allocation6], 1 }
 0xb6d   :  { %5324 = vsyncpa [#allocation4], 1 }
 0xb6e   :  { %5326 = vsyncpa [#allocation4 + $0x1], 1 }

</bundles_post_ra>
